<compile_context>
chip_gen: v5e
topology: v5e:2x2
jax: 0.10.0
libtpu: 0.0.40
codegen_flags: <defaults>
</compile_context>

<pallas_src>
import functools

import jax
import jax.numpy as jnp
from jax import lax
from jax.experimental import pallas as pl
from jax.experimental.pallas import tpu as pltpu

LANE = 128            # TPU lane width — hidden/class/input dims padded to this
SUBLANE = 8           # f32 sublane count — minimum batch block size
NEG_BIG = -1e30       # "minus infinity" bias for padded class logits (keep f32!)
UNROLL = 8            # partial unroll of the recurrent time loop
MAX_PROJ_CHUNKS = 16  # cap on statically-unrolled projection windows per layer


def _round_up(x, m):
    return (x + m - 1) // m * m


# ----------------------------------------------------------------------------
# Per-TPU-generation configuration & block-size derivation
# ----------------------------------------------------------------------------
def _tpu_config():
    """Batch-block target, VMEM budget and min grid length per TPU generation."""
    kind = ""
    try:
        kind = jax.devices()[0].device_kind.lower()
    except Exception:
        pass
    if "v7" in kind or "7x" in kind:
        # v7x: 64 MiB VMEM per TensorCore, 2 TCs/chip -> prefer >=2 batch blocks.
        return {"target_bb": 128, "vmem_limit": 48 * 1024 * 1024, "min_blocks": 2}
    if "v6" in kind:
        # v6e: 128 MiB VMEM, 256x256 MXU.
        return {"target_bb": 256, "vmem_limit": 100 * 1024 * 1024, "min_blocks": 1}
    if "v5e" in kind or "v5 lite" in kind or "v5lite" in kind:
        return {"target_bb": 128, "vmem_limit": 100 * 1024 * 1024, "min_blocks": 1}
    # Unknown / other generations: conservative defaults.
    return {"target_bb": 128, "vmem_limit": 64 * 1024 * 1024, "min_blocks": 1}


def _pick_time_window(T, Bb, G):
    """Time-window length for the streamed input projection (gx scratch)."""
    tw = max(1, (2 * 1024 * 1024) // (Bb * G * 4))   # ~2 MiB of f32 gate pre-acts
    tw = max(tw, pl.cdiv(T, MAX_PROJ_CHUNKS))        # bound static chunk count
    return min(T, tw)


def _vmem_bytes(Bb, T, Tw, D0p, U, G, Cp, depth, n_bufs, buf_bytes):
    """Rough per-grid-step VMEM footprint estimate (bytes)."""
    cd = 2                                            # bf16 compute dtype
    total = T * Bb * D0p * cd * 2                     # x block (double-buffered)
    total += T * Bb * Cp * 4 * 2                      # out block (double-buffered)
    w, d_in = 0, D0p
    for _ in range(depth):
        w += (d_in * G + U * G) * cd + 2 * G * 4
        d_in = U
    w += U * Cp * cd + Cp * 4
    total += 2 * w                                    # weights (double-buffered)
    total += Tw * Bb * G * 4                          # gx scratch (f32)
    total += n_bufs * T * Bb * U * buf_bytes          # hidden ping/pong buffers
    return total


def _choose_blocking(B, T, D0p, U, Cp, depth, cfg):
    """Pick (batch block, projection time window, hidden-buffer dtype)."""
    G = 3 * U
    n_bufs = min(2, depth - 1)
    budget = int(cfg["vmem_limit"] * 0.75)

    def mk(nb):
        req = pl.cdiv(B, nb)
        if req <= SUBLANE:              # tiny batch: aligned f32 (8,128) tiles
            return SUBLANE, jnp.float32, 4
        # 16-row-aligned batch block -> aligned bf16 packed stores.
        return _round_up(req, 16), jnp.bfloat16, 2

    n_blocks = max(1, pl.cdiv(B, cfg["target_bb"]))
    if cfg["min_blocks"] > n_blocks and B >= 4 * SUBLANE:
        n_blocks = cfg["min_blocks"]    # keep both v7x TensorCores busy

    b_blk, buf_dtype, buf_bytes = mk(n_blocks)
    tw = _pick_time_window(T, b_blk, G)
    # Shrink the batch block until the resident tile fits the VMEM budget.
    while (b_blk > SUBLANE and
           _vmem_bytes(b_blk, T, tw, D0p, U, G, Cp, depth, n_bufs, buf_bytes)
           > budget):
        n_blocks += 1
        b_blk, buf_dtype, buf_bytes = mk(n_blocks)
        tw = _pick_time_window(T, b_blk, G)
    return b_blk, tw, buf_dtype


# ----------------------------------------------------------------------------
# Fused Pallas kernel: GRU stack (flips + residuals) + Linear + log_softmax
# ----------------------------------------------------------------------------
def make_fused_kernel(*, depth, T, Tw, Bb, U, G, Cp, n_bufs,
                      compute_dtype, buf_dtype, unroll):
    """Kernel ref layout:
      inputs : x (T,Bb,D0p), then per layer (W_ih^T, W_hh^T, b_ih, b_hh),
               then W_out^T, b_out
      output : log-probs (T, Bb, Cp)
      scratch: gx (Tw*Bb, G) f32, n_bufs hidden ping/pong buffers (T*Bb, U)
    """
    n_chunks = pl.cdiv(T, Tw)

    def kernel(x_ref, *args):
        layer_refs = [args[4 * l: 4 * l + 4] for l in range(depth)]
        w_out_ref = args[4 * depth]
        b_out_ref = args[4 * depth + 1]
        out_ref = args[4 * depth + 2]
        gx_ref = args[4 * depth + 3]
        bufs = args[4 * depth + 4:]

        def row(idx):
            r = idx * Bb
            return r if isinstance(r, int) else pl.multiple_of(r, Bb)

        for layer in range(depth):
            wih_ref, whh_ref, bih_ref, bhh_ref = layer_refs[layer]
            is_first = layer == 0
            is_last = layer == depth - 1
            src_buf = None if is_first else bufs[(layer - 1) % n_bufs]
            dst_buf = None if is_last else bufs[layer % n_bufs]

            h = jnp.zeros((Bb, U), jnp.float32)
            for c in range(n_chunks):
                t0 = c * Tw
                Tc = min(Tw, T - t0)
                # Source (previous-layer-frame) time range of this window:
                # layers > 0 consume the previous layer's output time-reversed.
                s_lo = t0 if is_first else (T - t0 - Tc)

                # ---- Hoisted input projection, streamed per time window:
                #      ONE (Tc*Bb, d_in)x(d_in, 3U) MXU matmul with b_ih folded
                #      in; the sequential loop below only does h @ W_hh. ----
                if is_first:
                    x_win = x_ref[pl.ds(s_lo, Tc), :, :]
                    x_flat = x_win.reshape(Tc * Bb, x_ref.shape[-1])
                else:
                    x_flat = src_buf[pl.ds(row(s_lo), Tc * Bb), :]
                gx_ref[pl.ds(0, Tc * Bb), :] = (
                    jnp.dot(x_flat.astype(compute_dtype), wih_ref[...],
                            preferred_element_type=jnp.float32)
                    + bih_ref[...])

                def step(j, h, *, t0=t0, Tc=Tc, is_first=is_first,
                         is_last=is_last, src_buf=src_buf, dst_buf=dst_buf,
                         whh_ref=whh_ref, bhh_ref=bhh_ref):
                    t = t0 + j
                    s = t if is_first else (T - 1 - t)     # previous-layer index
                    loc = j if is_first else (Tc - 1 - j)  # row inside gx window
                    gx = gx_ref[pl.ds(row(loc), Bb), :]    # (Bb, 3U) f32
                    # TODO(synk): hold W_hh in MXU weight registers across the T
                    # steps via pltpu.matmul_push_rhs / matmul_acc_lhs (v7x MRB)
                    # instead of re-pushing the RHS every step.
                    gh = (jnp.dot(h.astype(compute_dtype), whh_ref[...],
                                  preferred_element_type=jnp.float32)
                          + bhh_ref[...])
                    r = jax.nn.sigmoid(gx[:, :U] + gh[:, :U])        # f32 gates
                    z = jax.nn.sigmoid(gx[:, U:2 * U] + gh[:, U:2 * U])
                    n = jnp.tanh(gx[:, 2 * U:] + r * gh[:, 2 * U:])
                    h_new = (1.0 - z) * n + z * h
                    if is_first:
                        out_t = h_new
                    else:
                        # Fused residual: out = flipped + gru(flipped)
                        out_t = (src_buf[pl.ds(row(s), Bb), :]
                                 .astype(jnp.float32) + h_new)
                    if is_last:
                        # ---- Fused classifier head: Linear + log_softmax.
                        #      Padded class columns carry a -1e30 f32 bias so
                        #      the normalization only sees the real classes.
                        #      Written in final (post-reverse) time order. ----
                        logits = (jnp.dot(out_t.astype(compute_dtype),
                                          w_out_ref[...],
                                          preferred_element_type=jnp.float32)
                                  + b_out_ref[...])
                        m = jnp.max(logits, axis=-1, keepdims=True)
                        sh = logits - m
                        lse = jnp.log(jnp.sum(jnp.exp(sh), axis=-1,
                                              keepdims=True))
                        d = T - 1 - t
                        out_ref[pl.ds(d, 1), :, :] = (sh - lse).reshape(1, Bb, Cp)
                    else:
                        # Store in this layer's natural (flipped) frame; the
                        # next layer reads it reversed again.
                        dst_buf[pl.ds(row(t), Bb), :] = out_t.astype(buf_dtype)
                    return h_new

                # Partial unroll: hides next step's gx/src loads & dst store
                # under the current step's recurrent MXU matmul.
                h = lax.fori_loop(0, Tc, step, h, unroll=min(unroll, Tc))

    return kernel


# ----------------------------------------------------------------------------
# pallas_call wrapper
# ----------------------------------------------------------------------------
def stacked_bigru_head(x_tm, layers, w_out_t, b_out, *, u_pad, c_pad, b_blk,
                       t_window, buf_dtype, compute_dtype, vmem_limit):
    """x_tm: (T, B_pad, D0p) time-major input; returns (T, B_pad, c_pad) log-probs."""
    T, B_pad, D0p = x_tm.shape
    assert B_pad % b_blk == 0
    depth = len(layers)
    G = 3 * u_pad
    n_bufs = min(2, depth - 1)
    grid = (B_pad // b_blk,)

    in_specs = [pl.BlockSpec((T, b_blk, D0p), lambda i: (0, i, 0))]
    flat_inputs = [x_tm]
    # TODO(synk): weights/biases have constant index_maps — single-buffer them
    # (pipeline_mode=pl.Buffered(1)) or DMA them once into scratch to halve
    # their VMEM footprint; matters most on v7x's 64 MiB VMEM.
    for (wih, whh, bih, bhh) in layers:
        for w in (wih, whh, bih, bhh):
            in_specs.append(pl.BlockSpec(w.shape, lambda i: (0, 0)))
            flat_inputs.append(w)
    for w in (w_out_t, b_out):
        in_specs.append(pl.BlockSpec(w.shape, lambda i: (0, 0)))
        flat_inputs.append(w)

    kernel = make_fused_kernel(
        depth=depth, T=T, Tw=t_window, Bb=b_blk, U=u_pad, G=G, Cp=c_pad,
        n_bufs=n_bufs, compute_dtype=compute_dtype, buf_dtype=buf_dtype,
        unroll=UNROLL)

    scratch = [pltpu.VMEM((t_window * b_blk, G), jnp.float32)]     # gate pre-acts
    scratch += [pltpu.VMEM((T * b_blk, u_pad), buf_dtype)          # ping/pong
                for _ in range(n_bufs)]

    return pl.pallas_call(
        kernel,
        grid=grid,
        in_specs=in_specs,
        out_specs=pl.BlockSpec((T, b_blk, c_pad), lambda i: (0, i, 0)),
        out_shape=jax.ShapeDtypeStruct((T, B_pad, c_pad), jnp.float32),
        scratch_shapes=scratch,
        compiler_params=pltpu.CompilerParams(
            dimension_semantics=("parallel",),   # batch blocks -> 2 TCs on v7x
            vmem_limit_bytes=int(vmem_limit),    # per-generation budget
        ),
    )(*flat_inputs)


# ----------------------------------------------------------------------------
# Full forward pass (embedding gather / pad / transpose in plain JAX)
# ----------------------------------------------------------------------------
def forward(packed, words, pos):
    emb = packed["emb"]
    emb_w = jnp.take(emb, words, axis=0)
    emb_p = jnp.take(emb, pos, axis=0)
    x = jnp.concatenate([emb_w, emb_p], axis=-1)                     # (B, T, 2E)
    B, T, D0 = x.shape
    D0p = packed["d0_pad"]
    u_pad, c_pad = packed["u_pad"], packed["c_pad"]
    depth = len(packed["layers"])

    cfg = _tpu_config()
    b_blk, t_window, buf_dtype = _choose_blocking(B, T, D0p, u_pad, c_pad,
                                                  depth, cfg)
    B_pad = _round_up(B, b_blk)

    # Pad batch to the block size and the feature dim to a lane multiple
    # (lane-dense x DMA and layer-0 matmul K dim), then go time-major.
    x = jnp.pad(x, ((0, B_pad - B), (0, 0), (0, D0p - D0)))
    x_tm = jnp.transpose(x, (1, 0, 2)).astype(packed["compute_dtype"])

    logp = stacked_bigru_head(
        x_tm, packed["layers"], packed["w_out_t"], packed["b_out"],
        u_pad=u_pad, c_pad=c_pad, b_blk=b_blk, t_window=t_window,
        buf_dtype=buf_dtype, compute_dtype=packed["compute_dtype"],
        vmem_limit=cfg["vmem_limit"])                                # (T,B_pad,Cp)

    out = jnp.transpose(logp, (1, 0, 2))                             # (B_pad,T,Cp)
    return out[:B, :, :packed["dim_out"]]


# ----------------------------------------------------------------------------
# Parameters: PyTorch-layout init + packing into the lane-dense kernel layout
# ----------------------------------------------------------------------------
def init_params(key, vocab, emb_dim, dim_u, depth, dim_out):
    """PyTorch-layout parameters (gate order r, z, n)."""
    def uni(k, shape, scale):
        return jax.random.uniform(k, shape, jnp.float32, -scale, scale)

    keys = jax.random.split(key, 3 + 4 * depth)
    ki = iter(keys)

    emb_matrix = uni(next(ki), (vocab, emb_dim), 1.0)

    input_dim = emb_dim * 2
    scale = float(dim_u) ** -0.5
    gru = []
    for layer in range(depth):
        d_in = input_dim if layer == 0 else dim_u
        w_ih = uni(next(ki), (3 * dim_u, d_in), scale)          # (3U, D)
        w_hh = uni(next(ki), (3 * dim_u, dim_u), scale)         # (3U, U)
        b_ih = uni(next(ki), (3 * dim_u,), scale)
        b_hh = uni(next(ki), (3 * dim_u,), scale)
        gru.append((w_ih, w_hh, b_ih, b_hh))

    w_out = uni(next(ki), (dim_out, dim_u), scale)              # (C, U)
    b_out = uni(next(ki), (dim_out,), scale)

    return {"emb": emb_matrix, "gru": gru, "w_out": w_out, "b_out": b_out}


def pack_params(params, *, compute_dtype=jnp.bfloat16):
    """Pad / transpose into the lane-dense layout the fused kernel expects."""
    gru = params["gru"]
    w_out, b_out = params["w_out"], params["b_out"]

    U = gru[0][1].shape[1]
    U_pad = _round_up(U, LANE)
    C = w_out.shape[0]
    C_pad = _round_up(C, LANE)
    D0 = gru[0][0].shape[1]                      # layer-0 input dim = 2 * emb_dim
    D0_pad = _round_up(D0, LANE)

    def pad_gate_rows(w):            # (3U, d_in) -> (3U_pad, d_in), per-gate pad
        d_in = w.shape[1]
        out = jnp.zeros((3 * U_pad, d_in), jnp.float32)
        for g in range(3):
            out = out.at[g * U_pad: g * U_pad + U].set(w[g * U:(g + 1) * U])
        return out

    def pad_bias(b):                 # (3U,) -> (1, 3U_pad)
        out = jnp.zeros((3 * U_pad,), jnp.float32)
        for g in range(3):
            out = out.at[g * U_pad: g * U_pad + U].set(b[g * U:(g + 1) * U])
        return out[None, :]

    layers = []
    for li, (w_ih, w_hh, b_ih, b_hh) in enumerate(gru):
        w_ih_p = pad_gate_rows(w_ih)                             # (3U_pad, d_in)
        d_in_pad = D0_pad if li == 0 else U_pad
        w_ih_p = jnp.pad(w_ih_p, ((0, 0), (0, d_in_pad - w_ih_p.shape[1])))
        w_hh_p = jnp.pad(pad_gate_rows(w_hh), ((0, 0), (0, U_pad - U)))
        layers.append((
            w_ih_p.T.astype(compute_dtype),                      # (d_in_pad, 3U_pad)
            w_hh_p.T.astype(compute_dtype),                      # (U_pad, 3U_pad)
            pad_bias(b_ih),                                      # (1, 3U_pad) f32
            pad_bias(b_hh),                                      # (1, 3U_pad) f32
        ))

    w_out_p = jnp.zeros((C_pad, U_pad), jnp.float32).at[:C, :U].set(w_out)
    b_out_p = jnp.full((C_pad,), NEG_BIG, jnp.float32).at[:C].set(b_out)

    return {
        "emb": params["emb"],
        "layers": layers,
        "w_out_t": w_out_p.T.astype(compute_dtype),              # (U_pad, C_pad)
        "b_out": b_out_p[None, :],                               # (1, C_pad) f32
        "dim_out": C,
        "u_pad": U_pad,
        "c_pad": C_pad,
        "d0_pad": D0_pad,
        "compute_dtype": compute_dtype,
    }


# ----------------------------------------------------------------------------
if __name__ == "__main__":
    VOCAB, EMB_DIM = 50, 16
    DIM_U, DEPTH, DIM_OUT = 32, 2, 2
    B, T = 2, 8

    key = jax.random.PRNGKey(0)
    k_params, k_words, k_pos = jax.random.split(key, 3)

    params = init_params(k_params, VOCAB, EMB_DIM, DIM_U, DEPTH, DIM_OUT)
    packed = pack_params(params, compute_dtype=jnp.bfloat16)

    words = jax.random.randint(k_words, (B, T), 0, VOCAB, dtype=jnp.int32)
    pos = jax.random.randint(k_pos, (B, T), 0, VOCAB, dtype=jnp.int32)

    out = jax.jit(functools.partial(forward, packed))(words, pos)
    out = jax.block_until_ready(out)

    assert out.shape == (B, T, DIM_OUT), out.shape
    # log_softmax rows must sum to ~1 in probability space
    assert jnp.allclose(jnp.sum(jnp.exp(out), axis=-1), 1.0, atol=1e-4)
    print("KERNEL_OK")
</pallas_src>

<mosaic_0001>
module attributes {stable_mosaic.version = 11 : i64} {
  func.func @kernel(%arg0: i32, %arg1: memref<8x8x128xbf16, #tpu.memory_space<vmem>>, %arg2: memref<128x384xbf16, #tpu.memory_space<vmem>>, %arg3: memref<128x384xbf16, #tpu.memory_space<vmem>>, %arg4: memref<1x384xf32, #tpu.memory_space<vmem>>, %arg5: memref<1x384xf32, #tpu.memory_space<vmem>>, %arg6: memref<128x384xbf16, #tpu.memory_space<vmem>>, %arg7: memref<128x384xbf16, #tpu.memory_space<vmem>>, %arg8: memref<1x384xf32, #tpu.memory_space<vmem>>, %arg9: memref<1x384xf32, #tpu.memory_space<vmem>>, %arg10: memref<128x128xbf16, #tpu.memory_space<vmem>>, %arg11: memref<1x128xf32, #tpu.memory_space<vmem>>, %arg12: memref<8x8x128xf32, #tpu.memory_space<vmem>>, %arg13: memref<64x384xf32, #tpu.memory_space<vmem>>, %arg14: memref<64x128xf32, #tpu.memory_space<vmem>>) attributes {dimension_semantics = [#tpu.dimension_semantics<parallel>], iteration_bounds = array<i64: 1>, scalar_prefetch = 0 : i64, scratch_operands = 2 : i64, tpu.core_type = #tpu.core_type<tc>, window_params = [{transform_indices = @transform_0, window_bounds = array<i64: 8, 8, 128>}, {pipeline_mode = #tpu.pipeline_mode<synchronous>, transform_indices = @transform_1, window_bounds = array<i64: 128, 384>}, {pipeline_mode = #tpu.pipeline_mode<synchronous>, transform_indices = @transform_2, window_bounds = array<i64: 128, 384>}, {pipeline_mode = #tpu.pipeline_mode<synchronous>, transform_indices = @transform_3, window_bounds = array<i64: 1, 384>}, {pipeline_mode = #tpu.pipeline_mode<synchronous>, transform_indices = @transform_4, window_bounds = array<i64: 1, 384>}, {pipeline_mode = #tpu.pipeline_mode<synchronous>, transform_indices = @transform_5, window_bounds = array<i64: 128, 384>}, {pipeline_mode = #tpu.pipeline_mode<synchronous>, transform_indices = @transform_6, window_bounds = array<i64: 128, 384>}, {pipeline_mode = #tpu.pipeline_mode<synchronous>, transform_indices = @transform_7, window_bounds = array<i64: 1, 384>}, {pipeline_mode = #tpu.pipeline_mode<synchronous>, transform_indices = @transform_8, window_bounds = array<i64: 1, 384>}, {pipeline_mode = #tpu.pipeline_mode<synchronous>, transform_indices = @transform_9, window_bounds = array<i64: 128, 128>}, {pipeline_mode = #tpu.pipeline_mode<synchronous>, transform_indices = @transform_10, window_bounds = array<i64: 1, 128>}, {transform_indices = @transform_11, window_bounds = array<i64: 8, 8, 128>}]} {
    %cst = arith.constant 0.000000e+00 : f32
    %0 = vector.broadcast %cst : f32 to vector<8x128xf32>
    %c0 = arith.constant 0 : index
    %c0_0 = arith.constant 0 : index
    %c0_1 = arith.constant 0 : index
    %1 = vector.load %arg1[%c0, %c0_0, %c0_1] : memref<8x8x128xbf16, #tpu.memory_space<vmem>>, vector<8x8x128xbf16>
    %2 = vector.shape_cast %1 : vector<8x8x128xbf16> to vector<64x128xbf16>
    %c0_2 = arith.constant 0 : index
    %c0_3 = arith.constant 0 : index
    %3 = vector.load %arg2[%c0_2, %c0_3] : memref<128x384xbf16, #tpu.memory_space<vmem>>, vector<128x384xbf16>
    %cst_4 = arith.constant dense<0.000000e+00> : vector<64x384xf32>
    %4 = tpu.matmul %2, %3, %cst_4 {dimension_numbers = #tpu.dot_dimension_numbers<[1], [0], [0], [1], [0, 0, 1, 1], [], []>} : vector<64x128xbf16>, vector<128x384xbf16>, vector<64x384xf32> -> vector<64x384xf32>
    %c0_5 = arith.constant 0 : index
    %c0_6 = arith.constant 0 : index
    %5 = vector.load %arg4[%c0_5, %c0_6] : memref<1x384xf32, #tpu.memory_space<vmem>>, vector<1x384xf32>
    %6 = vector.broadcast %5 : vector<1x384xf32> to vector<64x384xf32>
    %7 = arith.addf %4, %6 : vector<64x384xf32>
    %c0_7 = arith.constant 0 : index
    %c0_8 = arith.constant 0 : index
    %8 = vector.load %arg13[%c0_7, %c0_8] : memref<64x384xf32, #tpu.memory_space<vmem>>, vector<64x384xf32>
    tpu.vector_store %arg13[%c0_7, %c0_8], %7 {strides = array<i32>} : memref<64x384xf32, #tpu.memory_space<vmem>>, vector<64x384xf32>,
    %c0_i32 = arith.constant 0 : i32
    %c0_i32_9 = arith.constant 0 : i32
    %9 = arith.addi %c0_i32_9, %c0_i32 : i32
    %c8_i32 = arith.constant 8 : i32
    %10 = arith.muli %c0_i32, %c8_i32 : i32
    %11 = tpu.assume_multiple %10, 8 : i32
    %12 = arith.index_cast %11 : i32 to index
    %c0_10 = arith.constant 0 : index
    %13 = vector.load %arg13[%12, %c0_10] : memref<64x384xf32, #tpu.memory_space<vmem>>, vector<8x384xf32>
    %14 = arith.truncf %0 : vector<8x128xf32> to vector<8x128xbf16>
    %c0_11 = arith.constant 0 : index
    %c0_12 = arith.constant 0 : index
    %15 = vector.load %arg3[%c0_11, %c0_12] : memref<128x384xbf16, #tpu.memory_space<vmem>>, vector<128x384xbf16>
    %cst_13 = arith.constant dense<0.000000e+00> : vector<8x384xf32>
    %16 = tpu.matmul %14, %15, %cst_13 {dimension_numbers = #tpu.dot_dimension_numbers<[1], [0], [0], [1], [0, 0, 1, 1], [], []>} : vector<8x128xbf16>, vector<128x384xbf16>, vector<8x384xf32> -> vector<8x384xf32>
    %c0_14 = arith.constant 0 : index
    %c0_15 = arith.constant 0 : index
    %17 = vector.load %arg5[%c0_14, %c0_15] : memref<1x384xf32, #tpu.memory_space<vmem>>, vector<1x384xf32>
    %18 = vector.broadcast %17 : vector<1x384xf32> to vector<8x384xf32>
    %19 = arith.addf %16, %18 : vector<8x384xf32>
    %20 = vector.extract_strided_slice %13 {offsets = [0, 0], sizes = [8, 128], strides = [1, 1]} : vector<8x384xf32> to vector<8x128xf32>
    %21 = vector.extract_strided_slice %19 {offsets = [0, 0], sizes = [8, 128], strides = [1, 1]} : vector<8x384xf32> to vector<8x128xf32>
    %22 = arith.addf %20, %21 : vector<8x128xf32>
    %23 = arith.negf %22 : vector<8x128xf32>
    %24 = math.exp %23 : vector<8x128xf32>
    %cst_16 = arith.constant 1.000000e+00 : f32
    %25 = vector.broadcast %cst_16 : f32 to vector<8x128xf32>
    %26 = arith.addf %25, %24 : vector<8x128xf32>
    %27 = arith.divf %25, %26 : vector<8x128xf32>
    %28 = vector.extract_strided_slice %13 {offsets = [0, 128], sizes = [8, 128], strides = [1, 1]} : vector<8x384xf32> to vector<8x128xf32>
    %29 = vector.extract_strided_slice %19 {offsets = [0, 128], sizes = [8, 128], strides = [1, 1]} : vector<8x384xf32> to vector<8x128xf32>
    %30 = arith.addf %28, %29 : vector<8x128xf32>
    %31 = arith.negf %30 : vector<8x128xf32>
    %32 = math.exp %31 : vector<8x128xf32>
    %cst_17 = arith.constant 1.000000e+00 : f32
    %33 = vector.broadcast %cst_17 : f32 to vector<8x128xf32>
    %34 = arith.addf %33, %32 : vector<8x128xf32>
    %35 = arith.divf %33, %34 : vector<8x128xf32>
    %36 = vector.extract_strided_slice %13 {offsets = [0, 256], sizes = [8, 128], strides = [1, 1]} : vector<8x384xf32> to vector<8x128xf32>
    %37 = vector.extract_strided_slice %19 {offsets = [0, 256], sizes = [8, 128], strides = [1, 1]} : vector<8x384xf32> to vector<8x128xf32>
    %38 = arith.mulf %27, %37 : vector<8x128xf32>
    %39 = arith.addf %36, %38 : vector<8x128xf32>
    %40 = math.tanh %39 : vector<8x128xf32>
    %cst_18 = arith.constant 1.000000e+00 : f32
    %41 = vector.broadcast %cst_18 : f32 to vector<8x128xf32>
    %42 = arith.subf %41, %35 : vector<8x128xf32>
    %43 = arith.mulf %42, %40 : vector<8x128xf32>
    %44 = arith.mulf %35, %0 : vector<8x128xf32>
    %45 = arith.addf %43, %44 : vector<8x128xf32>
    %c8_i32_19 = arith.constant 8 : i32
    %46 = arith.muli %9, %c8_i32_19 : i32
    %47 = tpu.assume_multiple %46, 8 : i32
    %48 = arith.index_cast %47 : i32 to index
    %c0_20 = arith.constant 0 : index
    %49 = vector.load %arg14[%48, %c0_20] : memref<64x128xf32, #tpu.memory_space<vmem>>, vector<8x128xf32>
    tpu.vector_store %arg14[%48, %c0_20], %45 {strides = array<i32>} : memref<64x128xf32, #tpu.memory_space<vmem>>, vector<8x128xf32>,
    %c1_i32 = arith.constant 1 : i32
    %c0_i32_21 = arith.constant 0 : i32
    %50 = arith.addi %c0_i32_21, %c1_i32 : i32
    %c8_i32_22 = arith.constant 8 : i32
    %51 = arith.muli %c1_i32, %c8_i32_22 : i32
    %52 = tpu.assume_multiple %51, 8 : i32
    %53 = arith.index_cast %52 : i32 to index
    %c0_23 = arith.constant 0 : index
    %54 = vector.load %arg13[%53, %c0_23] : memref<64x384xf32, #tpu.memory_space<vmem>>, vector<8x384xf32>
    %55 = arith.truncf %45 : vector<8x128xf32> to vector<8x128xbf16>
    %c0_24 = arith.constant 0 : index
    %c0_25 = arith.constant 0 : index
    %56 = vector.load %arg3[%c0_24, %c0_25] : memref<128x384xbf16, #tpu.memory_space<vmem>>, vector<128x384xbf16>
    %cst_26 = arith.constant dense<0.000000e+00> : vector<8x384xf32>
    %57 = tpu.matmul %55, %56, %cst_26 {dimension_numbers = #tpu.dot_dimension_numbers<[1], [0], [0], [1], [0, 0, 1, 1], [], []>} : vector<8x128xbf16>, vector<128x384xbf16>, vector<8x384xf32> -> vector<8x384xf32>
    %c0_27 = arith.constant 0 : index
    %c0_28 = arith.constant 0 : index
    %58 = vector.load %arg5[%c0_27, %c0_28] : memref<1x384xf32, #tpu.memory_space<vmem>>, vector<1x384xf32>
    %59 = vector.broadcast %58 : vector<1x384xf32> to vector<8x384xf32>
    %60 = arith.addf %57, %59 : vector<8x384xf32>
    %61 = vector.extract_strided_slice %54 {offsets = [0, 0], sizes = [8, 128], strides = [1, 1]} : vector<8x384xf32> to vector<8x128xf32>
    %62 = vector.extract_strided_slice %60 {offsets = [0, 0], sizes = [8, 128], strides = [1, 1]} : vector<8x384xf32> to vector<8x128xf32>
    %63 = arith.addf %61, %62 : vector<8x128xf32>
    %64 = arith.negf %63 : vector<8x128xf32>
    %65 = math.exp %64 : vector<8x128xf32>
    %cst_29 = arith.constant 1.000000e+00 : f32
    %66 = vector.broadcast %cst_29 : f32 to vector<8x128xf32>
    %67 = arith.addf %66, %65 : vector<8x128xf32>
    %68 = arith.divf %66, %67 : vector<8x128xf32>
    %69 = vector.extract_strided_slice %54 {offsets = [0, 128], sizes = [8, 128], strides = [1, 1]} : vector<8x384xf32> to vector<8x128xf32>
    %70 = vector.extract_strided_slice %60 {offsets = [0, 128], sizes = [8, 128], strides = [1, 1]} : vector<8x384xf32> to vector<8x128xf32>
    %71 = arith.addf %69, %70 : vector<8x128xf32>
    %72 = arith.negf %71 : vector<8x128xf32>
    %73 = math.exp %72 : vector<8x128xf32>
    %cst_30 = arith.constant 1.000000e+00 : f32
    %74 = vector.broadcast %cst_30 : f32 to vector<8x128xf32>
    %75 = arith.addf %74, %73 : vector<8x128xf32>
    %76 = arith.divf %74, %75 : vector<8x128xf32>
    %77 = vector.extract_strided_slice %54 {offsets = [0, 256], sizes = [8, 128], strides = [1, 1]} : vector<8x384xf32> to vector<8x128xf32>
    %78 = vector.extract_strided_slice %60 {offsets = [0, 256], sizes = [8, 128], strides = [1, 1]} : vector<8x384xf32> to vector<8x128xf32>
    %79 = arith.mulf %68, %78 : vector<8x128xf32>
    %80 = arith.addf %77, %79 : vector<8x128xf32>
    %81 = math.tanh %80 : vector<8x128xf32>
    %cst_31 = arith.constant 1.000000e+00 : f32
    %82 = vector.broadcast %cst_31 : f32 to vector<8x128xf32>
    %83 = arith.subf %82, %76 : vector<8x128xf32>
    %84 = arith.mulf %83, %81 : vector<8x128xf32>
    %85 = arith.mulf %76, %45 : vector<8x128xf32>
    %86 = arith.addf %84, %85 : vector<8x128xf32>
    %c8_i32_32 = arith.constant 8 : i32
    %87 = arith.muli %50, %c8_i32_32 : i32
    %88 = tpu.assume_multiple %87, 8 : i32
    %89 = arith.index_cast %88 : i32 to index
    %c0_33 = arith.constant 0 : index
    %90 = vector.load %arg14[%89, %c0_33] : memref<64x128xf32, #tpu.memory_space<vmem>>, vector<8x128xf32>
    tpu.vector_store %arg14[%89, %c0_33], %86 {strides = array<i32>} : memref<64x128xf32, #tpu.memory_space<vmem>>, vector<8x128xf32>,
    %c2_i32 = arith.constant 2 : i32
    %c0_i32_34 = arith.constant 0 : i32
    %91 = arith.addi %c0_i32_34, %c2_i32 : i32
    %c8_i32_35 = arith.constant 8 : i32
    %92 = arith.muli %c2_i32, %c8_i32_35 : i32
    %93 = tpu.assume_multiple %92, 8 : i32
    %94 = arith.index_cast %93 : i32 to index
    %c0_36 = arith.constant 0 : index
    %95 = vector.load %arg13[%94, %c0_36] : memref<64x384xf32, #tpu.memory_space<vmem>>, vector<8x384xf32>
    %96 = arith.truncf %86 : vector<8x128xf32> to vector<8x128xbf16>
    %c0_37 = arith.constant 0 : index
    %c0_38 = arith.constant 0 : index
    %97 = vector.load %arg3[%c0_37, %c0_38] : memref<128x384xbf16, #tpu.memory_space<vmem>>, vector<128x384xbf16>
    %cst_39 = arith.constant dense<0.000000e+00> : vector<8x384xf32>
    %98 = tpu.matmul %96, %97, %cst_39 {dimension_numbers = #tpu.dot_dimension_numbers<[1], [0], [0], [1], [0, 0, 1, 1], [], []>} : vector<8x128xbf16>, vector<128x384xbf16>, vector<8x384xf32> -> vector<8x384xf32>
    %c0_40 = arith.constant 0 : index
    %c0_41 = arith.constant 0 : index
    %99 = vector.load %arg5[%c0_40, %c0_41] : memref<1x384xf32, #tpu.memory_space<vmem>>, vector<1x384xf32>
    %100 = vector.broadcast %99 : vector<1x384xf32> to vector<8x384xf32>
    %101 = arith.addf %98, %100 : vector<8x384xf32>
    %102 = vector.extract_strided_slice %95 {offsets = [0, 0], sizes = [8, 128], strides = [1, 1]} : vector<8x384xf32> to vector<8x128xf32>
    %103 = vector.extract_strided_slice %101 {offsets = [0, 0], sizes = [8, 128], strides = [1, 1]} : vector<8x384xf32> to vector<8x128xf32>
    %104 = arith.addf %102, %103 : vector<8x128xf32>
    %105 = arith.negf %104 : vector<8x128xf32>
    %106 = math.exp %105 : vector<8x128xf32>
    %cst_42 = arith.constant 1.000000e+00 : f32
    %107 = vector.broadcast %cst_42 : f32 to vector<8x128xf32>
    %108 = arith.addf %107, %106 : vector<8x128xf32>
    %109 = arith.divf %107, %108 : vector<8x128xf32>
    %110 = vector.extract_strided_slice %95 {offsets = [0, 128], sizes = [8, 128], strides = [1, 1]} : vector<8x384xf32> to vector<8x128xf32>
    %111 = vector.extract_strided_slice %101 {offsets = [0, 128], sizes = [8, 128], strides = [1, 1]} : vector<8x384xf32> to vector<8x128xf32>
    %112 = arith.addf %110, %111 : vector<8x128xf32>
    %113 = arith.negf %112 : vector<8x128xf32>
    %114 = math.exp %113 : vector<8x128xf32>
    %cst_43 = arith.constant 1.000000e+00 : f32
    %115 = vector.broadcast %cst_43 : f32 to vector<8x128xf32>
    %116 = arith.addf %115, %114 : vector<8x128xf32>
    %117 = arith.divf %115, %116 : vector<8x128xf32>
    %118 = vector.extract_strided_slice %95 {offsets = [0, 256], sizes = [8, 128], strides = [1, 1]} : vector<8x384xf32> to vector<8x128xf32>
    %119 = vector.extract_strided_slice %101 {offsets = [0, 256], sizes = [8, 128], strides = [1, 1]} : vector<8x384xf32> to vector<8x128xf32>
    %120 = arith.mulf %109, %119 : vector<8x128xf32>
    %121 = arith.addf %118, %120 : vector<8x128xf32>
    %122 = math.tanh %121 : vector<8x128xf32>
    %cst_44 = arith.constant 1.000000e+00 : f32
    %123 = vector.broadcast %cst_44 : f32 to vector<8x128xf32>
    %124 = arith.subf %123, %117 : vector<8x128xf32>
    %125 = arith.mulf %124, %122 : vector<8x128xf32>
    %126 = arith.mulf %117, %86 : vector<8x128xf32>
    %127 = arith.addf %125, %126 : vector<8x128xf32>
    %c8_i32_45 = arith.constant 8 : i32
    %128 = arith.muli %91, %c8_i32_45 : i32
    %129 = tpu.assume_multiple %128, 8 : i32
    %130 = arith.index_cast %129 : i32 to index
    %c0_46 = arith.constant 0 : index
    %131 = vector.load %arg14[%130, %c0_46] : memref<64x128xf32, #tpu.memory_space<vmem>>, vector<8x128xf32>
    tpu.vector_store %arg14[%130, %c0_46], %127 {strides = array<i32>} : memref<64x128xf32, #tpu.memory_space<vmem>>, vector<8x128xf32>,
    %c3_i32 = arith.constant 3 : i32
    %c0_i32_47 = arith.constant 0 : i32
    %132 = arith.addi %c0_i32_47, %c3_i32 : i32
    %c8_i32_48 = arith.constant 8 : i32
    %133 = arith.muli %c3_i32, %c8_i32_48 : i32
    %134 = tpu.assume_multiple %133, 8 : i32
    %135 = arith.index_cast %134 : i32 to index
    %c0_49 = arith.constant 0 : index
    %136 = vector.load %arg13[%135, %c0_49] : memref<64x384xf32, #tpu.memory_space<vmem>>, vector<8x384xf32>
    %137 = arith.truncf %127 : vector<8x128xf32> to vector<8x128xbf16>
    %c0_50 = arith.constant 0 : index
    %c0_51 = arith.constant 0 : index
    %138 = vector.load %arg3[%c0_50, %c0_51] : memref<128x384xbf16, #tpu.memory_space<vmem>>, vector<128x384xbf16>
    %cst_52 = arith.constant dense<0.000000e+00> : vector<8x384xf32>
    %139 = tpu.matmul %137, %138, %cst_52 {dimension_numbers = #tpu.dot_dimension_numbers<[1], [0], [0], [1], [0, 0, 1, 1], [], []>} : vector<8x128xbf16>, vector<128x384xbf16>, vector<8x384xf32> -> vector<8x384xf32>
    %c0_53 = arith.constant 0 : index
    %c0_54 = arith.constant 0 : index
    %140 = vector.load %arg5[%c0_53, %c0_54] : memref<1x384xf32, #tpu.memory_space<vmem>>, vector<1x384xf32>
    %141 = vector.broadcast %140 : vector<1x384xf32> to vector<8x384xf32>
    %142 = arith.addf %139, %141 : vector<8x384xf32>
    %143 = vector.extract_strided_slice %136 {offsets = [0, 0], sizes = [8, 128], strides = [1, 1]} : vector<8x384xf32> to vector<8x128xf32>
    %144 = vector.extract_strided_slice %142 {offsets = [0, 0], sizes = [8, 128], strides = [1, 1]} : vector<8x384xf32> to vector<8x128xf32>
    %145 = arith.addf %143, %144 : vector<8x128xf32>
    %146 = arith.negf %145 : vector<8x128xf32>
    %147 = math.exp %146 : vector<8x128xf32>
    %cst_55 = arith.constant 1.000000e+00 : f32
    %148 = vector.broadcast %cst_55 : f32 to vector<8x128xf32>
    %149 = arith.addf %148, %147 : vector<8x128xf32>
    %150 = arith.divf %148, %149 : vector<8x128xf32>
    %151 = vector.extract_strided_slice %136 {offsets = [0, 128], sizes = [8, 128], strides = [1, 1]} : vector<8x384xf32> to vector<8x128xf32>
    %152 = vector.extract_strided_slice %142 {offsets = [0, 128], sizes = [8, 128], strides = [1, 1]} : vector<8x384xf32> to vector<8x128xf32>
    %153 = arith.addf %151, %152 : vector<8x128xf32>
    %154 = arith.negf %153 : vector<8x128xf32>
    %155 = math.exp %154 : vector<8x128xf32>
    %cst_56 = arith.constant 1.000000e+00 : f32
    %156 = vector.broadcast %cst_56 : f32 to vector<8x128xf32>
    %157 = arith.addf %156, %155 : vector<8x128xf32>
    %158 = arith.divf %156, %157 : vector<8x128xf32>
    %159 = vector.extract_strided_slice %136 {offsets = [0, 256], sizes = [8, 128], strides = [1, 1]} : vector<8x384xf32> to vector<8x128xf32>
    %160 = vector.extract_strided_slice %142 {offsets = [0, 256], sizes = [8, 128], strides = [1, 1]} : vector<8x384xf32> to vector<8x128xf32>
    %161 = arith.mulf %150, %160 : vector<8x128xf32>
    %162 = arith.addf %159, %161 : vector<8x128xf32>
    %163 = math.tanh %162 : vector<8x128xf32>
    %cst_57 = arith.constant 1.000000e+00 : f32
    %164 = vector.broadcast %cst_57 : f32 to vector<8x128xf32>
    %165 = arith.subf %164, %158 : vector<8x128xf32>
    %166 = arith.mulf %165, %163 : vector<8x128xf32>
    %167 = arith.mulf %158, %127 : vector<8x128xf32>
    %168 = arith.addf %166, %167 : vector<8x128xf32>
    %c8_i32_58 = arith.constant 8 : i32
    %169 = arith.muli %132, %c8_i32_58 : i32
    %170 = tpu.assume_multiple %169, 8 : i32
    %171 = arith.index_cast %170 : i32 to index
    %c0_59 = arith.constant 0 : index
    %172 = vector.load %arg14[%171, %c0_59] : memref<64x128xf32, #tpu.memory_space<vmem>>, vector<8x128xf32>
    tpu.vector_store %arg14[%171, %c0_59], %168 {strides = array<i32>} : memref<64x128xf32, #tpu.memory_space<vmem>>, vector<8x128xf32>,
    %c4_i32 = arith.constant 4 : i32
    %c0_i32_60 = arith.constant 0 : i32
    %173 = arith.addi %c0_i32_60, %c4_i32 : i32
    %c8_i32_61 = arith.constant 8 : i32
    %174 = arith.muli %c4_i32, %c8_i32_61 : i32
    %175 = tpu.assume_multiple %174, 8 : i32
    %176 = arith.index_cast %175 : i32 to index
    %c0_62 = arith.constant 0 : index
    %177 = vector.load %arg13[%176, %c0_62] : memref<64x384xf32, #tpu.memory_space<vmem>>, vector<8x384xf32>
    %178 = arith.truncf %168 : vector<8x128xf32> to vector<8x128xbf16>
    %c0_63 = arith.constant 0 : index
    %c0_64 = arith.constant 0 : index
    %179 = vector.load %arg3[%c0_63, %c0_64] : memref<128x384xbf16, #tpu.memory_space<vmem>>, vector<128x384xbf16>
    %cst_65 = arith.constant dense<0.000000e+00> : vector<8x384xf32>
    %180 = tpu.matmul %178, %179, %cst_65 {dimension_numbers = #tpu.dot_dimension_numbers<[1], [0], [0], [1], [0, 0, 1, 1], [], []>} : vector<8x128xbf16>, vector<128x384xbf16>, vector<8x384xf32> -> vector<8x384xf32>
    %c0_66 = arith.constant 0 : index
    %c0_67 = arith.constant 0 : index
    %181 = vector.load %arg5[%c0_66, %c0_67] : memref<1x384xf32, #tpu.memory_space<vmem>>, vector<1x384xf32>
    %182 = vector.broadcast %181 : vector<1x384xf32> to vector<8x384xf32>
    %183 = arith.addf %180, %182 : vector<8x384xf32>
    %184 = vector.extract_strided_slice %177 {offsets = [0, 0], sizes = [8, 128], strides = [1, 1]} : vector<8x384xf32> to vector<8x128xf32>
    %185 = vector.extract_strided_slice %183 {offsets = [0, 0], sizes = [8, 128], strides = [1, 1]} : vector<8x384xf32> to vector<8x128xf32>
    %186 = arith.addf %184, %185 : vector<8x128xf32>
    %187 = arith.negf %186 : vector<8x128xf32>
    %188 = math.exp %187 : vector<8x128xf32>
    %cst_68 = arith.constant 1.000000e+00 : f32
    %189 = vector.broadcast %cst_68 : f32 to vector<8x128xf32>
    %190 = arith.addf %189, %188 : vector<8x128xf32>
    %191 = arith.divf %189, %190 : vector<8x128xf32>
    %192 = vector.extract_strided_slice %177 {offsets = [0, 128], sizes = [8, 128], strides = [1, 1]} : vector<8x384xf32> to vector<8x128xf32>
    %193 = vector.extract_strided_slice %183 {offsets = [0, 128], sizes = [8, 128], strides = [1, 1]} : vector<8x384xf32> to vector<8x128xf32>
    %194 = arith.addf %192, %193 : vector<8x128xf32>
    %195 = arith.negf %194 : vector<8x128xf32>
    %196 = math.exp %195 : vector<8x128xf32>
    %cst_69 = arith.constant 1.000000e+00 : f32
    %197 = vector.broadcast %cst_69 : f32 to vector<8x128xf32>
    %198 = arith.addf %197, %196 : vector<8x128xf32>
    %199 = arith.divf %197, %198 : vector<8x128xf32>
    %200 = vector.extract_strided_slice %177 {offsets = [0, 256], sizes = [8, 128], strides = [1, 1]} : vector<8x384xf32> to vector<8x128xf32>
    %201 = vector.extract_strided_slice %183 {offsets = [0, 256], sizes = [8, 128], strides = [1, 1]} : vector<8x384xf32> to vector<8x128xf32>
    %202 = arith.mulf %191, %201 : vector<8x128xf32>
    %203 = arith.addf %200, %202 : vector<8x128xf32>
    %204 = math.tanh %203 : vector<8x128xf32>
    %cst_70 = arith.constant 1.000000e+00 : f32
    %205 = vector.broadcast %cst_70 : f32 to vector<8x128xf32>
    %206 = arith.subf %205, %199 : vector<8x128xf32>
    %207 = arith.mulf %206, %204 : vector<8x128xf32>
    %208 = arith.mulf %199, %168 : vector<8x128xf32>
    %209 = arith.addf %207, %208 : vector<8x128xf32>
    %c8_i32_71 = arith.constant 8 : i32
    %210 = arith.muli %173, %c8_i32_71 : i32
    %211 = tpu.assume_multiple %210, 8 : i32
    %212 = arith.index_cast %211 : i32 to index
    %c0_72 = arith.constant 0 : index
    %213 = vector.load %arg14[%212, %c0_72] : memref<64x128xf32, #tpu.memory_space<vmem>>, vector<8x128xf32>
    tpu.vector_store %arg14[%212, %c0_72], %209 {strides = array<i32>} : memref<64x128xf32, #tpu.memory_space<vmem>>, vector<8x128xf32>,
    %c5_i32 = arith.constant 5 : i32
    %c0_i32_73 = arith.constant 0 : i32
    %214 = arith.addi %c0_i32_73, %c5_i32 : i32
    %c8_i32_74 = arith.constant 8 : i32
    %215 = arith.muli %c5_i32, %c8_i32_74 : i32
    %216 = tpu.assume_multiple %215, 8 : i32
    %217 = arith.index_cast %216 : i32 to index
    %c0_75 = arith.constant 0 : index
    %218 = vector.load %arg13[%217, %c0_75] : memref<64x384xf32, #tpu.memory_space<vmem>>, vector<8x384xf32>
    %219 = arith.truncf %209 : vector<8x128xf32> to vector<8x128xbf16>
    %c0_76 = arith.constant 0 : index
    %c0_77 = arith.constant 0 : index
    %220 = vector.load %arg3[%c0_76, %c0_77] : memref<128x384xbf16, #tpu.memory_space<vmem>>, vector<128x384xbf16>
    %cst_78 = arith.constant dense<0.000000e+00> : vector<8x384xf32>
    %221 = tpu.matmul %219, %220, %cst_78 {dimension_numbers = #tpu.dot_dimension_numbers<[1], [0], [0], [1], [0, 0, 1, 1], [], []>} : vector<8x128xbf16>, vector<128x384xbf16>, vector<8x384xf32> -> vector<8x384xf32>
    %c0_79 = arith.constant 0 : index
    %c0_80 = arith.constant 0 : index
    %222 = vector.load %arg5[%c0_79, %c0_80] : memref<1x384xf32, #tpu.memory_space<vmem>>, vector<1x384xf32>
    %223 = vector.broadcast %222 : vector<1x384xf32> to vector<8x384xf32>
    %224 = arith.addf %221, %223 : vector<8x384xf32>
    %225 = vector.extract_strided_slice %218 {offsets = [0, 0], sizes = [8, 128], strides = [1, 1]} : vector<8x384xf32> to vector<8x128xf32>
    %226 = vector.extract_strided_slice %224 {offsets = [0, 0], sizes = [8, 128], strides = [1, 1]} : vector<8x384xf32> to vector<8x128xf32>
    %227 = arith.addf %225, %226 : vector<8x128xf32>
    %228 = arith.negf %227 : vector<8x128xf32>
    %229 = math.exp %228 : vector<8x128xf32>
    %cst_81 = arith.constant 1.000000e+00 : f32
    %230 = vector.broadcast %cst_81 : f32 to vector<8x128xf32>
    %231 = arith.addf %230, %229 : vector<8x128xf32>
    %232 = arith.divf %230, %231 : vector<8x128xf32>
    %233 = vector.extract_strided_slice %218 {offsets = [0, 128], sizes = [8, 128], strides = [1, 1]} : vector<8x384xf32> to vector<8x128xf32>
    %234 = vector.extract_strided_slice %224 {offsets = [0, 128], sizes = [8, 128], strides = [1, 1]} : vector<8x384xf32> to vector<8x128xf32>
    %235 = arith.addf %233, %234 : vector<8x128xf32>
    %236 = arith.negf %235 : vector<8x128xf32>
    %237 = math.exp %236 : vector<8x128xf32>
    %cst_82 = arith.constant 1.000000e+00 : f32
    %238 = vector.broadcast %cst_82 : f32 to vector<8x128xf32>
    %239 = arith.addf %238, %237 : vector<8x128xf32>
    %240 = arith.divf %238, %239 : vector<8x128xf32>
    %241 = vector.extract_strided_slice %218 {offsets = [0, 256], sizes = [8, 128], strides = [1, 1]} : vector<8x384xf32> to vector<8x128xf32>
    %242 = vector.extract_strided_slice %224 {offsets = [0, 256], sizes = [8, 128], strides = [1, 1]} : vector<8x384xf32> to vector<8x128xf32>
    %243 = arith.mulf %232, %242 : vector<8x128xf32>
    %244 = arith.addf %241, %243 : vector<8x128xf32>
    %245 = math.tanh %244 : vector<8x128xf32>
    %cst_83 = arith.constant 1.000000e+00 : f32
    %246 = vector.broadcast %cst_83 : f32 to vector<8x128xf32>
    %247 = arith.subf %246, %240 : vector<8x128xf32>
    %248 = arith.mulf %247, %245 : vector<8x128xf32>
    %249 = arith.mulf %240, %209 : vector<8x128xf32>
    %250 = arith.addf %248, %249 : vector<8x128xf32>
    %c8_i32_84 = arith.constant 8 : i32
    %251 = arith.muli %214, %c8_i32_84 : i32
    %252 = tpu.assume_multiple %251, 8 : i32
    %253 = arith.index_cast %252 : i32 to index
    %c0_85 = arith.constant 0 : index
    %254 = vector.load %arg14[%253, %c0_85] : memref<64x128xf32, #tpu.memory_space<vmem>>, vector<8x128xf32>
    tpu.vector_store %arg14[%253, %c0_85], %250 {strides = array<i32>} : memref<64x128xf32, #tpu.memory_space<vmem>>, vector<8x128xf32>,
    %c6_i32 = arith.constant 6 : i32
    %c0_i32_86 = arith.constant 0 : i32
    %255 = arith.addi %c0_i32_86, %c6_i32 : i32
    %c8_i32_87 = arith.constant 8 : i32
    %256 = arith.muli %c6_i32, %c8_i32_87 : i32
    %257 = tpu.assume_multiple %256, 8 : i32
    %258 = arith.index_cast %257 : i32 to index
    %c0_88 = arith.constant 0 : index
    %259 = vector.load %arg13[%258, %c0_88] : memref<64x384xf32, #tpu.memory_space<vmem>>, vector<8x384xf32>
    %260 = arith.truncf %250 : vector<8x128xf32> to vector<8x128xbf16>
    %c0_89 = arith.constant 0 : index
    %c0_90 = arith.constant 0 : index
    %261 = vector.load %arg3[%c0_89, %c0_90] : memref<128x384xbf16, #tpu.memory_space<vmem>>, vector<128x384xbf16>
    %cst_91 = arith.constant dense<0.000000e+00> : vector<8x384xf32>
    %262 = tpu.matmul %260, %261, %cst_91 {dimension_numbers = #tpu.dot_dimension_numbers<[1], [0], [0], [1], [0, 0, 1, 1], [], []>} : vector<8x128xbf16>, vector<128x384xbf16>, vector<8x384xf32> -> vector<8x384xf32>
    %c0_92 = arith.constant 0 : index
    %c0_93 = arith.constant 0 : index
    %263 = vector.load %arg5[%c0_92, %c0_93] : memref<1x384xf32, #tpu.memory_space<vmem>>, vector<1x384xf32>
    %264 = vector.broadcast %263 : vector<1x384xf32> to vector<8x384xf32>
    %265 = arith.addf %262, %264 : vector<8x384xf32>
    %266 = vector.extract_strided_slice %259 {offsets = [0, 0], sizes = [8, 128], strides = [1, 1]} : vector<8x384xf32> to vector<8x128xf32>
    %267 = vector.extract_strided_slice %265 {offsets = [0, 0], sizes = [8, 128], strides = [1, 1]} : vector<8x384xf32> to vector<8x128xf32>
    %268 = arith.addf %266, %267 : vector<8x128xf32>
    %269 = arith.negf %268 : vector<8x128xf32>
    %270 = math.exp %269 : vector<8x128xf32>
    %cst_94 = arith.constant 1.000000e+00 : f32
    %271 = vector.broadcast %cst_94 : f32 to vector<8x128xf32>
    %272 = arith.addf %271, %270 : vector<8x128xf32>
    %273 = arith.divf %271, %272 : vector<8x128xf32>
    %274 = vector.extract_strided_slice %259 {offsets = [0, 128], sizes = [8, 128], strides = [1, 1]} : vector<8x384xf32> to vector<8x128xf32>
    %275 = vector.extract_strided_slice %265 {offsets = [0, 128], sizes = [8, 128], strides = [1, 1]} : vector<8x384xf32> to vector<8x128xf32>
    %276 = arith.addf %274, %275 : vector<8x128xf32>
    %277 = arith.negf %276 : vector<8x128xf32>
    %278 = math.exp %277 : vector<8x128xf32>
    %cst_95 = arith.constant 1.000000e+00 : f32
    %279 = vector.broadcast %cst_95 : f32 to vector<8x128xf32>
    %280 = arith.addf %279, %278 : vector<8x128xf32>
    %281 = arith.divf %279, %280 : vector<8x128xf32>
    %282 = vector.extract_strided_slice %259 {offsets = [0, 256], sizes = [8, 128], strides = [1, 1]} : vector<8x384xf32> to vector<8x128xf32>
    %283 = vector.extract_strided_slice %265 {offsets = [0, 256], sizes = [8, 128], strides = [1, 1]} : vector<8x384xf32> to vector<8x128xf32>
    %284 = arith.mulf %273, %283 : vector<8x128xf32>
    %285 = arith.addf %282, %284 : vector<8x128xf32>
    %286 = math.tanh %285 : vector<8x128xf32>
    %cst_96 = arith.constant 1.000000e+00 : f32
    %287 = vector.broadcast %cst_96 : f32 to vector<8x128xf32>
    %288 = arith.subf %287, %281 : vector<8x128xf32>
    %289 = arith.mulf %288, %286 : vector<8x128xf32>
    %290 = arith.mulf %281, %250 : vector<8x128xf32>
    %291 = arith.addf %289, %290 : vector<8x128xf32>
    %c8_i32_97 = arith.constant 8 : i32
    %292 = arith.muli %255, %c8_i32_97 : i32
    %293 = tpu.assume_multiple %292, 8 : i32
    %294 = arith.index_cast %293 : i32 to index
    %c0_98 = arith.constant 0 : index
    %295 = vector.load %arg14[%294, %c0_98] : memref<64x128xf32, #tpu.memory_space<vmem>>, vector<8x128xf32>
    tpu.vector_store %arg14[%294, %c0_98], %291 {strides = array<i32>} : memref<64x128xf32, #tpu.memory_space<vmem>>, vector<8x128xf32>,
    %c7_i32 = arith.constant 7 : i32
    %c0_i32_99 = arith.constant 0 : i32
    %296 = arith.addi %c0_i32_99, %c7_i32 : i32
    %c8_i32_100 = arith.constant 8 : i32
    %297 = arith.muli %c7_i32, %c8_i32_100 : i32
    %298 = tpu.assume_multiple %297, 8 : i32
    %299 = arith.index_cast %298 : i32 to index
    %c0_101 = arith.constant 0 : index
    %300 = vector.load %arg13[%299, %c0_101] : memref<64x384xf32, #tpu.memory_space<vmem>>, vector<8x384xf32>
    %301 = arith.truncf %291 : vector<8x128xf32> to vector<8x128xbf16>
    %c0_102 = arith.constant 0 : index
    %c0_103 = arith.constant 0 : index
    %302 = vector.load %arg3[%c0_102, %c0_103] : memref<128x384xbf16, #tpu.memory_space<vmem>>, vector<128x384xbf16>
    %cst_104 = arith.constant dense<0.000000e+00> : vector<8x384xf32>
    %303 = tpu.matmul %301, %302, %cst_104 {dimension_numbers = #tpu.dot_dimension_numbers<[1], [0], [0], [1], [0, 0, 1, 1], [], []>} : vector<8x128xbf16>, vector<128x384xbf16>, vector<8x384xf32> -> vector<8x384xf32>
    %c0_105 = arith.constant 0 : index
    %c0_106 = arith.constant 0 : index
    %304 = vector.load %arg5[%c0_105, %c0_106] : memref<1x384xf32, #tpu.memory_space<vmem>>, vector<1x384xf32>
    %305 = vector.broadcast %304 : vector<1x384xf32> to vector<8x384xf32>
    %306 = arith.addf %303, %305 : vector<8x384xf32>
    %307 = vector.extract_strided_slice %300 {offsets = [0, 0], sizes = [8, 128], strides = [1, 1]} : vector<8x384xf32> to vector<8x128xf32>
    %308 = vector.extract_strided_slice %306 {offsets = [0, 0], sizes = [8, 128], strides = [1, 1]} : vector<8x384xf32> to vector<8x128xf32>
    %309 = arith.addf %307, %308 : vector<8x128xf32>
    %310 = arith.negf %309 : vector<8x128xf32>
    %311 = math.exp %310 : vector<8x128xf32>
    %cst_107 = arith.constant 1.000000e+00 : f32
    %312 = vector.broadcast %cst_107 : f32 to vector<8x128xf32>
    %313 = arith.addf %312, %311 : vector<8x128xf32>
    %314 = arith.divf %312, %313 : vector<8x128xf32>
    %315 = vector.extract_strided_slice %300 {offsets = [0, 128], sizes = [8, 128], strides = [1, 1]} : vector<8x384xf32> to vector<8x128xf32>
    %316 = vector.extract_strided_slice %306 {offsets = [0, 128], sizes = [8, 128], strides = [1, 1]} : vector<8x384xf32> to vector<8x128xf32>
    %317 = arith.addf %315, %316 : vector<8x128xf32>
    %318 = arith.negf %317 : vector<8x128xf32>
    %319 = math.exp %318 : vector<8x128xf32>
    %cst_108 = arith.constant 1.000000e+00 : f32
    %320 = vector.broadcast %cst_108 : f32 to vector<8x128xf32>
    %321 = arith.addf %320, %319 : vector<8x128xf32>
    %322 = arith.divf %320, %321 : vector<8x128xf32>
    %323 = vector.extract_strided_slice %300 {offsets = [0, 256], sizes = [8, 128], strides = [1, 1]} : vector<8x384xf32> to vector<8x128xf32>
    %324 = vector.extract_strided_slice %306 {offsets = [0, 256], sizes = [8, 128], strides = [1, 1]} : vector<8x384xf32> to vector<8x128xf32>
    %325 = arith.mulf %314, %324 : vector<8x128xf32>
    %326 = arith.addf %323, %325 : vector<8x128xf32>
    %327 = math.tanh %326 : vector<8x128xf32>
    %cst_109 = arith.constant 1.000000e+00 : f32
    %328 = vector.broadcast %cst_109 : f32 to vector<8x128xf32>
    %329 = arith.subf %328, %322 : vector<8x128xf32>
    %330 = arith.mulf %329, %327 : vector<8x128xf32>
    %331 = arith.mulf %322, %291 : vector<8x128xf32>
    %332 = arith.addf %330, %331 : vector<8x128xf32>
    %c8_i32_110 = arith.constant 8 : i32
    %333 = arith.muli %296, %c8_i32_110 : i32
    %334 = tpu.assume_multiple %333, 8 : i32
    %335 = arith.index_cast %334 : i32 to index
    %c0_111 = arith.constant 0 : index
    %336 = vector.load %arg14[%335, %c0_111] : memref<64x128xf32, #tpu.memory_space<vmem>>, vector<8x128xf32>
    tpu.vector_store %arg14[%335, %c0_111], %332 {strides = array<i32>} : memref<64x128xf32, #tpu.memory_space<vmem>>, vector<8x128xf32>,
    %c8_i32_112 = arith.constant 8 : i32
    %cst_113 = arith.constant 0.000000e+00 : f32
    %337 = vector.broadcast %cst_113 : f32 to vector<8x128xf32>
    %c0_114 = arith.constant 0 : index
    %c0_115 = arith.constant 0 : index
    %338 = vector.load %arg14[%c0_114, %c0_115] : memref<64x128xf32, #tpu.memory_space<vmem>>, vector<64x128xf32>
    %339 = arith.truncf %338 : vector<64x128xf32> to vector<64x128xbf16>
    %c0_116 = arith.constant 0 : index
    %c0_117 = arith.constant 0 : index
    %340 = vector.load %arg6[%c0_116, %c0_117] : memref<128x384xbf16, #tpu.memory_space<vmem>>, vector<128x384xbf16>
    %cst_118 = arith.constant dense<0.000000e+00> : vector<64x384xf32>
    %341 = tpu.matmul %339, %340, %cst_118 {dimension_numbers = #tpu.dot_dimension_numbers<[1], [0], [0], [1], [0, 0, 1, 1], [], []>} : vector<64x128xbf16>, vector<128x384xbf16>, vector<64x384xf32> -> vector<64x384xf32>
    %c0_119 = arith.constant 0 : index
    %c0_120 = arith.constant 0 : index
    %342 = vector.load %arg8[%c0_119, %c0_120] : memref<1x384xf32, #tpu.memory_space<vmem>>, vector<1x384xf32>
    %343 = vector.broadcast %342 : vector<1x384xf32> to vector<64x384xf32>
    %344 = arith.addf %341, %343 : vector<64x384xf32>
    %c0_121 = arith.constant 0 : index
    %c0_122 = arith.constant 0 : index
    %345 = vector.load %arg13[%c0_121, %c0_122] : memref<64x384xf32, #tpu.memory_space<vmem>>, vector<64x384xf32>
    tpu.vector_store %arg13[%c0_121, %c0_122], %344 {strides = array<i32>} : memref<64x384xf32, #tpu.memory_space<vmem>>, vector<64x384xf32>,
    %c0_i32_123 = arith.constant 0 : i32
    %c0_i32_124 = arith.constant 0 : i32
    %346 = arith.addi %c0_i32_124, %c0_i32_123 : i32
    %c7_i32_125 = arith.constant 7 : i32
    %347 = arith.subi %c7_i32_125, %346 : i32
    %c7_i32_126 = arith.constant 7 : i32
    %348 = arith.subi %c7_i32_126, %c0_i32_123 : i32
    %c8_i32_127 = arith.constant 8 : i32
    %349 = arith.muli %348, %c8_i32_127 : i32
    %350 = tpu.assume_multiple %349, 8 : i32
    %351 = arith.index_cast %350 : i32 to index
    %c0_128 = arith.constant 0 : index
    %352 = vector.load %arg13[%351, %c0_128] : memref<64x384xf32, #tpu.memory_space<vmem>>, vector<8x384xf32>
    %353 = arith.truncf %337 : vector<8x128xf32> to vector<8x128xbf16>
    %c0_129 = arith.constant 0 : index
    %c0_130 = arith.constant 0 : index
    %354 = vector.load %arg7[%c0_129, %c0_130] : memref<128x384xbf16, #tpu.memory_space<vmem>>, vector<128x384xbf16>
    %cst_131 = arith.constant dense<0.000000e+00> : vector<8x384xf32>
    %355 = tpu.matmul %353, %354, %cst_131 {dimension_numbers = #tpu.dot_dimension_numbers<[1], [0], [0], [1], [0, 0, 1, 1], [], []>} : vector<8x128xbf16>, vector<128x384xbf16>, vector<8x384xf32> -> vector<8x384xf32>
    %c0_132 = arith.constant 0 : index
    %c0_133 = arith.constant 0 : index
    %356 = vector.load %arg9[%c0_132, %c0_133] : memref<1x384xf32, #tpu.memory_space<vmem>>, vector<1x384xf32>
    %357 = vector.broadcast %356 : vector<1x384xf32> to vector<8x384xf32>
    %358 = arith.addf %355, %357 : vector<8x384xf32>
    %359 = vector.extract_strided_slice %352 {offsets = [0, 0], sizes = [8, 128], strides = [1, 1]} : vector<8x384xf32> to vector<8x128xf32>
    %360 = vector.extract_strided_slice %358 {offsets = [0, 0], sizes = [8, 128], strides = [1, 1]} : vector<8x384xf32> to vector<8x128xf32>
    %361 = arith.addf %359, %360 : vector<8x128xf32>
    %362 = arith.negf %361 : vector<8x128xf32>
    %363 = math.exp %362 : vector<8x128xf32>
    %cst_134 = arith.constant 1.000000e+00 : f32
    %364 = vector.broadcast %cst_134 : f32 to vector<8x128xf32>
    %365 = arith.addf %364, %363 : vector<8x128xf32>
    %366 = arith.divf %364, %365 : vector<8x128xf32>
    %367 = vector.extract_strided_slice %352 {offsets = [0, 128], sizes = [8, 128], strides = [1, 1]} : vector<8x384xf32> to vector<8x128xf32>
    %368 = vector.extract_strided_slice %358 {offsets = [0, 128], sizes = [8, 128], strides = [1, 1]} : vector<8x384xf32> to vector<8x128xf32>
    %369 = arith.addf %367, %368 : vector<8x128xf32>
    %370 = arith.negf %369 : vector<8x128xf32>
    %371 = math.exp %370 : vector<8x128xf32>
    %cst_135 = arith.constant 1.000000e+00 : f32
    %372 = vector.broadcast %cst_135 : f32 to vector<8x128xf32>
    %373 = arith.addf %372, %371 : vector<8x128xf32>
    %374 = arith.divf %372, %373 : vector<8x128xf32>
    %375 = vector.extract_strided_slice %352 {offsets = [0, 256], sizes = [8, 128], strides = [1, 1]} : vector<8x384xf32> to vector<8x128xf32>
    %376 = vector.extract_strided_slice %358 {offsets = [0, 256], sizes = [8, 128], strides = [1, 1]} : vector<8x384xf32> to vector<8x128xf32>
    %377 = arith.mulf %366, %376 : vector<8x128xf32>
    %378 = arith.addf %375, %377 : vector<8x128xf32>
    %379 = math.tanh %378 : vector<8x128xf32>
    %cst_136 = arith.constant 1.000000e+00 : f32
    %380 = vector.broadcast %cst_136 : f32 to vector<8x128xf32>
    %381 = arith.subf %380, %374 : vector<8x128xf32>
    %382 = arith.mulf %381, %379 : vector<8x128xf32>
    %383 = arith.mulf %374, %337 : vector<8x128xf32>
    %384 = arith.addf %382, %383 : vector<8x128xf32>
    %c8_i32_137 = arith.constant 8 : i32
    %385 = arith.muli %347, %c8_i32_137 : i32
    %386 = tpu.assume_multiple %385, 8 : i32
    %387 = arith.index_cast %386 : i32 to index
    %c0_138 = arith.constant 0 : index
    %388 = vector.load %arg14[%387, %c0_138] : memref<64x128xf32, #tpu.memory_space<vmem>>, vector<8x128xf32>
    %389 = arith.addf %388, %384 : vector<8x128xf32>
    %390 = arith.truncf %389 : vector<8x128xf32> to vector<8x128xbf16>
    %c0_139 = arith.constant 0 : index
    %c0_140 = arith.constant 0 : index
    %391 = vector.load %arg10[%c0_139, %c0_140] : memref<128x128xbf16, #tpu.memory_space<vmem>>, vector<128x128xbf16>
    %cst_141 = arith.constant dense<0.000000e+00> : vector<8x128xf32>
    %392 = tpu.matmul %390, %391, %cst_141 {dimension_numbers = #tpu.dot_dimension_numbers<[1], [0], [0], [1], [0, 0, 1, 1], [], []>} : vector<8x128xbf16>, vector<128x128xbf16>, vector<8x128xf32> -> vector<8x128xf32>
    %c0_142 = arith.constant 0 : index
    %c0_143 = arith.constant 0 : index
    %393 = vector.load %arg11[%c0_142, %c0_143] : memref<1x128xf32, #tpu.memory_space<vmem>>, vector<1x128xf32>
    %394 = vector.broadcast %393 : vector<1x128xf32> to vector<8x128xf32>
    %395 = arith.addf %392, %394 : vector<8x128xf32>
    %cst_144 = arith.constant dense<0xFF800000> : vector<8xf32>
    %396 = vector.multi_reduction <maximumf>, %395, %cst_144 [1] : vector<8x128xf32> to vector<8xf32>
    %397 = vector.shape_cast %396 : vector<8xf32> to vector<8x1xf32>
    %398 = vector.broadcast %397 : vector<8x1xf32> to vector<8x128xf32>
    %399 = arith.subf %395, %398 : vector<8x128xf32>
    %400 = math.exp %399 : vector<8x128xf32>
    %cst_145 = arith.constant dense<0.000000e+00> : vector<8xf32>
    %401 = vector.multi_reduction <add>, %400, %cst_145 [1] : vector<8x128xf32> to vector<8xf32>
    %402 = vector.shape_cast %401 : vector<8xf32> to vector<8x1xf32>
    %403 = math.log %402 : vector<8x1xf32>
    %c7_i32_146 = arith.constant 7 : i32
    %404 = arith.subi %c7_i32_146, %346 : i32
    %405 = vector.broadcast %403 : vector<8x1xf32> to vector<8x128xf32>
    %406 = arith.subf %399, %405 : vector<8x128xf32>
    %407 = vector.shape_cast %406 : vector<8x128xf32> to vector<1x8x128xf32>
    %408 = arith.index_cast %404 : i32 to index
    %c0_147 = arith.constant 0 : index
    %c0_148 = arith.constant 0 : index
    %409 = vector.load %arg12[%408, %c0_147, %c0_148] : memref<8x8x128xf32, #tpu.memory_space<vmem>>, vector<1x8x128xf32>
    tpu.vector_store %arg12[%408, %c0_147, %c0_148], %407 {strides = array<i32>} : memref<8x8x128xf32, #tpu.memory_space<vmem>>, vector<1x8x128xf32>,
    %c1_i32_149 = arith.constant 1 : i32
    %c0_i32_150 = arith.constant 0 : i32
    %410 = arith.addi %c0_i32_150, %c1_i32_149 : i32
    %c7_i32_151 = arith.constant 7 : i32
    %411 = arith.subi %c7_i32_151, %410 : i32
    %c7_i32_152 = arith.constant 7 : i32
    %412 = arith.subi %c7_i32_152, %c1_i32_149 : i32
    %c8_i32_153 = arith.constant 8 : i32
    %413 = arith.muli %412, %c8_i32_153 : i32
    %414 = tpu.assume_multiple %413, 8 : i32
    %415 = arith.index_cast %414 : i32 to index
    %c0_154 = arith.constant 0 : index
    %416 = vector.load %arg13[%415, %c0_154] : memref<64x384xf32, #tpu.memory_space<vmem>>, vector<8x384xf32>
    %417 = arith.truncf %384 : vector<8x128xf32> to vector<8x128xbf16>
    %c0_155 = arith.constant 0 : index
    %c0_156 = arith.constant 0 : index
    %418 = vector.load %arg7[%c0_155, %c0_156] : memref<128x384xbf16, #tpu.memory_space<vmem>>, vector<128x384xbf16>
    %cst_157 = arith.constant dense<0.000000e+00> : vector<8x384xf32>
    %419 = tpu.matmul %417, %418, %cst_157 {dimension_numbers = #tpu.dot_dimension_numbers<[1], [0], [0], [1], [0, 0, 1, 1], [], []>} : vector<8x128xbf16>, vector<128x384xbf16>, vector<8x384xf32> -> vector<8x384xf32>
    %c0_158 = arith.constant 0 : index
    %c0_159 = arith.constant 0 : index
    %420 = vector.load %arg9[%c0_158, %c0_159] : memref<1x384xf32, #tpu.memory_space<vmem>>, vector<1x384xf32>
    %421 = vector.broadcast %420 : vector<1x384xf32> to vector<8x384xf32>
    %422 = arith.addf %419, %421 : vector<8x384xf32>
    %423 = vector.extract_strided_slice %416 {offsets = [0, 0], sizes = [8, 128], strides = [1, 1]} : vector<8x384xf32> to vector<8x128xf32>
    %424 = vector.extract_strided_slice %422 {offsets = [0, 0], sizes = [8, 128], strides = [1, 1]} : vector<8x384xf32> to vector<8x128xf32>
    %425 = arith.addf %423, %424 : vector<8x128xf32>
    %426 = arith.negf %425 : vector<8x128xf32>
    %427 = math.exp %426 : vector<8x128xf32>
    %cst_160 = arith.constant 1.000000e+00 : f32
    %428 = vector.broadcast %cst_160 : f32 to vector<8x128xf32>
    %429 = arith.addf %428, %427 : vector<8x128xf32>
    %430 = arith.divf %428, %429 : vector<8x128xf32>
    %431 = vector.extract_strided_slice %416 {offsets = [0, 128], sizes = [8, 128], strides = [1, 1]} : vector<8x384xf32> to vector<8x128xf32>
    %432 = vector.extract_strided_slice %422 {offsets = [0, 128], sizes = [8, 128], strides = [1, 1]} : vector<8x384xf32> to vector<8x128xf32>
    %433 = arith.addf %431, %432 : vector<8x128xf32>
    %434 = arith.negf %433 : vector<8x128xf32>
    %435 = math.exp %434 : vector<8x128xf32>
    %cst_161 = arith.constant 1.000000e+00 : f32
    %436 = vector.broadcast %cst_161 : f32 to vector<8x128xf32>
    %437 = arith.addf %436, %435 : vector<8x128xf32>
    %438 = arith.divf %436, %437 : vector<8x128xf32>
    %439 = vector.extract_strided_slice %416 {offsets = [0, 256], sizes = [8, 128], strides = [1, 1]} : vector<8x384xf32> to vector<8x128xf32>
    %440 = vector.extract_strided_slice %422 {offsets = [0, 256], sizes = [8, 128], strides = [1, 1]} : vector<8x384xf32> to vector<8x128xf32>
    %441 = arith.mulf %430, %440 : vector<8x128xf32>
    %442 = arith.addf %439, %441 : vector<8x128xf32>
    %443 = math.tanh %442 : vector<8x128xf32>
    %cst_162 = arith.constant 1.000000e+00 : f32
    %444 = vector.broadcast %cst_162 : f32 to vector<8x128xf32>
    %445 = arith.subf %444, %438 : vector<8x128xf32>
    %446 = arith.mulf %445, %443 : vector<8x128xf32>
    %447 = arith.mulf %438, %384 : vector<8x128xf32>
    %448 = arith.addf %446, %447 : vector<8x128xf32>
    %c8_i32_163 = arith.constant 8 : i32
    %449 = arith.muli %411, %c8_i32_163 : i32
    %450 = tpu.assume_multiple %449, 8 : i32
    %451 = arith.index_cast %450 : i32 to index
    %c0_164 = arith.constant 0 : index
    %452 = vector.load %arg14[%451, %c0_164] : memref<64x128xf32, #tpu.memory_space<vmem>>, vector<8x128xf32>
    %453 = arith.addf %452, %448 : vector<8x128xf32>
    %454 = arith.truncf %453 : vector<8x128xf32> to vector<8x128xbf16>
    %c0_165 = arith.constant 0 : index
    %c0_166 = arith.constant 0 : index
    %455 = vector.load %arg10[%c0_165, %c0_166] : memref<128x128xbf16, #tpu.memory_space<vmem>>, vector<128x128xbf16>
    %cst_167 = arith.constant dense<0.000000e+00> : vector<8x128xf32>
    %456 = tpu.matmul %454, %455, %cst_167 {dimension_numbers = #tpu.dot_dimension_numbers<[1], [0], [0], [1], [0, 0, 1, 1], [], []>} : vector<8x128xbf16>, vector<128x128xbf16>, vector<8x128xf32> -> vector<8x128xf32>
    %c0_168 = arith.constant 0 : index
    %c0_169 = arith.constant 0 : index
    %457 = vector.load %arg11[%c0_168, %c0_169] : memref<1x128xf32, #tpu.memory_space<vmem>>, vector<1x128xf32>
    %458 = vector.broadcast %457 : vector<1x128xf32> to vector<8x128xf32>
    %459 = arith.addf %456, %458 : vector<8x128xf32>
    %cst_170 = arith.constant dense<0xFF800000> : vector<8xf32>
    %460 = vector.multi_reduction <maximumf>, %459, %cst_170 [1] : vector<8x128xf32> to vector<8xf32>
    %461 = vector.shape_cast %460 : vector<8xf32> to vector<8x1xf32>
    %462 = vector.broadcast %461 : vector<8x1xf32> to vector<8x128xf32>
    %463 = arith.subf %459, %462 : vector<8x128xf32>
    %464 = math.exp %463 : vector<8x128xf32>
    %cst_171 = arith.constant dense<0.000000e+00> : vector<8xf32>
    %465 = vector.multi_reduction <add>, %464, %cst_171 [1] : vector<8x128xf32> to vector<8xf32>
    %466 = vector.shape_cast %465 : vector<8xf32> to vector<8x1xf32>
    %467 = math.log %466 : vector<8x1xf32>
    %c7_i32_172 = arith.constant 7 : i32
    %468 = arith.subi %c7_i32_172, %410 : i32
    %469 = vector.broadcast %467 : vector<8x1xf32> to vector<8x128xf32>
    %470 = arith.subf %463, %469 : vector<8x128xf32>
    %471 = vector.shape_cast %470 : vector<8x128xf32> to vector<1x8x128xf32>
    %472 = arith.index_cast %468 : i32 to index
    %c0_173 = arith.constant 0 : index
    %c0_174 = arith.constant 0 : index
    %473 = vector.load %arg12[%472, %c0_173, %c0_174] : memref<8x8x128xf32, #tpu.memory_space<vmem>>, vector<1x8x128xf32>
    tpu.vector_store %arg12[%472, %c0_173, %c0_174], %471 {strides = array<i32>} : memref<8x8x128xf32, #tpu.memory_space<vmem>>, vector<1x8x128xf32>,
    %c2_i32_175 = arith.constant 2 : i32
    %c0_i32_176 = arith.constant 0 : i32
    %474 = arith.addi %c0_i32_176, %c2_i32_175 : i32
    %c7_i32_177 = arith.constant 7 : i32
    %475 = arith.subi %c7_i32_177, %474 : i32
    %c7_i32_178 = arith.constant 7 : i32
    %476 = arith.subi %c7_i32_178, %c2_i32_175 : i32
    %c8_i32_179 = arith.constant 8 : i32
    %477 = arith.muli %476, %c8_i32_179 : i32
    %478 = tpu.assume_multiple %477, 8 : i32
    %479 = arith.index_cast %478 : i32 to index
    %c0_180 = arith.constant 0 : index
    %480 = vector.load %arg13[%479, %c0_180] : memref<64x384xf32, #tpu.memory_space<vmem>>, vector<8x384xf32>
    %481 = arith.truncf %448 : vector<8x128xf32> to vector<8x128xbf16>
    %c0_181 = arith.constant 0 : index
    %c0_182 = arith.constant 0 : index
    %482 = vector.load %arg7[%c0_181, %c0_182] : memref<128x384xbf16, #tpu.memory_space<vmem>>, vector<128x384xbf16>
    %cst_183 = arith.constant dense<0.000000e+00> : vector<8x384xf32>
    %483 = tpu.matmul %481, %482, %cst_183 {dimension_numbers = #tpu.dot_dimension_numbers<[1], [0], [0], [1], [0, 0, 1, 1], [], []>} : vector<8x128xbf16>, vector<128x384xbf16>, vector<8x384xf32> -> vector<8x384xf32>
    %c0_184 = arith.constant 0 : index
    %c0_185 = arith.constant 0 : index
    %484 = vector.load %arg9[%c0_184, %c0_185] : memref<1x384xf32, #tpu.memory_space<vmem>>, vector<1x384xf32>
    %485 = vector.broadcast %484 : vector<1x384xf32> to vector<8x384xf32>
    %486 = arith.addf %483, %485 : vector<8x384xf32>
    %487 = vector.extract_strided_slice %480 {offsets = [0, 0], sizes = [8, 128], strides = [1, 1]} : vector<8x384xf32> to vector<8x128xf32>
    %488 = vector.extract_strided_slice %486 {offsets = [0, 0], sizes = [8, 128], strides = [1, 1]} : vector<8x384xf32> to vector<8x128xf32>
    %489 = arith.addf %487, %488 : vector<8x128xf32>
    %490 = arith.negf %489 : vector<8x128xf32>
    %491 = math.exp %490 : vector<8x128xf32>
    %cst_186 = arith.constant 1.000000e+00 : f32
    %492 = vector.broadcast %cst_186 : f32 to vector<8x128xf32>
    %493 = arith.addf %492, %491 : vector<8x128xf32>
    %494 = arith.divf %492, %493 : vector<8x128xf32>
    %495 = vector.extract_strided_slice %480 {offsets = [0, 128], sizes = [8, 128], strides = [1, 1]} : vector<8x384xf32> to vector<8x128xf32>
    %496 = vector.extract_strided_slice %486 {offsets = [0, 128], sizes = [8, 128], strides = [1, 1]} : vector<8x384xf32> to vector<8x128xf32>
    %497 = arith.addf %495, %496 : vector<8x128xf32>
    %498 = arith.negf %497 : vector<8x128xf32>
    %499 = math.exp %498 : vector<8x128xf32>
    %cst_187 = arith.constant 1.000000e+00 : f32
    %500 = vector.broadcast %cst_187 : f32 to vector<8x128xf32>
    %501 = arith.addf %500, %499 : vector<8x128xf32>
    %502 = arith.divf %500, %501 : vector<8x128xf32>
    %503 = vector.extract_strided_slice %480 {offsets = [0, 256], sizes = [8, 128], strides = [1, 1]} : vector<8x384xf32> to vector<8x128xf32>
    %504 = vector.extract_strided_slice %486 {offsets = [0, 256], sizes = [8, 128], strides = [1, 1]} : vector<8x384xf32> to vector<8x128xf32>
    %505 = arith.mulf %494, %504 : vector<8x128xf32>
    %506 = arith.addf %503, %505 : vector<8x128xf32>
    %507 = math.tanh %506 : vector<8x128xf32>
    %cst_188 = arith.constant 1.000000e+00 : f32
    %508 = vector.broadcast %cst_188 : f32 to vector<8x128xf32>
    %509 = arith.subf %508, %502 : vector<8x128xf32>
    %510 = arith.mulf %509, %507 : vector<8x128xf32>
    %511 = arith.mulf %502, %448 : vector<8x128xf32>
    %512 = arith.addf %510, %511 : vector<8x128xf32>
    %c8_i32_189 = arith.constant 8 : i32
    %513 = arith.muli %475, %c8_i32_189 : i32
    %514 = tpu.assume_multiple %513, 8 : i32
    %515 = arith.index_cast %514 : i32 to index
    %c0_190 = arith.constant 0 : index
    %516 = vector.load %arg14[%515, %c0_190] : memref<64x128xf32, #tpu.memory_space<vmem>>, vector<8x128xf32>
    %517 = arith.addf %516, %512 : vector<8x128xf32>
    %518 = arith.truncf %517 : vector<8x128xf32> to vector<8x128xbf16>
    %c0_191 = arith.constant 0 : index
    %c0_192 = arith.constant 0 : index
    %519 = vector.load %arg10[%c0_191, %c0_192] : memref<128x128xbf16, #tpu.memory_space<vmem>>, vector<128x128xbf16>
    %cst_193 = arith.constant dense<0.000000e+00> : vector<8x128xf32>
    %520 = tpu.matmul %518, %519, %cst_193 {dimension_numbers = #tpu.dot_dimension_numbers<[1], [0], [0], [1], [0, 0, 1, 1], [], []>} : vector<8x128xbf16>, vector<128x128xbf16>, vector<8x128xf32> -> vector<8x128xf32>
    %c0_194 = arith.constant 0 : index
    %c0_195 = arith.constant 0 : index
    %521 = vector.load %arg11[%c0_194, %c0_195] : memref<1x128xf32, #tpu.memory_space<vmem>>, vector<1x128xf32>
    %522 = vector.broadcast %521 : vector<1x128xf32> to vector<8x128xf32>
    %523 = arith.addf %520, %522 : vector<8x128xf32>
    %cst_196 = arith.constant dense<0xFF800000> : vector<8xf32>
    %524 = vector.multi_reduction <maximumf>, %523, %cst_196 [1] : vector<8x128xf32> to vector<8xf32>
    %525 = vector.shape_cast %524 : vector<8xf32> to vector<8x1xf32>
    %526 = vector.broadcast %525 : vector<8x1xf32> to vector<8x128xf32>
    %527 = arith.subf %523, %526 : vector<8x128xf32>
    %528 = math.exp %527 : vector<8x128xf32>
    %cst_197 = arith.constant dense<0.000000e+00> : vector<8xf32>
    %529 = vector.multi_reduction <add>, %528, %cst_197 [1] : vector<8x128xf32> to vector<8xf32>
    %530 = vector.shape_cast %529 : vector<8xf32> to vector<8x1xf32>
    %531 = math.log %530 : vector<8x1xf32>
    %c7_i32_198 = arith.constant 7 : i32
    %532 = arith.subi %c7_i32_198, %474 : i32
    %533 = vector.broadcast %531 : vector<8x1xf32> to vector<8x128xf32>
    %534 = arith.subf %527, %533 : vector<8x128xf32>
    %535 = vector.shape_cast %534 : vector<8x128xf32> to vector<1x8x128xf32>
    %536 = arith.index_cast %532 : i32 to index
    %c0_199 = arith.constant 0 : index
    %c0_200 = arith.constant 0 : index
    %537 = vector.load %arg12[%536, %c0_199, %c0_200] : memref<8x8x128xf32, #tpu.memory_space<vmem>>, vector<1x8x128xf32>
    tpu.vector_store %arg12[%536, %c0_199, %c0_200], %535 {strides = array<i32>} : memref<8x8x128xf32, #tpu.memory_space<vmem>>, vector<1x8x128xf32>,
    %c3_i32_201 = arith.constant 3 : i32
    %c0_i32_202 = arith.constant 0 : i32
    %538 = arith.addi %c0_i32_202, %c3_i32_201 : i32
    %c7_i32_203 = arith.constant 7 : i32
    %539 = arith.subi %c7_i32_203, %538 : i32
    %c7_i32_204 = arith.constant 7 : i32
    %540 = arith.subi %c7_i32_204, %c3_i32_201 : i32
    %c8_i32_205 = arith.constant 8 : i32
    %541 = arith.muli %540, %c8_i32_205 : i32
    %542 = tpu.assume_multiple %541, 8 : i32
    %543 = arith.index_cast %542 : i32 to index
    %c0_206 = arith.constant 0 : index
    %544 = vector.load %arg13[%543, %c0_206] : memref<64x384xf32, #tpu.memory_space<vmem>>, vector<8x384xf32>
    %545 = arith.truncf %512 : vector<8x128xf32> to vector<8x128xbf16>
    %c0_207 = arith.constant 0 : index
    %c0_208 = arith.constant 0 : index
    %546 = vector.load %arg7[%c0_207, %c0_208] : memref<128x384xbf16, #tpu.memory_space<vmem>>, vector<128x384xbf16>
    %cst_209 = arith.constant dense<0.000000e+00> : vector<8x384xf32>
    %547 = tpu.matmul %545, %546, %cst_209 {dimension_numbers = #tpu.dot_dimension_numbers<[1], [0], [0], [1], [0, 0, 1, 1], [], []>} : vector<8x128xbf16>, vector<128x384xbf16>, vector<8x384xf32> -> vector<8x384xf32>
    %c0_210 = arith.constant 0 : index
    %c0_211 = arith.constant 0 : index
    %548 = vector.load %arg9[%c0_210, %c0_211] : memref<1x384xf32, #tpu.memory_space<vmem>>, vector<1x384xf32>
    %549 = vector.broadcast %548 : vector<1x384xf32> to vector<8x384xf32>
    %550 = arith.addf %547, %549 : vector<8x384xf32>
    %551 = vector.extract_strided_slice %544 {offsets = [0, 0], sizes = [8, 128], strides = [1, 1]} : vector<8x384xf32> to vector<8x128xf32>
    %552 = vector.extract_strided_slice %550 {offsets = [0, 0], sizes = [8, 128], strides = [1, 1]} : vector<8x384xf32> to vector<8x128xf32>
    %553 = arith.addf %551, %552 : vector<8x128xf32>
    %554 = arith.negf %553 : vector<8x128xf32>
    %555 = math.exp %554 : vector<8x128xf32>
    %cst_212 = arith.constant 1.000000e+00 : f32
    %556 = vector.broadcast %cst_212 : f32 to vector<8x128xf32>
    %557 = arith.addf %556, %555 : vector<8x128xf32>
    %558 = arith.divf %556, %557 : vector<8x128xf32>
    %559 = vector.extract_strided_slice %544 {offsets = [0, 128], sizes = [8, 128], strides = [1, 1]} : vector<8x384xf32> to vector<8x128xf32>
    %560 = vector.extract_strided_slice %550 {offsets = [0, 128], sizes = [8, 128], strides = [1, 1]} : vector<8x384xf32> to vector<8x128xf32>
    %561 = arith.addf %559, %560 : vector<8x128xf32>
    %562 = arith.negf %561 : vector<8x128xf32>
    %563 = math.exp %562 : vector<8x128xf32>
    %cst_213 = arith.constant 1.000000e+00 : f32
    %564 = vector.broadcast %cst_213 : f32 to vector<8x128xf32>
    %565 = arith.addf %564, %563 : vector<8x128xf32>
    %566 = arith.divf %564, %565 : vector<8x128xf32>
    %567 = vector.extract_strided_slice %544 {offsets = [0, 256], sizes = [8, 128], strides = [1, 1]} : vector<8x384xf32> to vector<8x128xf32>
    %568 = vector.extract_strided_slice %550 {offsets = [0, 256], sizes = [8, 128], strides = [1, 1]} : vector<8x384xf32> to vector<8x128xf32>
    %569 = arith.mulf %558, %568 : vector<8x128xf32>
    %570 = arith.addf %567, %569 : vector<8x128xf32>
    %571 = math.tanh %570 : vector<8x128xf32>
    %cst_214 = arith.constant 1.000000e+00 : f32
    %572 = vector.broadcast %cst_214 : f32 to vector<8x128xf32>
    %573 = arith.subf %572, %566 : vector<8x128xf32>
    %574 = arith.mulf %573, %571 : vector<8x128xf32>
    %575 = arith.mulf %566, %512 : vector<8x128xf32>
    %576 = arith.addf %574, %575 : vector<8x128xf32>
    %c8_i32_215 = arith.constant 8 : i32
    %577 = arith.muli %539, %c8_i32_215 : i32
    %578 = tpu.assume_multiple %577, 8 : i32
    %579 = arith.index_cast %578 : i32 to index
    %c0_216 = arith.constant 0 : index
    %580 = vector.load %arg14[%579, %c0_216] : memref<64x128xf32, #tpu.memory_space<vmem>>, vector<8x128xf32>
    %581 = arith.addf %580, %576 : vector<8x128xf32>
    %582 = arith.truncf %581 : vector<8x128xf32> to vector<8x128xbf16>
    %c0_217 = arith.constant 0 : index
    %c0_218 = arith.constant 0 : index
    %583 = vector.load %arg10[%c0_217, %c0_218] : memref<128x128xbf16, #tpu.memory_space<vmem>>, vector<128x128xbf16>
    %cst_219 = arith.constant dense<0.000000e+00> : vector<8x128xf32>
    %584 = tpu.matmul %582, %583, %cst_219 {dimension_numbers = #tpu.dot_dimension_numbers<[1], [0], [0], [1], [0, 0, 1, 1], [], []>} : vector<8x128xbf16>, vector<128x128xbf16>, vector<8x128xf32> -> vector<8x128xf32>
    %c0_220 = arith.constant 0 : index
    %c0_221 = arith.constant 0 : index
    %585 = vector.load %arg11[%c0_220, %c0_221] : memref<1x128xf32, #tpu.memory_space<vmem>>, vector<1x128xf32>
    %586 = vector.broadcast %585 : vector<1x128xf32> to vector<8x128xf32>
    %587 = arith.addf %584, %586 : vector<8x128xf32>
    %cst_222 = arith.constant dense<0xFF800000> : vector<8xf32>
    %588 = vector.multi_reduction <maximumf>, %587, %cst_222 [1] : vector<8x128xf32> to vector<8xf32>
    %589 = vector.shape_cast %588 : vector<8xf32> to vector<8x1xf32>
    %590 = vector.broadcast %589 : vector<8x1xf32> to vector<8x128xf32>
    %591 = arith.subf %587, %590 : vector<8x128xf32>
    %592 = math.exp %591 : vector<8x128xf32>
    %cst_223 = arith.constant dense<0.000000e+00> : vector<8xf32>
    %593 = vector.multi_reduction <add>, %592, %cst_223 [1] : vector<8x128xf32> to vector<8xf32>
    %594 = vector.shape_cast %593 : vector<8xf32> to vector<8x1xf32>
    %595 = math.log %594 : vector<8x1xf32>
    %c7_i32_224 = arith.constant 7 : i32
    %596 = arith.subi %c7_i32_224, %538 : i32
    %597 = vector.broadcast %595 : vector<8x1xf32> to vector<8x128xf32>
    %598 = arith.subf %591, %597 : vector<8x128xf32>
    %599 = vector.shape_cast %598 : vector<8x128xf32> to vector<1x8x128xf32>
    %600 = arith.index_cast %596 : i32 to index
    %c0_225 = arith.constant 0 : index
    %c0_226 = arith.constant 0 : index
    %601 = vector.load %arg12[%600, %c0_225, %c0_226] : memref<8x8x128xf32, #tpu.memory_space<vmem>>, vector<1x8x128xf32>
    tpu.vector_store %arg12[%600, %c0_225, %c0_226], %599 {strides = array<i32>} : memref<8x8x128xf32, #tpu.memory_space<vmem>>, vector<1x8x128xf32>,
    %c4_i32_227 = arith.constant 4 : i32
    %c0_i32_228 = arith.constant 0 : i32
    %602 = arith.addi %c0_i32_228, %c4_i32_227 : i32
    %c7_i32_229 = arith.constant 7 : i32
    %603 = arith.subi %c7_i32_229, %602 : i32
    %c7_i32_230 = arith.constant 7 : i32
    %604 = arith.subi %c7_i32_230, %c4_i32_227 : i32
    %c8_i32_231 = arith.constant 8 : i32
    %605 = arith.muli %604, %c8_i32_231 : i32
    %606 = tpu.assume_multiple %605, 8 : i32
    %607 = arith.index_cast %606 : i32 to index
    %c0_232 = arith.constant 0 : index
    %608 = vector.load %arg13[%607, %c0_232] : memref<64x384xf32, #tpu.memory_space<vmem>>, vector<8x384xf32>
    %609 = arith.truncf %576 : vector<8x128xf32> to vector<8x128xbf16>
    %c0_233 = arith.constant 0 : index
    %c0_234 = arith.constant 0 : index
    %610 = vector.load %arg7[%c0_233, %c0_234] : memref<128x384xbf16, #tpu.memory_space<vmem>>, vector<128x384xbf16>
    %cst_235 = arith.constant dense<0.000000e+00> : vector<8x384xf32>
    %611 = tpu.matmul %609, %610, %cst_235 {dimension_numbers = #tpu.dot_dimension_numbers<[1], [0], [0], [1], [0, 0, 1, 1], [], []>} : vector<8x128xbf16>, vector<128x384xbf16>, vector<8x384xf32> -> vector<8x384xf32>
    %c0_236 = arith.constant 0 : index
    %c0_237 = arith.constant 0 : index
    %612 = vector.load %arg9[%c0_236, %c0_237] : memref<1x384xf32, #tpu.memory_space<vmem>>, vector<1x384xf32>
    %613 = vector.broadcast %612 : vector<1x384xf32> to vector<8x384xf32>
    %614 = arith.addf %611, %613 : vector<8x384xf32>
    %615 = vector.extract_strided_slice %608 {offsets = [0, 0], sizes = [8, 128], strides = [1, 1]} : vector<8x384xf32> to vector<8x128xf32>
    %616 = vector.extract_strided_slice %614 {offsets = [0, 0], sizes = [8, 128], strides = [1, 1]} : vector<8x384xf32> to vector<8x128xf32>
    %617 = arith.addf %615, %616 : vector<8x128xf32>
    %618 = arith.negf %617 : vector<8x128xf32>
    %619 = math.exp %618 : vector<8x128xf32>
    %cst_238 = arith.constant 1.000000e+00 : f32
    %620 = vector.broadcast %cst_238 : f32 to vector<8x128xf32>
    %621 = arith.addf %620, %619 : vector<8x128xf32>
    %622 = arith.divf %620, %621 : vector<8x128xf32>
    %623 = vector.extract_strided_slice %608 {offsets = [0, 128], sizes = [8, 128], strides = [1, 1]} : vector<8x384xf32> to vector<8x128xf32>
    %624 = vector.extract_strided_slice %614 {offsets = [0, 128], sizes = [8, 128], strides = [1, 1]} : vector<8x384xf32> to vector<8x128xf32>
    %625 = arith.addf %623, %624 : vector<8x128xf32>
    %626 = arith.negf %625 : vector<8x128xf32>
    %627 = math.exp %626 : vector<8x128xf32>
    %cst_239 = arith.constant 1.000000e+00 : f32
    %628 = vector.broadcast %cst_239 : f32 to vector<8x128xf32>
    %629 = arith.addf %628, %627 : vector<8x128xf32>
    %630 = arith.divf %628, %629 : vector<8x128xf32>
    %631 = vector.extract_strided_slice %608 {offsets = [0, 256], sizes = [8, 128], strides = [1, 1]} : vector<8x384xf32> to vector<8x128xf32>
    %632 = vector.extract_strided_slice %614 {offsets = [0, 256], sizes = [8, 128], strides = [1, 1]} : vector<8x384xf32> to vector<8x128xf32>
    %633 = arith.mulf %622, %632 : vector<8x128xf32>
    %634 = arith.addf %631, %633 : vector<8x128xf32>
    %635 = math.tanh %634 : vector<8x128xf32>
    %cst_240 = arith.constant 1.000000e+00 : f32
    %636 = vector.broadcast %cst_240 : f32 to vector<8x128xf32>
    %637 = arith.subf %636, %630 : vector<8x128xf32>
    %638 = arith.mulf %637, %635 : vector<8x128xf32>
    %639 = arith.mulf %630, %576 : vector<8x128xf32>
    %640 = arith.addf %638, %639 : vector<8x128xf32>
    %c8_i32_241 = arith.constant 8 : i32
    %641 = arith.muli %603, %c8_i32_241 : i32
    %642 = tpu.assume_multiple %641, 8 : i32
    %643 = arith.index_cast %642 : i32 to index
    %c0_242 = arith.constant 0 : index
    %644 = vector.load %arg14[%643, %c0_242] : memref<64x128xf32, #tpu.memory_space<vmem>>, vector<8x128xf32>
    %645 = arith.addf %644, %640 : vector<8x128xf32>
    %646 = arith.truncf %645 : vector<8x128xf32> to vector<8x128xbf16>
    %c0_243 = arith.constant 0 : index
    %c0_244 = arith.constant 0 : index
    %647 = vector.load %arg10[%c0_243, %c0_244] : memref<128x128xbf16, #tpu.memory_space<vmem>>, vector<128x128xbf16>
    %cst_245 = arith.constant dense<0.000000e+00> : vector<8x128xf32>
    %648 = tpu.matmul %646, %647, %cst_245 {dimension_numbers = #tpu.dot_dimension_numbers<[1], [0], [0], [1], [0, 0, 1, 1], [], []>} : vector<8x128xbf16>, vector<128x128xbf16>, vector<8x128xf32> -> vector<8x128xf32>
    %c0_246 = arith.constant 0 : index
    %c0_247 = arith.constant 0 : index
    %649 = vector.load %arg11[%c0_246, %c0_247] : memref<1x128xf32, #tpu.memory_space<vmem>>, vector<1x128xf32>
    %650 = vector.broadcast %649 : vector<1x128xf32> to vector<8x128xf32>
    %651 = arith.addf %648, %650 : vector<8x128xf32>
    %cst_248 = arith.constant dense<0xFF800000> : vector<8xf32>
    %652 = vector.multi_reduction <maximumf>, %651, %cst_248 [1] : vector<8x128xf32> to vector<8xf32>
    %653 = vector.shape_cast %652 : vector<8xf32> to vector<8x1xf32>
    %654 = vector.broadcast %653 : vector<8x1xf32> to vector<8x128xf32>
    %655 = arith.subf %651, %654 : vector<8x128xf32>
    %656 = math.exp %655 : vector<8x128xf32>
    %cst_249 = arith.constant dense<0.000000e+00> : vector<8xf32>
    %657 = vector.multi_reduction <add>, %656, %cst_249 [1] : vector<8x128xf32> to vector<8xf32>
    %658 = vector.shape_cast %657 : vector<8xf32> to vector<8x1xf32>
    %659 = math.log %658 : vector<8x1xf32>
    %c7_i32_250 = arith.constant 7 : i32
    %660 = arith.subi %c7_i32_250, %602 : i32
    %661 = vector.broadcast %659 : vector<8x1xf32> to vector<8x128xf32>
    %662 = arith.subf %655, %661 : vector<8x128xf32>
    %663 = vector.shape_cast %662 : vector<8x128xf32> to vector<1x8x128xf32>
    %664 = arith.index_cast %660 : i32 to index
    %c0_251 = arith.constant 0 : index
    %c0_252 = arith.constant 0 : index
    %665 = vector.load %arg12[%664, %c0_251, %c0_252] : memref<8x8x128xf32, #tpu.memory_space<vmem>>, vector<1x8x128xf32>
    tpu.vector_store %arg12[%664, %c0_251, %c0_252], %663 {strides = array<i32>} : memref<8x8x128xf32, #tpu.memory_space<vmem>>, vector<1x8x128xf32>,
    %c5_i32_253 = arith.constant 5 : i32
    %c0_i32_254 = arith.constant 0 : i32
    %666 = arith.addi %c0_i32_254, %c5_i32_253 : i32
    %c7_i32_255 = arith.constant 7 : i32
    %667 = arith.subi %c7_i32_255, %666 : i32
    %c7_i32_256 = arith.constant 7 : i32
    %668 = arith.subi %c7_i32_256, %c5_i32_253 : i32
    %c8_i32_257 = arith.constant 8 : i32
    %669 = arith.muli %668, %c8_i32_257 : i32
    %670 = tpu.assume_multiple %669, 8 : i32
    %671 = arith.index_cast %670 : i32 to index
    %c0_258 = arith.constant 0 : index
    %672 = vector.load %arg13[%671, %c0_258] : memref<64x384xf32, #tpu.memory_space<vmem>>, vector<8x384xf32>
    %673 = arith.truncf %640 : vector<8x128xf32> to vector<8x128xbf16>
    %c0_259 = arith.constant 0 : index
    %c0_260 = arith.constant 0 : index
    %674 = vector.load %arg7[%c0_259, %c0_260] : memref<128x384xbf16, #tpu.memory_space<vmem>>, vector<128x384xbf16>
    %cst_261 = arith.constant dense<0.000000e+00> : vector<8x384xf32>
    %675 = tpu.matmul %673, %674, %cst_261 {dimension_numbers = #tpu.dot_dimension_numbers<[1], [0], [0], [1], [0, 0, 1, 1], [], []>} : vector<8x128xbf16>, vector<128x384xbf16>, vector<8x384xf32> -> vector<8x384xf32>
    %c0_262 = arith.constant 0 : index
    %c0_263 = arith.constant 0 : index
    %676 = vector.load %arg9[%c0_262, %c0_263] : memref<1x384xf32, #tpu.memory_space<vmem>>, vector<1x384xf32>
    %677 = vector.broadcast %676 : vector<1x384xf32> to vector<8x384xf32>
    %678 = arith.addf %675, %677 : vector<8x384xf32>
    %679 = vector.extract_strided_slice %672 {offsets = [0, 0], sizes = [8, 128], strides = [1, 1]} : vector<8x384xf32> to vector<8x128xf32>
    %680 = vector.extract_strided_slice %678 {offsets = [0, 0], sizes = [8, 128], strides = [1, 1]} : vector<8x384xf32> to vector<8x128xf32>
    %681 = arith.addf %679, %680 : vector<8x128xf32>
    %682 = arith.negf %681 : vector<8x128xf32>
    %683 = math.exp %682 : vector<8x128xf32>
    %cst_264 = arith.constant 1.000000e+00 : f32
    %684 = vector.broadcast %cst_264 : f32 to vector<8x128xf32>
    %685 = arith.addf %684, %683 : vector<8x128xf32>
    %686 = arith.divf %684, %685 : vector<8x128xf32>
    %687 = vector.extract_strided_slice %672 {offsets = [0, 128], sizes = [8, 128], strides = [1, 1]} : vector<8x384xf32> to vector<8x128xf32>
    %688 = vector.extract_strided_slice %678 {offsets = [0, 128], sizes = [8, 128], strides = [1, 1]} : vector<8x384xf32> to vector<8x128xf32>
    %689 = arith.addf %687, %688 : vector<8x128xf32>
    %690 = arith.negf %689 : vector<8x128xf32>
    %691 = math.exp %690 : vector<8x128xf32>
    %cst_265 = arith.constant 1.000000e+00 : f32
    %692 = vector.broadcast %cst_265 : f32 to vector<8x128xf32>
    %693 = arith.addf %692, %691 : vector<8x128xf32>
    %694 = arith.divf %692, %693 : vector<8x128xf32>
    %695 = vector.extract_strided_slice %672 {offsets = [0, 256], sizes = [8, 128], strides = [1, 1]} : vector<8x384xf32> to vector<8x128xf32>
    %696 = vector.extract_strided_slice %678 {offsets = [0, 256], sizes = [8, 128], strides = [1, 1]} : vector<8x384xf32> to vector<8x128xf32>
    %697 = arith.mulf %686, %696 : vector<8x128xf32>
    %698 = arith.addf %695, %697 : vector<8x128xf32>
    %699 = math.tanh %698 : vector<8x128xf32>
    %cst_266 = arith.constant 1.000000e+00 : f32
    %700 = vector.broadcast %cst_266 : f32 to vector<8x128xf32>
    %701 = arith.subf %700, %694 : vector<8x128xf32>
    %702 = arith.mulf %701, %699 : vector<8x128xf32>
    %703 = arith.mulf %694, %640 : vector<8x128xf32>
    %704 = arith.addf %702, %703 : vector<8x128xf32>
    %c8_i32_267 = arith.constant 8 : i32
    %705 = arith.muli %667, %c8_i32_267 : i32
    %706 = tpu.assume_multiple %705, 8 : i32
    %707 = arith.index_cast %706 : i32 to index
    %c0_268 = arith.constant 0 : index
    %708 = vector.load %arg14[%707, %c0_268] : memref<64x128xf32, #tpu.memory_space<vmem>>, vector<8x128xf32>
    %709 = arith.addf %708, %704 : vector<8x128xf32>
    %710 = arith.truncf %709 : vector<8x128xf32> to vector<8x128xbf16>
    %c0_269 = arith.constant 0 : index
    %c0_270 = arith.constant 0 : index
    %711 = vector.load %arg10[%c0_269, %c0_270] : memref<128x128xbf16, #tpu.memory_space<vmem>>, vector<128x128xbf16>
    %cst_271 = arith.constant dense<0.000000e+00> : vector<8x128xf32>
    %712 = tpu.matmul %710, %711, %cst_271 {dimension_numbers = #tpu.dot_dimension_numbers<[1], [0], [0], [1], [0, 0, 1, 1], [], []>} : vector<8x128xbf16>, vector<128x128xbf16>, vector<8x128xf32> -> vector<8x128xf32>
    %c0_272 = arith.constant 0 : index
    %c0_273 = arith.constant 0 : index
    %713 = vector.load %arg11[%c0_272, %c0_273] : memref<1x128xf32, #tpu.memory_space<vmem>>, vector<1x128xf32>
    %714 = vector.broadcast %713 : vector<1x128xf32> to vector<8x128xf32>
    %715 = arith.addf %712, %714 : vector<8x128xf32>
    %cst_274 = arith.constant dense<0xFF800000> : vector<8xf32>
    %716 = vector.multi_reduction <maximumf>, %715, %cst_274 [1] : vector<8x128xf32> to vector<8xf32>
    %717 = vector.shape_cast %716 : vector<8xf32> to vector<8x1xf32>
    %718 = vector.broadcast %717 : vector<8x1xf32> to vector<8x128xf32>
    %719 = arith.subf %715, %718 : vector<8x128xf32>
    %720 = math.exp %719 : vector<8x128xf32>
    %cst_275 = arith.constant dense<0.000000e+00> : vector<8xf32>
    %721 = vector.multi_reduction <add>, %720, %cst_275 [1] : vector<8x128xf32> to vector<8xf32>
    %722 = vector.shape_cast %721 : vector<8xf32> to vector<8x1xf32>
    %723 = math.log %722 : vector<8x1xf32>
    %c7_i32_276 = arith.constant 7 : i32
    %724 = arith.subi %c7_i32_276, %666 : i32
    %725 = vector.broadcast %723 : vector<8x1xf32> to vector<8x128xf32>
    %726 = arith.subf %719, %725 : vector<8x128xf32>
    %727 = vector.shape_cast %726 : vector<8x128xf32> to vector<1x8x128xf32>
    %728 = arith.index_cast %724 : i32 to index
    %c0_277 = arith.constant 0 : index
    %c0_278 = arith.constant 0 : index
    %729 = vector.load %arg12[%728, %c0_277, %c0_278] : memref<8x8x128xf32, #tpu.memory_space<vmem>>, vector<1x8x128xf32>
    tpu.vector_store %arg12[%728, %c0_277, %c0_278], %727 {strides = array<i32>} : memref<8x8x128xf32, #tpu.memory_space<vmem>>, vector<1x8x128xf32>,
    %c6_i32_279 = arith.constant 6 : i32
    %c0_i32_280 = arith.constant 0 : i32
    %730 = arith.addi %c0_i32_280, %c6_i32_279 : i32
    %c7_i32_281 = arith.constant 7 : i32
    %731 = arith.subi %c7_i32_281, %730 : i32
    %c7_i32_282 = arith.constant 7 : i32
    %732 = arith.subi %c7_i32_282, %c6_i32_279 : i32
    %c8_i32_283 = arith.constant 8 : i32
    %733 = arith.muli %732, %c8_i32_283 : i32
    %734 = tpu.assume_multiple %733, 8 : i32
    %735 = arith.index_cast %734 : i32 to index
    %c0_284 = arith.constant 0 : index
    %736 = vector.load %arg13[%735, %c0_284] : memref<64x384xf32, #tpu.memory_space<vmem>>, vector<8x384xf32>
    %737 = arith.truncf %704 : vector<8x128xf32> to vector<8x128xbf16>
    %c0_285 = arith.constant 0 : index
    %c0_286 = arith.constant 0 : index
    %738 = vector.load %arg7[%c0_285, %c0_286] : memref<128x384xbf16, #tpu.memory_space<vmem>>, vector<128x384xbf16>
    %cst_287 = arith.constant dense<0.000000e+00> : vector<8x384xf32>
    %739 = tpu.matmul %737, %738, %cst_287 {dimension_numbers = #tpu.dot_dimension_numbers<[1], [0], [0], [1], [0, 0, 1, 1], [], []>} : vector<8x128xbf16>, vector<128x384xbf16>, vector<8x384xf32> -> vector<8x384xf32>
    %c0_288 = arith.constant 0 : index
    %c0_289 = arith.constant 0 : index
    %740 = vector.load %arg9[%c0_288, %c0_289] : memref<1x384xf32, #tpu.memory_space<vmem>>, vector<1x384xf32>
    %741 = vector.broadcast %740 : vector<1x384xf32> to vector<8x384xf32>
    %742 = arith.addf %739, %741 : vector<8x384xf32>
    %743 = vector.extract_strided_slice %736 {offsets = [0, 0], sizes = [8, 128], strides = [1, 1]} : vector<8x384xf32> to vector<8x128xf32>
    %744 = vector.extract_strided_slice %742 {offsets = [0, 0], sizes = [8, 128], strides = [1, 1]} : vector<8x384xf32> to vector<8x128xf32>
    %745 = arith.addf %743, %744 : vector<8x128xf32>
    %746 = arith.negf %745 : vector<8x128xf32>
    %747 = math.exp %746 : vector<8x128xf32>
    %cst_290 = arith.constant 1.000000e+00 : f32
    %748 = vector.broadcast %cst_290 : f32 to vector<8x128xf32>
    %749 = arith.addf %748, %747 : vector<8x128xf32>
    %750 = arith.divf %748, %749 : vector<8x128xf32>
    %751 = vector.extract_strided_slice %736 {offsets = [0, 128], sizes = [8, 128], strides = [1, 1]} : vector<8x384xf32> to vector<8x128xf32>
    %752 = vector.extract_strided_slice %742 {offsets = [0, 128], sizes = [8, 128], strides = [1, 1]} : vector<8x384xf32> to vector<8x128xf32>
    %753 = arith.addf %751, %752 : vector<8x128xf32>
    %754 = arith.negf %753 : vector<8x128xf32>
    %755 = math.exp %754 : vector<8x128xf32>
    %cst_291 = arith.constant 1.000000e+00 : f32
    %756 = vector.broadcast %cst_291 : f32 to vector<8x128xf32>
    %757 = arith.addf %756, %755 : vector<8x128xf32>
    %758 = arith.divf %756, %757 : vector<8x128xf32>
    %759 = vector.extract_strided_slice %736 {offsets = [0, 256], sizes = [8, 128], strides = [1, 1]} : vector<8x384xf32> to vector<8x128xf32>
    %760 = vector.extract_strided_slice %742 {offsets = [0, 256], sizes = [8, 128], strides = [1, 1]} : vector<8x384xf32> to vector<8x128xf32>
    %761 = arith.mulf %750, %760 : vector<8x128xf32>
    %762 = arith.addf %759, %761 : vector<8x128xf32>
    %763 = math.tanh %762 : vector<8x128xf32>
    %cst_292 = arith.constant 1.000000e+00 : f32
    %764 = vector.broadcast %cst_292 : f32 to vector<8x128xf32>
    %765 = arith.subf %764, %758 : vector<8x128xf32>
    %766 = arith.mulf %765, %763 : vector<8x128xf32>
    %767 = arith.mulf %758, %704 : vector<8x128xf32>
    %768 = arith.addf %766, %767 : vector<8x128xf32>
    %c8_i32_293 = arith.constant 8 : i32
    %769 = arith.muli %731, %c8_i32_293 : i32
    %770 = tpu.assume_multiple %769, 8 : i32
    %771 = arith.index_cast %770 : i32 to index
    %c0_294 = arith.constant 0 : index
    %772 = vector.load %arg14[%771, %c0_294] : memref<64x128xf32, #tpu.memory_space<vmem>>, vector<8x128xf32>
    %773 = arith.addf %772, %768 : vector<8x128xf32>
    %774 = arith.truncf %773 : vector<8x128xf32> to vector<8x128xbf16>
    %c0_295 = arith.constant 0 : index
    %c0_296 = arith.constant 0 : index
    %775 = vector.load %arg10[%c0_295, %c0_296] : memref<128x128xbf16, #tpu.memory_space<vmem>>, vector<128x128xbf16>
    %cst_297 = arith.constant dense<0.000000e+00> : vector<8x128xf32>
    %776 = tpu.matmul %774, %775, %cst_297 {dimension_numbers = #tpu.dot_dimension_numbers<[1], [0], [0], [1], [0, 0, 1, 1], [], []>} : vector<8x128xbf16>, vector<128x128xbf16>, vector<8x128xf32> -> vector<8x128xf32>
    %c0_298 = arith.constant 0 : index
    %c0_299 = arith.constant 0 : index
    %777 = vector.load %arg11[%c0_298, %c0_299] : memref<1x128xf32, #tpu.memory_space<vmem>>, vector<1x128xf32>
    %778 = vector.broadcast %777 : vector<1x128xf32> to vector<8x128xf32>
    %779 = arith.addf %776, %778 : vector<8x128xf32>
    %cst_300 = arith.constant dense<0xFF800000> : vector<8xf32>
    %780 = vector.multi_reduction <maximumf>, %779, %cst_300 [1] : vector<8x128xf32> to vector<8xf32>
    %781 = vector.shape_cast %780 : vector<8xf32> to vector<8x1xf32>
    %782 = vector.broadcast %781 : vector<8x1xf32> to vector<8x128xf32>
    %783 = arith.subf %779, %782 : vector<8x128xf32>
    %784 = math.exp %783 : vector<8x128xf32>
    %cst_301 = arith.constant dense<0.000000e+00> : vector<8xf32>
    %785 = vector.multi_reduction <add>, %784, %cst_301 [1] : vector<8x128xf32> to vector<8xf32>
    %786 = vector.shape_cast %785 : vector<8xf32> to vector<8x1xf32>
    %787 = math.log %786 : vector<8x1xf32>
    %c7_i32_302 = arith.constant 7 : i32
    %788 = arith.subi %c7_i32_302, %730 : i32
    %789 = vector.broadcast %787 : vector<8x1xf32> to vector<8x128xf32>
    %790 = arith.subf %783, %789 : vector<8x128xf32>
    %791 = vector.shape_cast %790 : vector<8x128xf32> to vector<1x8x128xf32>
    %792 = arith.index_cast %788 : i32 to index
    %c0_303 = arith.constant 0 : index
    %c0_304 = arith.constant 0 : index
    %793 = vector.load %arg12[%792, %c0_303, %c0_304] : memref<8x8x128xf32, #tpu.memory_space<vmem>>, vector<1x8x128xf32>
    tpu.vector_store %arg12[%792, %c0_303, %c0_304], %791 {strides = array<i32>} : memref<8x8x128xf32, #tpu.memory_space<vmem>>, vector<1x8x128xf32>,
    %c7_i32_305 = arith.constant 7 : i32
    %c0_i32_306 = arith.constant 0 : i32
    %794 = arith.addi %c0_i32_306, %c7_i32_305 : i32
    %c7_i32_307 = arith.constant 7 : i32
    %795 = arith.subi %c7_i32_307, %794 : i32
    %c7_i32_308 = arith.constant 7 : i32
    %796 = arith.subi %c7_i32_308, %c7_i32_305 : i32
    %c8_i32_309 = arith.constant 8 : i32
    %797 = arith.muli %796, %c8_i32_309 : i32
    %798 = tpu.assume_multiple %797, 8 : i32
    %799 = arith.index_cast %798 : i32 to index
    %c0_310 = arith.constant 0 : index
    %800 = vector.load %arg13[%799, %c0_310] : memref<64x384xf32, #tpu.memory_space<vmem>>, vector<8x384xf32>
    %801 = arith.truncf %768 : vector<8x128xf32> to vector<8x128xbf16>
    %c0_311 = arith.constant 0 : index
    %c0_312 = arith.constant 0 : index
    %802 = vector.load %arg7[%c0_311, %c0_312] : memref<128x384xbf16, #tpu.memory_space<vmem>>, vector<128x384xbf16>
    %cst_313 = arith.constant dense<0.000000e+00> : vector<8x384xf32>
    %803 = tpu.matmul %801, %802, %cst_313 {dimension_numbers = #tpu.dot_dimension_numbers<[1], [0], [0], [1], [0, 0, 1, 1], [], []>} : vector<8x128xbf16>, vector<128x384xbf16>, vector<8x384xf32> -> vector<8x384xf32>
    %c0_314 = arith.constant 0 : index
    %c0_315 = arith.constant 0 : index
    %804 = vector.load %arg9[%c0_314, %c0_315] : memref<1x384xf32, #tpu.memory_space<vmem>>, vector<1x384xf32>
    %805 = vector.broadcast %804 : vector<1x384xf32> to vector<8x384xf32>
    %806 = arith.addf %803, %805 : vector<8x384xf32>
    %807 = vector.extract_strided_slice %800 {offsets = [0, 0], sizes = [8, 128], strides = [1, 1]} : vector<8x384xf32> to vector<8x128xf32>
    %808 = vector.extract_strided_slice %806 {offsets = [0, 0], sizes = [8, 128], strides = [1, 1]} : vector<8x384xf32> to vector<8x128xf32>
    %809 = arith.addf %807, %808 : vector<8x128xf32>
    %810 = arith.negf %809 : vector<8x128xf32>
    %811 = math.exp %810 : vector<8x128xf32>
    %cst_316 = arith.constant 1.000000e+00 : f32
    %812 = vector.broadcast %cst_316 : f32 to vector<8x128xf32>
    %813 = arith.addf %812, %811 : vector<8x128xf32>
    %814 = arith.divf %812, %813 : vector<8x128xf32>
    %815 = vector.extract_strided_slice %800 {offsets = [0, 128], sizes = [8, 128], strides = [1, 1]} : vector<8x384xf32> to vector<8x128xf32>
    %816 = vector.extract_strided_slice %806 {offsets = [0, 128], sizes = [8, 128], strides = [1, 1]} : vector<8x384xf32> to vector<8x128xf32>
    %817 = arith.addf %815, %816 : vector<8x128xf32>
    %818 = arith.negf %817 : vector<8x128xf32>
    %819 = math.exp %818 : vector<8x128xf32>
    %cst_317 = arith.constant 1.000000e+00 : f32
    %820 = vector.broadcast %cst_317 : f32 to vector<8x128xf32>
    %821 = arith.addf %820, %819 : vector<8x128xf32>
    %822 = arith.divf %820, %821 : vector<8x128xf32>
    %823 = vector.extract_strided_slice %800 {offsets = [0, 256], sizes = [8, 128], strides = [1, 1]} : vector<8x384xf32> to vector<8x128xf32>
    %824 = vector.extract_strided_slice %806 {offsets = [0, 256], sizes = [8, 128], strides = [1, 1]} : vector<8x384xf32> to vector<8x128xf32>
    %825 = arith.mulf %814, %824 : vector<8x128xf32>
    %826 = arith.addf %823, %825 : vector<8x128xf32>
    %827 = math.tanh %826 : vector<8x128xf32>
    %cst_318 = arith.constant 1.000000e+00 : f32
    %828 = vector.broadcast %cst_318 : f32 to vector<8x128xf32>
    %829 = arith.subf %828, %822 : vector<8x128xf32>
    %830 = arith.mulf %829, %827 : vector<8x128xf32>
    %831 = arith.mulf %822, %768 : vector<8x128xf32>
    %832 = arith.addf %830, %831 : vector<8x128xf32>
    %c8_i32_319 = arith.constant 8 : i32
    %833 = arith.muli %795, %c8_i32_319 : i32
    %834 = tpu.assume_multiple %833, 8 : i32
    %835 = arith.index_cast %834 : i32 to index
    %c0_320 = arith.constant 0 : index
    %836 = vector.load %arg14[%835, %c0_320] : memref<64x128xf32, #tpu.memory_space<vmem>>, vector<8x128xf32>
    %837 = arith.addf %836, %832 : vector<8x128xf32>
    %838 = arith.truncf %837 : vector<8x128xf32> to vector<8x128xbf16>
    %c0_321 = arith.constant 0 : index
    %c0_322 = arith.constant 0 : index
    %839 = vector.load %arg10[%c0_321, %c0_322] : memref<128x128xbf16, #tpu.memory_space<vmem>>, vector<128x128xbf16>
    %cst_323 = arith.constant dense<0.000000e+00> : vector<8x128xf32>
    %840 = tpu.matmul %838, %839, %cst_323 {dimension_numbers = #tpu.dot_dimension_numbers<[1], [0], [0], [1], [0, 0, 1, 1], [], []>} : vector<8x128xbf16>, vector<128x128xbf16>, vector<8x128xf32> -> vector<8x128xf32>
    %c0_324 = arith.constant 0 : index
    %c0_325 = arith.constant 0 : index
    %841 = vector.load %arg11[%c0_324, %c0_325] : memref<1x128xf32, #tpu.memory_space<vmem>>, vector<1x128xf32>
    %842 = vector.broadcast %841 : vector<1x128xf32> to vector<8x128xf32>
    %843 = arith.addf %840, %842 : vector<8x128xf32>
    %cst_326 = arith.constant dense<0xFF800000> : vector<8xf32>
    %844 = vector.multi_reduction <maximumf>, %843, %cst_326 [1] : vector<8x128xf32> to vector<8xf32>
    %845 = vector.shape_cast %844 : vector<8xf32> to vector<8x1xf32>
    %846 = vector.broadcast %845 : vector<8x1xf32> to vector<8x128xf32>
    %847 = arith.subf %843, %846 : vector<8x128xf32>
    %848 = math.exp %847 : vector<8x128xf32>
    %cst_327 = arith.constant dense<0.000000e+00> : vector<8xf32>
    %849 = vector.multi_reduction <add>, %848, %cst_327 [1] : vector<8x128xf32> to vector<8xf32>
    %850 = vector.shape_cast %849 : vector<8xf32> to vector<8x1xf32>
    %851 = math.log %850 : vector<8x1xf32>
    %c7_i32_328 = arith.constant 7 : i32
    %852 = arith.subi %c7_i32_328, %794 : i32
    %853 = vector.broadcast %851 : vector<8x1xf32> to vector<8x128xf32>
    %854 = arith.subf %847, %853 : vector<8x128xf32>
    %855 = vector.shape_cast %854 : vector<8x128xf32> to vector<1x8x128xf32>
    %856 = arith.index_cast %852 : i32 to index
    %c0_329 = arith.constant 0 : index
    %c0_330 = arith.constant 0 : index
    %857 = vector.load %arg12[%856, %c0_329, %c0_330] : memref<8x8x128xf32, #tpu.memory_space<vmem>>, vector<1x8x128xf32>
    tpu.vector_store %arg12[%856, %c0_329, %c0_330], %855 {strides = array<i32>} : memref<8x8x128xf32, #tpu.memory_space<vmem>>, vector<1x8x128xf32>,
    %c8_i32_331 = arith.constant 8 : i32
    return
  }
  func.func @transform_0(%arg0: i32) -> (i32, i32, i32) {
    %c0_i32 = arith.constant 0 : i32
    %c0_i32_0 = arith.constant 0 : i32
    %c0_i32_1 = arith.constant 0 : i32
    return %c0_i32, %arg0, %c0_i32_0 : i32, i32, i32
  }
  func.func @transform_1(%arg0: i32) -> (i32, i32) {
    %c0_i32 = arith.constant 0 : i32
    %c0_i32_0 = arith.constant 0 : i32
    %c0_i32_1 = arith.constant 0 : i32
    return %c0_i32, %c0_i32_0 : i32, i32
  }
  func.func @transform_2(%arg0: i32) -> (i32, i32) {
    %c0_i32 = arith.constant 0 : i32
    %c0_i32_0 = arith.constant 0 : i32
    %c0_i32_1 = arith.constant 0 : i32
    return %c0_i32, %c0_i32_0 : i32, i32
  }
  func.func @transform_3(%arg0: i32) -> (i32, i32) {
    %c0_i32 = arith.constant 0 : i32
    %c0_i32_0 = arith.constant 0 : i32
    %c0_i32_1 = arith.constant 0 : i32
    return %c0_i32, %c0_i32_0 : i32, i32
  }
  func.func @transform_4(%arg0: i32) -> (i32, i32) {
    %c0_i32 = arith.constant 0 : i32
    %c0_i32_0 = arith.constant 0 : i32
    %c0_i32_1 = arith.constant 0 : i32
    return %c0_i32, %c0_i32_0 : i32, i32
  }
  func.func @transform_5(%arg0: i32) -> (i32, i32) {
    %c0_i32 = arith.constant 0 : i32
    %c0_i32_0 = arith.constant 0 : i32
    %c0_i32_1 = arith.constant 0 : i32
    return %c0_i32, %c0_i32_0 : i32, i32
  }
  func.func @transform_6(%arg0: i32) -> (i32, i32) {
    %c0_i32 = arith.constant 0 : i32
    %c0_i32_0 = arith.constant 0 : i32
    %c0_i32_1 = arith.constant 0 : i32
    return %c0_i32, %c0_i32_0 : i32, i32
  }
  func.func @transform_7(%arg0: i32) -> (i32, i32) {
    %c0_i32 = arith.constant 0 : i32
    %c0_i32_0 = arith.constant 0 : i32
    %c0_i32_1 = arith.constant 0 : i32
    return %c0_i32, %c0_i32_0 : i32, i32
  }
  func.func @transform_8(%arg0: i32) -> (i32, i32) {
    %c0_i32 = arith.constant 0 : i32
    %c0_i32_0 = arith.constant 0 : i32
    %c0_i32_1 = arith.constant 0 : i32
    return %c0_i32, %c0_i32_0 : i32, i32
  }
  func.func @transform_9(%arg0: i32) -> (i32, i32) {
    %c0_i32 = arith.constant 0 : i32
    %c0_i32_0 = arith.constant 0 : i32
    %c0_i32_1 = arith.constant 0 : i32
    return %c0_i32, %c0_i32_0 : i32, i32
  }
  func.func @transform_10(%arg0: i32) -> (i32, i32) {
    %c0_i32 = arith.constant 0 : i32
    %c0_i32_0 = arith.constant 0 : i32
    %c0_i32_1 = arith.constant 0 : i32
    return %c0_i32, %c0_i32_0 : i32, i32
  }
  func.func @transform_11(%arg0: i32) -> (i32, i32, i32) {
    %c0_i32 = arith.constant 0 : i32
    %c0_i32_0 = arith.constant 0 : i32
    %c0_i32_1 = arith.constant 0 : i32
    return %c0_i32, %arg0, %c0_i32_0 : i32, i32, i32
  }
}

</mosaic_0001>

<bundles_post_ra>
// kernel: forward.1
= control target key start
LH: loop header
LB: loop body
LE: loop exit
PB: predicated region body
PF: predicated region fallthrough
CT: control target
= control target key end

     0   :  { %16 = vsyncpa [#allocation5], 0  ;;  %s10656_s0 = inlined_call_operand.vmem [shape: bf16[8,8,128], index: 0, kind: input, shape index: {}]   ;;  %s10657_s1 = inlined_call_operand.hbm [shape: bf16[128,384], index: 1, kind: input, shape index: {}]   ;;  %s10658_s2 = inlined_call_operand.hbm [shape: bf16[128,384], index: 2, kind: input, shape index: {}]   ;;  %s10659_s3 = inlined_call_operand.hbm [shape: f32[1,384], index: 3, kind: input, shape index: {}]   ;;  %s10660_s4 = inlined_call_operand.hbm [shape: f32[1,384], index: 4, kind: input, shape index: {}]   ;;  %s10661_s5 = inlined_call_operand.hbm [shape: bf16[128,384], index: 5, kind: input, shape index: {}]   ;;  %s10662_s6 = inlined_call_operand.vmem [shape: bf16[128,384], index: 6, kind: input, shape index: {}]   ;;  %s10663_s7 = inlined_call_operand.hbm [shape: f32[1,384], index: 7, kind: input, shape index: {}]   ;;  %s10664_s8 = inlined_call_operand.vmem [shape: f32[1,384], index: 8, kind: input, shape index: {}]   ;;  %s10665_s9 = inlined_call_operand.vmem [shape: bf16[128,128], index: 9, kind: input, shape index: {}]   ;;  %s10666_s10 = inlined_call_operand.hbm [shape: f32[1,128], index: 10, kind: input, shape index: {}]   ;;  %s10667_s11 = inlined_call_operand.vmem [shape: f32[8,8,128], index: 11, kind: output, shape index: {}]  }
   0x1   :  { %17 = vsyncpa [#allocation7], 0 }
   0x2   :  { %18 = vsyncpa [#allocation10], 0 }
   0x3   :  { %19 = vsyncpa [#allocation13], 0  ;;  %s39_s19 = sshll.u32 %s10658_s2, 4  ;;  %s8614_s20 = smov [#allocation6]   ;;  %s40_s19 = int_to_ptr.hbm [resolvable:$true] %s39_s19 }
   0x4   :  { %s41_s21 = sshll.u32 %s8614_s20, 4  ;;  %s64_s24 = sshll.u32 %s10660_s4, 4  ;;  %s42_s21 = int_to_ptr.vmem [resolvable:$true] %s41_s21  ;;  %s65_s24 = int_to_ptr.hbm [resolvable:$true] %s64_s24 }
   0x5   :  { %s8615_s25 = smov 192   ;;  %s8616_s26 = smov 12  }
   0x6   :  { %47 = dma.hbm_to_vmem [thread:$0]  %s40_s19, 3072, %s42_s21, [#allocation7], %s8615_s25, %s8615_s25, %s8616_s26  }
   0x7   :  { %s8617_s27 = smov [#allocation9]   ;;  %s90_s2 = sshll.u32 %s10663_s7, 4  ;;  %s91_s2 = int_to_ptr.hbm [resolvable:$true] %s90_s2 }
   0x8   :  { %s66_s28 = sshll.u32 %s8617_s27, 4  ;;  %s26_s4 = sshll.u32 %s10657_s1, 4  ;;  %s67_s28 = int_to_ptr.vmem [resolvable:$true] %s66_s28  ;;  %s27_s4 = int_to_ptr.hbm [resolvable:$true] %s26_s4 }
   0x9   :  { %69 = dma.hbm_to_vmem [thread:$0]  %s65_s24, 48, %s67_s28, [#allocation10]  }
   0xa   :  { %s8618_s14 = smov [#allocation12]   ;;  %s8619_s16 = smov [#allocation4]  }
   0xb   :  { %s92_s15 = sshll.u32 %s8618_s14, 4  ;;  %s28_s17 = sshll.u32 %s8619_s16, 4  ;;  %s93_s15 = int_to_ptr.vmem [resolvable:$true] %s92_s15  ;;  %s29_s17 = int_to_ptr.vmem [resolvable:$true] %s28_s17 }
   0xc   :  { %95 = dma.hbm_to_vmem [thread:$0]  %s91_s2, 48, %s93_s15, [#allocation13]  }
   0xd   :  { %s53_s20 = sshll.u32 %s10659_s3, 4  ;;  %s74_s1 = sshll.u32 %s10661_s5, 4  ;;  %s54_s20 = int_to_ptr.hbm [resolvable:$true] %s53_s20  ;;  %s75_s1 = int_to_ptr.hbm [resolvable:$true] %s74_s1 }
   0xe   :  { %34 = dma.hbm_to_vmem [thread:$0]  %s27_s4, 3072, %s29_s17, [#allocation5], %s8615_s25, %s8615_s25, %s8616_s26  }
   0xf   :  { %s8620_s22 = smov [#allocation8]   ;;  %s8621_s24 = smov [#allocation11]  }
  0x10   :  { %s55_s23 = sshll.u32 %s8620_s22, 4  ;;  %s76_s27 = sshll.u32 %s8621_s24, 4  ;;  %s56_s23 = int_to_ptr.vmem [resolvable:$true] %s55_s23  ;;  %s77_s27 = int_to_ptr.vmem [resolvable:$true] %s76_s27 }
  0x11   :  { %58 = dma.hbm_to_vmem [thread:$0]  %s54_s20, 48, %s56_s23, [#allocation7]  }
  0x12   :  { %s105_s3 = sshll.u32 %s10666_s10, 4  ;;  %s8622_s30 = smov [#allocation14]   ;;  %s106_s3 = int_to_ptr.hbm [resolvable:$true] %s105_s3 }
  0x13   :  { %82 = dma.hbm_to_vmem [thread:$0]  %s75_s1, 3072, %s77_s27, [#allocation10], %s8615_s25, %s8615_s25, %s8616_s26  }
  0x14   :  { %s107_s2 = sshll.u32 %s8622_s30, 4  ;;  %s108_s2 = int_to_ptr.vmem [resolvable:$true] %s107_s2 }
  0x15   :  { %110 = dma.hbm_to_vmem [thread:$0]  %s106_s3, 16, %s108_s2, [#allocation13]  }
  0x16   :  { %8606 = dma.done.wait [#allocation5], 3072  }
  0x17   :  { %8607 = vsyncadd [#allocation5], 4294964224 }
  0x18   :  { %8608 = dma.done.wait [#allocation7], 3120  }
  0x19   :  { %8609 = vsyncadd [#allocation7], 4294964176 }
  0x1a   :  { %8610 = dma.done.wait [#allocation10], 3120  }
  0x1b   :  { %8611 = vsyncadd [#allocation10], 4294964176 }
  0x1c   :  { %8612 = dma.done.wait [#allocation13], 64  }
  0x1d   :  { %8613 = vsyncadd [#allocation13], 4294967232  ;;  %v5791_v0 = vld [vmem:[#allocation4 + $0xa8] sm:$0xf]  ;;  %v7754_v1 = vld [vmem:[#allocation4 + $0xb0] sm:$0xf0] }
  0x1e   :  { %v5887_v2 = vld [vmem:[#allocation6 + $0xa8] sm:$0xf]  ;;  %v5792_v3 = vor.u32 %v7754_v1, %v5791_v0  ;;  %v7778_v4 = vld [vmem:[#allocation6 + $0xb0] sm:$0xf0]  ;;  %v5779_v5 = vld [vmem:[#allocation4 + $0x90] sm:$0xf] }
  0x1f   :  { %v7751_v6 = vld [vmem:[#allocation4 + $0x98] sm:$0xf0]  ;;  %v5888_v7 = vor.u32 %v7778_v4, %v5887_v2  ;;  %v5875_v8 = vld [vmem:[#allocation6 + $0x90] sm:$0xf]  ;;  %v5767_v12 = vld [vmem:[#allocation4 + $0x78] sm:$0xf] }
  0x20   :  { %v7775_v9 = vld [vmem:[#allocation6 + $0x98] sm:$0xf0]  ;;  %340 = vmatpush.bf16.msra.mxu0 %v5792_v3  ;;  %v5780_v10 = vor.u32 %v7751_v6, %v5779_v5  ;;  %v7748_v13 = vld [vmem:[#allocation4 + $0x80] sm:$0xf0]  ;;  %v5863_v14 = vld [vmem:[#allocation6 + $0x78] sm:$0xf] }
  0x21   :  { %625 = vmatpush.bf16.msra.mxu3 %v5888_v7  ;;  %v5876_v11 = vor.u32 %v7775_v9, %v5875_v8  ;;  %v7772_v15 = vld [vmem:[#allocation6 + $0x80] sm:$0xf0]  ;;  %v5768_v16 = vor.u32 %v7748_v13, %v5767_v12  ;;  %v5755_v18 = vld [vmem:[#allocation4 + $0x60] sm:$0xf]  ;;  %v7745_v19 = vld [vmem:[#allocation4 + $0x68] sm:$0xf0] }
  0x22   :  { %v5864_v17 = vor.u32 %v7772_v15, %v5863_v14  ;;  %v5851_v20 = vld [vmem:[#allocation6 + $0x60] sm:$0xf]  ;;  %v7769_v21 = vld [vmem:[#allocation6 + $0x68] sm:$0xf0]  ;;  %v5756_v22 = vor.u32 %v7745_v19, %v5755_v18  ;;  %v5743_v24 = vld [vmem:[#allocation4 + $0x48] sm:$0xf] }
  0x23   :  { %v5852_v23 = vor.u32 %v7769_v21, %v5851_v20  ;;  %v7742_v25 = vld [vmem:[#allocation4 + $0x50] sm:$0xf0]  ;;  %v5839_v26 = vld [vmem:[#allocation6 + $0x48] sm:$0xf]  ;;  %v7753_v28 = vld [vmem:[#allocation4 + $0xac] sm:$0xf] }
  0x24   :  { %341 = vmatpush.bf16.msra.mxu0 %v5780_v10  ;;  %v7766_v27 = vld [vmem:[#allocation6 + $0x50] sm:$0xf0]  ;;  %v5793_v29 = vld [vmem:[#allocation4 + $0xb4] sm:$0xf0]  ;;  %v5781_v32 = vld [vmem:[#allocation4 + $0x9c] sm:$0xf0]  ;;  %v5744_v33 = vor.u32 %v7742_v25, %v5743_v24 }
  0x25   :  { %626 = vmatpush.bf16.msra.mxu3 %v5876_v11  ;;  %v5796_v30 = vor.u32 %v7753_v28, %v5793_v29  ;;  %v7750_v31 = vld [vmem:[#allocation4 + $0x94] sm:$0xf]  ;;  %v5840_v34 = vor.u32 %v7766_v27, %v5839_v26  ;;  %v5731_v35 = vld [vmem:[#allocation4 + $0x30] sm:$0xf]  ;;  %v7739_v36 = vld [vmem:[#allocation4 + $0x38] sm:$0xf0] }
  0x26   :  { %v5827_v37 = vld [vmem:[#allocation6 + $0x30] sm:$0xf]  ;;  %v5784_v38 = vor.u32 %v7750_v31, %v5781_v32  ;;  %v7763_v39 = vld [vmem:[#allocation6 + $0x38] sm:$0xf0]  ;;  %v5769_v41 = vld [vmem:[#allocation4 + $0x84] sm:$0xf0]  ;;  %v5732_v42 = vor.u32 %v7739_v36, %v5731_v35 }
  0x27   :  { %369 = vmatpush.bf16.msra.mxu1 %v5796_v30  ;;  %v7747_v40 = vld [vmem:[#allocation4 + $0x7c] sm:$0xf]  ;;  %v5719_v43 = vld [vmem:[#allocation4 + $0x18] sm:$0xf]  ;;  %v7736_v44 = vld [vmem:[#allocation4 + $0x20] sm:$0xf0]  ;;  %v5828_v46 = vor.u32 %v7763_v39, %v5827_v37 }
  0x28   :  { %342 = vmatpush.bf16.msra.mxu0 %v5768_v16  ;;  %v5815_v45 = vld [vmem:[#allocation6 + $0x18] sm:$0xf]  ;;  %v7760_v47 = vld [vmem:[#allocation6 + $0x20] sm:$0xf0]  ;;  %v5772_v48 = vor.u32 %v7747_v40, %v5769_v41  ;;  %v5757_v50 = vld [vmem:[#allocation4 + $0x6c] sm:$0xf0]  ;;  %v5720_v56 = vor.u32 %v7736_v44, %v5719_v43 }
  0x29   :  { %627 = vmatpush.bf16.msra.mxu3 %v5864_v17  ;;  %v7744_v49 = vld [vmem:[#allocation4 + $0x64] sm:$0xf]  ;;  %v5799_v51 = vld [vmem:[#allocation4 + $0xb0] sm:$0xf]  ;;  %v7755_v52 = vld [vmem:[#allocation4 + $0xb8] sm:$0xf0]  ;;  %v5816_v59 = vor.u32 %v7760_v47, %v5815_v45 }
  0x2a   :  { %v5707_v53 = vld [vmem:[#allocation4] sm:$0xf]  ;;  %v7733_v54 = vld [vmem:[#allocation4 + $0x8] sm:$0xf0]  ;;  %v5800_v55 = vor.u32 %v7755_v52, %v5799_v51  ;;  %v5889_v61 = vld [vmem:[#allocation6 + $0xb4] sm:$0xf0]  ;;  %v5760_v62 = vor.u32 %v7744_v49, %v5757_v50 }
  0x2b   :  { %370 = vmatpush.bf16.msra.mxu1 %v5784_v38  ;;  %v5803_v57 = vld [vmem:[#allocation6] sm:$0xf]  ;;  %v7757_v58 = vld [vmem:[#allocation6 + $0x8] sm:$0xf0]  ;;  %v5895_v63 = vld [vmem:[#allocation6 + $0xb0] sm:$0xf]  ;;  %v5708_v5 = vor.u32 %v7733_v54, %v5707_v53 }
  0x2c   :  { %343 = vmatpush.bf16.msra.mxu0 %v5756_v22  ;;  %v7777_v60 = vld [vmem:[#allocation6 + $0xac] sm:$0xf]  ;;  %v7779_v0 = vld [vmem:[#allocation6 + $0xb8] sm:$0xf0]  ;;  %398 = vmatpush.bf16.msra.mxu2 %v5800_v55  ;;  %v5787_v1 = vld [vmem:[#allocation4 + $0x98] sm:$0xf]  ;;  %v5804_v7 = vor.u32 %v7757_v58, %v5803_v57 }
  0x2d   :  { %628 = vmatpush.bf16.msra.mxu3 %v5852_v23  ;;  %v7741_v2 = vld [vmem:[#allocation4 + $0x4c] sm:$0xf]  ;;  %v5745_v3 = vld [vmem:[#allocation4 + $0x54] sm:$0xf0]  ;;  %v7752_v4 = vld [vmem:[#allocation4 + $0xa0] sm:$0xf0]  ;;  %v5896_v9 = vor.u32 %v7779_v0, %v5895_v63  ;;  %v5892_v12 = vor.u32 %v7777_v60, %v5889_v61 }
  0x2e   :  { %v5788_v6 = vor.u32 %v7752_v4, %v5787_v1  ;;  %v8717_v8 = vld [vmem:[%s10656_s0] sm:$0xff]  ;;  %v7774_v10 = vld [vmem:[#allocation6 + $0x94] sm:$0xf]  ;;  %v5883_v11 = vld [vmem:[#allocation6 + $0x98] sm:$0xf]  ;;  %v5748_v14 = vor.u32 %v7741_v2, %v5745_v3 }
  0x2f   :  { %371 = vmatpush.bf16.msra.mxu1 %v5772_v48  ;;  %v7776_v13 = vld [vmem:[#allocation6 + $0xa0] sm:$0xf0]  ;;  %v5775_v15 = vld [vmem:[#allocation4 + $0x80] sm:$0xf]  ;;  %v7749_v16 = vld [vmem:[#allocation4 + $0x88] sm:$0xf0] }
  0x30   :  { %344 = vmatpush.bf16.msra.mxu0 %v5744_v33  ;;  %399 = vmatpush.bf16.msra.mxu2 %v5788_v6  ;;  %v5877_v17 = vld [vmem:[#allocation6 + $0x9c] sm:$0xf0]  ;;  %v7738_v18 = vld [vmem:[#allocation4 + $0x34] sm:$0xf]  ;;  %v5776_v20 = vor.u32 %v7749_v16, %v5775_v15  ;;  %v7771_v21 = vld [vmem:[#allocation6 + $0x7c] sm:$0xf]  ;;  %v5884_v22 = vor.u32 %v7776_v13, %v5883_v11 }
  0x31   :  { %629 = vmatpush.bf16.msra.mxu3 %v5840_v34  ;;  %v5733_v19 = vld [vmem:[#allocation4 + $0x3c] sm:$0xf0]  ;;  %v5880_v24 = vor.u32 %v7774_v10, %v5877_v17  ;;  %v7773_v25 = vld [vmem:[#allocation6 + $0x88] sm:$0xf0]  ;;  %v5763_v27 = vld [vmem:[#allocation4 + $0x68] sm:$0xf] }
  0x32   :  { %v5871_v23 = vld [vmem:[#allocation6 + $0x80] sm:$0xf]  ;;  %v5736_v26 = vor.u32 %v7738_v18, %v5733_v19  ;;  %v7746_v28 = vld [vmem:[#allocation4 + $0x70] sm:$0xf0]  ;;  %v5865_v29 = vld [vmem:[#allocation6 + $0x84] sm:$0xf0] }
  0x33   :  { %372 = vmatpush.bf16.msra.mxu1 %v5760_v62  ;;  %v7735_v30 = vld [vmem:[#allocation4 + $0x1c] sm:$0xf]  ;;  %v5721_v31 = vld [vmem:[#allocation4 + $0x24] sm:$0xf0]  ;;  %v5764_v32 = vor.u32 %v7746_v28, %v5763_v27  ;;  %v8623_v33 = vmov 0   ;;  %v5872_v36 = vor.u32 %v7773_v25, %v5871_v23  ;;  %v5868_v37 = vor.u32 %v7771_v21, %v5865_v29 }
  0x34   :  { %345 = vmatpush.bf16.msra.mxu0 %v5732_v42  ;;  %400 = vmatpush.bf16.msra.mxu2 %v5776_v20  ;;  %v5751_v34 = vld [vmem:[#allocation4 + $0x50] sm:$0xf]  ;;  %v7743_v35 = vld [vmem:[#allocation4 + $0x58] sm:$0xf0]  ;;  %v7768_v38 = vld [vmem:[#allocation6 + $0x64] sm:$0xf]  ;;  %v5724_v41 = vor.u32 %v7735_v30, %v5721_v31 }
  0x35   :  { %630 = vmatpush.bf16.msra.mxu3 %v5828_v46  ;;  %v5859_v39 = vld [vmem:[#allocation6 + $0x68] sm:$0xf]  ;;  %v7770_v40 = vld [vmem:[#allocation6 + $0x70] sm:$0xf0]  ;;  %v5853_v42 = vld [vmem:[#allocation6 + $0x6c] sm:$0xf0]  ;;  %v5752_v45 = vor.u32 %v7743_v35, %v5751_v34 }
  0x36   :  { %v7732_v43 = vld [vmem:[#allocation4 + $0x4] sm:$0xf]  ;;  %v5709_v44 = vld [vmem:[#allocation4 + $0xc] sm:$0xf0]  ;;  %v5739_v46 = vld [vmem:[#allocation4 + $0x38] sm:$0xf]  ;;  %v5860_v48 = vor.u32 %v7770_v40, %v5859_v39  ;;  %v5856_v49 = vor.u32 %v7768_v38, %v5853_v42 }
  0x37   :  { %373 = vmatpush.bf16.msra.mxu1 %v5748_v14  ;;  %v7740_v47 = vld [vmem:[#allocation4 + $0x40] sm:$0xf0]  ;;  %v5712_v50 = vor.u32 %v7732_v43, %v5709_v44  ;;  %v5847_v51 = vld [vmem:[#allocation6 + $0x50] sm:$0xf]  ;;  %v7767_v52 = vld [vmem:[#allocation6 + $0x58] sm:$0xf0] }
  0x38   :  { %346 = vmatpush.bf16.msra.mxu0 %v5720_v56  ;;  %401 = vmatpush.bf16.msra.mxu2 %v5764_v32  ;;  %v7765_v53 = vld [vmem:[#allocation6 + $0x4c] sm:$0xf]  ;;  %v5841_v54 = vld [vmem:[#allocation6 + $0x54] sm:$0xf0]  ;;  %v5740_v55 = vor.u32 %v7740_v47, %v5739_v46  ;;  %v5727_v56 = vld [vmem:[#allocation4 + $0x20] sm:$0xf]  ;;  %v5848_v58 = vor.u32 %v7767_v52, %v5847_v51 }
  0x39   :  { %631 = vmatpush.bf16.msra.mxu3 %v5816_v59  ;;  %v7737_v57 = vld [vmem:[#allocation4 + $0x28] sm:$0xf0]  ;;  %v5844_v59 = vor.u32 %v7765_v53, %v5841_v54  ;;  %v5835_v60 = vld [vmem:[#allocation6 + $0x38] sm:$0xf]  ;;  %v7764_v61 = vld [vmem:[#allocation6 + $0x40] sm:$0xf0] }
  0x3a   :  { %v7729_v62 = vld [vmem:[%s10656_s0 + $0x8] sm:$0xff]  ;;  %v7762_v63 = vld [vmem:[#allocation6 + $0x34] sm:$0xf]  ;;  %v5829_v0 = vld [vmem:[#allocation6 + $0x3c] sm:$0xf0]  ;;  %v5728_v1 = vor.u32 %v7737_v57, %v5727_v56  ;;  %v5836_v2 = vor.u32 %v7764_v61, %v5835_v60 }
  0x3b   :  { %374 = vmatpush.bf16.msra.mxu1 %v5736_v26  ;;  %v5832_v3 = vor.u32 %v7762_v63, %v5829_v0  ;;  %v7759_v4 = vld [vmem:[#allocation6 + $0x1c] sm:$0xf]  ;;  %v7734_v6 = vld [vmem:[#allocation4 + $0x10] sm:$0xf0]  ;;  %v7761_v10 = vld [vmem:[#allocation6 + $0x28] sm:$0xf0] }
  0x3c   :  { %347 = vmatpush.bf16.msra.mxu0 %v5708_v5  ;;  %402 = vmatpush.bf16.msra.mxu2 %v5752_v45  ;;  %v5715_v5 = vld [vmem:[#allocation4 + $0x8] sm:$0xf]  ;;  %v7758_v15 = vld [vmem:[#allocation6 + $0x10] sm:$0xf0]  ;;  %v7756_v16 = vld [vmem:[#allocation6 + $0x4] sm:$0xf] }
  0x3d   :  { %632 = vmatpush.bf16.msra.mxu3 %v5804_v7  ;;  %v5817_v7 = vld [vmem:[#allocation6 + $0x24] sm:$0xf0]  ;;  %v5716_v11 = vor.u32 %v7734_v6, %v5715_v5  ;;  %v5805_v17 = vld [vmem:[#allocation6 + $0xc] sm:$0xf0]  ;;  %v7731_v21 = vld [vmem:[%s10656_s0 + $0x18] sm:$0xff] }
  0x3e   :  { %v5820_v13 = vor.u32 %v7759_v4, %v5817_v7  ;;  %v5811_v14 = vld [vmem:[#allocation6 + $0x8] sm:$0xf]  ;;  %v5808_v19 = vor.u32 %v7756_v16, %v5805_v17  ;;  %v7730_v20 = vld [vmem:[%s10656_s0 + $0x10] sm:$0xff]  ;;  %v7801_v23 = vld [vmem:[#allocation6 + $0xac] sm:$0xf] }
  0x3f   :  { %348 = vmatmul.bf16.vlgmr.msra.gmra.mxu0 %v8717_v8  ;;  %375 = vmatpush.bf16.msra.mxu1 %v5724_v41  ;;  %v5812_v18 = vor.u32 %v7758_v15, %v5811_v14  ;;  %v5987_v25 = vld [vmem:[#allocation6 + $0xb4] sm:$0xf0]  ;;  %v5973_v27 = vld [vmem:[#allocation6 + $0x90] sm:$0xf]  ;;  %v7799_v28 = vld [vmem:[#allocation6 + $0x98] sm:$0xf0] }
  0x40   :  { %651 = vmatpush.bf16.msrb.mxu0 %v5896_v9  ;;  %633 = vmatmul.bf16.vlgmr.msra.gmra.mxu3 %v8623_v33  ;;  %v5823_v9 = vld [vmem:[#allocation6 + $0x20] sm:$0xf]  ;;  %v5990_v26 = vor.u32 %v7801_v23, %v5987_v25  ;;  %v7798_v29 = vld [vmem:[#allocation6 + $0x94] sm:$0xf]  ;;  %v5974_v30 = vor.u32 %v7799_v28, %v5973_v27  ;;  %v8734_v35 = vld [vmem:[#allocation9] sm:$0x7] }
  0x41   :  { %638 = vmatpush.bf16.msrb.mxu3 %v5892_v12  ;;  %403 = vmatpush.bf16.msra.mxu2 %v5740_v55  ;;  %v5824_v12 = vor.u32 %v7761_v10, %v5823_v9  ;;  %v5975_v31 = vld [vmem:[#allocation6 + $0x9c] sm:$0xf0]  ;;  %v491_v39 = vperm.slane %v8734_v35, 0  ;;  %v5993_v47 = vld [vmem:[#allocation6 + $0xb0] sm:$0xf] }
  0x42   :  { %v5978_v32 = vor.u32 %v7798_v29, %v5975_v31  ;;  %v5981_v51 = vld [vmem:[#allocation6 + $0x98] sm:$0xf]  ;;  %v7800_v52 = vld [vmem:[#allocation6 + $0xa0] sm:$0xf0]  ;;  %v7795_v57 = vld [vmem:[#allocation6 + $0x7c] sm:$0xf] }
  0x43   :  { %376 = vmatpush.bf16.msra.mxu1 %v5712_v50  ;;  %v5982_v54 = vor.u32 %v7800_v52, %v5981_v51  ;;  %v5961_v55 = vld [vmem:[#allocation6 + $0x78] sm:$0xf]  ;;  %v7796_v56 = vld [vmem:[#allocation6 + $0x80] sm:$0xf0]  ;;  %v5969_v60 = vld [vmem:[#allocation6 + $0x80] sm:$0xf] }
  0x44   :  { %652 = vmatpush.bf16.msrb.mxu0 %v5884_v22  ;;  %v7802_v22 = vld [vmem:[#allocation6 + $0xb0] sm:$0xf0]  ;;  %v7797_v61 = vld [vmem:[#allocation6 + $0x88] sm:$0xf0]  ;;  %v7792_v4 = vld [vmem:[#allocation6 + $0x64] sm:$0xf] }
  0x45   :  { %639 = vmatpush.bf16.msrb.mxu3 %v5880_v24  ;;  %404 = vmatpush.bf16.msra.mxu2 %v5728_v1  ;;  %v5970_v63 = vor.u32 %v7797_v61, %v5969_v60  ;;  %v5951_v9 = vld [vmem:[#allocation6 + $0x6c] sm:$0xf0]  ;;  %v5937_v10 = vld [vmem:[#allocation6 + $0x48] sm:$0xf]  ;;  %v7789_v15 = vld [vmem:[#allocation6 + $0x4c] sm:$0xf] }
  0x46   :  { %377 = vmatmul.bf16.vlgmr.msra.gmra.mxu1 %v8717_v8  ;;  %v5954_v14 = vor.u32 %v7792_v4, %v5951_v9  ;;  %v5939_v16 = vld [vmem:[#allocation6 + $0x54] sm:$0xf0]  ;;  %v5957_v23 = vld [vmem:[#allocation6 + $0x68] sm:$0xf]  ;;  %v7786_v25 = vld [vmem:[#allocation6 + $0x34] sm:$0xf] }
  0x47   :  { %v7794_v27 = vld [vmem:[#allocation6 + $0x70] sm:$0xf0]  ;;  %v5945_v31 = vld [vmem:[#allocation6 + $0x50] sm:$0xf]  ;;  %v7784_v51 = vld [vmem:[#allocation6 + $0x20] sm:$0xf0] }
  0x48   :  { %653 = vmatpush.bf16.msrb.mxu0 %v5872_v36  ;;  %v5958_v29 = vor.u32 %v7794_v27, %v5957_v23  ;;  %v7783_v52 = vld [vmem:[#allocation6 + $0x1c] sm:$0xf]  ;;  %v5921_v61 = vld [vmem:[#allocation6 + $0x20] sm:$0xf] }
  0x49   :  { %640 = vmatpush.bf16.msrb.mxu3 %v5868_v37  ;;  %405 = vmatpush.bf16.msra.mxu2 %v5716_v11  ;;  %v8736_v37 = vld [vmem:[#allocation8] sm:$0x7]  ;;  %v7790_v11 = vld [vmem:[#allocation6 + $0x50] sm:$0xf0] }
  0x4a   :  { %v8742_v40 = vperm.slane %v8736_v37, 0  ;;  %v8751_v0 = vperm.slane %v8736_v37, 1 }
  0x4c   :  { %654 = vmatpush.bf16.msrb.mxu0 %v5860_v48  ;;  %406 = vmatmul.bf16.vlgmr.msra.gmra.mxu2 %v8717_v8  ;;  %v5985_v8 = vld [vmem:[#allocation6 + $0xa8] sm:$0xf]  ;;  %v7803_v48 = vld [vmem:[#allocation6 + $0xb8] sm:$0xf0] }
  0x4d   :  { %641 = vmatpush.bf16.msrb.mxu3 %v5856_v49  ;;  %v5986_v24 = vor.u32 %v7802_v22, %v5985_v8  ;;  %900 = vmatpush.bf16.msrb.mxu2 %v5990_v26  ;;  %v5994_v49 = vor.u32 %v7803_v48, %v5993_v47  ;;  %v5925_v8 = vld [vmem:[#allocation6 + $0x30] sm:$0xf]  ;;  %v7787_v22 = vld [vmem:[#allocation6 + $0x38] sm:$0xf0]  ;;  %v5927_v26 = vld [vmem:[#allocation6 + $0x3c] sm:$0xf0] }
  0x4f   :  { %353 = vmatmul.bf16.gmra.mxu0 %v7729_v62  ;;  %887 = vmatpush.bf16.msrb.mxu1 %v5986_v24 }
  0x50   :  { %655 = vmatpush.bf16.msrb.mxu0 %v5848_v58  ;;  %v5962_v58 = vor.u32 %v7796_v56, %v5961_v55  ;;  %v5915_v56 = vld [vmem:[#allocation6 + $0x24] sm:$0xf0] }
  0x51   :  { %642 = vmatpush.bf16.msrb.mxu3 %v5844_v59  ;;  %901 = vmatpush.bf16.msrb.mxu2 %v5978_v32  ;;  %v5963_v59 = vld [vmem:[#allocation6 + $0x84] sm:$0xf0]  ;;  %v7791_v32 = vld [vmem:[#allocation6 + $0x58] sm:$0xf0]  ;;  %v5918_v60 = vor.u32 %v7783_v52, %v5915_v56 }
  0x53   :  { %888 = vmatpush.bf16.msrb.mxu1 %v5974_v30  ;;  %v5926_v30 = vor.u32 %v7787_v22, %v5925_v8 }
  0x54   :  { %656 = vmatpush.bf16.msrb.mxu0 %v5836_v2  ;;  %v5949_v2 = vld [vmem:[#allocation6 + $0x60] sm:$0xf] }
  0x55   :  { %643 = vmatpush.bf16.msrb.mxu3 %v5832_v3  ;;  %v7793_v3 = vld [vmem:[#allocation6 + $0x68] sm:$0xf0] }
  0x56   :  { %382 = vmatmul.bf16.gmra.mxu1 %v7729_v62  ;;  %v5950_v7 = vor.u32 %v7793_v3, %v5949_v2 }
  0x57   :  { %889 = vmatpush.bf16.msrb.mxu1 %v5962_v58  ;;  %v7781_v58 = vld [vmem:[#allocation6 + $0x8] sm:$0xf0] }
  0x58   :  { %657 = vmatpush.bf16.msrb.mxu0 %v5824_v12 }
  0x59   :  { %644 = vmatpush.bf16.msrb.mxu3 %v5820_v13  ;;  %v492_v13 = vperm.slane %v8734_v35, 1 }
  0x5b   :  { %890 = vmatpush.bf16.msrb.mxu1 %v5950_v7  ;;  %v7782_v7 = vld [vmem:[#allocation6 + $0x10] sm:$0xf0] }
  0x5c   :  { %658 = vmatpush.bf16.msrb.mxu0 %v5812_v18  ;;  %411 = vmatmul.bf16.gmra.mxu2 %v7729_v62  ;;  %v5966_v62 = vor.u32 %v7795_v57, %v5963_v59  ;;  %v5938_v18 = vor.u32 %v7790_v11, %v5937_v10  ;;  %v5901_v57 = vld [vmem:[#allocation6] sm:$0xf] }
  0x5d   :  { %645 = vmatpush.bf16.msrb.mxu3 %v5808_v19  ;;  %v5902_v3 = vor.u32 %v7781_v58, %v5901_v57 }
  0x5e   :  { %902 = vmatpush.bf16.msrb.mxu2 %v5966_v62  ;;  %v7785_v62 = vld [vmem:[#allocation6 + $0x28] sm:$0xf0] }
  0x5f   :  { %358 = vmatmul.bf16.gmra.mxu0 %v7730_v20  ;;  %891 = vmatpush.bf16.msrb.mxu1 %v5938_v18  ;;  %v5922_v4 = vor.u32 %v7785_v62, %v5921_v61 }
  0x60   :  { %646 = vmatmul.bf16.vlgmr.msrb.gmra.mxu3 %v8623_v33 }
  0x61   :  { %913 = vmatpush.bf16.msra.mxu3 %v5994_v49 }
  0x62   :  { %903 = vmatpush.bf16.msrb.mxu2 %v5954_v14  ;;  %v8772_v14 = vperm.slane %v8736_v37, 2  ;;  %v493_v37 = vperm.slane %v8734_v35, 2 }
  0x63   :  { %892 = vmatpush.bf16.msrb.mxu1 %v5926_v30 }
  0x65   :  { %914 = vmatpush.bf16.msra.mxu3 %v5982_v54 }
  0x66   :  { %387 = vmatmul.bf16.gmra.mxu1 %v7730_v20 }
  0x69   :  { %915 = vmatpush.bf16.msra.mxu3 %v5970_v63  ;;  %v7780_v63 = vld [vmem:[#allocation6 + $0x4] sm:$0xf] }
  0x6c   :  { %416 = vmatmul.bf16.gmra.mxu2 %v7730_v20  ;;  %v5942_v20 = vor.u32 %v7789_v15, %v5939_v16 }
  0x6d   :  { %916 = vmatpush.bf16.msra.mxu3 %v5958_v29 }
  0x6e   :  { %904 = vmatpush.bf16.msrb.mxu2 %v5942_v20 }
  0x6f   :  { %363 = vmatmul.bf16.gmra.mxu0 %v7731_v21 }
  0x76   :  { %392 = vmatmul.bf16.gmra.mxu1 %v7731_v21 }
  0x7c   :  { %421 = vmatmul.bf16.gmra.mxu2 %v7731_v21 }
  0x7f   :  { %659 = vmatmul.bf16.vlgmr.msrb.gmra.mxu0 %v8623_v33 }
  0xbc   :  { %v349_v34 = vpop.f32.mrf.mxu0 }
  0xbd   :  { %v350_v42 = vadd.f32 %v349_v34, %v8742_v40 }
  0xc3   :  { %v634_v36 = vpop.f32.mrf.mxu3  ;;  %v378_v6 = vpop.f32.mrf.mxu1 }
  0xc4   :  { %v8738_v38 = vpop.f32.mrf.mxu0  ;;  %v635_v41 = vadd.f32 %v634_v36, %v491_v39  ;;  %v379_v19 = vadd.f32 %v378_v6, %v8751_v0  ;;  %v5930_v36 = vor.u32 %v7786_v25, %v5927_v26  ;;  %v5909_v6 = vld [vmem:[#allocation6 + $0x8] sm:$0xf] }
  0xc6   :  { %v664_v45 = vadd.f32 %v635_v41, %v350_v42  ;;  %v5946_v41 = vor.u32 %v7791_v32, %v5945_v31  ;;  %905 = vmatpush.bf16.msrb.mxu2 %v5930_v36 }
  0xc8   :  { %v5897_v50 = vmul.f32 -1.442695, %v664_v45  ;;  %917 = vmatpush.bf16.msra.mxu3 %v5946_v41 }
  0xca   :  { %8246 = vpow2.f32 %v5897_v50  ;;  %v5913_v50 = vld [vmem:[#allocation6 + $0x18] sm:$0xf]  ;;  %906 = vmatpush.bf16.msrb.mxu2 %v5918_v60 }
  0xcb   :  { %v636_v43 = vpop.f32.mrf.mxu3  ;;  %v5914_v55 = vor.u32 %v7784_v51, %v5913_v50  ;;  %v8799_v60 = vpop.f32.mrf.mxu1 }
  0xcc   :  { %v354_v44 = vpop.f32.mrf.mxu0  ;;  %v5933_v43 = vld [vmem:[#allocation6 + $0x38] sm:$0xf] }
  0xcd   :  { %v8746_v46 = vadd.f32 %v354_v44, %v8742_v40  ;;  %v7788_v44 = vld [vmem:[#allocation6 + $0x40] sm:$0xf0]  ;;  %893 = vmatpush.bf16.msrb.mxu1 %v5914_v55 }
  0xce   :  { %v5934_v45 = vor.u32 %v7788_v44, %v5933_v43 }
  0xcf   :  { %v8760_v21 = vpop.f32.mrf.mxu2 }
  0xd0   :  { %v8247_v1 = vpop.eup %8246  ;;  %918 = vmatpush.bf16.msra.mxu3 %v5934_v45  ;;  %v408_v31 = vadd.f32 %v8760_v21, %v8772_v14 }
  0xd1   :  { %v8757_v17 = vadd.f32 1.0, %v8247_v1  ;;  %894 = vmatpush.bf16.msrb.mxu1 %v5902_v3 }
  0xd3   :  { %8248 = vrcp.f32 %v8757_v17  ;;  %v680_v23 = vand.u32 2147483648, %v8757_v17  ;;  %vm674_vm1 = vweird.f32 %v8757_v17  ;;  %v678_v25 = vand.u32 2147483647, %v8757_v17  ;;  %v8801_v61 = vpop.f32.mrf.mxu1 }
  0xd4   :  { %v8748_v53 = vpop.f32.mrf.mxu0  ;;  %919 = vmatpush.bf16.msra.mxu3 %v5922_v4  ;;  %v6083_v4 = vld [vmem:[#allocation6 + $0xa8] sm:$0xf] }
  0xd5   :  { %v681_v30 = vor.u32 1.1754944e-38, %v680_v23  ;;  %vm679_vm3 = vcmp.eq.f32.partialorder %v678_v25, 8.507059e+37  ;;  %v7822_v23 = vld [vmem:[#allocation6 + $0x94] sm:$0xf]  ;;  %v6079_v25 = vld [vmem:[#allocation6 + $0x98] sm:$0xf] }
  0xd7   :  { %v8765_v49 = vpop.f32.mrf.mxu2 }
  0xd9   :  { %v8249_v47 = vpop.eup %8248 }
  0xda   :  { %v670_v54 = vmul.f32 %v8249_v47, %v8757_v17  ;;  %vm675_vm0 = vweird.f32 %v8249_v47 }
  0xdb   :  { %vm676_vm2 = vmor %vm674_vm1, %vm675_vm0  ;;  %v8803_v62 = vpop.f32.mrf.mxu1 }
  0xdc   :  { %v359_v5 = vpop.f32.mrf.mxu0  ;;  %v671_v11 = vsub.f32 1.0, %v670_v54 }
  0xdd   :  { %v8754_v12 = vadd.f32 %v359_v5, %v8742_v40  ;;  %v5903_v5 = vld [vmem:[#allocation6 + $0xc] sm:$0xf0] }
  0xde   :  { %v5906_v10 = vor.u32 %v7780_v63, %v5903_v5  ;;  %v672_v18 = vmul.f32 %v8249_v47, %v671_v11  ;;  %v7826_v5 = vld [vmem:[#allocation6 + $0xb0] sm:$0xf0]  ;;  %v7827_v11 = vld [vmem:[#allocation6 + $0xb8] sm:$0xf0] }
  0xdf   :  { %v412_v15 = vpop.f32.mrf.mxu2 }
  0xe0   :  { %907 = vmatpush.bf16.msrb.mxu2 %v5906_v10  ;;  %v8775_v16 = vadd.f32 %v412_v15, %v8772_v14  ;;  %v673_v22 = vadd.f32 %v8249_v47, %v672_v18  ;;  %v6091_v10 = vld [vmem:[#allocation6 + $0xb0] sm:$0xf]  ;;  %v8811_v18 = vld [vmem:[#allocation9] sm:$0x7] }
  0xe1   :  { %v6092_v15 = vor.u32 %v7827_v11, %v6091_v10  ;;  %v6035_v10 = vld [vmem:[#allocation6 + $0x48] sm:$0xf]  ;;  %v7814_v11 = vld [vmem:[#allocation6 + $0x50] sm:$0xf0] }
  0xe3   :  { %v647_v24 = vpop.f32.mrf.mxu3  ;;  %v8805_v63 = vpop.f32.mrf.mxu1 }
  0xe4   :  { %v648_v28 = vadd.f32 %v647_v24, %v492_v13  ;;  %v8763_v39 = vpop.f32.mrf.mxu0  ;;  %v5910_v13 = vor.u32 %v7782_v7, %v5909_v6  ;;  %v7825_v6 = vld [vmem:[#allocation6 + $0xac] sm:$0xf]  ;;  %v6084_v7 = vor.u32 %v7826_v5, %v6083_v4  ;;  %1176 = vmatpush.bf16.msra.mxu2 %v6092_v15  ;;  %v7818_v4 = vld [vmem:[#allocation6 + $0x70] sm:$0xf0] }
  0xe6   :  { %v684_v34 = vadd.f32 %v648_v28, %v379_v19  ;;  %920 = vmatpush.bf16.msra.mxu3 %v5910_v13  ;;  %v677_v28 = vsel %vm676_vm2, %v8249_v47, %v673_v22  ;;  %1150 = vmatpush.bf16.msra.mxu0 %v6084_v7  ;;  %v7823_v22 = vld [vmem:[#allocation6 + $0x98] sm:$0xf0] }
  0xe7   :  { %v8783_v26 = vpop.f32.mrf.mxu2 }
  0xe8   :  { %v5898_v42 = vmul.f32 -1.442695, %v684_v34  ;;  %v682_v34 = vsel %vm679_vm3, %v681_v30, %v677_v28  ;;  %v753_v30 = vperm.slane %v8811_v18, 0 }
  0xea   :  { %8250 = vpow2.f32 %v5898_v42 }
  0xeb   :  { %v649_v48 = vpop.f32.mrf.mxu3 }
  0xec   :  { %v364_v59 = vpop.f32.mrf.mxu0 }
  0xed   :  { %v8769_v2 = vadd.f32 %v364_v59, %v8742_v40 }
  0xef   :  { %v417_v43 = vpop.f32.mrf.mxu2 }
  0xf0   :  { %v8251_v1 = vpop.eup %8250  ;;  %v8788_v45 = vadd.f32 %v417_v43, %v8772_v14 }
  0xf1   :  { %v688_v9 = vadd.f32 1.0, %v8251_v1  ;;  %v8807_v1 = vpop.f32.mrf.mxu1 }
  0xf3   :  { %8252 = vrcp.f32 %v688_v9  ;;  %vm694_vm4 = vweird.f32 %v688_v9  ;;  %v700_v36 = vand.u32 2147483648, %v688_v9  ;;  %v698_v42 = vand.u32 2147483647, %v688_v9 }
  0xf4   :  { %v8777_v19 = vpop.f32.mrf.mxu0 }
  0xf5   :  { %v701_v47 = vor.u32 1.1754944e-38, %v700_v36  ;;  %vm699_vm7 = vcmp.eq.f32.partialorder %v698_v42, 8.507059e+37  ;;  %v6061_v36 = vld [vmem:[#allocation6 + $0x84] sm:$0xf0]  ;;  %v7821_v42 = vld [vmem:[#allocation6 + $0x88] sm:$0xf0] }
  0xf7   :  { %v8790_v52 = vpop.f32.mrf.mxu2 }
  0xf9   :  { %v8253_v20 = vpop.eup %8252  ;;  %v8809_v3 = vpop.f32.mrf.mxu1 }
  0xfa   :  { %v690_v8 = vmul.f32 %v8253_v20, %v688_v9  ;;  %vm695_vm5 = vweird.f32 %v8253_v20  ;;  %v6085_v9 = vld [vmem:[#allocation6 + $0xb4] sm:$0xf0] }
  0xfb   :  { %vm696_vm6 = vmor %vm694_vm4, %vm695_vm5  ;;  %v6088_v13 = vor.u32 %v7825_v6, %v6085_v9  ;;  %v754_v9 = vperm.slane %v8811_v18, 1 }
  0xfc   :  { %v691_v24 = vsub.f32 1.0, %v690_v8  ;;  %v660_v29 = vpop.f32.mrf.mxu0  ;;  %v6071_v8 = vld [vmem:[#allocation6 + $0x90] sm:$0xf] }
  0xfd   :  { %v661_v32 = vadd.f32 %v660_v29, %v493_v37  ;;  %1163 = vmatpush.bf16.msra.mxu1 %v6088_v13  ;;  %v6073_v37 = vld [vmem:[#allocation6 + $0x9c] sm:$0xf0]  ;;  %v7813_v13 = vld [vmem:[#allocation6 + $0x4c] sm:$0xf] }
  0xfe   :  { %v692_v27 = vmul.f32 %v8253_v20, %v691_v24  ;;  %v6072_v24 = vor.u32 %v7823_v22, %v6071_v8  ;;  %v6076_v28 = vor.u32 %v7822_v23, %v6073_v37  ;;  %v6036_v8 = vor.u32 %v7814_v11, %v6035_v10  ;;  %v6037_v22 = vld [vmem:[#allocation6 + $0x54] sm:$0xf0]  ;;  %v7815_v37 = vld [vmem:[#allocation6 + $0x58] sm:$0xf0]  ;;  %v7805_v10 = vld [vmem:[#allocation6 + $0x8] sm:$0xf0] }
  0xff   :  { %v704_v41 = vmul.f32 %v682_v34, %v661_v32  ;;  %v422_v58 = vpop.f32.mrf.mxu2  ;;  %v7820_v32 = vld [vmem:[#allocation6 + $0x80] sm:$0xf0]  ;;  %v7819_v34 = vld [vmem:[#allocation6 + $0x7c] sm:$0xf] }
 0x100   :  { %v693_v35 = vadd.f32 %v8253_v20, %v692_v27  ;;  %v8797_v59 = vadd.f32 %v422_v58, %v8772_v14  ;;  %v7824_v27 = vld [vmem:[#allocation6 + $0xa0] sm:$0xf0]  ;;  %1151 = vmatpush.bf16.msra.mxu0 %v6072_v24  ;;  %v6064_v43 = vor.u32 %v7819_v34, %v6061_v36  ;;  %v6055_v58 = vld [vmem:[#allocation6 + $0x68] sm:$0xf]  ;;  %v6040_v24 = vor.u32 %v7813_v13, %v6037_v22  ;;  %v7810_v34 = vld [vmem:[#allocation6 + $0x34] sm:$0xf] }
 0x101   :  { %v705_v17 = vadd.f32 %v704_v41, %v408_v31  ;;  %v6080_v29 = vor.u32 %v7824_v27, %v6079_v25  ;;  %1164 = vmatpush.bf16.msra.mxu1 %v6076_v28  ;;  %v6059_v31 = vld [vmem:[#allocation6 + $0x78] sm:$0xf]  ;;  %v6067_v41 = vld [vmem:[#allocation6 + $0x80] sm:$0xf]  ;;  %v6056_v6 = vor.u32 %v7818_v4, %v6055_v58  ;;  %v381_v25 = vadd.f32 %v8799_v60, %v8751_v0  ;;  %v7809_v58 = vld [vmem:[#allocation6 + $0x28] sm:$0xf0] }
 0x102   :  { %v697_v44 = vsel %vm696_vm6, %v8253_v20, %v693_v35  ;;  %v8813_v20 = vpop.f32.mrf.mxu1  ;;  %v6060_v35 = vor.u32 %v7820_v32, %v6059_v31  ;;  %v6023_v31 = vld [vmem:[#allocation6 + $0x30] sm:$0xf]  ;;  %v7811_v32 = vld [vmem:[#allocation6 + $0x38] sm:$0xf0]  ;;  %v6007_v22 = vld [vmem:[#allocation6 + $0x8] sm:$0xf] }
 0x103   :  { %8254 = vtanh.f32 %v705_v17  ;;  %v702_v48 = vsel %vm699_vm7, %v701_v47, %v697_v44  ;;  %1177 = vmatpush.bf16.msra.mxu2 %v6080_v29  ;;  %v6068_v44 = vor.u32 %v7821_v42, %v6067_v41  ;;  %v6024_v36 = vor.u32 %v7811_v32, %v6023_v31  ;;  %v6025_v41 = vld [vmem:[#allocation6 + $0x3c] sm:$0xf0]  ;;  %v6031_v42 = vld [vmem:[#allocation6 + $0x38] sm:$0xf] }
 0x104   :  { %v662_v21 = vpop.f32.mrf.mxu0  ;;  %v707_v50 = vsub.f32 1.0, %v702_v48  ;;  %v709_v55 = vmul.f32 0.0, %v702_v48  ;;  %1152 = vmatpush.bf16.msra.mxu0 %v6060_v35  ;;  %v7817_v48 = vld [vmem:[#allocation6 + $0x68] sm:$0xf0]  ;;  %v755_v32 = vperm.slane %v8811_v18, 2 }
 0x105   :  { %1165 = vmatpush.bf16.msra.mxu1 %v6064_v43  ;;  %v6047_v21 = vld [vmem:[#allocation6 + $0x60] sm:$0xf]  ;;  %v7812_v43 = vld [vmem:[#allocation6 + $0x40] sm:$0xf0] }
 0x107   :  { %v8816_v17 = vpop.f32.mrf.mxu2  ;;  %1178 = vmatpush.bf16.msra.mxu2 %v6068_v44  ;;  %v6028_v44 = vor.u32 %v7810_v34, %v6025_v41 }
 0x109   :  { %v8255_v51 = vpop.eup %8254 }
 0x10a   :  { %v708_v54 = vmul.f32 %v8255_v51, %v707_v50  ;;  %v7816_v50 = vld [vmem:[#allocation6 + $0x64] sm:$0xf]  ;;  %v352_v51 = vadd.f32 %v8738_v38, %v8742_v40  ;;  %v6043_v38 = vld [vmem:[#allocation6 + $0x50] sm:$0xf] }
 0x10b   :  { %1179 = vmatpush.bf16.msra.mxu2 %v6056_v6  ;;  %v6044_v29 = vor.u32 %v7815_v37, %v6043_v38  ;;  %v7806_v38 = vld [vmem:[#allocation6 + $0x10] sm:$0xf0] }
 0x10c   :  { %v8792_v56 = vadd.f32 %v709_v55, %v708_v54  ;;  %v6048_v55 = vor.u32 %v7817_v48, %v6047_v21  ;;  %v6011_v21 = vld [vmem:[#allocation6 + $0x18] sm:$0xf]  ;;  %v7808_v48 = vld [vmem:[#allocation6 + $0x20] sm:$0xf0] }
 0x10e   :  { %v718_v57 = vpack.c.bf16 %v8792_v56, %v8792_v56  ;;  %1153 = vmatpush.bf16.msra.mxu0 %v6048_v55  ;;  %v6013_v55 = vld [vmem:[#allocation6 + $0x24] sm:$0xf0] }
 0x10f   :  { %1180 = vmatpush.bf16.msra.mxu2 %v6044_v29 }
 0x110   :  { %895 = vmatmul.bf16.vlgmr.msrb.gmra.mxu1 %v718_v57  ;;  %908 = vmatmul.bf16.vlgmr.msrb.gmra.mxu2 %v718_v57 }
 0x111   :  { %921 = vmatmul.bf16.vlgmr.msra.gmra.mxu3 %v718_v57  ;;  %v6049_v57 = vld [vmem:[#allocation6 + $0x6c] sm:$0xf0] }
 0x112   :  { %v6052_v5 = vor.u32 %v7816_v50, %v6049_v57  ;;  %1154 = vmatpush.bf16.msra.mxu0 %v6036_v8  ;;  %v7807_v50 = vld [vmem:[#allocation6 + $0x1c] sm:$0xf]  ;;  %v6019_v57 = vld [vmem:[#allocation6 + $0x20] sm:$0xf]  ;;  %v6001_v8 = vld [vmem:[#allocation6 + $0xc] sm:$0xf0] }
 0x113   :  { %v6016_v6 = vor.u32 %v7807_v50, %v6013_v55 }
 0x114   :  { %1166 = vmatpush.bf16.msra.mxu1 %v6052_v5 }
 0x116   :  { %1155 = vmatpush.bf16.msra.mxu0 %v6024_v36 }
 0x118   :  { %1167 = vmatpush.bf16.msra.mxu1 %v6040_v24  ;;  %v6008_v24 = vor.u32 %v7806_v38, %v6007_v22  ;;  %v6183_v22 = vld [vmem:[#allocation6 + $0xb4] sm:$0xf0]  ;;  %v6189_v38 = vld [vmem:[#allocation6 + $0xb0] sm:$0xf] }
 0x11c   :  { %1168 = vmatpush.bf16.msra.mxu1 %v6028_v44 }
 0x120   :  { %1169 = vmatpush.bf16.msra.mxu1 %v6016_v6 }
 0x18d   :  { %v896_v47 = vpop.f32.mrf.mxu1 }
 0x18e   :  { %v897_v54 = vadd.f32 %v896_v47, %v753_v30  ;;  %v6032_v47 = vor.u32 %v7812_v43, %v6031_v42 }
 0x190   :  { %v926_v7 = vadd.f32 %v897_v54, %v352_v51  ;;  %1181 = vmatpush.bf16.msra.mxu2 %v6032_v47  ;;  %v6012_v54 = vor.u32 %v7808_v48, %v6011_v21  ;;  %v410_v21 = vadd.f32 %v8765_v49, %v8772_v14 }
 0x192   :  { %v5995_v15 = vmul.f32 -1.442695, %v926_v7  ;;  %v6020_v7 = vor.u32 %v7809_v58, %v6019_v57  ;;  %1156 = vmatpush.bf16.msra.mxu0 %v6012_v54 }
 0x193   :  { %v909_v23 = vpop.f32.mrf.mxu2 }
 0x194   :  { %8256 = vpow2.f32 %v5995_v15  ;;  %v910_v27 = vadd.f32 %v909_v23, %v754_v9  ;;  %v8823_v28 = vpop.f32.mrf.mxu3  ;;  %v5999_v9 = vld [vmem:[#allocation6] sm:$0xf]  ;;  %v7804_v15 = vld [vmem:[#allocation6 + $0x4] sm:$0xf]  ;;  %1182 = vmatpush.bf16.msra.mxu2 %v6020_v7 }
 0x195   :  { %v898_v30 = vpop.f32.mrf.mxu1  ;;  %v6000_v13 = vor.u32 %v7805_v10, %v5999_v9  ;;  %v6004_v23 = vor.u32 %v7804_v15, %v6001_v8  ;;  %v923_v47 = vadd.f32 %v8823_v28, %v755_v32  ;;  %v7849_v15 = vld [vmem:[#allocation6 + $0xac] sm:$0xf]  ;;  %v6171_v32 = vld [vmem:[#allocation6 + $0x9c] sm:$0xf0] }
 0x196   :  { %v946_v35 = vadd.f32 %v910_v27, %v381_v25 }
 0x197   :  { %1157 = vmatpush.bf16.msra.mxu0 %v6000_v13  ;;  %1170 = vmatpush.bf16.msra.mxu1 %v6004_v23  ;;  %v7850_v13 = vld [vmem:[#allocation6 + $0xb0] sm:$0xf0]  ;;  %v7851_v23 = vld [vmem:[#allocation6 + $0xb8] sm:$0xf0] }
 0x198   :  { %v5996_v60 = vmul.f32 -1.442695, %v946_v35  ;;  %1183 = vmatpush.bf16.msra.mxu2 %v6008_v24  ;;  %v6186_v24 = vor.u32 %v7849_v15, %v6183_v22 }
 0x19a   :  { %v8257_v51 = vpop.eup %8256  ;;  %8258 = vpow2.f32 %v5996_v60 }
 0x19b   :  { %v930_v4 = vadd.f32 1.0, %v8257_v51  ;;  %v911_v5 = vpop.f32.mrf.mxu2  ;;  %1426 = vmatpush.bf16.msrb.mxu0 %v6186_v24  ;;  %v7838_v24 = vld [vmem:[#allocation6 + $0x50] sm:$0xf0] }
 0x19c   :  { %v924_v11 = vpop.f32.mrf.mxu3 }
 0x19d   :  { %8260 = vrcp.f32 %v930_v4  ;;  %v942_v31 = vand.u32 2147483648, %v930_v4  ;;  %v940_v35 = vand.u32 2147483647, %v930_v4  ;;  %vm936_vm9 = vweird.f32 %v930_v4  ;;  %v6181_v11 = vld [vmem:[#allocation6 + $0xa8] sm:$0xf] }
 0x19e   :  { %v6182_v8 = vor.u32 %v7850_v13, %v6181_v11  ;;  %v6153_v11 = vld [vmem:[#allocation6 + $0x68] sm:$0xf]  ;;  %v7842_v13 = vld [vmem:[#allocation6 + $0x70] sm:$0xf0] }
 0x19f   :  { %v943_v43 = vor.u32 1.1754944e-38, %v942_v31  ;;  %vm941_vm11 = vcmp.eq.f32.partialorder %v940_v35, 8.507059e+37  ;;  %v7848_v35 = vld [vmem:[#allocation6 + $0xa0] sm:$0xf0] }
 0x1a0   :  { %v8259_v37 = vpop.eup %8258  ;;  %1413 = vmatpush.bf16.msrb.mxu3 %v6182_v8  ;;  %v6154_v8 = vor.u32 %v7842_v13, %v6153_v11  ;;  %v6097_v11 = vld [vmem:[#allocation6] sm:$0xf]  ;;  %v7829_v13 = vld [vmem:[#allocation6 + $0x8] sm:$0xf0] }
 0x1a1   :  { %v950_v25 = vadd.f32 1.0, %v8259_v37  ;;  %v6190_v37 = vor.u32 %v7851_v23, %v6189_v38  ;;  %v6133_v23 = vld [vmem:[#allocation6 + $0x48] sm:$0xf] }
 0x1a3   :  { %v8261_v27 = vpop.eup %8260  ;;  %8262 = vrcp.f32 %v950_v25  ;;  %v962_v18 = vand.u32 2147483648, %v950_v25  ;;  %v960_v54 = vand.u32 2147483647, %v950_v25  ;;  %vm956_vm13 = vweird.f32 %v950_v25  ;;  %1439 = vmatpush.bf16.msrb.mxu1 %v6190_v37  ;;  %v7837_v37 = vld [vmem:[#allocation6 + $0x4c] sm:$0xf] }
 0x1a4   :  { %v932_v29 = vmul.f32 %v8261_v27, %v930_v4  ;;  %vm937_vm8 = vweird.f32 %v8261_v27 }
 0x1a5   :  { %vm938_vm10 = vmor %vm936_vm9, %vm937_vm8  ;;  %v963_v58 = vor.u32 1.1754944e-38, %v962_v18  ;;  %vm961_vm15 = vcmp.eq.f32.partialorder %v960_v54, 8.507059e+37  ;;  %v7845_v18 = vld [vmem:[#allocation6 + $0x88] sm:$0xf0] }
 0x1a6   :  { %v933_v30 = vsub.f32 1.0, %v932_v29  ;;  %v7847_v29 = vld [vmem:[#allocation6 + $0x98] sm:$0xf0] }
 0x1a8   :  { %v934_v34 = vmul.f32 %v8261_v27, %v933_v30  ;;  %v7846_v30 = vld [vmem:[#allocation6 + $0x94] sm:$0xf] }
 0x1a9   :  { %v8263_v36 = vpop.eup %8262 }
 0x1aa   :  { %v952_v41 = vmul.f32 %v8263_v36, %v950_v25  ;;  %v935_v42 = vadd.f32 %v8261_v27, %v934_v34  ;;  %vm957_vm12 = vweird.f32 %v8263_v36  ;;  %v8834_v25 = vld [vmem:[#allocation9] sm:$0x7]  ;;  %v6177_v34 = vld [vmem:[#allocation6 + $0x98] sm:$0xf] }
 0x1ab   :  { %vm958_vm14 = vmor %vm956_vm13, %vm957_vm12 }
 0x1ac   :  { %v953_v44 = vsub.f32 1.0, %v952_v41  ;;  %v939_v60 = vsel %vm938_vm10, %v8261_v27, %v935_v42  ;;  %v6169_v27 = vld [vmem:[#allocation6 + $0x90] sm:$0xf]  ;;  %v6178_v41 = vor.u32 %v7848_v35, %v6177_v34  ;;  %v1016_v42 = vperm.slane %v8834_v25, 0  ;;  %v7839_v34 = vld [vmem:[#allocation6 + $0x58] sm:$0xf0] }
 0x1ad   :  { %v944_v48 = vsel %vm941_vm11, %v943_v43, %v939_v60  ;;  %v6170_v31 = vor.u32 %v7847_v29, %v6169_v27  ;;  %v1017_v43 = vperm.slane %v8834_v25, 1  ;;  %v7843_v60 = vld [vmem:[#allocation6 + $0x7c] sm:$0xf] }
 0x1ae   :  { %v954_v50 = vmul.f32 %v8263_v36, %v953_v44  ;;  %v966_v51 = vmul.f32 %v944_v48, %v923_v47  ;;  %1440 = vmatpush.bf16.msrb.mxu1 %v6178_v41  ;;  %v6157_v44 = vld [vmem:[#allocation6 + $0x78] sm:$0xf]  ;;  %v7844_v47 = vld [vmem:[#allocation6 + $0x80] sm:$0xf0]  ;;  %v6159_v48 = vld [vmem:[#allocation6 + $0x84] sm:$0xf0] }
 0x1af   :  { %1414 = vmatpush.bf16.msrb.mxu3 %v6170_v31 }
 0x1b0   :  { %v955_v55 = vadd.f32 %v8263_v36, %v954_v50  ;;  %v967_v57 = vadd.f32 %v966_v51, %v410_v21  ;;  %v6158_v21 = vor.u32 %v7844_v47, %v6157_v44  ;;  %v6165_v50 = vld [vmem:[#allocation6 + $0x80] sm:$0xf]  ;;  %v6162_v51 = vor.u32 %v7843_v60, %v6159_v48  ;;  %v7834_v44 = vld [vmem:[#allocation6 + $0x34] sm:$0xf]  ;;  %v7836_v48 = vld [vmem:[#allocation6 + $0x40] sm:$0xf0] }
 0x1b1   :  { %v6166_v54 = vor.u32 %v7845_v18, %v6165_v50  ;;  %v6123_v60 = vld [vmem:[#allocation6 + $0x3c] sm:$0xf0] }
 0x1b2   :  { %v959_v4 = vsel %vm958_vm14, %v8263_v36, %v955_v55  ;;  %8264 = vtanh.f32 %v967_v57  ;;  %v6174_v36 = vor.u32 %v7846_v30, %v6171_v32  ;;  %v6135_v30 = vld [vmem:[#allocation6 + $0x54] sm:$0xf0]  ;;  %v6141_v32 = vld [vmem:[#allocation6 + $0x50] sm:$0xf]  ;;  %v6126_v50 = vor.u32 %v7834_v44, %v6123_v60 }
 0x1b3   :  { %v964_v28 = vsel %vm961_vm15, %v963_v58, %v959_v4  ;;  %1415 = vmatpush.bf16.msrb.mxu3 %v6158_v21  ;;  %1441 = vmatpush.bf16.msrb.mxu1 %v6166_v54  ;;  %v6145_v58 = vld [vmem:[#allocation6 + $0x60] sm:$0xf]  ;;  %v7841_v4 = vld [vmem:[#allocation6 + $0x68] sm:$0xf0]  ;;  %v6138_v31 = vor.u32 %v7837_v37, %v6135_v30  ;;  %v6129_v21 = vld [vmem:[#allocation6 + $0x38] sm:$0xf] }
 0x1b4   :  { %v969_v5 = vsub.f32 1.0, %v964_v28  ;;  %v971_v49 = vmul.f32 %v964_v28, %v8792_v56  ;;  %1427 = vmatpush.bf16.msrb.mxu0 %v6174_v36  ;;  %v7840_v28 = vld [vmem:[#allocation6 + $0x64] sm:$0xf]  ;;  %v6142_v36 = vor.u32 %v7839_v34, %v6141_v32  ;;  %v6130_v18 = vor.u32 %v7836_v48, %v6129_v21  ;;  %v7830_v37 = vld [vmem:[#allocation6 + $0x10] sm:$0xf0] }
 0x1b5   :  { %v7832_v54 = vld [vmem:[#allocation6 + $0x20] sm:$0xf0] }
 0x1b7   :  { %1442 = vmatpush.bf16.msrb.mxu1 %v6154_v8 }
 0x1b8   :  { %v8265_v6 = vpop.eup %8264  ;;  %1428 = vmatpush.bf16.msrb.mxu0 %v6162_v51  ;;  %v6109_v51 = vld [vmem:[#allocation6 + $0x18] sm:$0xf] }
 0x1b9   :  { %v970_v7 = vmul.f32 %v8265_v6, %v969_v5  ;;  %v384_v5 = vadd.f32 %v8801_v61, %v8751_v0  ;;  %v6134_v61 = vor.u32 %v7838_v24, %v6133_v23  ;;  %v6099_v23 = vld [vmem:[#allocation6 + $0xc] sm:$0xf0]  ;;  %v6105_v24 = vld [vmem:[#allocation6 + $0x8] sm:$0xf] }
 0x1bb   :  { %v8830_v9 = vadd.f32 %v971_v49, %v970_v7  ;;  %v6146_v49 = vor.u32 %v7841_v4, %v6145_v58  ;;  %1443 = vmatpush.bf16.msrb.mxu1 %v6142_v36  ;;  %v6110_v58 = vor.u32 %v7832_v54, %v6109_v51  ;;  %v6111_v4 = vld [vmem:[#allocation6 + $0x24] sm:$0xf0] }
 0x1bd   :  { %v981_v10 = vpack.c.bf16 %v8830_v9, %v8830_v9  ;;  %1416 = vmatpush.bf16.msrb.mxu3 %v6146_v49 }
 0x1bf   :  { %1158 = vmatmul.bf16.vlgmr.msra.gmra.mxu0 %v981_v10  ;;  %1171 = vmatmul.bf16.vlgmr.msra.gmra.mxu1 %v981_v10 }
 0x1c0   :  { %1184 = vmatmul.bf16.vlgmr.msra.gmra.mxu2 %v981_v10  ;;  %v6147_v10 = vld [vmem:[#allocation6 + $0x6c] sm:$0xf0]  ;;  %1444 = vmatpush.bf16.msrb.mxu1 %v6130_v18 }
 0x1c1   :  { %v6150_v15 = vor.u32 %v7840_v28, %v6147_v10  ;;  %1417 = vmatpush.bf16.msrb.mxu3 %v6134_v61  ;;  %v6117_v28 = vld [vmem:[#allocation6 + $0x20] sm:$0xf] }
 0x1c3   :  { %1429 = vmatpush.bf16.msrb.mxu0 %v6150_v15 }
 0x1c7   :  { %1430 = vmatpush.bf16.msrb.mxu0 %v6138_v31 }
 0x1cb   :  { %1431 = vmatpush.bf16.msrb.mxu0 %v6126_v50 }
 0x23c   :  { %v1159_v55 = vpop.f32.mrf.mxu0  ;;  %v1172_v57 = vpop.f32.mrf.mxu1 }
 0x23d   :  { %v1160_v6 = vadd.f32 %v1159_v55, %v1016_v42  ;;  %v1173_v7 = vadd.f32 %v1172_v57, %v1017_v43  ;;  %v6121_v42 = vld [vmem:[#allocation6 + $0x30] sm:$0xf]  ;;  %v7835_v43 = vld [vmem:[#allocation6 + $0x38] sm:$0xf0] }
 0x23e   :  { %v6122_v47 = vor.u32 %v7835_v43, %v6121_v42  ;;  %v7831_v55 = vld [vmem:[#allocation6 + $0x1c] sm:$0xf] }
 0x23f   :  { %v1189_v22 = vadd.f32 %v1160_v6, %v8746_v46  ;;  %v1209_v38 = vadd.f32 %v1173_v7, %v384_v5  ;;  %v7833_v5 = vld [vmem:[#allocation6 + $0x28] sm:$0xf0]  ;;  %v6114_v49 = vor.u32 %v7831_v55, %v6111_v4 }
 0x240   :  { %1418 = vmatpush.bf16.msrb.mxu3 %v6122_v47  ;;  %v6118_v10 = vor.u32 %v7833_v5, %v6117_v28 }
 0x241   :  { %v6093_v27 = vmul.f32 -1.442695, %v1189_v22  ;;  %v6094_v29 = vmul.f32 -1.442695, %v1209_v38  ;;  %v6098_v22 = vor.u32 %v7829_v13, %v6097_v11  ;;  %v7828_v38 = vld [vmem:[#allocation6 + $0x4] sm:$0xf]  ;;  %1432 = vmatpush.bf16.msrb.mxu0 %v6114_v49 }
 0x242   :  { %1445 = vmatpush.bf16.msrb.mxu1 %v6118_v10  ;;  %v8851_v10 = vld [vmem:[#allocation9] sm:$0x7]  ;;  %v7874_v11 = vld [vmem:[#allocation6 + $0xb0] sm:$0xf0]  ;;  %v7873_v13 = vld [vmem:[#allocation6 + $0xac] sm:$0xf] }
 0x243   :  { %8266 = vpow2.f32 %v6093_v27  ;;  %v8841_v35 = vpop.f32.mrf.mxu2  ;;  %v6102_v27 = vor.u32 %v7828_v38, %v6099_v23  ;;  %v7875_v38 = vld [vmem:[#allocation6 + $0xb8] sm:$0xf0] }
 0x244   :  { %8268 = vpow2.f32 %v6094_v29  ;;  %v1161_v46 = vpop.f32.mrf.mxu0  ;;  %v1174_v41 = vpop.f32.mrf.mxu1  ;;  %1419 = vmatpush.bf16.msrb.mxu3 %v6110_v58  ;;  %v6106_v29 = vor.u32 %v7830_v37, %v6105_v24  ;;  %v1280_v37 = vperm.slane %v8851_v10, 1 }
 0x245   :  { %1433 = vmatpush.bf16.msrb.mxu0 %v6102_v27  ;;  %v1018_v41 = vperm.slane %v8834_v25, 2  ;;  %v6267_v27 = vld [vmem:[#allocation6 + $0x90] sm:$0xf] }
 0x246   :  { %1446 = vmatpush.bf16.msrb.mxu1 %v6106_v29  ;;  %v7871_v29 = vld [vmem:[#allocation6 + $0x98] sm:$0xf0] }
 0x247   :  { %v1186_v21 = vadd.f32 %v8841_v35, %v1018_v41 }
 0x248   :  { %1420 = vmatpush.bf16.msrb.mxu3 %v6098_v22  ;;  %v6287_v22 = vld [vmem:[#allocation6 + $0xb0] sm:$0xf] }
 0x249   :  { %v8267_v57 = vpop.eup %8266  ;;  %v6288_v24 = vor.u32 %v7875_v38, %v6287_v22 }
 0x24a   :  { %v8269_v6 = vpop.eup %8268  ;;  %v1193_v7 = vadd.f32 1.0, %v8267_v57 }
 0x24b   :  { %v1213_v15 = vadd.f32 1.0, %v8269_v6  ;;  %v1187_v8 = vpop.f32.mrf.mxu2  ;;  %1702 = vmatpush.bf16.msra.mxu0 %v6288_v24  ;;  %v6231_v24 = vld [vmem:[#allocation6 + $0x48] sm:$0xf] }
 0x24c   :  { %8270 = vrcp.f32 %v1193_v7  ;;  %v1205_v46 = vand.u32 2147483648, %v1193_v7  ;;  %v1203_v43 = vand.u32 2147483647, %v1193_v7  ;;  %vm1199_vm1 = vweird.f32 %v1193_v7  ;;  %v6281_v8 = vld [vmem:[#allocation6 + $0xb4] sm:$0xf0] }
 0x24d   :  { %8272 = vrcp.f32 %v1213_v15  ;;  %v1225_v51 = vand.u32 2147483648, %v1213_v15  ;;  %vm1219_vm5 = vweird.f32 %v1213_v15  ;;  %v1223_v55 = vand.u32 2147483647, %v1213_v15 }
 0x24e   :  { %v1206_v60 = vor.u32 1.1754944e-38, %v1205_v46  ;;  %vm1204_vm3 = vcmp.eq.f32.partialorder %v1203_v43, 8.507059e+37  ;;  %v6284_v23 = vor.u32 %v7873_v13, %v6281_v8  ;;  %v7866_v13 = vld [vmem:[#allocation6 + $0x70] sm:$0xf0] }
 0x24f   :  { %v1226_v58 = vor.u32 1.1754944e-38, %v1225_v51  ;;  %vm1224_vm7 = vcmp.eq.f32.partialorder %v1223_v55, 8.507059e+37  ;;  %v6257_v51 = vld [vmem:[#allocation6 + $0x84] sm:$0xf0]  ;;  %v7869_v55 = vld [vmem:[#allocation6 + $0x88] sm:$0xf0] }
 0x250   :  { %1689 = vmatpush.bf16.msra.mxu3 %v6284_v23 }
 0x252   :  { %v8271_v61 = vpop.eup %8270 }
 0x253   :  { %v8273_v30 = vpop.eup %8272  ;;  %v1195_v31 = vmul.f32 %v8271_v61, %v1193_v7  ;;  %vm1200_vm0 = vweird.f32 %v8271_v61 }
 0x254   :  { %v1215_v32 = vmul.f32 %v8273_v30, %v1213_v15  ;;  %vm1201_vm2 = vmor %vm1199_vm1, %vm1200_vm0  ;;  %vm1220_vm4 = vweird.f32 %v8273_v30 }
 0x255   :  { %v1196_v34 = vsub.f32 1.0, %v1195_v31  ;;  %vm1221_vm6 = vmor %vm1219_vm5, %vm1220_vm4  ;;  %v6269_v31 = vld [vmem:[#allocation6 + $0x9c] sm:$0xf0] }
 0x256   :  { %v1216_v36 = vsub.f32 1.0, %v1215_v32  ;;  %v6275_v32 = vld [vmem:[#allocation6 + $0x98] sm:$0xf] }
 0x257   :  { %v1197_v42 = vmul.f32 %v8271_v61, %v1196_v34  ;;  %v7872_v34 = vld [vmem:[#allocation6 + $0xa0] sm:$0xf0] }
 0x258   :  { %v1217_v44 = vmul.f32 %v8273_v30, %v1216_v36  ;;  %v6276_v41 = vor.u32 %v7872_v34, %v6275_v32  ;;  %v7863_v32 = vld [vmem:[#allocation6 + $0x58] sm:$0xf0]  ;;  %v6219_v34 = vld [vmem:[#allocation6 + $0x30] sm:$0xf] }
 0x259   :  { %v1198_v47 = vadd.f32 %v8271_v61, %v1197_v42  ;;  %v386_v42 = vadd.f32 %v8803_v62, %v8751_v0 }
 0x25a   :  { %v1218_v18 = vadd.f32 %v8273_v30, %v1217_v44  ;;  %1703 = vmatpush.bf16.msra.mxu0 %v6276_v41 }
 0x25b   :  { %v1202_v48 = vsel %vm1201_vm2, %v8271_v61, %v1198_v47  ;;  %v7870_v61 = vld [vmem:[#allocation6 + $0x94] sm:$0xf]  ;;  %v1279_v47 = vperm.slane %v8851_v10, 0 }
 0x25c   :  { %v1207_v50 = vsel %vm1204_vm3, %v1206_v60, %v1202_v48  ;;  %v1222_v57 = vsel %vm1221_vm6, %v8273_v30, %v1218_v18  ;;  %v6268_v30 = vor.u32 %v7871_v29, %v6267_v27  ;;  %v6272_v46 = vor.u32 %v7870_v61, %v6269_v31  ;;  %v6255_v60 = vld [vmem:[#allocation6 + $0x78] sm:$0xf]  ;;  %v7867_v48 = vld [vmem:[#allocation6 + $0x7c] sm:$0xf]  ;;  %v7861_v27 = vld [vmem:[#allocation6 + $0x4c] sm:$0xf] }
 0x25d   :  { %v1229_v54 = vmul.f32 %v1207_v50, %v1186_v21  ;;  %v1227_v4 = vsel %vm1224_vm7, %v1226_v58, %v1222_v57  ;;  %v7868_v21 = vld [vmem:[#allocation6 + $0x80] sm:$0xf0] }
 0x25e   :  { %v1232_v28 = vsub.f32 1.0, %v1227_v4  ;;  %v1234_v6 = vmul.f32 %v1227_v4, %v8830_v9  ;;  %1690 = vmatpush.bf16.msra.mxu3 %v6272_v46  ;;  %v6256_v18 = vor.u32 %v7868_v21, %v6255_v60  ;;  %v6243_v4 = vld [vmem:[#allocation6 + $0x60] sm:$0xf]  ;;  %v6227_v60 = vld [vmem:[#allocation6 + $0x38] sm:$0xf] }
 0x25f   :  { %v1230_v25 = vadd.f32 %v1229_v54, %v8775_v16  ;;  %v6279_v16 = vld [vmem:[#allocation6 + $0xa8] sm:$0xf]  ;;  %v6263_v54 = vld [vmem:[#allocation6 + $0x80] sm:$0xf] }
 0x260   :  { %v6280_v15 = vor.u32 %v7874_v11, %v6279_v16  ;;  %v6264_v57 = vor.u32 %v7869_v55, %v6263_v54  ;;  %v6245_v16 = vld [vmem:[#allocation6 + $0x6c] sm:$0xf0]  ;;  %v6251_v11 = vld [vmem:[#allocation6 + $0x68] sm:$0xf]  ;;  %v7856_v55 = vld [vmem:[#allocation6 + $0x20] sm:$0xf0] }
 0x261   :  { %8274 = vtanh.f32 %v1230_v25  ;;  %v6260_v25 = vor.u32 %v7867_v48, %v6257_v51  ;;  %v6252_v22 = vor.u32 %v7866_v13, %v6251_v11  ;;  %v6207_v51 = vld [vmem:[#allocation6 + $0x18] sm:$0xf]  ;;  %v6197_v11 = vld [vmem:[#allocation6 + $0xc] sm:$0xf0] }
 0x262   :  { %1676 = vmatpush.bf16.msrb.mxu2 %v6280_v15  ;;  %1704 = vmatpush.bf16.msra.mxu0 %v6264_v57  ;;  %v6209_v57 = vld [vmem:[#allocation6 + $0x24] sm:$0xf0] }
 0x263   :  { %1691 = vmatpush.bf16.msra.mxu3 %v6260_v25  ;;  %v7855_v25 = vld [vmem:[#allocation6 + $0x1c] sm:$0xf] }
 0x266   :  { %1677 = vmatpush.bf16.msrb.mxu2 %v6268_v30  ;;  %1705 = vmatpush.bf16.msra.mxu0 %v6252_v22  ;;  %v6239_v30 = vld [vmem:[#allocation6 + $0x50] sm:$0xf] }
 0x267   :  { %v8275_v5 = vpop.eup %8274  ;;  %v6240_v41 = vor.u32 %v7863_v32, %v6239_v30 }
 0x268   :  { %v1233_v35 = vmul.f32 %v8275_v5, %v1232_v28  ;;  %v7865_v28 = vld [vmem:[#allocation6 + $0x68] sm:$0xf0]  ;;  %v7864_v5 = vld [vmem:[#allocation6 + $0x64] sm:$0xf] }
 0x269   :  { %v6248_v8 = vor.u32 %v7864_v5, %v6245_v16  ;;  %v6195_v5 = vld [vmem:[#allocation6] sm:$0xf]  ;;  %v7852_v16 = vld [vmem:[#allocation6 + $0x4] sm:$0xf] }
 0x26a   :  { %v8847_v7 = vadd.f32 %v1234_v6, %v1233_v35  ;;  %1678 = vmatpush.bf16.msrb.mxu2 %v6256_v18  ;;  %v357_v35 = vadd.f32 %v8748_v53, %v8742_v40  ;;  %v6233_v53 = vld [vmem:[#allocation6 + $0x54] sm:$0xf0]  ;;  %v7860_v18 = vld [vmem:[#allocation6 + $0x40] sm:$0xf0]  ;;  %1706 = vmatpush.bf16.msra.mxu0 %v6240_v41 }
 0x26b   :  { %1692 = vmatpush.bf16.msra.mxu3 %v6248_v8  ;;  %v6236_v31 = vor.u32 %v7861_v27, %v6233_v53  ;;  %v6228_v54 = vor.u32 %v7860_v18, %v6227_v60  ;;  %v7854_v8 = vld [vmem:[#allocation6 + $0x10] sm:$0xf0] }
 0x26c   :  { %v1244_v49 = vpack.c.bf16 %v8847_v7, %v8847_v7 }
 0x26e   :  { %1421 = vmatmul.bf16.vlgmr.msrb.gmra.mxu3 %v1244_v49  ;;  %1434 = vmatmul.bf16.vlgmr.msrb.gmra.mxu0 %v1244_v49 }
 0x26f   :  { %1447 = vmatmul.bf16.vlgmr.msrb.gmra.mxu1 %v1244_v49  ;;  %v6244_v49 = vor.u32 %v7865_v28, %v6243_v4  ;;  %1693 = vmatpush.bf16.msra.mxu3 %v6236_v31  ;;  %v7857_v4 = vld [vmem:[#allocation6 + $0x28] sm:$0xf0]  ;;  %v6212_v28 = vor.u32 %v7855_v25, %v6209_v57  ;;  %v1281_v31 = vperm.slane %v8851_v10, 2 }
 0x270   :  { %1707 = vmatpush.bf16.msra.mxu0 %v6228_v54 }
 0x271   :  { %1679 = vmatpush.bf16.msrb.mxu2 %v6244_v49 }
 0x2eb   :  { %v1435_v36 = vpop.f32.mrf.mxu0 }
 0x2ec   :  { %v1436_v43 = vadd.f32 %v1435_v36, %v1280_v37  ;;  %v8856_v44 = vpop.f32.mrf.mxu1  ;;  %v7862_v37 = vld [vmem:[#allocation6 + $0x50] sm:$0xf0]  ;;  %v7859_v36 = vld [vmem:[#allocation6 + $0x38] sm:$0xf0] }
 0x2ed   :  { %v6232_v61 = vor.u32 %v7862_v37, %v6231_v24 }
 0x2ee   :  { %v1472_v50 = vadd.f32 %v1436_v43, %v386_v42  ;;  %v6220_v42 = vor.u32 %v7859_v36, %v6219_v34  ;;  %v7858_v43 = vld [vmem:[#allocation6 + $0x34] sm:$0xf] }
 0x2ef   :  { %1680 = vmatpush.bf16.msrb.mxu2 %v6232_v61 }
 0x2f0   :  { %v6192_v58 = vmul.f32 -1.442695, %v1472_v50 }
 0x2f1   :  { %v1422_v62 = vpop.f32.mrf.mxu3 }
 0x2f2   :  { %8276 = vpow2.f32 %v6192_v58  ;;  %v1423_v6 = vadd.f32 %v1422_v62, %v1279_v47  ;;  %v6221_v47 = vld [vmem:[#allocation6 + $0x3c] sm:$0xf0]  ;;  %v6208_v62 = vor.u32 %v7856_v55, %v6207_v51 }
 0x2f3   :  { %v1437_v15 = vpop.f32.mrf.mxu0  ;;  %v6224_v50 = vor.u32 %v7858_v43, %v6221_v47  ;;  %v6215_v58 = vld [vmem:[#allocation6 + $0x20] sm:$0xf]  ;;  %1681 = vmatpush.bf16.msrb.mxu2 %v6220_v42  ;;  %v1449_v42 = vadd.f32 %v8856_v44, %v1281_v31 }
 0x2f4   :  { %v1452_v38 = vadd.f32 %v1423_v6, %v357_v35  ;;  %v1450_v23 = vpop.f32.mrf.mxu1  ;;  %v7853_v35 = vld [vmem:[#allocation6 + $0x8] sm:$0xf0]  ;;  %v6216_v49 = vor.u32 %v7857_v4, %v6215_v58  ;;  %v6203_v15 = vld [vmem:[#allocation6 + $0x8] sm:$0xf] }
 0x2f5   :  { %1694 = vmatpush.bf16.msra.mxu3 %v6224_v50  ;;  %v6196_v22 = vor.u32 %v7853_v35, %v6195_v5  ;;  %v6204_v24 = vor.u32 %v7854_v8, %v6203_v15  ;;  %v7897_v5 = vld [vmem:[#allocation6 + $0xac] sm:$0xf]  ;;  %v6365_v15 = vld [vmem:[#allocation6 + $0x90] sm:$0xf]  ;;  %v7895_v8 = vld [vmem:[#allocation6 + $0x98] sm:$0xf0] }
 0x2f6   :  { %v6191_v29 = vmul.f32 -1.442695, %v1452_v38  ;;  %v6200_v38 = vor.u32 %v7852_v16, %v6197_v11  ;;  %1708 = vmatpush.bf16.msra.mxu0 %v6216_v49  ;;  %v6385_v49 = vld [vmem:[#allocation6 + $0xb0] sm:$0xf]  ;;  %v7899_v16 = vld [vmem:[#allocation6 + $0xb8] sm:$0xf0] }
 0x2f7   :  { %1682 = vmatpush.bf16.msrb.mxu2 %v6208_v62 }
 0x2f8   :  { %v8277_v46 = vpop.eup %8276  ;;  %8278 = vpow2.f32 %v6191_v29 }
 0x2f9   :  { %v8861_v21 = vadd.f32 1.0, %v8277_v46  ;;  %v1424_v48 = vpop.f32.mrf.mxu3  ;;  %1695 = vmatpush.bf16.msra.mxu3 %v6212_v28  ;;  %v7898_v28 = vld [vmem:[#allocation6 + $0xb0] sm:$0xf0] }
 0x2fa   :  { %1709 = vmatpush.bf16.msra.mxu0 %v6204_v24  ;;  %v415_v48 = vadd.f32 %v8783_v26, %v8772_v14  ;;  %v6373_v24 = vld [vmem:[#allocation6 + $0x98] sm:$0xf] }
 0x2fb   :  { %8280 = vrcp.f32 %v8861_v21  ;;  %1683 = vmatpush.bf16.msrb.mxu2 %v6196_v22  ;;  %v1488_v10 = vand.u32 2147483648, %v8861_v21  ;;  %vm1482_vm13 = vweird.f32 %v8861_v21  ;;  %v1486_v18 = vand.u32 2147483647, %v8861_v21  ;;  %v7894_v22 = vld [vmem:[#allocation6 + $0x94] sm:$0xf] }
 0x2fd   :  { %1696 = vmatpush.bf16.msra.mxu3 %v6200_v38  ;;  %v1489_v55 = vor.u32 1.1754944e-38, %v1488_v10  ;;  %vm1487_vm15 = vcmp.eq.f32.partialorder %v1486_v18, 8.507059e+37  ;;  %v6366_v38 = vor.u32 %v7895_v8, %v6365_v15  ;;  %v7889_v18 = vld [vmem:[#allocation6 + $0x68] sm:$0xf0]  ;;  %v6331_v15 = vld [vmem:[#allocation6 + $0x54] sm:$0xf0] }
 0x2fe   :  { %v8279_v6 = vpop.eup %8278 }
 0x2ff   :  { %v1456_v13 = vadd.f32 1.0, %v8279_v6  ;;  %v6379_v6 = vld [vmem:[#allocation6 + $0xb4] sm:$0xf0] }
 0x300   :  { %v6382_v11 = vor.u32 %v7897_v5, %v6379_v6  ;;  %v6329_v6 = vld [vmem:[#allocation6 + $0x48] sm:$0xf] }
 0x301   :  { %8282 = vrcp.f32 %v1456_v13  ;;  %v8281_v23 = vpop.eup %8280  ;;  %v1468_v30 = vand.u32 2147483648, %v1456_v13  ;;  %v1466_v34 = vand.u32 2147483647, %v1456_v13  ;;  %vm1462_vm9 = vweird.f32 %v1456_v13 }
 0x302   :  { %v1478_v37 = vmul.f32 %v8281_v23, %v8861_v21  ;;  %vm1483_vm12 = vweird.f32 %v8281_v23  ;;  %v6377_v21 = vld [vmem:[#allocation6 + $0xa8] sm:$0xf]  ;;  %1952 = vmatpush.bf16.msra.mxu2 %v6382_v11 }
 0x303   :  { %v1469_v41 = vor.u32 1.1754944e-38, %v1468_v30  ;;  %vm1467_vm11 = vcmp.eq.f32.partialorder %v1466_v34, 8.507059e+37  ;;  %vm1484_vm14 = vmor %vm1482_vm13, %vm1483_vm12  ;;  %v6378_v35 = vor.u32 %v7898_v28, %v6377_v21  ;;  %v7892_v34 = vld [vmem:[#allocation6 + $0x80] sm:$0xf0] }
 0x304   :  { %v1479_v61 = vsub.f32 1.0, %v1478_v37  ;;  %v7896_v37 = vld [vmem:[#allocation6 + $0xa0] sm:$0xf0] }
 0x305   :  { %1939 = vmatpush.bf16.msra.mxu1 %v6378_v35 }
 0x306   :  { %v1480_v36 = vmul.f32 %v8281_v23, %v1479_v61  ;;  %v6374_v61 = vor.u32 %v7896_v37, %v6373_v24  ;;  %v7882_v37 = vld [vmem:[#allocation6 + $0x34] sm:$0xf] }
 0x307   :  { %v8283_v27 = vpop.eup %8282 }
 0x308   :  { %v1458_v29 = vmul.f32 %v8283_v27, %v1456_v13  ;;  %vm1463_vm8 = vweird.f32 %v8283_v27  ;;  %v1481_v47 = vadd.f32 %v8281_v23, %v1480_v36  ;;  %v6386_v13 = vor.u32 %v7899_v16, %v6385_v49  ;;  %v7891_v36 = vld [vmem:[#allocation6 + $0x7c] sm:$0xf]  ;;  %v7886_v49 = vld [vmem:[#allocation6 + $0x50] sm:$0xf0]  ;;  %v7885_v16 = vld [vmem:[#allocation6 + $0x4c] sm:$0xf] }
 0x309   :  { %vm1464_vm10 = vmor %vm1462_vm9, %vm1463_vm8  ;;  %1940 = vmatpush.bf16.msra.mxu1 %v6366_v38  ;;  %v6334_v8 = vor.u32 %v7885_v16, %v6331_v15  ;;  %v7887_v38 = vld [vmem:[#allocation6 + $0x58] sm:$0xf0] }
 0x30a   :  { %v1459_v53 = vsub.f32 1.0, %v1458_v29  ;;  %v1485_v54 = vsel %vm1484_vm14, %v8281_v23, %v1481_v47  ;;  %1965 = vmatpush.bf16.msrb.mxu3 %v6386_v13  ;;  %v6367_v23 = vld [vmem:[#allocation6 + $0x9c] sm:$0xf0]  ;;  %v6330_v13 = vor.u32 %v7886_v49, %v6329_v6 }
 0x30b   :  { %v1490_v44 = vsel %vm1487_vm15, %v1489_v55, %v1485_v54  ;;  %v6370_v29 = vor.u32 %v7894_v22, %v6367_v23  ;;  %v389_v54 = vadd.f32 %v8805_v63, %v8751_v0  ;;  %v6337_v22 = vld [vmem:[#allocation6 + $0x50] sm:$0xf] }
 0x30c   :  { %v1460_v32 = vmul.f32 %v8283_v27, %v1459_v53  ;;  %v1495_v25 = vsub.f32 1.0, %v1490_v44  ;;  %v1497_v62 = vmul.f32 %v1490_v44, %v8847_v7  ;;  %v6317_v23 = vld [vmem:[#allocation6 + $0x30] sm:$0xf]  ;;  %v6338_v24 = vor.u32 %v7887_v38, %v6337_v22 }
 0x30d   :  { %1953 = vmatpush.bf16.msra.mxu2 %v6370_v29  ;;  %v6319_v29 = vld [vmem:[#allocation6 + $0x3c] sm:$0xf0] }
 0x30e   :  { %v1461_v46 = vadd.f32 %v8283_v27, %v1460_v32  ;;  %1966 = vmatpush.bf16.msrb.mxu3 %v6374_v61  ;;  %v6353_v32 = vld [vmem:[#allocation6 + $0x78] sm:$0xf] }
 0x310   :  { %v1465_v43 = vsel %vm1464_vm10, %v8283_v27, %v1461_v46  ;;  %v8877_v27 = vld [vmem:[#allocation9] sm:$0x7]  ;;  %v6354_v46 = vor.u32 %v7892_v34, %v6353_v32  ;;  %v6322_v32 = vor.u32 %v7882_v37, %v6319_v29  ;;  %v6325_v34 = vld [vmem:[#allocation6 + $0x38] sm:$0xf] }
 0x311   :  { %v1470_v60 = vsel %vm1467_vm11, %v1469_v41, %v1465_v43  ;;  %v1542_v30 = vperm.slane %v8877_v27, 0  ;;  %v1543_v31 = vperm.slane %v8877_v27, 1  ;;  %v6355_v41 = vld [vmem:[#allocation6 + $0x84] sm:$0xf0]  ;;  %v7893_v43 = vld [vmem:[#allocation6 + $0x88] sm:$0xf0] }
 0x312   :  { %v1492_v50 = vmul.f32 %v1470_v60, %v1449_v42  ;;  %v6361_v42 = vld [vmem:[#allocation6 + $0x80] sm:$0xf]  ;;  %v6358_v47 = vor.u32 %v7891_v36, %v6355_v41  ;;  %1941 = vmatpush.bf16.msra.mxu1 %v6354_v46  ;;  %v7884_v36 = vld [vmem:[#allocation6 + $0x40] sm:$0xf0]  ;;  %v6305_v46 = vld [vmem:[#allocation6 + $0x18] sm:$0xf] }
 0x313   :  { %v6362_v60 = vor.u32 %v7893_v43, %v6361_v42  ;;  %v6326_v41 = vor.u32 %v7884_v36, %v6325_v34  ;;  %v7880_v42 = vld [vmem:[#allocation6 + $0x20] sm:$0xf0]  ;;  %v7879_v43 = vld [vmem:[#allocation6 + $0x1c] sm:$0xf] }
 0x314   :  { %v1493_v51 = vadd.f32 %v1492_v50, %v415_v48  ;;  %1954 = vmatpush.bf16.msra.mxu2 %v6358_v47  ;;  %v6341_v50 = vld [vmem:[#allocation6 + $0x60] sm:$0xf]  ;;  %v6307_v47 = vld [vmem:[#allocation6 + $0x24] sm:$0xf0] }
 0x315   :  { %1967 = vmatpush.bf16.msrb.mxu3 %v6362_v60  ;;  %v6313_v60 = vld [vmem:[#allocation6 + $0x20] sm:$0xf] }
 0x316   :  { %8284 = vtanh.f32 %v1493_v51  ;;  %v7888_v51 = vld [vmem:[#allocation6 + $0x64] sm:$0xf] }
 0x31c   :  { %v8285_v57 = vpop.eup %8284 }
 0x31d   :  { %v1496_v58 = vmul.f32 %v8285_v57, %v1495_v25  ;;  %v6342_v25 = vor.u32 %v7889_v18, %v6341_v50  ;;  %v6343_v57 = vld [vmem:[#allocation6 + $0x6c] sm:$0xf0]  ;;  %v6310_v50 = vor.u32 %v7879_v43, %v6307_v47  ;;  %v6293_v18 = vld [vmem:[#allocation6] sm:$0xf] }
 0x31f   :  { %v8873_v26 = vadd.f32 %v1497_v62, %v1496_v58  ;;  %v6349_v58 = vld [vmem:[#allocation6 + $0x68] sm:$0xf]  ;;  %v7890_v62 = vld [vmem:[#allocation6 + $0x70] sm:$0xf0]  ;;  %1942 = vmatpush.bf16.msra.mxu1 %v6342_v25  ;;  %v6295_v25 = vld [vmem:[#allocation6 + $0xc] sm:$0xf0] }
 0x320   :  { %v6350_v21 = vor.u32 %v7890_v62, %v6349_v58  ;;  %v6301_v62 = vld [vmem:[#allocation6 + $0x8] sm:$0xf] }
 0x321   :  { %v1507_v4 = vpack.c.bf16 %v8873_v26, %v8873_v26 }
 0x322   :  { %1968 = vmatpush.bf16.msrb.mxu3 %v6350_v21 }
 0x323   :  { %1684 = vmatmul.bf16.vlgmr.msrb.gmra.mxu2 %v1507_v4  ;;  %1697 = vmatmul.bf16.vlgmr.msra.gmra.mxu3 %v1507_v4 }
 0x324   :  { %1710 = vmatmul.bf16.vlgmr.msra.gmra.mxu0 %v1507_v4  ;;  %v6346_v4 = vor.u32 %v7888_v51, %v6343_v57  ;;  %1943 = vmatpush.bf16.msra.mxu1 %v6330_v13  ;;  %v7877_v51 = vld [vmem:[#allocation6 + $0x8] sm:$0xf0] }
 0x326   :  { %1955 = vmatpush.bf16.msra.mxu2 %v6346_v4  ;;  %1969 = vmatpush.bf16.msrb.mxu3 %v6338_v24  ;;  %v7878_v4 = vld [vmem:[#allocation6 + $0x10] sm:$0xf0] }
 0x32a   :  { %1956 = vmatpush.bf16.msra.mxu2 %v6334_v8  ;;  %1970 = vmatpush.bf16.msrb.mxu3 %v6326_v41  ;;  %v1544_v8 = vperm.slane %v8877_v27, 2 }
 0x32e   :  { %1957 = vmatpush.bf16.msra.mxu2 %v6322_v32 }
 0x332   :  { %1958 = vmatpush.bf16.msra.mxu2 %v6310_v50 }
 0x3a1   :  { %v8879_v53 = vpop.f32.mrf.mxu0 }
 0x3a2   :  { %v1712_v37 = vadd.f32 %v8879_v53, %v1544_v8 }
 0x3a6   :  { %v1685_v48 = vpop.f32.mrf.mxu2  ;;  %v1698_v10 = vpop.f32.mrf.mxu3 }
 0x3a7   :  { %v1686_v55 = vadd.f32 %v1685_v48, %v1542_v30  ;;  %v1699_v44 = vadd.f32 %v1698_v10, %v1543_v31  ;;  %v7881_v48 = vld [vmem:[#allocation6 + $0x28] sm:$0xf0]  ;;  %v6306_v10 = vor.u32 %v7880_v42, %v6305_v46 }
 0x3a9   :  { %v1715_v28 = vadd.f32 %v1686_v55, %v8754_v12  ;;  %v1735_v5 = vadd.f32 %v1699_v44, %v389_v54  ;;  %v1713_v35 = vpop.f32.mrf.mxu0  ;;  %v7883_v12 = vld [vmem:[#allocation6 + $0x38] sm:$0xf0]  ;;  %v6314_v55 = vor.u32 %v7881_v48, %v6313_v60  ;;  %v7876_v44 = vld [vmem:[#allocation6 + $0x4] sm:$0xf] }
 0x3aa   :  { %v6318_v31 = vor.u32 %v7883_v12, %v6317_v23  ;;  %v6302_v35 = vor.u32 %v7878_v4, %v6301_v62  ;;  %v6475_v4 = vld [vmem:[#allocation6 + $0xa8] sm:$0xf] }
 0x3ab   :  { %v6289_v11 = vmul.f32 -1.442695, %v1715_v28  ;;  %v6290_v63 = vmul.f32 -1.442695, %v1735_v5  ;;  %v6294_v28 = vor.u32 %v7877_v51, %v6293_v18  ;;  %v6298_v5 = vor.u32 %v7876_v44, %v6295_v25  ;;  %1971 = vmatpush.bf16.msrb.mxu3 %v6314_v55  ;;  %v6471_v18 = vld [vmem:[#allocation6 + $0x98] sm:$0xf] }
 0x3ac   :  { %1944 = vmatpush.bf16.msra.mxu1 %v6318_v31  ;;  %v7920_v51 = vld [vmem:[#allocation6 + $0xa0] sm:$0xf0]  ;;  %v6459_v55 = vld [vmem:[#allocation6 + $0x80] sm:$0xf]  ;;  %v7917_v44 = vld [vmem:[#allocation6 + $0x88] sm:$0xf0] }
 0x3ad   :  { %8286 = vpow2.f32 %v6289_v11  ;;  %1959 = vmatpush.bf16.msra.mxu2 %v6298_v5  ;;  %v6460_v25 = vor.u32 %v7917_v44, %v6459_v55  ;;  %v6399_v55 = vld [vmem:[#allocation6 + $0x8] sm:$0xf]  ;;  %v7902_v44 = vld [vmem:[#allocation6 + $0x10] sm:$0xf0] }
 0x3ae   :  { %8288 = vpow2.f32 %v6290_v63  ;;  %v1687_v61 = vpop.f32.mrf.mxu2  ;;  %v1700_v30 = vpop.f32.mrf.mxu3 }
 0x3af   :  { %1972 = vmatpush.bf16.msrb.mxu3 %v6302_v35  ;;  %v6477_v35 = vld [vmem:[#allocation6 + $0xb4] sm:$0xf0] }
 0x3b0   :  { %1945 = vmatpush.bf16.msra.mxu1 %v6306_v10  ;;  %v7923_v10 = vld [vmem:[#allocation6 + $0xb8] sm:$0xf0] }
 0x3b3   :  { %v8287_v54 = vpop.eup %8286 }
 0x3b4   :  { %v8289_v57 = vpop.eup %8288  ;;  %v1719_v58 = vadd.f32 1.0, %v8287_v54  ;;  %1946 = vmatpush.bf16.msra.mxu1 %v6294_v28  ;;  %v6472_v54 = vor.u32 %v7920_v51, %v6471_v18  ;;  %v7921_v28 = vld [vmem:[#allocation6 + $0xac] sm:$0xf] }
 0x3b5   :  { %v1739_v21 = vadd.f32 1.0, %v8289_v57  ;;  %v6447_v57 = vld [vmem:[#allocation6 + $0x68] sm:$0xf] }
 0x3b6   :  { %8290 = vrcp.f32 %v1719_v58  ;;  %v1731_v13 = vand.u32 2147483648, %v1719_v58  ;;  %v1729_v38 = vand.u32 2147483647, %v1719_v58  ;;  %vm1725_vm1 = vweird.f32 %v1719_v58 }
 0x3b7   :  { %8292 = vrcp.f32 %v1739_v21  ;;  %v1751_v32 = vand.u32 2147483648, %v1739_v21  ;;  %vm1745_vm5 = vweird.f32 %v1739_v21  ;;  %v1749_v34 = vand.u32 2147483647, %v1739_v21 }
 0x3b8   :  { %v1732_v12 = vor.u32 1.1754944e-38, %v1731_v13  ;;  %vm1730_vm3 = vcmp.eq.f32.partialorder %v1729_v38, 8.507059e+37  ;;  %v7919_v13 = vld [vmem:[#allocation6 + $0x98] sm:$0xf0]  ;;  %v8894_v38 = vld [vmem:[#allocation9] sm:$0x7] }
 0x3b9   :  { %v1752_v46 = vor.u32 1.1754944e-38, %v1751_v32  ;;  %vm1750_vm7 = vcmp.eq.f32.partialorder %v1749_v34, 8.507059e+37  ;;  %v6453_v34 = vld [vmem:[#allocation6 + $0x84] sm:$0xf0] }
 0x3bc   :  { %v8291_v6 = vpop.eup %8290 }
 0x3bd   :  { %v8293_v49 = vpop.eup %8292  ;;  %v1721_v16 = vmul.f32 %v8291_v6, %v1719_v58  ;;  %vm1726_vm0 = vweird.f32 %v8291_v6  ;;  %v7914_v58 = vld [vmem:[#allocation6 + $0x70] sm:$0xf0] }
 0x3be   :  { %v1741_v11 = vmul.f32 %v8293_v49, %v1739_v21  ;;  %vm1727_vm2 = vmor %vm1725_vm1, %vm1726_vm0  ;;  %vm1746_vm4 = vweird.f32 %v8293_v49  ;;  %v6448_v62 = vor.u32 %v7914_v58, %v6447_v57  ;;  %v7922_v21 = vld [vmem:[#allocation6 + $0xb0] sm:$0xf0]  ;;  %v6427_v57 = vld [vmem:[#allocation6 + $0x48] sm:$0xf] }
 0x3bf   :  { %v1722_v63 = vsub.f32 1.0, %v1721_v16  ;;  %vm1747_vm6 = vmor %vm1745_vm5, %vm1746_vm4  ;;  %v6476_v5 = vor.u32 %v7922_v21, %v6475_v4  ;;  %v7911_v16 = vld [vmem:[#allocation6 + $0x58] sm:$0xf0]  ;;  %v7910_v58 = vld [vmem:[#allocation6 + $0x50] sm:$0xf0] }
 0x3c0   :  { %v1742_v15 = vsub.f32 1.0, %v1741_v11  ;;  %v6428_v21 = vor.u32 %v7910_v58, %v6427_v57 }
 0x3c1   :  { %v1723_v22 = vmul.f32 %v8291_v6, %v1722_v63  ;;  %2202 = vmatpush.bf16.msrb.mxu0 %v6476_v5  ;;  %v6463_v63 = vld [vmem:[#allocation6 + $0x90] sm:$0xf] }
 0x3c2   :  { %v1743_v23 = vmul.f32 %v8293_v49, %v1742_v15  ;;  %v7918_v15 = vld [vmem:[#allocation6 + $0x94] sm:$0xf]  ;;  %v6464_v8 = vor.u32 %v7919_v13, %v6463_v63 }
 0x3c3   :  { %v1724_v24 = vadd.f32 %v8291_v6, %v1723_v22  ;;  %v6465_v22 = vld [vmem:[#allocation6 + $0x9c] sm:$0xf0] }
 0x3c4   :  { %v1744_v30 = vadd.f32 %v8293_v49, %v1743_v23  ;;  %v6468_v23 = vor.u32 %v7918_v15, %v6465_v22  ;;  %v6415_v15 = vld [vmem:[#allocation6 + $0x30] sm:$0xf]  ;;  %v7906_v22 = vld [vmem:[#allocation6 + $0x34] sm:$0xf] }
 0x3c5   :  { %v1728_v29 = vsel %vm1727_vm2, %v8291_v6, %v1724_v24  ;;  %v6480_v6 = vor.u32 %v7921_v28, %v6477_v35  ;;  %2203 = vmatpush.bf16.msrb.mxu0 %v6464_v8  ;;  %v6423_v24 = vld [vmem:[#allocation6 + $0x38] sm:$0xf]  ;;  %v7907_v8 = vld [vmem:[#allocation6 + $0x38] sm:$0xf0] }
 0x3c6   :  { %v1733_v61 = vsel %vm1730_vm3, %v1732_v12, %v1728_v29  ;;  %v1748_v36 = vsel %vm1747_vm6, %v8293_v49, %v1744_v30  ;;  %v6435_v49 = vld [vmem:[#allocation6 + $0x50] sm:$0xf]  ;;  %v7908_v12 = vld [vmem:[#allocation6 + $0x40] sm:$0xf0]  ;;  %v6451_v29 = vld [vmem:[#allocation6 + $0x78] sm:$0xf] }
 0x3c7   :  { %v1755_v31 = vmul.f32 %v1733_v61, %v1712_v37  ;;  %v1753_v41 = vsel %vm1750_vm7, %v1752_v46, %v1748_v36  ;;  %2215 = vmatpush.bf16.msrb.mxu1 %v6480_v6  ;;  %v6436_v11 = vor.u32 %v7911_v16, %v6435_v49  ;;  %v6424_v37 = vor.u32 %v7908_v12, %v6423_v24  ;;  %v7916_v61 = vld [vmem:[#allocation6 + $0x80] sm:$0xf0]  ;;  %v7915_v30 = vld [vmem:[#allocation6 + $0x7c] sm:$0xf]  ;;  %v6411_v36 = vld [vmem:[#allocation6 + $0x20] sm:$0xf] }
 0x3c8   :  { %v1758_v42 = vsub.f32 1.0, %v1753_v41  ;;  %v1760_v47 = vmul.f32 %v1753_v41, %v8873_v26  ;;  %v6452_v32 = vor.u32 %v7916_v61, %v6451_v29  ;;  %v7905_v46 = vld [vmem:[#allocation6 + $0x28] sm:$0xf0]  ;;  %v6429_v28 = vld [vmem:[#allocation6 + $0x54] sm:$0xf0]  ;;  %v391_v49 = vadd.f32 %v8807_v1, %v8751_v0 }
 0x3c9   :  { %v1756_v27 = vadd.f32 %v1755_v31, %v8788_v45  ;;  %v6483_v45 = vld [vmem:[#allocation6 + $0xb0] sm:$0xf]  ;;  %v1805_v31 = vperm.slane %v8894_v38, 0  ;;  %v7970_v6 = vld [vmem:[#allocation11 + $0xb0] sm:$0xf0]  ;;  %v6416_v24 = vor.u32 %v7907_v8, %v6415_v15  ;;  %v1807_v8 = vperm.slane %v8894_v38, 2 }
 0x3ca   :  { %v6484_v50 = vor.u32 %v7923_v10, %v6483_v45  ;;  %2204 = vmatpush.bf16.msrb.mxu0 %v6452_v32  ;;  %v6417_v12 = vld [vmem:[#allocation6 + $0x3c] sm:$0xf0]  ;;  %v7967_v29 = vld [vmem:[#allocation11 + $0x98] sm:$0xf0]  ;;  %v7952_v15 = vld [vmem:[#allocation11 + $0x20] sm:$0xf0] }
 0x3cb   :  { %8294 = vtanh.f32 %v1756_v27  ;;  %2216 = vmatpush.bf16.msrb.mxu1 %v6468_v23  ;;  %v6456_v27 = vor.u32 %v7915_v30, %v6453_v34  ;;  %v6420_v61 = vor.u32 %v7906_v22, %v6417_v12  ;;  %v7904_v32 = vld [vmem:[#allocation6 + $0x20] sm:$0xf0]  ;;  %v7903_v34 = vld [vmem:[#allocation6 + $0x1c] sm:$0xf] }
 0x3cc   :  { %2228 = vmatpush.bf16.msrb.mxu2 %v6484_v50  ;;  %v6441_v50 = vld [vmem:[#allocation6 + $0x6c] sm:$0xf0] }
 0x3cf   :  { %2217 = vmatpush.bf16.msrb.mxu1 %v6456_v27 }
 0x3d0   :  { %2229 = vmatpush.bf16.msrb.mxu2 %v6472_v54  ;;  %v1806_v54 = vperm.slane %v8894_v38, 1  ;;  %v420_v38 = vadd.f32 %v8790_v52, %v8772_v14 }
 0x3d1   :  { %v8295_v43 = vpop.eup %8294 }
 0x3d2   :  { %v1759_v53 = vmul.f32 %v8295_v43, %v1758_v42  ;;  %v6412_v42 = vor.u32 %v7905_v46, %v6411_v36  ;;  %v6439_v43 = vld [vmem:[#allocation6 + $0x60] sm:$0xf]  ;;  %v6405_v46 = vld [vmem:[#allocation6 + $0x24] sm:$0xf0] }
 0x3d4   :  { %v8890_v60 = vadd.f32 %v1760_v47, %v1759_v53  ;;  %2230 = vmatpush.bf16.msrb.mxu2 %v6460_v25  ;;  %v7913_v53 = vld [vmem:[#allocation6 + $0x68] sm:$0xf0]  ;;  %v7912_v47 = vld [vmem:[#allocation6 + $0x64] sm:$0xf]  ;;  %v6400_v25 = vor.u32 %v7902_v44, %v6399_v55  ;;  %v6635_v55 = vld [vmem:[#allocation11 + $0x60] sm:$0xf] }
 0x3d5   :  { %v6440_v10 = vor.u32 %v7913_v53, %v6439_v43  ;;  %v6444_v18 = vor.u32 %v7912_v47, %v6441_v50  ;;  %v6408_v47 = vor.u32 %v7903_v34, %v6405_v46  ;;  %v7961_v44 = vld [vmem:[#allocation11 + $0x68] sm:$0xf0] }
 0x3d6   :  { %v1770_v48 = vpack.c.bf16 %v8890_v60, %v8890_v60  ;;  %v6636_v57 = vor.u32 %v7961_v44, %v6635_v55  ;;  %v8915_v55 = vpack.c.bf16 %v8830_v9, %v8792_v56  ;;  %v8920_v44 = vpack.c.bf16 %v8873_v26, %v8847_v7 }
 0x3d7   :  { %2205 = vmatpush.bf16.msrb.mxu0 %v6440_v10  ;;  %2218 = vmatpush.bf16.msrb.mxu1 %v6444_v18  ;;  %v7901_v10 = vld [vmem:[#allocation6 + $0x8] sm:$0xf0] }
 0x3d8   :  { %1947 = vmatmul.bf16.vlgmr.msra.gmra.mxu1 %v1770_v48  ;;  %1960 = vmatmul.bf16.vlgmr.msra.gmra.mxu2 %v1770_v48 }
 0x3d9   :  { %1973 = vmatmul.bf16.vlgmr.msrb.gmra.mxu3 %v1770_v48  ;;  %2231 = vmatpush.bf16.msrb.mxu2 %v6448_v62  ;;  %v362_v48 = vadd.f32 %v8763_v39, %v8742_v40  ;;  %v7909_v62 = vld [vmem:[#allocation6 + $0x4c] sm:$0xf]  ;;  %v6671_v39 = vld [vmem:[#allocation11 + $0xa8] sm:$0xf] }
 0x3da   :  { %v6432_v35 = vor.u32 %v7909_v62, %v6429_v28  ;;  %v6672_v63 = vor.u32 %v7970_v6, %v6671_v39  ;;  %v6623_v62 = vld [vmem:[#allocation11 + $0x48] sm:$0xf] }
 0x3db   :  { %2206 = vmatpush.bf16.msrb.mxu0 %v6428_v21 }
 0x3dc   :  { %2219 = vmatpush.bf16.msrb.mxu1 %v6432_v35  ;;  %v7955_v35 = vld [vmem:[#allocation11 + $0x38] sm:$0xf0] }
 0x3dd   :  { %2232 = vmatpush.bf16.msrb.mxu2 %v6436_v11 }
 0x3df   :  { %2207 = vmatpush.bf16.msrb.mxu0 %v6416_v24 }
 0x3e0   :  { %2220 = vmatpush.bf16.msrb.mxu1 %v6420_v61 }
 0x3e1   :  { %2233 = vmatpush.bf16.msrb.mxu2 %v6424_v37  ;;  %v6659_v37 = vld [vmem:[#allocation11 + $0x90] sm:$0xf] }
 0x3e2   :  { %v6660_v30 = vor.u32 %v7967_v29, %v6659_v37 }
 0x3e4   :  { %2221 = vmatpush.bf16.msrb.mxu1 %v6408_v47 }
 0x3e5   :  { %2234 = vmatpush.bf16.msrb.mxu2 %v6412_v42  ;;  %v7964_v42 = vld [vmem:[#allocation11 + $0x80] sm:$0xf0] }
 0x3e9   :  { %2235 = vmatpush.bf16.msrb.mxu2 %v6400_v25 }
 0x3ed   :  { %2733 = vmatpush.bf16.msra.mxu2 %v6672_v63 }
 0x3f1   :  { %2734 = vmatpush.bf16.msra.mxu2 %v6660_v30  ;;  %v6587_v30 = vld [vmem:[#allocation11] sm:$0xf] }
 0x455   :  { %v1948_v41 = vpop.f32.mrf.mxu1 }
 0x456   :  { %v1949_v45 = vadd.f32 %v1948_v41, %v1805_v31  ;;  %v6403_v31 = vld [vmem:[#allocation6 + $0x18] sm:$0xf]  ;;  %v6647_v41 = vld [vmem:[#allocation11 + $0x78] sm:$0xf] }
 0x457   :  { %v6404_v36 = vor.u32 %v7904_v32, %v6403_v31 }
 0x458   :  { %v1978_v51 = vadd.f32 %v1949_v45, %v362_v48  ;;  %v6648_v48 = vor.u32 %v7964_v42, %v6647_v41  ;;  %v6391_v45 = vld [vmem:[#allocation6] sm:$0xf] }
 0x459   :  { %2208 = vmatpush.bf16.msrb.mxu0 %v6404_v36  ;;  %v6392_v18 = vor.u32 %v7901_v10, %v6391_v45 }
 0x45a   :  { %v6387_v4 = vmul.f32 -1.442695, %v1978_v51  ;;  %v7900_v51 = vld [vmem:[#allocation6 + $0x4] sm:$0xf]  ;;  %2735 = vmatpush.bf16.msra.mxu2 %v6648_v48 }
 0x45b   :  { %v1961_v5 = vpop.f32.mrf.mxu2 }
 0x45c   :  { %8296 = vpow2.f32 %v6387_v4  ;;  %v1962_v16 = vadd.f32 %v1961_v5, %v1806_v54  ;;  %v8902_v11 = vpop.f32.mrf.mxu3  ;;  %v6393_v54 = vld [vmem:[#allocation6 + $0xc] sm:$0xf0]  ;;  %v7958_v4 = vld [vmem:[#allocation11 + $0x50] sm:$0xf0]  ;;  %v6611_v5 = vld [vmem:[#allocation11 + $0x30] sm:$0xf] }
 0x45d   :  { %v1950_v13 = vpop.f32.mrf.mxu1  ;;  %v6396_v25 = vor.u32 %v7900_v51, %v6393_v54  ;;  %2209 = vmatpush.bf16.msrb.mxu0 %v6392_v18  ;;  %v6624_v28 = vor.u32 %v7958_v4, %v6623_v62  ;;  %v1975_v32 = vadd.f32 %v8902_v11, %v1807_v8  ;;  %v7945_v62 = vld [vmem:[#allocation6 + $0xac] sm:$0xf] }
 0x45e   :  { %v1998_v23 = vadd.f32 %v1962_v16, %v391_v49  ;;  %2736 = vmatpush.bf16.msra.mxu2 %v6636_v57  ;;  %v6612_v16 = vor.u32 %v7955_v35, %v6611_v5  ;;  %v6599_v13 = vld [vmem:[#allocation11 + $0x18] sm:$0xf]  ;;  %v6573_v57 = vld [vmem:[#allocation6 + $0xa8] sm:$0xf]  ;;  %v7943_v5 = vld [vmem:[#allocation6 + $0x98] sm:$0xf0] }
 0x45f   :  { %2222 = vmatpush.bf16.msrb.mxu1 %v6396_v25  ;;  %v6600_v29 = vor.u32 %v7952_v15, %v6599_v13  ;;  %v7942_v35 = vld [vmem:[#allocation6 + $0x94] sm:$0xf]  ;;  %v7940_v13 = vld [vmem:[#allocation6 + $0x80] sm:$0xf0]  ;;  %v7939_v15 = vld [vmem:[#allocation6 + $0x7c] sm:$0xf] }
 0x460   :  { %v6388_v1 = vmul.f32 -1.442695, %v1998_v23 }
 0x462   :  { %v8297_v27 = vpop.eup %8296  ;;  %8298 = vpow2.f32 %v6388_v1  ;;  %2737 = vmatpush.bf16.msra.mxu2 %v6624_v28  ;;  %v7949_v1 = vld [vmem:[#allocation11 + $0x8] sm:$0xf0] }
 0x463   :  { %v1982_v43 = vadd.f32 1.0, %v8297_v27  ;;  %v1963_v53 = vpop.f32.mrf.mxu2  ;;  %v6588_v42 = vor.u32 %v7949_v1, %v6587_v30  ;;  %v6581_v30 = vld [vmem:[#allocation6 + $0xb0] sm:$0xf]  ;;  %v7947_v1 = vld [vmem:[#allocation6 + $0xb8] sm:$0xf0] }
 0x464   :  { %v1976_v50 = vpop.f32.mrf.mxu3 }
 0x465   :  { %8300 = vrcp.f32 %v1982_v43  ;;  %v1994_v63 = vand.u32 2147483648, %v1982_v43  ;;  %v1992_v23 = vand.u32 2147483647, %v1982_v43  ;;  %vm1988_vm9 = vweird.f32 %v1982_v43 }
 0x466   :  { %2738 = vmatpush.bf16.msra.mxu2 %v6612_v16 }
 0x467   :  { %v1995_v61 = vor.u32 1.1754944e-38, %v1994_v63  ;;  %vm1993_vm11 = vcmp.eq.f32.partialorder %v1992_v23, 8.507059e+37  ;;  %v6549_v63 = vld [vmem:[#allocation6 + $0x78] sm:$0xf] }
 0x468   :  { %v8299_v58 = vpop.eup %8298  ;;  %v6550_v8 = vor.u32 %v7940_v13, %v6549_v63  ;;  %v7938_v63 = vld [vmem:[#allocation6 + $0x70] sm:$0xf0] }
 0x469   :  { %v2002_v21 = vadd.f32 1.0, %v8299_v58  ;;  %v7946_v58 = vld [vmem:[#allocation6 + $0xb0] sm:$0xf0] }
 0x46a   :  { %2739 = vmatpush.bf16.msra.mxu2 %v6600_v29  ;;  %v6574_v4 = vor.u32 %v7946_v58, %v6573_v57 }
 0x46b   :  { %v8301_v39 = vpop.eup %8300  ;;  %8302 = vrcp.f32 %v2002_v21  ;;  %v2014_v27 = vand.u32 2147483648, %v2002_v21  ;;  %vm2008_vm13 = vweird.f32 %v2002_v21 }
 0x46c   :  { %v1984_v6 = vmul.f32 %v8301_v39, %v1982_v43  ;;  %vm1989_vm8 = vweird.f32 %v8301_v39  ;;  %v2012_v43 = vand.u32 2147483647, %v2002_v21  ;;  %2465 = vmatpush.bf16.msra.mxu3 %v6574_v4  ;;  %v6501_v4 = vld [vmem:[#allocation6 + $0x18] sm:$0xf] }
 0x46d   :  { %vm1990_vm10 = vmor %vm1988_vm9, %vm1989_vm8  ;;  %v2015_v48 = vor.u32 1.1754944e-38, %v2014_v27  ;;  %v7933_v27 = vld [vmem:[#allocation6 + $0x4c] sm:$0xf] }
 0x46e   :  { %v1985_v49 = vsub.f32 1.0, %v1984_v6  ;;  %2740 = vmatpush.bf16.msra.mxu2 %v6588_v42  ;;  %vm2013_vm15 = vcmp.eq.f32.partialorder %v2012_v43, 8.507059e+37  ;;  %v7944_v43 = vld [vmem:[#allocation6 + $0xa0] sm:$0xf0] }
 0x470   :  { %v1986_v22 = vmul.f32 %v8301_v39, %v1985_v49  ;;  %v6563_v49 = vld [vmem:[#allocation6 + $0x9c] sm:$0xf0] }
 0x471   :  { %v8303_v24 = vpop.eup %8302  ;;  %v6566_v16 = vor.u32 %v7942_v35, %v6563_v49  ;;  %v6503_v49 = vld [vmem:[#allocation6 + $0x24] sm:$0xf0] }
 0x472   :  { %v2004_v12 = vmul.f32 %v8303_v24, %v2002_v21  ;;  %v1987_v37 = vadd.f32 %v8301_v39, %v1986_v22  ;;  %vm2009_vm12 = vweird.f32 %v8303_v24  ;;  %v6575_v21 = vld [vmem:[#allocation6 + $0xb4] sm:$0xf0]  ;;  %v6551_v22 = vld [vmem:[#allocation6 + $0x84] sm:$0xf0] }
 0x473   :  { %vm2010_vm14 = vmor %vm2008_vm13, %vm2009_vm12  ;;  %v6578_v28 = vor.u32 %v7945_v62, %v6575_v21  ;;  %v6554_v23 = vor.u32 %v7939_v15, %v6551_v22  ;;  %v7928_v21 = vld [vmem:[#allocation6 + $0x20] sm:$0xf0] }
 0x474   :  { %v2005_v31 = vsub.f32 1.0, %v2004_v12  ;;  %v1991_v34 = vsel %vm1990_vm10, %v8301_v39, %v1987_v37  ;;  %v6561_v39 = vld [vmem:[#allocation6 + $0x90] sm:$0xf]  ;;  %v7937_v12 = vld [vmem:[#allocation6 + $0x68] sm:$0xf0] }
 0x475   :  { %v1996_v36 = vsel %vm1993_vm11, %v1995_v61, %v1991_v34  ;;  %2478 = vmatpush.bf16.msra.mxu0 %v6578_v28  ;;  %v6562_v6 = vor.u32 %v7943_v5, %v6561_v39  ;;  %v7936_v37 = vld [vmem:[#allocation6 + $0x64] sm:$0xf]  ;;  %v6539_v61 = vld [vmem:[#allocation6 + $0x6c] sm:$0xf0]  ;;  %v6525_v34 = vld [vmem:[#allocation6 + $0x48] sm:$0xf]  ;;  %v394_v39 = vadd.f32 %v8809_v3, %v8751_v0 }
 0x476   :  { %v2006_v46 = vmul.f32 %v8303_v24, %v2005_v31  ;;  %v2018_v41 = vmul.f32 %v1996_v36, %v1975_v32  ;;  %v6542_v31 = vor.u32 %v7936_v37, %v6539_v61  ;;  %v6582_v32 = vor.u32 %v7947_v1, %v6581_v30  ;;  %v7927_v28 = vld [vmem:[#allocation6 + $0x1c] sm:$0xf]  ;;  %v7925_v37 = vld [vmem:[#allocation6 + $0x8] sm:$0xf0]  ;;  %v6491_v61 = vld [vmem:[#allocation6 + $0xc] sm:$0xf0] }
 0x477   :  { %2466 = vmatpush.bf16.msra.mxu3 %v6562_v6  ;;  %v6502_v6 = vor.u32 %v7928_v21, %v6501_v4  ;;  %v6533_v30 = vld [vmem:[#allocation6 + $0x50] sm:$0xf]  ;;  %v7935_v1 = vld [vmem:[#allocation6 + $0x58] sm:$0xf0]  ;;  %v7929_v4 = vld [vmem:[#allocation6 + $0x28] sm:$0xf0] }
 0x478   :  { %v2007_v53 = vadd.f32 %v8303_v24, %v2006_v46  ;;  %v2019_v47 = vadd.f32 %v2018_v41, %v420_v38  ;;  %2491 = vmatpush.bf16.msra.mxu1 %v6582_v32  ;;  %v7934_v38 = vld [vmem:[#allocation6 + $0x50] sm:$0xf0]  ;;  %v6527_v46 = vld [vmem:[#allocation6 + $0x54] sm:$0xf0]  ;;  %v7963_v21 = vld [vmem:[#allocation11 + $0x7c] sm:$0xf] }
 0x479   :  { %2479 = vmatpush.bf16.msra.mxu0 %v6566_v16  ;;  %v6526_v36 = vor.u32 %v7934_v38, %v6525_v34  ;;  %v6569_v41 = vld [vmem:[#allocation6 + $0x98] sm:$0xf]  ;;  %v6530_v42 = vor.u32 %v7933_v27, %v6527_v46  ;;  %v6545_v16 = vld [vmem:[#allocation6 + $0x68] sm:$0xf]  ;;  %v6534_v38 = vor.u32 %v7935_v1, %v6533_v30  ;;  %v7969_v27 = vld [vmem:[#allocation11 + $0xac] sm:$0xf] }
 0x47a   :  { %v2011_v45 = vsel %vm2010_vm14, %v8303_v24, %v2007_v53  ;;  %8304 = vtanh.f32 %v2019_v47  ;;  %v6537_v24 = vld [vmem:[#allocation6 + $0x60] sm:$0xf]  ;;  %v8928_v53 = vld [vmem:[#allocation9] sm:$0x7]  ;;  %v6570_v47 = vor.u32 %v7944_v43, %v6569_v41  ;;  %v6546_v22 = vor.u32 %v7938_v63, %v6545_v16  ;;  %v6679_v46 = vld [vmem:[#allocation11 + $0xb0] sm:$0xf] }
 0x47b   :  { %v2016_v11 = vsel %vm2013_vm15, %v2015_v48, %v2011_v45  ;;  %2467 = vmatpush.bf16.msra.mxu3 %v6550_v8  ;;  %v6538_v29 = vor.u32 %v7937_v12, %v6537_v24  ;;  %v6513_v48 = vld [vmem:[#allocation6 + $0x30] sm:$0xf]  ;;  %v7931_v45 = vld [vmem:[#allocation6 + $0x38] sm:$0xf0]  ;;  %v2069_v57 = vperm.slane %v8928_v53, 1  ;;  %v6506_v8 = vor.u32 %v7927_v28, %v6503_v49 }
 0x47c   :  { %v2021_v10 = vsub.f32 1.0, %v2016_v11  ;;  %v2023_v18 = vmul.f32 %v2016_v11, %v8890_v60  ;;  %v7930_v11 = vld [vmem:[#allocation6 + $0x34] sm:$0xf]  ;;  %2492 = vmatpush.bf16.msra.mxu1 %v6570_v47  ;;  %v6489_v12 = vld [vmem:[#allocation6] sm:$0xf] }
 0x47d   :  { %2480 = vmatpush.bf16.msra.mxu0 %v6554_v23  ;;  %v6490_v3 = vor.u32 %v7925_v37, %v6489_v12  ;;  %v7971_v41 = vld [vmem:[#allocation11 + $0xb8] sm:$0xf0]  ;;  %v7960_v12 = vld [vmem:[#allocation11 + $0x64] sm:$0xf]  ;;  %v6637_v37 = vld [vmem:[#allocation11 + $0x6c] sm:$0xf0] }
 0x47e   :  { %v6680_v43 = vor.u32 %v7971_v41, %v6679_v46  ;;  %v7957_v1 = vld [vmem:[#allocation11 + $0x4c] sm:$0xf] }
 0x47f   :  { %2468 = vmatpush.bf16.msra.mxu3 %v6538_v29  ;;  %v7924_v29 = vld [vmem:[#allocation6 + $0x4] sm:$0xf] }
 0x480   :  { %v8305_v52 = vpop.eup %8304  ;;  %v6494_v34 = vor.u32 %v7924_v29, %v6491_v61  ;;  %v6640_v29 = vor.u32 %v7960_v12, %v6637_v37  ;;  %v7962_v61 = vld [vmem:[#allocation11 + $0x70] sm:$0xf0] }
 0x481   :  { %v2022_v50 = vmul.f32 %v8305_v52, %v2021_v10  ;;  %2481 = vmatpush.bf16.msra.mxu0 %v6542_v31  ;;  %v6514_v10 = vor.u32 %v7931_v45, %v6513_v48  ;;  %v6515_v52 = vld [vmem:[#allocation6 + $0x3c] sm:$0xf0]  ;;  %v6521_v45 = vld [vmem:[#allocation6 + $0x38] sm:$0xf] }
 0x482   :  { %v6518_v58 = vor.u32 %v7930_v11, %v6515_v52  ;;  %v7932_v11 = vld [vmem:[#allocation6 + $0x40] sm:$0xf0] }
 0x483   :  { %v8909_v51 = vadd.f32 %v2023_v18, %v2022_v50  ;;  %2469 = vmatpush.bf16.msra.mxu3 %v6526_v36  ;;  %v6557_v50 = vld [vmem:[#allocation6 + $0x80] sm:$0xf]  ;;  %v7941_v18 = vld [vmem:[#allocation6 + $0x88] sm:$0xf0]  ;;  %v6522_v52 = vor.u32 %v7932_v11, %v6521_v45 }
 0x484   :  { %v6558_v62 = vor.u32 %v7941_v18, %v6557_v50  ;;  %v6673_v36 = vld [vmem:[#allocation11 + $0xb4] sm:$0xf0]  ;;  %v6661_v50 = vld [vmem:[#allocation11 + $0x9c] sm:$0xf0] }
 0x485   :  { %v2033_v54 = vpack.c.bf16 %v8909_v51, %v8909_v51  ;;  %v8925_v25 = vpack.c.bf16 %v8909_v51, %v8890_v60  ;;  %2482 = vmatpush.bf16.msra.mxu0 %v6530_v42  ;;  %v6676_v42 = vor.u32 %v7969_v27, %v6673_v36  ;;  %v6667_v18 = vld [vmem:[#allocation11 + $0x98] sm:$0xf] }
 0x486   :  { %2493 = vmatpush.bf16.msra.mxu1 %v6558_v62  ;;  %v6509_v62 = vld [vmem:[#allocation6 + $0x20] sm:$0xf] }
 0x487   :  { %2210 = vmatmul.bf16.vlgmr.msrb.gmra.mxu0 %v2033_v54  ;;  %2223 = vmatmul.bf16.vlgmr.msrb.gmra.mxu1 %v2033_v54 }
 0x488   :  { %2236 = vmatmul.bf16.vlgmr.msrb.gmra.mxu2 %v2033_v54  ;;  %v2068_v54 = vperm.slane %v8928_v53, 0  ;;  %2470 = vmatpush.bf16.msra.mxu3 %v6514_v10  ;;  %v7966_v10 = vld [vmem:[#allocation11 + $0x94] sm:$0xf] }
 0x489   :  { %2483 = vmatpush.bf16.msra.mxu0 %v6518_v58 }
 0x48a   :  { %2494 = vmatpush.bf16.msra.mxu1 %v6546_v22  ;;  %v6497_v22 = vld [vmem:[#allocation6 + $0x8] sm:$0xf] }
 0x48c   :  { %2471 = vmatpush.bf16.msra.mxu3 %v6502_v6  ;;  %v7965_v6 = vld [vmem:[#allocation11 + $0x88] sm:$0xf0] }
 0x48d   :  { %2484 = vmatpush.bf16.msra.mxu0 %v6506_v8 }
 0x48e   :  { %2495 = vmatpush.bf16.msra.mxu1 %v6534_v38  ;;  %v7959_v38 = vld [vmem:[#allocation11 + $0x58] sm:$0xf0] }
 0x490   :  { %2472 = vmatpush.bf16.msra.mxu3 %v6490_v3  ;;  %v6643_v3 = vld [vmem:[#allocation11 + $0x68] sm:$0xf] }
 0x491   :  { %2485 = vmatpush.bf16.msra.mxu0 %v6494_v34  ;;  %v6644_v30 = vor.u32 %v7962_v61, %v6643_v3 }
 0x492   :  { %2496 = vmatpush.bf16.msra.mxu1 %v6522_v52  ;;  %v7956_v52 = vld [vmem:[#allocation11 + $0x40] sm:$0xf0] }
 0x494   :  { %2762 = vmatpush.bf16.msrb.mxu3 %v6676_v42 }
 0x495   :  { %2791 = vmatpush.bf16.msrb.mxu0 %v6680_v43  ;;  %v7954_v43 = vld [vmem:[#allocation11 + $0x34] sm:$0xf] }
 0x498   :  { %2741 = vmatmul.bf16.vlgmr.msra.gmra.mxu2 %v8915_v55 }
 0x4a8   :  { %2746 = vmatmul.bf16.gmra.mxu2 %v8920_v44 }
 0x4b8   :  { %2751 = vmatmul.bf16.gmra.mxu2 %v8925_v25 }
 0x504   :  { %v2211_v5 = vpop.f32.mrf.mxu0  ;;  %v2224_v35 = vpop.f32.mrf.mxu1 }
 0x505   :  { %v2212_v13 = vadd.f32 %v2211_v5, %v2068_v54  ;;  %v2225_v15 = vadd.f32 %v2224_v35, %v2069_v57  ;;  %v7968_v54 = vld [vmem:[#allocation11 + $0xa0] sm:$0xf0]  ;;  %v6664_v57 = vor.u32 %v7966_v10, %v6661_v50  ;;  %v6649_v5 = vld [vmem:[#allocation11 + $0x84] sm:$0xf0]  ;;  %v6655_v35 = vld [vmem:[#allocation11 + $0x80] sm:$0xf] }
 0x506   :  { %v6668_v58 = vor.u32 %v7968_v54, %v6667_v18  ;;  %v6652_v63 = vor.u32 %v7963_v21, %v6649_v5  ;;  %v6619_v10 = vld [vmem:[#allocation11 + $0x38] sm:$0xf]  ;;  %v6607_v21 = vld [vmem:[#allocation11 + $0x20] sm:$0xf] }
 0x507   :  { %v2241_v23 = vadd.f32 %v2212_v13, %v8769_v2  ;;  %v2261_v24 = vadd.f32 %v2225_v15, %v394_v39  ;;  %2763 = vmatpush.bf16.msrb.mxu3 %v6664_v57  ;;  %v6510_v39 = vor.u32 %v7929_v4, %v6509_v62  ;;  %v6656_v13 = vor.u32 %v7965_v6, %v6655_v35  ;;  %v7951_v57 = vld [vmem:[#allocation11 + $0x1c] sm:$0xf] }
 0x508   :  { %2792 = vmatpush.bf16.msrb.mxu0 %v6668_v58  ;;  %v6620_v54 = vor.u32 %v7956_v52, %v6619_v10  ;;  %v6601_v58 = vld [vmem:[#allocation11 + $0x24] sm:$0xf0]  ;;  %v8990_v10 = vld [vmem:[#allocation9] sm:$0x7]  ;;  %v6719_v52 = vld [vmem:[%s10662_s6 + $0x48] sm:$0xf] }
 0x509   :  { %v6485_v31 = vmul.f32 -1.442695, %v2241_v23  ;;  %v6486_v32 = vmul.f32 -1.442695, %v2261_v24  ;;  %2497 = vmatpush.bf16.msra.mxu1 %v6510_v39  ;;  %v7926_v23 = vld [vmem:[#allocation6 + $0x10] sm:$0xf0]  ;;  %v6604_v5 = vor.u32 %v7951_v57, %v6601_v58 }
 0x50a   :  { %v6498_v24 = vor.u32 %v7926_v23, %v6497_v22  ;;  %v7948_v22 = vld [vmem:[#allocation11 + $0x4] sm:$0xf]  ;;  %v6589_v23 = vld [vmem:[#allocation11 + $0xc] sm:$0xf0]  ;;  %v6707_v57 = vld [vmem:[%s10662_s6 + $0x30] sm:$0xf] }
 0x50b   :  { %8306 = vpow2.f32 %v6485_v31  ;;  %v8935_v2 = vpop.f32.mrf.mxu2  ;;  %2764 = vmatpush.bf16.msrb.mxu3 %v6652_v63  ;;  %v6625_v31 = vld [vmem:[#allocation11 + $0x54] sm:$0xf0]  ;;  %v7979_v58 = vld [vmem:[%s10662_s6 + $0x38] sm:$0xf0] }
 0x50c   :  { %8308 = vpow2.f32 %v6486_v32  ;;  %v2213_v47 = vpop.f32.mrf.mxu0  ;;  %v2226_v48 = vpop.f32.mrf.mxu1  ;;  %2793 = vmatpush.bf16.msrb.mxu0 %v6656_v13  ;;  %v6631_v32 = vld [vmem:[#allocation11 + $0x50] sm:$0xf]  ;;  %v6628_v34 = vor.u32 %v7957_v1, %v6625_v31 }
 0x50d   :  { %2498 = vmatpush.bf16.msra.mxu1 %v6498_v24  ;;  %v6632_v36 = vor.u32 %v7959_v38, %v6631_v32  ;;  %v6613_v47 = vld [vmem:[#allocation11 + $0x3c] sm:$0xf0]  ;;  %v2070_v48 = vperm.slane %v8928_v53, 2  ;;  %v6595_v24 = vld [vmem:[#allocation11 + $0x8] sm:$0xf] }
 0x50e   :  { %v6616_v11 = vor.u32 %v7954_v43, %v6613_v47  ;;  %v7988_v43 = vld [vmem:[%s10662_s6 + $0x80] sm:$0xf0] }
 0x50f   :  { %2765 = vmatpush.bf16.msrb.mxu3 %v6640_v29  ;;  %v7950_v29 = vld [vmem:[#allocation11 + $0x10] sm:$0xf0] }
 0x510   :  { %2794 = vmatpush.bf16.msrb.mxu0 %v6644_v30 }
 0x511   :  { %v8307_v28 = vpop.eup %8306 }
 0x512   :  { %v8309_v49 = vpop.eup %8308  ;;  %v8937_v16 = vadd.f32 1.0, %v8307_v28  ;;  %v7953_v28 = vld [vmem:[#allocation11 + $0x28] sm:$0xf0] }
 0x513   :  { %v8939_v15 = vadd.f32 1.0, %v8309_v49  ;;  %v2239_v8 = vpop.f32.mrf.mxu2  ;;  %2766 = vmatpush.bf16.msrb.mxu3 %v6628_v34  ;;  %v6608_v6 = vor.u32 %v7953_v28, %v6607_v21  ;;  %v2238_v49 = vadd.f32 %v8935_v2, %v2070_v48  ;;  %v6596_v2 = vor.u32 %v7950_v29, %v6595_v24  ;;  %v6731_v48 = vld [vmem:[%s10662_s6 + $0x60] sm:$0xf] }
 0x514   :  { %8310 = vrcp.f32 %v8937_v16  ;;  %v2257_v18 = vand.u32 2147483648, %v8937_v16  ;;  %2795 = vmatpush.bf16.msrb.mxu0 %v6632_v36  ;;  %v2255_v4 = vand.u32 2147483647, %v8937_v16  ;;  %vm2251_vm1 = vweird.f32 %v8937_v16  ;;  %v6683_v24 = vld [vmem:[%s10662_s6] sm:$0xf] }
 0x515   :  { %8312 = vrcp.f32 %v8939_v15  ;;  %v2277_v12 = vand.u32 2147483648, %v8939_v15  ;;  %vm2271_vm5 = vweird.f32 %v8939_v15  ;;  %v2275_v3 = vand.u32 2147483647, %v8939_v15 }
 0x516   :  { %v2258_v35 = vor.u32 1.1754944e-38, %v2257_v18  ;;  %vm2256_vm3 = vcmp.eq.f32.partialorder %v2255_v4, 8.507059e+37  ;;  %v6708_v4 = vor.u32 %v7979_v58, %v6707_v57  ;;  %v396_v21 = vadd.f32 %v8813_v20, %v8751_v0  ;;  %v7976_v20 = vld [vmem:[%s10662_s6 + $0x20] sm:$0xf0]  ;;  %v6721_v58 = vld [vmem:[%s10662_s6 + $0x54] sm:$0xf0] }
 0x517   :  { %2767 = vmatpush.bf16.msrb.mxu3 %v6616_v11  ;;  %v2278_v1 = vor.u32 1.1754944e-38, %v2277_v12  ;;  %vm2276_vm7 = vcmp.eq.f32.partialorder %v2275_v3, 8.507059e+37  ;;  %v7973_v12 = vld [vmem:[%s10662_s6 + $0x8] sm:$0xf0]  ;;  %v6769_v3 = vld [vmem:[%s10662_s6 + $0xb4] sm:$0xf0] }
 0x518   :  { %2796 = vmatpush.bf16.msrb.mxu0 %v6620_v54  ;;  %v2332_v54 = vperm.slane %v8990_v10, 1  ;;  %v6684_v29 = vor.u32 %v7973_v12, %v6683_v24  ;;  %v6697_v24 = vld [vmem:[%s10662_s6 + $0x24] sm:$0xf0] }
 0x51a   :  { %v8311_v27 = vpop.eup %8310 }
 0x51b   :  { %v8313_v46 = vpop.eup %8312  ;;  %v2247_v41 = vmul.f32 %v8311_v27, %v8937_v16  ;;  %vm2252_vm0 = vweird.f32 %v8311_v27  ;;  %2768 = vmatpush.bf16.msrb.mxu3 %v6604_v5  ;;  %v6592_v16 = vor.u32 %v7948_v22, %v6589_v23  ;;  %v367_v22 = vadd.f32 %v8777_v19, %v8742_v40  ;;  %v7992_v40 = vld [vmem:[%s10662_s6 + $0xa0] sm:$0xf0]  ;;  %v7993_v19 = vld [vmem:[%s10662_s6 + $0xac] sm:$0xf] }
 0x51c   :  { %v2267_v42 = vmul.f32 %v8313_v46, %v8939_v15  ;;  %vm2253_vm2 = vmor %vm2251_vm1, %vm2252_vm0  ;;  %vm2272_vm4 = vweird.f32 %v8313_v46  ;;  %2797 = vmatpush.bf16.msrb.mxu0 %v6608_v6  ;;  %v7995_v6 = vld [vmem:[%s10662_s6 + $0xb8] sm:$0xf0] }
 0x51d   :  { %v2248_v45 = vsub.f32 1.0, %v2247_v41  ;;  %vm2273_vm6 = vmor %vm2271_vm5, %vm2272_vm4 }
 0x51e   :  { %v2268_v50 = vsub.f32 1.0, %v2267_v42 }
 0x51f   :  { %v2249_v62 = vmul.f32 %v8311_v27, %v2248_v45  ;;  %2769 = vmatpush.bf16.msrb.mxu3 %v6592_v16  ;;  %v7985_v45 = vld [vmem:[%s10662_s6 + $0x68] sm:$0xf0] }
 0x520   :  { %v2269_v39 = vmul.f32 %v8313_v46, %v2268_v50  ;;  %2798 = vmatpush.bf16.msrb.mxu0 %v6596_v2  ;;  %v6732_v11 = vor.u32 %v7985_v45, %v6731_v48  ;;  %v7982_v50 = vld [vmem:[%s10662_s6 + $0x50] sm:$0xf0] }
 0x521   :  { %v2250_v53 = vadd.f32 %v8311_v27, %v2249_v62  ;;  %v6720_v18 = vor.u32 %v7982_v50, %v6719_v52  ;;  %v6739_v50 = vld [vmem:[%s10662_s6 + $0x68] sm:$0xf] }
 0x522   :  { %v2270_v8 = vadd.f32 %v8313_v46, %v2269_v39 }
 0x523   :  { %v2254_v63 = vsel %vm2253_vm2, %v8311_v27, %v2250_v53  ;;  %v2331_v53 = vperm.slane %v8990_v10, 0 }
 0x524   :  { %v2259_v13 = vsel %vm2256_vm3, %v2258_v35, %v2254_v63  ;;  %v2274_v30 = vsel %vm2273_vm6, %v8313_v46, %v2270_v8  ;;  %v7994_v46 = vld [vmem:[%s10662_s6 + $0xb0] sm:$0xf0]  ;;  %v6775_v35 = vld [vmem:[%s10662_s6 + $0xb0] sm:$0xf] }
 0x525   :  { %v2281_v37 = vmul.f32 %v2259_v13, %v2238_v49  ;;  %v2279_v31 = vsel %vm2276_vm7, %v2278_v1, %v2274_v30  ;;  %v6695_v49 = vld [vmem:[%s10662_s6 + $0x18] sm:$0xf]  ;;  %v6776_v0 = vor.u32 %v7995_v6, %v6775_v35  ;;  %v6772_v1 = vor.u32 %v7993_v19, %v6769_v3  ;;  %v7980_v19 = vld [vmem:[%s10662_s6 + $0x40] sm:$0xf0] }
 0x526   :  { %v2284_v32 = vsub.f32 1.0, %v2279_v31  ;;  %v2286_v27 = vmul.f32 %v2279_v31, %v8909_v51  ;;  %v6696_v13 = vor.u32 %v7976_v20, %v6695_v49  ;;  %v7990_v31 = vld [vmem:[%s10662_s6 + $0x94] sm:$0xf]  ;;  %v6727_v20 = vld [vmem:[%s10662_s6 + $0x50] sm:$0xf] }
 0x527   :  { %v2282_v61 = vadd.f32 %v2281_v37, %v8797_v59  ;;  %v6767_v59 = vld [vmem:[%s10662_s6 + $0xa8] sm:$0xf]  ;;  %3041 = vmatpush.bf16.msrb.mxu2 %v6776_v0  ;;  %v6763_v37 = vld [vmem:[%s10662_s6 + $0x98] sm:$0xf] }
 0x528   :  { %v6768_v41 = vor.u32 %v7994_v46, %v6767_v59  ;;  %v6764_v30 = vor.u32 %v7992_v40, %v6763_v37  ;;  %v6751_v46 = vld [vmem:[%s10662_s6 + $0x80] sm:$0xf]  ;;  %v7972_v37 = vld [vmem:[%s10662_s6 + $0x4] sm:$0xf] }
 0x529   :  { %8314 = vtanh.f32 %v2282_v61 }
 0x52a   :  { %3015 = vmatpush.bf16.msrb.mxu1 %v6768_v41  ;;  %v7989_v41 = vld [vmem:[%s10662_s6 + $0x88] sm:$0xf0] }
 0x52b   :  { %3042 = vmatpush.bf16.msrb.mxu2 %v6764_v30  ;;  %v7977_v30 = vld [vmem:[%s10662_s6 + $0x28] sm:$0xf0] }
 0x52f   :  { %v8315_v34 = vpop.eup %8314 }
 0x530   :  { %v2285_v38 = vmul.f32 %v8315_v34, %v2284_v32  ;;  %v6757_v32 = vld [vmem:[%s10662_s6 + $0x9c] sm:$0xf0] }
 0x532   :  { %v8956_v36 = vadd.f32 %v2286_v27, %v2285_v38  ;;  %v6760_v38 = vor.u32 %v7990_v31, %v6757_v32 }
 0x534   :  { %v2296_v15 = vpack.c.bf16 %v8956_v36, %v8956_v36 }
 0x536   :  { %2473 = vmatmul.bf16.vlgmr.msra.gmra.mxu3 %v2296_v15  ;;  %2486 = vmatmul.bf16.vlgmr.msra.gmra.mxu0 %v2296_v15 }
 0x537   :  { %2499 = vmatmul.bf16.vlgmr.msra.gmra.mxu1 %v2296_v15 }
 0x546   :  { %2770 = vmatmul.bf16.vlgmr.msrb.gmra.mxu3 %v8915_v55  ;;  %2799 = vmatmul.bf16.vlgmr.msrb.gmra.mxu0 %v8915_v55  ;;  %v6755_v55 = vld [vmem:[%s10662_s6 + $0x90] sm:$0xf] }
 0x556   :  { %2775 = vmatmul.bf16.gmra.mxu3 %v8920_v44  ;;  %2804 = vmatmul.bf16.gmra.mxu0 %v8920_v44  ;;  %v7991_v44 = vld [vmem:[%s10662_s6 + $0x98] sm:$0xf0] }
 0x557   :  { %v6756_v42 = vor.u32 %v7991_v44, %v6755_v55  ;;  %v7987_v55 = vld [vmem:[%s10662_s6 + $0x7c] sm:$0xf]  ;;  %v6752_v44 = vor.u32 %v7989_v41, %v6751_v46  ;;  %v425_v46 = vadd.f32 %v8816_v17, %v8772_v14 }
 0x559   :  { %3016 = vmatpush.bf16.msrb.mxu1 %v6756_v42  ;;  %v6745_v42 = vld [vmem:[%s10662_s6 + $0x84] sm:$0xf0]  ;;  %3043 = vmatpush.bf16.msrb.mxu2 %v6752_v44 }
 0x55a   :  { %v6691_v44 = vld [vmem:[%s10662_s6 + $0x8] sm:$0xf] }
 0x566   :  { %2780 = vmatmul.bf16.gmra.mxu3 %v8925_v25  ;;  %2809 = vmatmul.bf16.gmra.mxu0 %v8925_v25  ;;  %v6743_v25 = vld [vmem:[%s10662_s6 + $0x78] sm:$0xf] }
 0x567   :  { %v6744_v47 = vor.u32 %v7988_v43, %v6743_v25  ;;  %v6748_v25 = vor.u32 %v7987_v55, %v6745_v42  ;;  %v7984_v43 = vld [vmem:[%s10662_s6 + $0x64] sm:$0xf] }
 0x569   :  { %3017 = vmatpush.bf16.msrb.mxu1 %v6744_v47  ;;  %v6733_v47 = vld [vmem:[%s10662_s6 + $0x6c] sm:$0xf0] }
 0x56d   :  { %3018 = vmatpush.bf16.msrb.mxu1 %v6732_v11  ;;  %v6736_v11 = vor.u32 %v7984_v43, %v6733_v47 }
 0x571   :  { %3019 = vmatpush.bf16.msrb.mxu1 %v6720_v18  ;;  %v7986_v18 = vld [vmem:[%s10662_s6 + $0x70] sm:$0xf0] }
 0x572   :  { %v6740_v57 = vor.u32 %v7986_v18, %v6739_v50 }
 0x574   :  { %3044 = vmatpush.bf16.msrb.mxu2 %v6740_v57 }
 0x575   :  { %3020 = vmatpush.bf16.msrb.mxu1 %v6708_v4  ;;  %v7978_v4 = vld [vmem:[%s10662_s6 + $0x34] sm:$0xf] }
 0x579   :  { %3021 = vmatpush.bf16.msrb.mxu1 %v6696_v13  ;;  %v2333_v13 = vperm.slane %v8990_v10, 2  ;;  %v6685_v10 = vld [vmem:[%s10662_s6 + $0xc] sm:$0xf0] }
 0x57a   :  { %v6688_v31 = vor.u32 %v7972_v37, %v6685_v10 }
 0x57d   :  { %3022 = vmatpush.bf16.msrb.mxu1 %v6684_v29 }
 0x580   :  { %3023 = vmatmul.bf16.vlgmr.msrb.gmra.mxu1 %v8623_v33 }
 0x581   :  { %3028 = vmatpush.bf16.msra.mxu1 %v6772_v1 }
 0x585   :  { %3029 = vmatpush.bf16.msra.mxu1 %v6760_v38 }
 0x589   :  { %3030 = vmatpush.bf16.msra.mxu1 %v6748_v25 }
 0x58d   :  { %3031 = vmatpush.bf16.msra.mxu1 %v6736_v11 }
 0x5b3   :  { %v2487_v62 = vpop.f32.mrf.mxu0 }
 0x5b4   :  { %v2488_v28 = vadd.f32 %v2487_v62, %v2332_v54  ;;  %v9007_v39 = vpop.f32.mrf.mxu1  ;;  %v7981_v54 = vld [vmem:[%s10662_s6 + $0x4c] sm:$0xf] }
 0x5b5   :  { %v6724_v62 = vor.u32 %v7981_v54, %v6721_v58  ;;  %v2501_v32 = vadd.f32 %v9007_v39, %v2333_v13  ;;  %v7974_v39 = vld [vmem:[%s10662_s6 + $0x10] sm:$0xf0] }
 0x5b6   :  { %v2524_v5 = vadd.f32 %v2488_v28, %v396_v21  ;;  %v6709_v21 = vld [vmem:[%s10662_s6 + $0x3c] sm:$0xf0]  ;;  %v6692_v17 = vor.u32 %v7974_v39, %v6691_v44 }
 0x5b7   :  { %3032 = vmatpush.bf16.msra.mxu1 %v6724_v62 }
 0x5b8   :  { %v6584_v63 = vmul.f32 -1.442695, %v2524_v5  ;;  %v6712_v5 = vor.u32 %v7978_v4, %v6709_v21 }
 0x5b9   :  { %v2474_v8 = vpop.f32.mrf.mxu3 }
 0x5ba   :  { %8316 = vpow2.f32 %v6584_v63  ;;  %v2475_v23 = vadd.f32 %v2474_v8, %v2331_v53  ;;  %v7983_v63 = vld [vmem:[%s10662_s6 + $0x58] sm:$0xf0] }
 0x5bb   :  { %v2489_v16 = vpop.f32.mrf.mxu0  ;;  %3033 = vmatpush.bf16.msra.mxu1 %v6712_v5 }
 0x5bc   :  { %v2504_v2 = vadd.f32 %v2475_v23, %v367_v22  ;;  %v2502_v61 = vpop.f32.mrf.mxu1  ;;  %v6728_v22 = vor.u32 %v7983_v63, %v6727_v20  ;;  %v7975_v23 = vld [vmem:[%s10662_s6 + $0x1c] sm:$0xf]  ;;  %v6715_v16 = vld [vmem:[%s10662_s6 + $0x38] sm:$0xf] }
 0x5bd   :  { %v6700_v40 = vor.u32 %v7975_v23, %v6697_v24  ;;  %v6703_v61 = vld [vmem:[%s10662_s6 + $0x20] sm:$0xf]  ;;  %v8023_v20 = vld [vmem:[%s10662_s6 + $0x98] sm:$0xf0] }
 0x5be   :  { %v6583_v34 = vmul.f32 -1.442695, %v2504_v2  ;;  %3045 = vmatpush.bf16.msrb.mxu2 %v6728_v22  ;;  %v6716_v2 = vor.u32 %v7980_v19, %v6715_v16  ;;  %v8025_v16 = vld [vmem:[%s10662_s6 + $0xac] sm:$0xf] }
 0x5bf   :  { %3034 = vmatpush.bf16.msra.mxu1 %v6700_v40  ;;  %v6906_v40 = vld [vmem:[%s10662_s6 + $0xb0] sm:$0xf] }
 0x5c0   :  { %v8317_v27 = vpop.eup %8316  ;;  %8318 = vpow2.f32 %v6583_v34 }
 0x5c1   :  { %v9048_v15 = vadd.f32 1.0, %v8317_v27  ;;  %v2476_v59 = vpop.f32.mrf.mxu3 }
 0x5c2   :  { %3046 = vmatpush.bf16.msrb.mxu2 %v6716_v2  ;;  %v6704_v59 = vor.u32 %v7977_v30, %v6703_v61  ;;  %v9207_v30 = vld [vmem:[%s10664_s8] sm:$0x7] }
 0x5c3   :  { %8320 = vrcp.f32 %v9048_v15  ;;  %v2540_v41 = vand.u32 2147483648, %v9048_v15  ;;  %vm2534_vm13 = vweird.f32 %v9048_v15  ;;  %v2538_v42 = vand.u32 2147483647, %v9048_v15  ;;  %3035 = vmatpush.bf16.msra.mxu1 %v6688_v31 }
 0x5c4   :  { %v2881_v44 = vperm.slane %v9207_v30, 0  ;;  %v2882_v39 = vperm.slane %v9207_v30, 1 }
 0x5c5   :  { %v2541_v43 = vor.u32 1.1754944e-38, %v2540_v41  ;;  %vm2539_vm15 = vcmp.eq.f32.partialorder %v2538_v42, 8.507059e+37  ;;  %v9228_v41 = vld [vmem:[#allocation12] sm:$0x7]  ;;  %v8002_v42 = vld [vmem:[%s10665_s9 + $0x30] sm:$0xff] }
 0x5c6   :  { %v8319_v48 = vpop.eup %8318  ;;  %3047 = vmatpush.bf16.msrb.mxu2 %v6704_v59  ;;  %3036 = vmatmul.bf16.vlgmr.msra.gmra.mxu1 %v8623_v33 }
 0x5c7   :  { %v2508_v45 = vadd.f32 1.0, %v8319_v48 }
 0x5c9   :  { %8322 = vrcp.f32 %v2508_v45  ;;  %v9070_v52 = vpop.eup %8320  ;;  %v2518_v49 = vand.u32 2147483647, %v2508_v45  ;;  %v2520_v8 = vand.u32 2147483648, %v2508_v45  ;;  %vm2514_vm9 = vweird.f32 %v2508_v45  ;;  %v9148_v54 = vpop.f32.mrf.mxu3 }
 0x5ca   :  { %v2530_v28 = vmul.f32 %v9070_v52, %v9048_v15  ;;  %vm2535_vm12 = vweird.f32 %v9070_v52  ;;  %3048 = vmatpush.bf16.msrb.mxu2 %v6692_v17  ;;  %v6862_v17 = vld [vmem:[%s10662_s6 + $0x60] sm:$0xf] }
 0x5cb   :  { %v2521_v1 = vor.u32 1.1754944e-38, %v2520_v8  ;;  %vm2519_vm11 = vcmp.eq.f32.partialorder %v2518_v49, 8.507059e+37  ;;  %vm2536_vm14 = vmor %vm2534_vm13, %vm2535_vm12 }
 0x5cc   :  { %v2531_v6 = vsub.f32 1.0, %v2530_v28 }
 0x5ce   :  { %v2532_v29 = vmul.f32 %v9070_v52, %v2531_v6 }
 0x5cf   :  { %v8323_v53 = vpop.eup %8322 }
 0x5d0   :  { %v2510_v35 = vmul.f32 %v8323_v53, %v2508_v45  ;;  %vm2515_vm8 = vweird.f32 %v8323_v53  ;;  %v2533_v27 = vadd.f32 %v9070_v52, %v2532_v29  ;;  %v6900_v29 = vld [vmem:[%s10662_s6 + $0xb4] sm:$0xf0] }
 0x5d1   :  { %vm2516_vm10 = vmor %vm2514_vm9, %vm2515_vm8  ;;  %v9152_v58 = vpop.f32.mrf.mxu3  ;;  %v6903_v19 = vor.u32 %v8025_v16, %v6900_v29 }
 0x5d2   :  { %v2511_v0 = vsub.f32 1.0, %v2510_v35  ;;  %v2537_v14 = vsel %vm2536_vm14, %v9070_v52, %v2533_v27  ;;  %v9146_v52 = vpop.f32.mrf.mxu2  ;;  %v9166_v35 = vpop.f32.mrf.mxu0  ;;  %v6894_v27 = vld [vmem:[%s10662_s6 + $0x98] sm:$0xf] }
 0x5d3   :  { %v2542_v47 = vsel %vm2539_vm15, %v2541_v43, %v2537_v14  ;;  %3382 = vmatpush.bf16.msrb.mxu1 %v6903_v19  ;;  %v8020_v14 = vld [vmem:[%s10662_s6 + $0x80] sm:$0xf0]  ;;  %v9245_v43 = vperm.slane %v9228_v41, 0  ;;  %v6864_v19 = vld [vmem:[%s10662_s6 + $0x6c] sm:$0xf0] }
 0x5d4   :  { %v2512_v12 = vmul.f32 %v8323_v53, %v2511_v0  ;;  %v2547_v48 = vsub.f32 1.0, %v2542_v47  ;;  %v2549_v50 = vmul.f32 %v2542_v47, %v8956_v36  ;;  %v6886_v0 = vld [vmem:[%s10662_s6 + $0x90] sm:$0xf] }
 0x5d5   :  { %v6887_v63 = vor.u32 %v8023_v20, %v6886_v0  ;;  %v6882_v0 = vld [vmem:[%s10662_s6 + $0x80] sm:$0xf]  ;;  %v8021_v20 = vld [vmem:[%s10662_s6 + $0x88] sm:$0xf0] }
 0x5d6   :  { %v2513_v3 = vadd.f32 %v8323_v53, %v2512_v12 }
 0x5d8   :  { %v2517_v34 = vsel %vm2516_vm10, %v8323_v53, %v2513_v3  ;;  %v6898_v53 = vld [vmem:[%s10662_s6 + $0xa8] sm:$0xf]  ;;  %v8027_v3 = vld [vmem:[%s10662_s6 + $0xb8] sm:$0xf0] }
 0x5d9   :  { %v2522_v38 = vsel %vm2519_vm11, %v2521_v1, %v2517_v34  ;;  %v9158_v28 = vpop.f32.mrf.mxu3  ;;  %v6907_v2 = vor.u32 %v8027_v3, %v6906_v40  ;;  %v8003_v1 = vld [vmem:[%s10665_s9 + $0x38] sm:$0xff]  ;;  %v8022_v34 = vld [vmem:[%s10662_s6 + $0x94] sm:$0xf]  ;;  %v8016_v40 = vld [vmem:[%s10662_s6 + $0x64] sm:$0xf] }
 0x5da   :  { %v2544_v55 = vmul.f32 %v2522_v38, %v2501_v32  ;;  %v9150_v57 = vpop.f32.mrf.mxu2  ;;  %v9178_v13 = vpop.f32.mrf.mxu0  ;;  %v6888_v38 = vld [vmem:[%s10662_s6 + $0x9c] sm:$0xf0]  ;;  %3172 = vmatpush.bf16.msra.mxu3 %v8003_v1  ;;  %v6870_v3 = vld [vmem:[%s10662_s6 + $0x68] sm:$0xf] }
 0x5db   :  { %3395 = vmatpush.bf16.msra.mxu2 %v6907_v2  ;;  %v6891_v59 = vor.u32 %v8022_v34, %v6888_v38  ;;  %v8018_v34 = vld [vmem:[%s10662_s6 + $0x70] sm:$0xf0] }
 0x5dc   :  { %v2545_v25 = vadd.f32 %v2544_v55, %v425_v46  ;;  %v8024_v46 = vld [vmem:[%s10662_s6 + $0xa0] sm:$0xf0] }
 0x5dd   :  { %v6895_v55 = vor.u32 %v8024_v46, %v6894_v27  ;;  %3383 = vmatpush.bf16.msrb.mxu1 %v6891_v59  ;;  %v6871_v27 = vor.u32 %v8018_v34, %v6870_v3  ;;  %v8007_v3 = vld [vmem:[%s10662_s6 + $0x1c] sm:$0xf]  ;;  %v6834_v34 = vld [vmem:[%s10662_s6 + $0x20] sm:$0xf] }
 0x5de   :  { %8324 = vtanh.f32 %v2545_v25  ;;  %v6874_v25 = vld [vmem:[%s10662_s6 + $0x78] sm:$0xf]  ;;  %3173 = vmatpush.bf16.msra.mxu3 %v8002_v42 }
 0x5df   :  { %3396 = vmatpush.bf16.msra.mxu2 %v6895_v55  ;;  %v6875_v47 = vor.u32 %v8020_v14, %v6874_v25  ;;  %v6852_v42 = vld [vmem:[%s10662_s6 + $0x54] sm:$0xf0]  ;;  %v6858_v25 = vld [vmem:[%s10662_s6 + $0x50] sm:$0xf] }
 0x5e1   :  { %v9170_v49 = vpop.f32.mrf.mxu3 }
 0x5e2   :  { %v9156_v21 = vpop.f32.mrf.mxu2  ;;  %v9184_v24 = vpop.f32.mrf.mxu0 }
 0x5e4   :  { %v8325_v45 = vpop.eup %8324 }
 0x5e5   :  { %v2548_v11 = vmul.f32 %v8325_v45, %v2547_v48  ;;  %v8017_v48 = vld [vmem:[%s10662_s6 + $0x68] sm:$0xf0]  ;;  %v6850_v45 = vld [vmem:[%s10662_s6 + $0x48] sm:$0xf] }
 0x5e7   :  { %v9141_v15 = vadd.f32 %v2549_v50, %v2548_v11  ;;  %v8014_v11 = vld [vmem:[%s10662_s6 + $0x50] sm:$0xf0]  ;;  %v8019_v50 = vld [vmem:[%s10662_s6 + $0x7c] sm:$0xf] }
 0x5e8   :  { %v6851_v55 = vor.u32 %v8014_v11, %v6850_v45  ;;  %v7999_v11 = vld [vmem:[%s10665_s9 + $0x18] sm:$0xff] }
 0x5e9   :  { %v2564_v18 = vpack.c.bf16 %v9141_v15, %v8956_v36  ;;  %v9182_v23 = vpop.f32.mrf.mxu3 }
 0x5ea   :  { %v9168_v6 = vpop.f32.mrf.mxu2  ;;  %v9202_v61 = vpop.f32.mrf.mxu0 }
 0x5eb   :  { %2756 = vmatmul.bf16.gmra.mxu2 %v2564_v18  ;;  %2785 = vmatmul.bf16.gmra.mxu3 %v2564_v18 }
 0x5ec   :  { %2814 = vmatmul.bf16.gmra.mxu0 %v2564_v18  ;;  %v6876_v18 = vld [vmem:[%s10662_s6 + $0x84] sm:$0xf0] }
 0x5f1   :  { %v9188_v10 = vpop.f32.mrf.mxu3 }
 0x5f2   :  { %v9180_v22 = vpop.f32.mrf.mxu2  ;;  %v9289_v38 = vpop.f32.mrf.mxu0 }
 0x5fa   :  { %v9186_v37 = vpop.f32.mrf.mxu2 }
 0x5fb   :  { %3049 = vmatmul.bf16.vlgmr.msrb.gmra.mxu2 %v8623_v33  ;;  %v8026_v33 = vld [vmem:[%s10662_s6 + $0xb0] sm:$0xf0] }
 0x5fc   :  { %v6899_v5 = vor.u32 %v8026_v33, %v6898_v53  ;;  %v6863_v33 = vor.u32 %v8017_v48, %v6862_v17  ;;  %v8015_v48 = vld [vmem:[%s10662_s6 + $0x58] sm:$0xf0] }
 0x5fd   :  { %v9154_v62 = vpop.f32.mrf.mxu1  ;;  %v6859_v45 = vor.u32 %v8015_v48, %v6858_v25  ;;  %v7997_v25 = vld [vmem:[%s10665_s9 + $0x8] sm:$0xff]  ;;  %v6816_v48 = vld [vmem:[%s10662_s6 + $0xc] sm:$0xf0] }
 0x5fe   :  { %3369 = vmatpush.bf16.msra.mxu0 %v6899_v5  ;;  %v6879_v5 = vor.u32 %v8019_v50, %v6876_v18  ;;  %v6838_v18 = vld [vmem:[%s10662_s6 + $0x30] sm:$0xf] }
 0x600   :  { %3384 = vmatpush.bf16.msrb.mxu1 %v6879_v5 }
 0x602   :  { %3370 = vmatpush.bf16.msra.mxu0 %v6887_v63  ;;  %v8001_v63 = vld [vmem:[%s10665_s9 + $0x28] sm:$0xff] }
 0x603   :  { %3174 = vmatpush.bf16.msra.mxu3 %v8001_v63  ;;  %v8012_v63 = vld [vmem:[%s10662_s6 + $0x40] sm:$0xf0] }
 0x605   :  { %v3026_v4 = vpop.f32.mrf.mxu1 }
 0x606   :  { %v9263_v4 = vperm.slane %v9228_v41, 1  ;;  %3371 = vmatpush.bf16.msra.mxu0 %v6875_v47 }
 0x60a   :  { %3372 = vmatpush.bf16.msra.mxu0 %v6863_v33  ;;  %v8010_v33 = vld [vmem:[%s10662_s6 + $0x34] sm:$0xf] }
 0x60e   :  { %3373 = vmatpush.bf16.msra.mxu0 %v6851_v55  ;;  %v6814_v55 = vld [vmem:[%s10662_s6] sm:$0xf] }
 0x643   :  { %v3037_v8 = vpop.f32.mrf.mxu1 }
 0x644   :  { %v3038_v53 = vadd.f32 %v3037_v8, %v2882_v39  ;;  %v6883_v8 = vor.u32 %v8021_v20, %v6882_v0  ;;  %v8013_v39 = vld [vmem:[%s10662_s6 + $0x4c] sm:$0xf]  ;;  %v6840_v0 = vld [vmem:[%s10662_s6 + $0x3c] sm:$0xf0]  ;;  %v6846_v20 = vld [vmem:[%s10662_s6 + $0x38] sm:$0xf] }
 0x645   :  { %v6855_v47 = vor.u32 %v8013_v39, %v6852_v42 }
 0x646   :  { %3397 = vmatpush.bf16.msra.mxu2 %v6883_v8  ;;  %v9332_v8 = vpop.f32.mrf.mxu0 }
 0x64a   :  { %3398 = vmatpush.bf16.msra.mxu2 %v6871_v27  ;;  %v8009_v27 = vld [vmem:[%s10662_s6 + $0x28] sm:$0xf0] }
 0x64b   :  { %v3039_v12 = vpop.f32.mrf.mxu1  ;;  %v6835_v42 = vor.u32 %v8009_v27, %v6834_v34 }
 0x64c   :  { %v3025_v12 = vadd.f32 %v9154_v62, %v2881_v44  ;;  %v6867_v62 = vor.u32 %v8016_v40, %v6864_v19  ;;  %v8000_v44 = vld [vmem:[%s10665_s9 + $0x20] sm:$0xff]  ;;  %v6826_v40 = vld [vmem:[%s10662_s6 + $0x18] sm:$0xf] }
 0x64d   :  { %3175 = vmatpush.bf16.msra.mxu3 %v8000_v44  ;;  %v8008_v19 = vld [vmem:[%s10662_s6 + $0x20] sm:$0xf0]  ;;  %v8005_v44 = vld [vmem:[%s10662_s6 + $0x8] sm:$0xf0] }
 0x64e   :  { %3385 = vmatpush.bf16.msrb.mxu1 %v6867_v62  ;;  %3399 = vmatpush.bf16.msra.mxu2 %v6859_v45  ;;  %v6828_v62 = vld [vmem:[%s10662_s6 + $0x24] sm:$0xf0] }
 0x64f   :  { %v6831_v39 = vor.u32 %v8007_v3, %v6828_v62 }
 0x651   :  { %3176 = vmatpush.bf16.msra.mxu3 %v7999_v11  ;;  %v6822_v11 = vld [vmem:[%s10662_s6 + $0x8] sm:$0xf] }
 0x652   :  { %3386 = vmatpush.bf16.msrb.mxu1 %v6855_v47  ;;  %v8004_v47 = vld [vmem:[%s10662_s6 + $0x4] sm:$0xf] }
 0x66e   :  { %v9212_v31 = vpop.f32.mrf.mxu2  ;;  %v9214_v32 = vpop.f32.mrf.mxu3 }
 0x676   :  { %v2759_v16 = vpop.f32.mrf.mxu2  ;;  %v2788_v29 = vpop.f32.mrf.mxu3 }
 0x677   :  { %v2760_v2 = vadd.f32 %v2759_v16, %v9245_v43  ;;  %v2789_v1 = vadd.f32 %v2788_v29, %v9263_v4  ;;  %v6847_v16 = vor.u32 %v8012_v63, %v6846_v20  ;;  %v7998_v29 = vld [vmem:[%s10665_s9 + $0x10] sm:$0xff] }
 0x678   :  { %3177 = vmatpush.bf16.msra.mxu3 %v7998_v29  ;;  %v2883_v29 = vperm.slane %v9207_v30, 2 }
 0x679   :  { %v3054_v59 = vadd.f32 %v3025_v12, %v2760_v2  ;;  %v3074_v46 = vadd.f32 %v3038_v53, %v2789_v1  ;;  %v8011_v53 = vld [vmem:[%s10662_s6 + $0x38] sm:$0xf0]  ;;  %v6843_v12 = vor.u32 %v8010_v33, %v6840_v0  ;;  %v6827_v1 = vor.u32 %v8008_v19, %v6826_v40  ;;  %3400 = vmatpush.bf16.msra.mxu2 %v6847_v16  ;;  %v9376_v0 = vpop.f32.mrf.mxu0 }
 0x67a   :  { %v6839_v5 = vor.u32 %v8011_v53, %v6838_v18  ;;  %v8006_v18 = vld [vmem:[%s10662_s6 + $0x10] sm:$0xf0]  ;;  %v7996_v53 = vld [vmem:[%s10665_s9] sm:$0xff]  ;;  %v6819_v33 = vor.u32 %v8004_v47, %v6816_v48 }
 0x67b   :  { %v6777_v14 = vmul.f32 -1.442695, %v3054_v59  ;;  %v6778_v17 = vmul.f32 -1.442695, %v3074_v46  ;;  %3387 = vmatpush.bf16.msrb.mxu1 %v6843_v12 }
 0x67c   :  { %3374 = vmatpush.bf16.msra.mxu0 %v6839_v5  ;;  %3178 = vmatpush.bf16.msra.mxu3 %v7997_v25  ;;  %v6823_v5 = vor.u32 %v8006_v18, %v6822_v11 }
 0x67d   :  { %8326 = vpow2.f32 %v6777_v14  ;;  %3401 = vmatpush.bf16.msra.mxu2 %v6835_v42 }
 0x67e   :  { %8328 = vpow2.f32 %v6778_v17  ;;  %v9309_v50 = vpop.f32.mrf.mxu2  ;;  %v6815_v17 = vor.u32 %v8005_v44, %v6814_v55  ;;  %v9381_v44 = vperm.slane %v9228_v41, 2 }
 0x67f   :  { %3388 = vmatpush.bf16.msrb.mxu1 %v6831_v39  ;;  %v3051_v34 = vadd.f32 %v9309_v50, %v2883_v29  ;;  %v8057_v29 = vld [vmem:[%s10662_s6 + $0xac] sm:$0xf] }
 0x680   :  { %3375 = vmatpush.bf16.msra.mxu0 %v6827_v1  ;;  %3179 = vmatpush.bf16.msra.mxu3 %v7996_v53 }
 0x681   :  { %3402 = vmatpush.bf16.msra.mxu2 %v6823_v5 }
 0x683   :  { %v8327_v2 = vpop.eup %8326  ;;  %3389 = vmatpush.bf16.msrb.mxu1 %v6819_v33 }
 0x684   :  { %v8329_v59 = vpop.eup %8328  ;;  %v3058_v46 = vadd.f32 1.0, %v8327_v2  ;;  %3376 = vmatpush.bf16.msra.mxu0 %v6815_v17 }
 0x685   :  { %v3078_v14 = vadd.f32 1.0, %v8329_v59  ;;  %v2817_v59 = vpop.f32.mrf.mxu0 }
 0x686   :  { %8330 = vrcp.f32 %v3058_v46  ;;  %v3052_v45 = vpop.f32.mrf.mxu2  ;;  %v3070_v3 = vand.u32 2147483648, %v3058_v46  ;;  %v3068_v1 = vand.u32 2147483647, %v3058_v46  ;;  %vm3064_vm1 = vweird.f32 %v3058_v46 }
 0x687   :  { %8332 = vrcp.f32 %v3078_v14  ;;  %v2818_v25 = vadd.f32 %v2817_v59, %v9381_v44  ;;  %v3090_v17 = vand.u32 2147483648, %v3078_v14  ;;  %vm3084_vm5 = vweird.f32 %v3078_v14  ;;  %v8055_v59 = vld [vmem:[%s10662_s6 + $0x98] sm:$0xf0] }
 0x688   :  { %v3071_v55 = vor.u32 1.1754944e-38, %v3070_v3  ;;  %vm3069_vm3 = vcmp.eq.f32.partialorder %v3068_v1, 8.507059e+37  ;;  %v3088_v48 = vand.u32 2147483647, %v3078_v14  ;;  %v8059_v3 = vld [vmem:[%s10662_s6 + $0xb8] sm:$0xf0] }
 0x689   :  { %v3091_v45 = vor.u32 1.1754944e-38, %v3090_v17 }
 0x68a   :  { %vm3089_vm7 = vcmp.eq.f32.partialorder %v3088_v48, 8.507059e+37 }
 0x68c   :  { %v8331_v20 = vpop.eup %8330 }
 0x68d   :  { %v8333_v63 = vpop.eup %8332  ;;  %v3060_v12 = vmul.f32 %v8331_v20, %v3058_v46  ;;  %vm3065_vm0 = vweird.f32 %v8331_v20 }
 0x68e   :  { %v3080_v16 = vmul.f32 %v8333_v63, %v3078_v14  ;;  %vm3066_vm2 = vmor %vm3064_vm1, %vm3065_vm0  ;;  %vm3085_vm4 = vweird.f32 %v8333_v63 }
 0x68f   :  { %v3061_v40 = vsub.f32 1.0, %v3060_v12  ;;  %vm3086_vm6 = vmor %vm3084_vm5, %vm3085_vm4 }
 0x690   :  { %v3081_v19 = vsub.f32 1.0, %v3080_v16  ;;  %v8058_v16 = vld [vmem:[%s10662_s6 + $0xb0] sm:$0xf0] }
 0x691   :  { %v3062_v2 = vmul.f32 %v8331_v20, %v3061_v40 }
 0x692   :  { %v3082_v62 = vmul.f32 %v8333_v63, %v3081_v19  ;;  %v7037_v19 = vld [vmem:[%s10662_s6 + $0xb0] sm:$0xf] }
 0x693   :  { %v3063_v27 = vadd.f32 %v8331_v20, %v3062_v2  ;;  %v7038_v1 = vor.u32 %v8059_v3, %v7037_v19  ;;  %v8049_v19 = vld [vmem:[%s10662_s6 + $0x68] sm:$0xf0]  ;;  %v8048_v3 = vld [vmem:[%s10662_s6 + $0x64] sm:$0xf] }
 0x694   :  { %v3083_v42 = vadd.f32 %v8333_v63, %v3082_v62  ;;  %v9411_v62 = vld [vmem:[%s10664_s8] sm:$0x7] }
 0x695   :  { %v3067_v39 = vsel %vm3066_vm2, %v8331_v20, %v3063_v27  ;;  %3749 = vmatpush.bf16.msrb.mxu2 %v7038_v1  ;;  %v7017_v27 = vld [vmem:[%s10662_s6 + $0x90] sm:$0xf]  ;;  %v3235_v48 = vperm.slane %v9411_v62, 0 }
 0x696   :  { %v3072_v30 = vsel %vm3069_vm3, %v3071_v55, %v3067_v39  ;;  %v3087_v46 = vsel %vm3086_vm6, %v8333_v63, %v3083_v42  ;;  %v7029_v63 = vld [vmem:[%s10662_s6 + $0xa8] sm:$0xf]  ;;  %v8054_v55 = vld [vmem:[%s10662_s6 + $0x94] sm:$0xf]  ;;  %v7018_v39 = vor.u32 %v8055_v59, %v7017_v27  ;;  %v7025_v42 = vld [vmem:[%s10662_s6 + $0x98] sm:$0xf] }
 0x697   :  { %v3094_v47 = vmul.f32 %v3072_v30, %v3051_v34  ;;  %v3092_v11 = vsel %vm3089_vm7, %v3091_v45, %v3087_v46  ;;  %v7030_v40 = vor.u32 %v8058_v16, %v7029_v63  ;;  %v8035_v34 = vld [vmem:[%s10665_s9 + $0x38] sm:$0xff]  ;;  %v7019_v30 = vld [vmem:[%s10662_s6 + $0x9c] sm:$0xf0]  ;;  %v8034_v46 = vld [vmem:[%s10665_s9 + $0x30] sm:$0xff]  ;;  %v2758_v16 = vadd.f32 %v9212_v31, %v9245_v43 }
 0x698   :  { %v3097_v41 = vsub.f32 1.0, %v3092_v11  ;;  %v3099_v33 = vmul.f32 0.0, %v3092_v11  ;;  %3526 = vmatpush.bf16.msrb.mxu3 %v8035_v34  ;;  %v7022_v17 = vor.u32 %v8054_v55, %v7019_v30  ;;  %v7005_v45 = vld [vmem:[%s10662_s6 + $0x78] sm:$0xf]  ;;  %v8052_v11 = vld [vmem:[%s10662_s6 + $0x80] sm:$0xf0] }
 0x699   :  { %v3095_v50 = vadd.f32 %v3094_v47, %v2818_v25  ;;  %3723 = vmatpush.bf16.msrb.mxu0 %v7030_v40  ;;  %v8056_v25 = vld [vmem:[%s10662_s6 + $0xa0] sm:$0xf0]  ;;  %v8033_v63 = vld [vmem:[%s10665_s9 + $0x28] sm:$0xff]  ;;  %v6995_v27 = vld [vmem:[%s10662_s6 + $0x6c] sm:$0xf0] }
 0x69a   :  { %v7026_v47 = vor.u32 %v8056_v25, %v7025_v42  ;;  %v7001_v59 = vld [vmem:[%s10662_s6 + $0x68] sm:$0xf]  ;;  %v8050_v55 = vld [vmem:[%s10662_s6 + $0x70] sm:$0xf0]  ;;  %v8238_v25 = vld [vmem:[#allocation14] ss:$0 sm:$0xff] }
 0x69b   :  { %8334 = vtanh.f32 %v3095_v50  ;;  %v3236_v50 = vperm.slane %v9411_v62, 1  ;;  %v7002_v30 = vor.u32 %v8050_v55, %v7001_v59  ;;  %v8030_v55 = vld [vmem:[%s10665_s9 + $0x10] sm:$0xff] }
 0x69c   :  { %3750 = vmatpush.bf16.msrb.mxu2 %v7026_v47  ;;  %3527 = vmatpush.bf16.msrb.mxu3 %v8034_v46  ;;  %v6981_v47 = vld [vmem:[%s10662_s6 + $0x48] sm:$0xf] }
 0x69d   :  { %3724 = vmatpush.bf16.msrb.mxu0 %v7018_v39  ;;  %v6998_v39 = vor.u32 %v8048_v3, %v6995_v27 }
 0x6a0   :  { %3528 = vmatpush.bf16.msrb.mxu3 %v8033_v63 }
 0x6a1   :  { %v8335_v18 = vpop.eup %8334 }
 0x6a2   :  { %v3098_v53 = vmul.f32 %v8335_v18, %v3097_v41  ;;  %v8051_v41 = vld [vmem:[%s10662_s6 + $0x7c] sm:$0xf]  ;;  %v7006_v18 = vor.u32 %v8052_v11, %v7005_v45 }
 0x6a4   :  { %v9384_v5 = vadd.f32 %v3099_v33, %v3098_v53  ;;  %v7007_v53 = vld [vmem:[%s10662_s6 + $0x84] sm:$0xf0]  ;;  %v7013_v33 = vld [vmem:[%s10662_s6 + $0x80] sm:$0xf]  ;;  %3725 = vmatpush.bf16.msrb.mxu0 %v7006_v18 }
 0x6a6   :  { %v3200_v20 = vpack.c.bf16 %v9384_v5, %v9384_v5  ;;  %v3102_v12 = vadd.f32 %v9384_v5, %v9141_v15  ;;  %v7031_v15 = vld [vmem:[%s10662_s6 + $0xb4] sm:$0xf0] }
 0x6a7   :  { %v7034_v2 = vor.u32 %v8057_v29, %v7031_v15  ;;  %v6993_v15 = vld [vmem:[%s10662_s6 + $0x60] sm:$0xf] }
 0x6a8   :  { %3377 = vmatmul.bf16.vlgmr.msra.gmra.mxu0 %v3200_v20  ;;  %3390 = vmatmul.bf16.vlgmr.msrb.gmra.mxu1 %v3200_v20  ;;  %v3103_v14 = vpack.c.bf16 %v3102_v12, %v3102_v12  ;;  %v7010_v12 = vor.u32 %v8051_v41, %v7007_v53  ;;  %v6994_v34 = vor.u32 %v8049_v19, %v6993_v15  ;;  %v6983_v41 = vld [vmem:[%s10662_s6 + $0x54] sm:$0xf0]  ;;  %v6989_v53 = vld [vmem:[%s10662_s6 + $0x50] sm:$0xf]  ;;  %v8042_v15 = vld [vmem:[%s10662_s6 + $0x34] sm:$0xf] }
 0x6a9   :  { %3403 = vmatmul.bf16.vlgmr.msra.gmra.mxu2 %v3200_v20  ;;  %3736 = vmatpush.bf16.msra.mxu1 %v7034_v2  ;;  %v8053_v20 = vld [vmem:[%s10662_s6 + $0x88] sm:$0xf0]  ;;  %v2787_v2 = vadd.f32 %v9214_v32, %v9263_v4 }
 0x6aa   :  { %3180 = vmatmul.bf16.vlgmr.msra.gmra.mxu3 %v3103_v14  ;;  %v7014_v14 = vor.u32 %v8053_v20, %v7013_v33  ;;  %3726 = vmatpush.bf16.msrb.mxu0 %v6994_v34  ;;  %v8047_v33 = vld [vmem:[%s10662_s6 + $0x58] sm:$0xf0]  ;;  %v8044_v34 = vld [vmem:[%s10662_s6 + $0x40] sm:$0xf0] }
 0x6ac   :  { %3751 = vmatpush.bf16.msrb.mxu2 %v7014_v14  ;;  %v8031_v14 = vld [vmem:[%s10665_s9 + $0x18] sm:$0xff] }
 0x6ad   :  { %3737 = vmatpush.bf16.msra.mxu1 %v7022_v17  ;;  %v8032_v17 = vld [vmem:[%s10665_s9 + $0x20] sm:$0xff] }
 0x6ae   :  { %3529 = vmatpush.bf16.msrb.mxu3 %v8032_v17  ;;  %v6959_v17 = vld [vmem:[%s10662_s6 + $0x24] sm:$0xf0] }
 0x6b0   :  { %3752 = vmatpush.bf16.msrb.mxu2 %v7002_v30  ;;  %v8040_v30 = vld [vmem:[%s10662_s6 + $0x20] sm:$0xf0] }
 0x6b1   :  { %3738 = vmatpush.bf16.msra.mxu1 %v7010_v12  ;;  %v6990_v12 = vor.u32 %v8047_v33, %v6989_v53  ;;  %v8037_v53 = vld [vmem:[%s10662_s6 + $0x8] sm:$0xf0] }
 0x6b2   :  { %3530 = vmatpush.bf16.msrb.mxu3 %v8031_v14 }
 0x6b4   :  { %3753 = vmatpush.bf16.msrb.mxu2 %v6990_v12 }
 0x6b5   :  { %3739 = vmatpush.bf16.msra.mxu1 %v6998_v39  ;;  %v6957_v39 = vld [vmem:[%s10662_s6 + $0x18] sm:$0xf] }
 0x6b6   :  { %3531 = vmatpush.bf16.msrb.mxu3 %v8030_v55 }
 0x725   :  { %v3378_v29 = vpop.f32.mrf.mxu0  ;;  %v3391_v40 = vpop.f32.mrf.mxu1 }
 0x726   :  { %v3379_v31 = vadd.f32 %v3378_v29, %v3235_v48  ;;  %v3392_v1 = vadd.f32 %v3391_v40, %v3236_v50  ;;  %v8046_v48 = vld [vmem:[%s10662_s6 + $0x50] sm:$0xf0]  ;;  %v8045_v50 = vld [vmem:[%s10662_s6 + $0x4c] sm:$0xf]  ;;  %v6969_v29 = vld [vmem:[%s10662_s6 + $0x30] sm:$0xf] }
 0x727   :  { %v6982_v11 = vor.u32 %v8046_v48, %v6981_v47  ;;  %v6986_v18 = vor.u32 %v8045_v50, %v6983_v41  ;;  %v8043_v40 = vld [vmem:[%s10662_s6 + $0x38] sm:$0xf0]  ;;  %v6965_v47 = vld [vmem:[%s10662_s6 + $0x20] sm:$0xf]  ;;  %v8041_v48 = vld [vmem:[%s10662_s6 + $0x28] sm:$0xf0] }
 0x728   :  { %v3408_v42 = vadd.f32 %v3379_v31, %v2758_v16  ;;  %v3428_v32 = vadd.f32 %v3392_v1, %v2787_v2  ;;  %v6970_v2 = vor.u32 %v8043_v40, %v6969_v29  ;;  %v6971_v31 = vld [vmem:[%s10662_s6 + $0x3c] sm:$0xf0]  ;;  %v6977_v1 = vld [vmem:[%s10662_s6 + $0x38] sm:$0xf]  ;;  %v8029_v41 = vld [vmem:[%s10665_s9 + $0x8] sm:$0xff] }
 0x729   :  { %3727 = vmatpush.bf16.msrb.mxu0 %v6982_v11  ;;  %3740 = vmatpush.bf16.msra.mxu1 %v6986_v18  ;;  %v6974_v27 = vor.u32 %v8042_v15, %v6971_v31  ;;  %v6978_v59 = vor.u32 %v8044_v34, %v6977_v1  ;;  %v6966_v11 = vor.u32 %v8041_v48, %v6965_v47  ;;  %v6945_v18 = vld [vmem:[%s10662_s6] sm:$0xf]  ;;  %v6953_v40 = vld [vmem:[%s10662_s6 + $0x8] sm:$0xf]  ;;  %v8038_v15 = vld [vmem:[%s10662_s6 + $0x10] sm:$0xf0] }
 0x72a   :  { %v6908_v46 = vmul.f32 -1.442695, %v3408_v42  ;;  %v6909_v45 = vmul.f32 -1.442695, %v3428_v32  ;;  %v8039_v42 = vld [vmem:[%s10662_s6 + $0x1c] sm:$0xf]  ;;  %v6946_v14 = vor.u32 %v8037_v53, %v6945_v18  ;;  %3532 = vmatpush.bf16.msrb.mxu3 %v8029_v41  ;;  %v6954_v31 = vor.u32 %v8038_v15, %v6953_v40 }
 0x72b   :  { %3754 = vmatpush.bf16.msrb.mxu2 %v6978_v59  ;;  %v2816_v18 = vadd.f32 %v9376_v0, %v9381_v44 }
 0x72c   :  { %8336 = vpow2.f32 %v6908_v46  ;;  %v9503_v20 = vpop.f32.mrf.mxu2 }
 0x72d   :  { %8338 = vpow2.f32 %v6909_v45  ;;  %v3181_v63 = vpop.f32.mrf.mxu3  ;;  %v3380_v16 = vpop.f32.mrf.mxu0  ;;  %3728 = vmatpush.bf16.msrb.mxu0 %v6970_v2  ;;  %3741 = vmatpush.bf16.msra.mxu1 %v6974_v27  ;;  %v6962_v45 = vor.u32 %v8039_v42, %v6959_v17  ;;  %v3237_v42 = vperm.slane %v9411_v62, 2 }
 0x72e   :  { %v9517_v19 = vadd.f32 %v8238_v25, %v3181_v63  ;;  %v3393_v3 = vpop.f32.mrf.mxu1  ;;  %v6958_v25 = vor.u32 %v8040_v30, %v6957_v39  ;;  %v8036_v63 = vld [vmem:[%s10662_s6 + $0x4] sm:$0xf]  ;;  %v6947_v16 = vld [vmem:[%s10662_s6 + $0xc] sm:$0xf0] }
 0x72f   :  { %3755 = vmatpush.bf16.msrb.mxu2 %v6966_v11  ;;  %v8028_v3 = vld [vmem:[%s10665_s9] sm:$0xff]  ;;  %v6950_v2 = vor.u32 %v8036_v63, %v6947_v16 }
 0x730   :  { %3185 = vmax.xlane.f32.xlu0 %v9517_v19  ;;  %3533 = vmatpush.bf16.msrb.mxu3 %v8028_v3 }
 0x731   :  { %3729 = vmatpush.bf16.msrb.mxu0 %v6958_v25  ;;  %3742 = vmatpush.bf16.msra.mxu1 %v6962_v45 }
 0x732   :  { %v8337_v32 = vpop.eup %8336 }
 0x733   :  { %v8339_v50 = vpop.eup %8338  ;;  %v3412_v46 = vadd.f32 1.0, %v8337_v32  ;;  %3756 = vmatpush.bf16.msrb.mxu2 %v6954_v31  ;;  %v7160_v31 = vld [vmem:[%s10662_s6 + $0xa8] sm:$0xf] }
 0x734   :  { %v3432_v33 = vadd.f32 1.0, %v8339_v50  ;;  %v3406_v12 = vpop.f32.mrf.mxu2  ;;  %v3405_v50 = vadd.f32 %v9503_v20, %v3237_v42  ;;  %v8067_v42 = vld [vmem:[%s10665_s9 + $0x38] sm:$0xff] }
 0x735   :  { %8340 = vrcp.f32 %v3412_v46  ;;  %v3183_v29 = vpop.f32.mrf.mxu3  ;;  %3730 = vmatpush.bf16.msrb.mxu0 %v6946_v14  ;;  %3743 = vmatpush.bf16.msra.mxu1 %v6950_v2  ;;  %v3424_v30 = vand.u32 2147483648, %v3412_v46  ;;  %v3422_v25 = vand.u32 2147483647, %v3412_v46  ;;  %vm3418_vm9 = vweird.f32 %v3412_v46 }
 0x736   :  { %8342 = vrcp.f32 %v3432_v33  ;;  %v3444_v53 = vand.u32 2147483648, %v3432_v33  ;;  %vm3438_vm13 = vweird.f32 %v3432_v33  ;;  %v3442_v12 = vand.u32 2147483647, %v3432_v33  ;;  %3880 = vmatpush.bf16.msra.mxu3 %v8067_v42  ;;  %v8082_v42 = vld [vmem:[%s10662_s6 + $0x70] sm:$0xf0] }
 0x737   :  { %v3425_v48 = vor.u32 1.1754944e-38, %v3424_v30  ;;  %vm3423_vm11 = vcmp.eq.f32.partialorder %v3422_v25, 8.507059e+37  ;;  %v9606_v30 = vld [vmem:[%s10664_s8] sm:$0x7]  ;;  %v8087_v25 = vld [vmem:[%s10662_s6 + $0x98] sm:$0xf0] }
 0x738   :  { %vm3443_vm15 = vcmp.eq.f32.partialorder %v3442_v12, 8.507059e+37  ;;  %v7136_v12 = vld [vmem:[%s10662_s6 + $0x78] sm:$0xf] }
 0x73b   :  { %v8341_v1 = vpop.eup %8340 }
 0x73c   :  { %v8343_v34 = vpop.eup %8342  ;;  %v3414_v27 = vmul.f32 %v8341_v1, %v3412_v46  ;;  %vm3419_vm8 = vweird.f32 %v8341_v1  ;;  %v3445_v46 = vor.u32 1.1754944e-38, %v3444_v53  ;;  %v3590_v53 = vperm.slane %v9606_v30, 1 }
 0x73d   :  { %v3434_v59 = vmul.f32 %v8343_v34, %v3432_v33  ;;  %vm3420_vm10 = vmor %vm3418_vm9, %vm3419_vm8  ;;  %vm3439_vm12 = vweird.f32 %v8343_v34 }
 0x73e   :  { %v3415_v55 = vsub.f32 1.0, %v3414_v27  ;;  %vm3440_vm14 = vmor %vm3438_vm13, %vm3439_vm12  ;;  %v7168_v27 = vld [vmem:[%s10662_s6 + $0xb0] sm:$0xf] }
 0x73f   :  { %v3435_v39 = vsub.f32 1.0, %v3434_v59  ;;  %v8091_v59 = vld [vmem:[%s10662_s6 + $0xb8] sm:$0xf0] }
 0x740   :  { %v3416_v32 = vmul.f32 %v8341_v1, %v3415_v55 }
 0x741   :  { %v3436_v17 = vmul.f32 %v8343_v34, %v3435_v39  ;;  %v7169_v39 = vor.u32 %v8091_v59, %v7168_v27 }
 0x742   :  { %v3417_v47 = vadd.f32 %v8341_v1, %v3416_v32  ;;  %v7148_v32 = vld [vmem:[%s10662_s6 + $0x90] sm:$0xf] }
 0x743   :  { %v3437_v41 = vadd.f32 %v8343_v34, %v3436_v17  ;;  %4103 = vmatpush.bf16.msra.mxu2 %v7169_v39  ;;  %v8086_v17 = vld [vmem:[%s10662_s6 + $0x94] sm:$0xf]  ;;  %v7132_v39 = vld [vmem:[%s10662_s6 + $0x68] sm:$0xf] }
 0x744   :  { %v3421_v45 = vsel %vm3420_vm10, %v8341_v1, %v3417_v47  ;;  %v8089_v1 = vld [vmem:[%s10662_s6 + $0xac] sm:$0xf]  ;;  %v7149_v47 = vor.u32 %v8087_v25, %v7148_v32  ;;  %v7133_v25 = vor.u32 %v8082_v42, %v7132_v39  ;;  %v8072_v39 = vld [vmem:[%s10662_s6 + $0x20] sm:$0xf0]  ;;  %v8071_v42 = vld [vmem:[%s10662_s6 + $0x1c] sm:$0xf] }
 0x745   :  { %v3426_v11 = vsel %vm3423_vm11, %v3425_v48, %v3421_v45  ;;  %v3441_v63 = vsel %vm3440_vm14, %v8343_v34, %v3437_v41  ;;  %v7150_v48 = vld [vmem:[%s10662_s6 + $0x9c] sm:$0xf0]  ;;  %v8088_v45 = vld [vmem:[%s10662_s6 + $0xa0] sm:$0xf0] }
 0x746   :  { %v3448_v62 = vmul.f32 %v3426_v11, %v3405_v50  ;;  %v3446_v16 = vsel %vm3443_vm15, %v3445_v46, %v3441_v63  ;;  %v7156_v50 = vld [vmem:[%s10662_s6 + $0x98] sm:$0xf]  ;;  %v7153_v11 = vor.u32 %v8086_v17, %v7150_v48  ;;  %v8083_v63 = vld [vmem:[%s10662_s6 + $0x7c] sm:$0xf]  ;;  %v8064_v48 = vld [vmem:[%s10665_s9 + $0x20] sm:$0xff] }
 0x747   :  { %v3451_v20 = vsub.f32 1.0, %v3446_v16  ;;  %v3453_v15 = vmul.f32 %v3446_v16, %v9384_v5  ;;  %v8090_v5 = vld [vmem:[%s10662_s6 + $0xb0] sm:$0xf0]  ;;  %v7157_v41 = vor.u32 %v8088_v45, %v7156_v50  ;;  %v7138_v16 = vld [vmem:[%s10662_s6 + $0x84] sm:$0xf0] }
 0x748   :  { %v3449_v14 = vadd.f32 %v3448_v62, %v2816_v18  ;;  %v7161_v34 = vor.u32 %v8090_v5, %v7160_v31  ;;  %v3589_v18 = vperm.slane %v9606_v30, 0  ;;  %v8066_v62 = vld [vmem:[%s10665_s9 + $0x30] sm:$0xff]  ;;  %v7124_v5 = vld [vmem:[%s10662_s6 + $0x60] sm:$0xf]  ;;  %v7112_v50 = vld [vmem:[%s10662_s6 + $0x48] sm:$0xf] }
 0x749   :  { %4104 = vmatpush.bf16.msra.mxu2 %v7157_v41  ;;  %3881 = vmatpush.bf16.msra.mxu3 %v8066_v62  ;;  %v8078_v45 = vld [vmem:[%s10662_s6 + $0x50] sm:$0xf0]  ;;  %v7114_v62 = vld [vmem:[%s10662_s6 + $0x54] sm:$0xf0] }
 0x74a   :  { %8344 = vtanh.f32 %v3449_v14  ;;  %4077 = vmatpush.bf16.msra.mxu0 %v7161_v34  ;;  %v8084_v14 = vld [vmem:[%s10662_s6 + $0x80] sm:$0xf0] }
 0x74b   :  { %v7137_v46 = vor.u32 %v8084_v14, %v7136_v12  ;;  %v8080_v34 = vld [vmem:[%s10662_s6 + $0x64] sm:$0xf]  ;;  %v7120_v14 = vld [vmem:[%s10662_s6 + $0x50] sm:$0xf] }
 0x74e   :  { %4078 = vmatpush.bf16.msra.mxu0 %v7149_v47  ;;  %v8239_v47 = vld [vmem:[#allocation14] ss:$0 sm:$0xff] }
 0x750   :  { %v8345_v29 = vpop.eup %8344 }
 0x751   :  { %v3452_v40 = vmul.f32 %v8345_v29, %v3451_v20  ;;  %v7144_v20 = vld [vmem:[%s10662_s6 + $0x80] sm:$0xf]  ;;  %v8085_v29 = vld [vmem:[%s10662_s6 + $0x88] sm:$0xf0] }
 0x752   :  { %4079 = vmatpush.bf16.msra.mxu0 %v7137_v46 }
 0x753   :  { %v9579_v3 = vadd.f32 %v3453_v15, %v3452_v40  ;;  %v7141_v40 = vor.u32 %v8083_v63, %v7138_v16  ;;  %v7145_v15 = vor.u32 %v8085_v29, %v7144_v20  ;;  %v8079_v63 = vld [vmem:[%s10662_s6 + $0x58] sm:$0xf0] }
 0x754   :  { %v7121_v16 = vor.u32 %v8079_v63, %v7120_v14  ;;  %v8063_v20 = vld [vmem:[%s10665_s9 + $0x18] sm:$0xff]  ;;  %v8068_v63 = vld [vmem:[%s10662_s6 + $0x4] sm:$0xf] }
 0x755   :  { %v3554_v0 = vpack.c.bf16 %v9579_v3, %v9579_v3  ;;  %v3456_v33 = vadd.f32 %v9579_v3, %v8956_v36  ;;  %v7162_v36 = vld [vmem:[%s10662_s6 + $0xb4] sm:$0xf0]  ;;  %4105 = vmatpush.bf16.msra.mxu2 %v7145_v15  ;;  %v7100_v15 = vld [vmem:[%s10662_s6 + $0x30] sm:$0xf] }
 0x756   :  { %v7165_v55 = vor.u32 %v8089_v1, %v7162_v36  ;;  %v8081_v1 = vld [vmem:[%s10662_s6 + $0x68] sm:$0xf0]  ;;  %v2784_v36 = vadd.f32 %v9188_v10, %v9263_v4 }
 0x757   :  { %3731 = vmatmul.bf16.vlgmr.msrb.gmra.mxu0 %v3554_v0  ;;  %3744 = vmatmul.bf16.vlgmr.msra.gmra.mxu1 %v3554_v0  ;;  %v3457_v2 = vpack.c.bf16 %v3456_v33, %v3456_v33  ;;  %v2755_v33 = vadd.f32 %v9186_v37, %v9245_v43  ;;  %v7125_v59 = vor.u32 %v8081_v1, %v7124_v5  ;;  %v7102_v1 = vld [vmem:[%s10662_s6 + $0x3c] sm:$0xf0] }
 0x758   :  { %3757 = vmatmul.bf16.vlgmr.msrb.gmra.mxu2 %v3554_v0  ;;  %4090 = vmatpush.bf16.msrb.mxu1 %v7165_v55  ;;  %v8065_v0 = vld [vmem:[%s10665_s9 + $0x28] sm:$0xff]  ;;  %v7126_v55 = vld [vmem:[%s10662_s6 + $0x6c] sm:$0xf0] }
 0x759   :  { %3534 = vmatmul.bf16.vlgmr.msrb.gmra.mxu3 %v3457_v2  ;;  %v7129_v32 = vor.u32 %v8080_v34, %v7126_v55  ;;  %4080 = vmatpush.bf16.msra.mxu0 %v7125_v59  ;;  %v7108_v34 = vld [vmem:[%s10662_s6 + $0x38] sm:$0xf]  ;;  %v8062_v59 = vld [vmem:[%s10665_s9 + $0x10] sm:$0xff] }
 0x75a   :  { %3882 = vmatpush.bf16.msra.mxu3 %v8065_v0  ;;  %4106 = vmatpush.bf16.msra.mxu2 %v7133_v25  ;;  %v8075_v0 = vld [vmem:[%s10662_s6 + $0x38] sm:$0xf0]  ;;  %v7088_v55 = vld [vmem:[%s10662_s6 + $0x18] sm:$0xf] }
 0x75b   :  { %v7101_v5 = vor.u32 %v8075_v0, %v7100_v15  ;;  %v7089_v25 = vor.u32 %v8072_v39, %v7088_v55  ;;  %v8060_v15 = vld [vmem:[%s10665_s9] sm:$0xff] }
 0x75c   :  { %4091 = vmatpush.bf16.msrb.mxu1 %v7153_v11  ;;  %v8077_v11 = vld [vmem:[%s10662_s6 + $0x4c] sm:$0xf] }
 0x75d   :  { %v7117_v12 = vor.u32 %v8077_v11, %v7114_v62 }
 0x75e   :  { %3883 = vmatpush.bf16.msra.mxu3 %v8064_v48  ;;  %4107 = vmatpush.bf16.msra.mxu2 %v7121_v16  ;;  %v7078_v16 = vld [vmem:[%s10662_s6 + $0xc] sm:$0xf0] }
 0x75f   :  { %v7081_v0 = vor.u32 %v8068_v63, %v7078_v16 }
 0x760   :  { %4092 = vmatpush.bf16.msrb.mxu1 %v7141_v40 }
 0x762   :  { %3884 = vmatpush.bf16.msra.mxu3 %v8063_v20 }
 0x764   :  { %4093 = vmatpush.bf16.msrb.mxu1 %v7129_v32 }
 0x766   :  { %3885 = vmatpush.bf16.msra.mxu3 %v8062_v59  ;;  %v3591_v59 = vperm.slane %v9606_v30, 2 }
 0x768   :  { %4094 = vmatpush.bf16.msrb.mxu1 %v7117_v12 }
 0x7d4   :  { %v3732_v2 = vpop.f32.mrf.mxu0  ;;  %v3745_v31 = vpop.f32.mrf.mxu1 }
 0x7d5   :  { %v3733_v37 = vadd.f32 %v3732_v2, %v3589_v18  ;;  %v3746_v27 = vadd.f32 %v3745_v31, %v3590_v53  ;;  %v7113_v53 = vor.u32 %v8078_v45, %v7112_v50 }
 0x7d7   :  { %v3762_v17 = vadd.f32 %v3733_v37, %v2755_v33  ;;  %v3782_v10 = vadd.f32 %v3746_v27, %v2784_v36  ;;  %4081 = vmatpush.bf16.msra.mxu0 %v7113_v53  ;;  %v8074_v33 = vld [vmem:[%s10662_s6 + $0x34] sm:$0xf]  ;;  %v8076_v36 = vld [vmem:[%s10662_s6 + $0x40] sm:$0xf0]  ;;  %v8069_v53 = vld [vmem:[%s10662_s6 + $0x8] sm:$0xf0] }
 0x7d8   :  { %v7105_v37 = vor.u32 %v8074_v33, %v7102_v1  ;;  %v7109_v27 = vor.u32 %v8076_v36, %v7108_v34 }
 0x7d9   :  { %v7039_v41 = vmul.f32 -1.442695, %v3762_v17  ;;  %v7040_v18 = vmul.f32 -1.442695, %v3782_v10  ;;  %v7090_v17 = vld [vmem:[%s10662_s6 + $0x24] sm:$0xf0] }
 0x7da   :  { %4095 = vmatpush.bf16.msrb.mxu1 %v7105_v37  ;;  %4108 = vmatpush.bf16.msra.mxu2 %v7109_v27  ;;  %v7096_v10 = vld [vmem:[%s10662_s6 + $0x20] sm:$0xf]  ;;  %v7093_v45 = vor.u32 %v8071_v42, %v7090_v17 }
 0x7db   :  { %8346 = vpow2.f32 %v7039_v41  ;;  %v9698_v46 = vpop.f32.mrf.mxu2  ;;  %4082 = vmatpush.bf16.msra.mxu0 %v7101_v5  ;;  %v8061_v41 = vld [vmem:[%s10665_s9 + $0x8] sm:$0xff] }
 0x7dc   :  { %8348 = vpow2.f32 %v7040_v18  ;;  %v3535_v29 = vpop.f32.mrf.mxu3  ;;  %v3734_v40 = vpop.f32.mrf.mxu0  ;;  %v7076_v18 = vld [vmem:[%s10662_s6] sm:$0xf]  ;;  %3886 = vmatpush.bf16.msra.mxu3 %v8061_v41  ;;  %v3759_v17 = vadd.f32 %v9698_v46, %v3591_v59  ;;  %v8118_v59 = vld [vmem:[%s10662_s6 + $0x94] sm:$0xf] }
 0x7dd   :  { %v9712_v2 = vadd.f32 %v8239_v47, %v3535_v29  ;;  %v3747_v31 = vpop.f32.mrf.mxu1  ;;  %v8073_v47 = vld [vmem:[%s10662_s6 + $0x28] sm:$0xf0]  ;;  %v7077_v14 = vor.u32 %v8069_v53, %v7076_v18  ;;  %v7084_v29 = vld [vmem:[%s10662_s6 + $0x8] sm:$0xf]  ;;  %v8070_v40 = vld [vmem:[%s10662_s6 + $0x10] sm:$0xf0] }
 0x7de   :  { %v7097_v11 = vor.u32 %v8073_v47, %v7096_v10  ;;  %4096 = vmatpush.bf16.msrb.mxu1 %v7093_v45  ;;  %v7085_v33 = vor.u32 %v8070_v40, %v7084_v29  ;;  %v2813_v45 = vadd.f32 %v9332_v8, %v9381_v44  ;;  %v7291_v40 = vld [vmem:[%s10662_s6 + $0xa8] sm:$0xf] }
 0x7df   :  { %3539 = vmax.xlane.f32.xlu0 %v9712_v2  ;;  %4083 = vmatpush.bf16.msra.mxu0 %v7089_v25 }
 0x7e0   :  { %4109 = vmatpush.bf16.msra.mxu2 %v7097_v11  ;;  %3887 = vmatpush.bf16.msra.mxu3 %v8060_v15  ;;  %v8121_v15 = vld [vmem:[%s10662_s6 + $0xac] sm:$0xf] }
 0x7e1   :  { %v8347_v32 = vpop.eup %8346 }
 0x7e2   :  { %v8349_v48 = vpop.eup %8348  ;;  %v3766_v50 = vadd.f32 1.0, %v8347_v32  ;;  %4097 = vmatpush.bf16.msrb.mxu1 %v7081_v0 }
 0x7e3   :  { %v3786_v62 = vadd.f32 1.0, %v8349_v48  ;;  %v3760_v12 = vpop.f32.mrf.mxu2  ;;  %4084 = vmatpush.bf16.msra.mxu0 %v7077_v14 }
 0x7e4   :  { %8350 = vrcp.f32 %v3766_v50  ;;  %v3537_v20 = vpop.f32.mrf.mxu3  ;;  %4110 = vmatpush.bf16.msra.mxu2 %v7085_v33  ;;  %v3778_v27 = vand.u32 2147483648, %v3766_v50  ;;  %v3776_v39 = vand.u32 2147483647, %v3766_v50  ;;  %vm3772_vm1 = vweird.f32 %v3766_v50  ;;  %v7299_v33 = vld [vmem:[%s10662_s6 + $0xb0] sm:$0xf] }
 0x7e5   :  { %8352 = vrcp.f32 %v3786_v62  ;;  %v3798_v11 = vand.u32 2147483648, %v3786_v62  ;;  %vm3792_vm5 = vweird.f32 %v3786_v62  ;;  %v3796_v41 = vand.u32 2147483647, %v3786_v62 }
 0x7e6   :  { %v3779_v25 = vor.u32 1.1754944e-38, %v3778_v27  ;;  %vm3777_vm3 = vcmp.eq.f32.partialorder %v3776_v39, 8.507059e+37  ;;  %v8119_v27 = vld [vmem:[%s10662_s6 + $0x98] sm:$0xf0]  ;;  %v7281_v39 = vld [vmem:[%s10662_s6 + $0x9c] sm:$0xf0] }
 0x7e7   :  { %vm3797_vm7 = vcmp.eq.f32.partialorder %v3796_v41, 8.507059e+37 }
 0x7ea   :  { %v8351_v31 = vpop.eup %8350 }
 0x7eb   :  { %v8353_v5 = vpop.eup %8352  ;;  %v3768_v1 = vmul.f32 %v8351_v31, %v3766_v50  ;;  %vm3773_vm0 = vweird.f32 %v8351_v31  ;;  %v3799_v50 = vor.u32 1.1754944e-38, %v3798_v11  ;;  %v8116_v11 = vld [vmem:[%s10662_s6 + $0x80] sm:$0xf0] }
 0x7ec   :  { %v3788_v34 = vmul.f32 %v8353_v5, %v3786_v62  ;;  %vm3774_vm2 = vmor %vm3772_vm1, %vm3773_vm0  ;;  %vm3793_vm4 = vweird.f32 %v8353_v5 }
 0x7ed   :  { %v3769_v36 = vsub.f32 1.0, %v3768_v1  ;;  %vm3794_vm6 = vmor %vm3792_vm5, %vm3793_vm4 }
 0x7ee   :  { %v3789_v37 = vsub.f32 1.0, %v3788_v34  ;;  %v9801_v34 = vld [vmem:[%s10664_s8] sm:$0x7] }
 0x7ef   :  { %v3770_v55 = vmul.f32 %v8351_v31, %v3769_v36  ;;  %v8099_v36 = vld [vmem:[%s10665_s9 + $0x38] sm:$0xff] }
 0x7f0   :  { %v3790_v42 = vmul.f32 %v8353_v5, %v3789_v37  ;;  %v7279_v37 = vld [vmem:[%s10662_s6 + $0x90] sm:$0xf]  ;;  %4234 = vmatpush.bf16.msrb.mxu3 %v8099_v36 }
 0x7f1   :  { %v3771_v32 = vadd.f32 %v8351_v31, %v3770_v55  ;;  %v7280_v55 = vor.u32 %v8119_v27, %v7279_v37  ;;  %v8240_v37 = vld [vmem:[#allocation14] ss:$0 sm:$0xff]  ;;  %v8096_v27 = vld [vmem:[%s10665_s9 + $0x20] sm:$0xff] }
 0x7f2   :  { %v3791_v48 = vadd.f32 %v8353_v5, %v3790_v42  ;;  %v7287_v42 = vld [vmem:[%s10662_s6 + $0x98] sm:$0xf] }
 0x7f3   :  { %v3775_v10 = vsel %vm3774_vm2, %v8351_v31, %v3771_v32  ;;  %v8123_v31 = vld [vmem:[%s10662_s6 + $0xb8] sm:$0xf0]  ;;  %v8120_v32 = vld [vmem:[%s10662_s6 + $0xa0] sm:$0xf0] }
 0x7f4   :  { %v3780_v47 = vsel %vm3777_vm3, %v3779_v25, %v3775_v10  ;;  %v3795_v53 = vsel %vm3794_vm6, %v8353_v5, %v3791_v48  ;;  %v7300_v1 = vor.u32 %v8123_v31, %v7299_v33  ;;  %v7284_v25 = vor.u32 %v8118_v59, %v7281_v39  ;;  %v8098_v48 = vld [vmem:[%s10665_s9 + $0x30] sm:$0xff]  ;;  %v7263_v33 = vld [vmem:[%s10662_s6 + $0x68] sm:$0xf]  ;;  %v8109_v39 = vld [vmem:[%s10662_s6 + $0x4c] sm:$0xf] }
 0x7f5   :  { %v3802_v30 = vmul.f32 %v3780_v47, %v3759_v17  ;;  %v3800_v12 = vsel %vm3797_vm7, %v3799_v50, %v3795_v53  ;;  %v7288_v17 = vor.u32 %v8120_v32, %v7287_v42  ;;  %v3943_v10 = vperm.slane %v9801_v34, 0  ;;  %4235 = vmatpush.bf16.msrb.mxu3 %v8098_v48  ;;  %v7275_v53 = vld [vmem:[%s10662_s6 + $0x80] sm:$0xf]  ;;  %v8117_v50 = vld [vmem:[%s10662_s6 + $0x88] sm:$0xf0] }
 0x7f6   :  { %v3805_v46 = vsub.f32 1.0, %v3800_v12  ;;  %v3807_v16 = vmul.f32 %v3800_v12, %v9579_v3  ;;  %v8122_v3 = vld [vmem:[%s10662_s6 + $0xb0] sm:$0xf0]  ;;  %4457 = vmatpush.bf16.msrb.mxu2 %v7300_v1  ;;  %v3944_v47 = vperm.slane %v9801_v34, 1  ;;  %v7243_v59 = vld [vmem:[%s10662_s6 + $0x48] sm:$0xf] }
 0x7f7   :  { %v3803_v18 = vadd.f32 %v3802_v30, %v2813_v45  ;;  %v7292_v0 = vor.u32 %v8122_v3, %v7291_v40  ;;  %v7267_v45 = vld [vmem:[%s10662_s6 + $0x78] sm:$0xf]  ;;  %v8115_v30 = vld [vmem:[%s10662_s6 + $0x7c] sm:$0xf]  ;;  %v8112_v40 = vld [vmem:[%s10662_s6 + $0x64] sm:$0xf]  ;;  %v2782_v3 = vadd.f32 %v9182_v23, %v9263_v4 }
 0x7f8   :  { %v7268_v41 = vor.u32 %v8116_v11, %v7267_v45  ;;  %v8114_v31 = vld [vmem:[%s10662_s6 + $0x70] sm:$0xf0]  ;;  %v8111_v48 = vld [vmem:[%s10662_s6 + $0x58] sm:$0xf0] }
 0x7f9   :  { %8354 = vtanh.f32 %v3803_v18  ;;  %4431 = vmatpush.bf16.msrb.mxu0 %v7292_v0  ;;  %v7269_v18 = vld [vmem:[%s10662_s6 + $0x84] sm:$0xf0]  ;;  %v7264_v1 = vor.u32 %v8114_v31, %v7263_v33 }
 0x7fa   :  { %4458 = vmatpush.bf16.msrb.mxu2 %v7288_v17  ;;  %v7272_v12 = vor.u32 %v8115_v30, %v7269_v18  ;;  %v7245_v17 = vld [vmem:[%s10662_s6 + $0x54] sm:$0xf0]  ;;  %v7221_v31 = vld [vmem:[%s10662_s6 + $0x24] sm:$0xf0] }
 0x7fb   :  { %v8095_v30 = vld [vmem:[%s10665_s9 + $0x18] sm:$0xff] }
 0x7fd   :  { %4432 = vmatpush.bf16.msrb.mxu0 %v7280_v55  ;;  %v8110_v55 = vld [vmem:[%s10662_s6 + $0x50] sm:$0xf0] }
 0x7ff   :  { %v8355_v14 = vpop.eup %8354 }
 0x800   :  { %v3806_v63 = vmul.f32 %v8355_v14, %v3805_v46  ;;  %v7276_v46 = vor.u32 %v8117_v50, %v7275_v53  ;;  %v8097_v14 = vld [vmem:[%s10665_s9 + $0x28] sm:$0xff]  ;;  %v7231_v53 = vld [vmem:[%s10662_s6 + $0x30] sm:$0xf]  ;;  %v8107_v50 = vld [vmem:[%s10662_s6 + $0x38] sm:$0xf0] }
 0x801   :  { %4433 = vmatpush.bf16.msrb.mxu0 %v7268_v41  ;;  %4236 = vmatpush.bf16.msrb.mxu3 %v8097_v14 }
 0x802   :  { %v9774_v20 = vadd.f32 %v3807_v16, %v3806_v63  ;;  %v2753_v63 = vadd.f32 %v9180_v22, %v9245_v43  ;;  %4459 = vmatpush.bf16.msrb.mxu2 %v7276_v46 }
 0x804   :  { %v3908_v8 = vpack.c.bf16 %v9774_v20, %v9774_v20  ;;  %v3810_v62 = vadd.f32 %v9774_v20, %v8909_v51  ;;  %v7293_v51 = vld [vmem:[%s10662_s6 + $0xb4] sm:$0xf0] }
 0x805   :  { %v7296_v5 = vor.u32 %v8121_v15, %v7293_v51  ;;  %v7257_v51 = vld [vmem:[%s10662_s6 + $0x6c] sm:$0xf0]  ;;  %4237 = vmatpush.bf16.msrb.mxu3 %v8096_v27 }
 0x806   :  { %4085 = vmatmul.bf16.vlgmr.msra.gmra.mxu0 %v3908_v8  ;;  %4098 = vmatmul.bf16.vlgmr.msrb.gmra.mxu1 %v3908_v8  ;;  %v3811_v29 = vpack.c.bf16 %v3810_v62, %v3810_v62  ;;  %v7255_v62 = vld [vmem:[%s10662_s6 + $0x60] sm:$0xf] }
 0x807   :  { %4111 = vmatmul.bf16.vlgmr.msra.gmra.mxu2 %v3908_v8  ;;  %4444 = vmatpush.bf16.msra.mxu1 %v7296_v5  ;;  %v7260_v5 = vor.u32 %v8112_v40, %v7257_v51 }
 0x808   :  { %3888 = vmatmul.bf16.vlgmr.msra.gmra.mxu3 %v3811_v29  ;;  %v8113_v29 = vld [vmem:[%s10662_s6 + $0x68] sm:$0xf0]  ;;  %4460 = vmatpush.bf16.msrb.mxu2 %v7264_v1 }
 0x809   :  { %v7256_v0 = vor.u32 %v8113_v29, %v7255_v62  ;;  %4238 = vmatpush.bf16.msrb.mxu3 %v8095_v30  ;;  %v8108_v62 = vld [vmem:[%s10662_s6 + $0x40] sm:$0xf0]  ;;  %v8105_v1 = vld [vmem:[%s10662_s6 + $0x28] sm:$0xf0] }
 0x80a   :  { %v8092_v30 = vld [vmem:[%s10665_s9] sm:$0xff] }
 0x80b   :  { %4445 = vmatpush.bf16.msra.mxu1 %v7284_v25  ;;  %4434 = vmatpush.bf16.msrb.mxu0 %v7256_v0  ;;  %v7244_v25 = vor.u32 %v8110_v55, %v7243_v59  ;;  %v8103_v0 = vld [vmem:[%s10662_s6 + $0x1c] sm:$0xf]  ;;  %v8093_v59 = vld [vmem:[%s10665_s9 + $0x8] sm:$0xff]  ;;  %v7207_v55 = vld [vmem:[%s10662_s6] sm:$0xf] }
 0x80f   :  { %4446 = vmatpush.bf16.msra.mxu1 %v7272_v12  ;;  %4435 = vmatpush.bf16.msrb.mxu0 %v7244_v25  ;;  %v8106_v12 = vld [vmem:[%s10662_s6 + $0x34] sm:$0xf] }
 0x813   :  { %4447 = vmatpush.bf16.msra.mxu1 %v7260_v5  ;;  %v7227_v5 = vld [vmem:[%s10662_s6 + $0x20] sm:$0xf] }
 0x814   :  { %v7228_v27 = vor.u32 %v8105_v1, %v7227_v5  ;;  %v2811_v5 = vadd.f32 %v9289_v38, %v9381_v44 }
 0x883   :  { %v4086_v16 = vpop.f32.mrf.mxu0  ;;  %v4099_v8 = vpop.f32.mrf.mxu1 }
 0x884   :  { %v4087_v22 = vadd.f32 %v4086_v16, %v3943_v10  ;;  %v4100_v15 = vadd.f32 %v4099_v8, %v3944_v47  ;;  %v7248_v10 = vor.u32 %v8109_v39, %v7245_v17  ;;  %v7251_v47 = vld [vmem:[%s10662_s6 + $0x50] sm:$0xf]  ;;  %v7233_v16 = vld [vmem:[%s10662_s6 + $0x3c] sm:$0xf0]  ;;  %v7239_v8 = vld [vmem:[%s10662_s6 + $0x38] sm:$0xf] }
 0x885   :  { %v7252_v11 = vor.u32 %v8111_v48, %v7251_v47  ;;  %v7236_v29 = vor.u32 %v8106_v12, %v7233_v16  ;;  %v7240_v40 = vor.u32 %v8108_v62, %v7239_v8  ;;  %v8101_v39 = vld [vmem:[%s10662_s6 + $0x8] sm:$0xf0]  ;;  %v8100_v17 = vld [vmem:[%s10662_s6 + $0x4] sm:$0xf]  ;;  %v7215_v48 = vld [vmem:[%s10662_s6 + $0x8] sm:$0xf] }
 0x886   :  { %v4116_v36 = vadd.f32 %v4087_v22, %v2753_v63  ;;  %v4136_v23 = vadd.f32 %v4100_v15, %v2782_v3  ;;  %4448 = vmatpush.bf16.msra.mxu1 %v7248_v10  ;;  %v7232_v63 = vor.u32 %v8107_v50, %v7231_v53  ;;  %v8094_v3 = vld [vmem:[%s10665_s9 + $0x10] sm:$0xff]  ;;  %v7219_v22 = vld [vmem:[%s10662_s6 + $0x18] sm:$0xf]  ;;  %v8104_v15 = vld [vmem:[%s10662_s6 + $0x20] sm:$0xf0]  ;;  %v7208_v25 = vor.u32 %v8101_v39, %v7207_v55 }
 0x887   :  { %4461 = vmatpush.bf16.msrb.mxu2 %v7252_v11  ;;  %4239 = vmatpush.bf16.msrb.mxu3 %v8094_v3  ;;  %v7220_v33 = vor.u32 %v8104_v15, %v7219_v22  ;;  %v7209_v10 = vld [vmem:[%s10662_s6 + $0xc] sm:$0xf0]  ;;  %v8102_v11 = vld [vmem:[%s10662_s6 + $0x10] sm:$0xf0]  ;;  %v3945_v62 = vperm.slane %v9801_v34, 2 }
 0x888   :  { %v7170_v42 = vmul.f32 -1.442695, %v4116_v36  ;;  %v7171_v32 = vmul.f32 -1.442695, %v4136_v23  ;;  %4436 = vmatpush.bf16.msrb.mxu0 %v7232_v63 }
 0x88a   :  { %8356 = vpow2.f32 %v7170_v42  ;;  %v9893_v45 = vpop.f32.mrf.mxu2  ;;  %4449 = vmatpush.bf16.msra.mxu1 %v7236_v29 }
 0x88b   :  { %8358 = vpow2.f32 %v7171_v32  ;;  %v3889_v41 = vpop.f32.mrf.mxu3  ;;  %v4088_v18 = vpop.f32.mrf.mxu0  ;;  %4462 = vmatpush.bf16.msrb.mxu2 %v7240_v40  ;;  %4240 = vmatpush.bf16.msrb.mxu3 %v8093_v59 }
 0x88c   :  { %v9907_v46 = vadd.f32 %v8240_v37, %v3889_v41  ;;  %v4101_v14 = vpop.f32.mrf.mxu1  ;;  %v7224_v37 = vor.u32 %v8103_v0, %v7221_v31  ;;  %4437 = vmatpush.bf16.msrb.mxu0 %v7220_v33  ;;  %v7212_v41 = vor.u32 %v8100_v17, %v7209_v10  ;;  %v7216_v18 = vor.u32 %v8102_v11, %v7215_v48  ;;  %v7422_v10 = vld [vmem:[%s10662_s6 + $0xa8] sm:$0xf]  ;;  %v7430_v11 = vld [vmem:[%s10662_s6 + $0xb0] sm:$0xf] }
 0x88d   :  { %v4113_v0 = vadd.f32 %v9893_v45, %v3945_v62  ;;  %v7418_v62 = vld [vmem:[%s10662_s6 + $0x98] sm:$0xf] }
 0x88e   :  { %3893 = vmax.xlane.f32.xlu1 %v9907_v46  ;;  %4450 = vmatpush.bf16.msra.mxu1 %v7224_v37 }
 0x88f   :  { %4463 = vmatpush.bf16.msrb.mxu2 %v7228_v27  ;;  %4241 = vmatpush.bf16.msrb.mxu3 %v8092_v30  ;;  %v8155_v30 = vld [vmem:[%s10662_s6 + $0xb8] sm:$0xf0] }
 0x890   :  { %v8357_v51 = vpop.eup %8356  ;;  %4438 = vmatpush.bf16.msrb.mxu0 %v7208_v25 }
 0x891   :  { %v8359_v36 = vpop.eup %8358  ;;  %v4120_v23 = vadd.f32 1.0, %v8357_v51 }
 0x892   :  { %v4140_v42 = vadd.f32 1.0, %v8359_v36  ;;  %v4114_v32 = vpop.f32.mrf.mxu2  ;;  %4451 = vmatpush.bf16.msra.mxu1 %v7212_v41 }
 0x893   :  { %8360 = vrcp.f32 %v4120_v23  ;;  %v3891_v47 = vpop.f32.mrf.mxu3  ;;  %4464 = vmatpush.bf16.msrb.mxu2 %v7216_v18  ;;  %v4132_v8 = vand.u32 2147483648, %v4120_v23  ;;  %v4130_v40 = vand.u32 2147483647, %v4120_v23  ;;  %vm4126_vm9 = vweird.f32 %v4120_v23 }
 0x894   :  { %8362 = vrcp.f32 %v4140_v42  ;;  %v4152_v1 = vand.u32 2147483648, %v4140_v42  ;;  %vm4146_vm13 = vweird.f32 %v4140_v42  ;;  %v4150_v36 = vand.u32 2147483647, %v4140_v42  ;;  %v8153_v47 = vld [vmem:[%s10662_s6 + $0xac] sm:$0xf] }
 0x895   :  { %v4133_v15 = vor.u32 1.1754944e-38, %v4132_v8  ;;  %vm4131_vm11 = vcmp.eq.f32.partialorder %v4130_v40, 8.507059e+37  ;;  %v7431_v18 = vor.u32 %v8155_v30, %v7430_v11  ;;  %v7412_v8 = vld [vmem:[%s10662_s6 + $0x9c] sm:$0xf0] }
 0x896   :  { %vm4151_vm15 = vcmp.eq.f32.partialorder %v4150_v36, 8.507059e+37  ;;  %v8149_v36 = vld [vmem:[%s10662_s6 + $0x88] sm:$0xf0] }
 0x897   :  { %4811 = vmatpush.bf16.msra.mxu2 %v7431_v18  ;;  %v8128_v18 = vld [vmem:[%s10665_s9 + $0x20] sm:$0xff] }
 0x899   :  { %v8361_v53 = vpop.eup %8360 }
 0x89a   :  { %v8363_v50 = vpop.eup %8362  ;;  %v4122_v12 = vmul.f32 %v8361_v53, %v4120_v23  ;;  %vm4127_vm8 = vweird.f32 %v8361_v53  ;;  %v4153_v23 = vor.u32 1.1754944e-38, %v4152_v1  ;;  %v7400_v1 = vld [vmem:[%s10662_s6 + $0x84] sm:$0xf0] }
 0x89b   :  { %v4142_v14 = vmul.f32 %v8363_v50, %v4140_v42  ;;  %vm4128_vm10 = vmor %vm4126_vm9, %vm4127_vm8  ;;  %vm4147_vm12 = vweird.f32 %v8363_v50 }
 0x89c   :  { %v4123_v63 = vsub.f32 1.0, %v4122_v12  ;;  %vm4148_vm14 = vmor %vm4146_vm13, %vm4147_vm12  ;;  %v7410_v12 = vld [vmem:[%s10662_s6 + $0x90] sm:$0xf] }
 0x89d   :  { %v4143_v16 = vsub.f32 1.0, %v4142_v14  ;;  %v8151_v14 = vld [vmem:[%s10662_s6 + $0x98] sm:$0xf0] }
 0x89e   :  { %v4124_v29 = vmul.f32 %v8361_v53, %v4123_v63  ;;  %v8150_v63 = vld [vmem:[%s10662_s6 + $0x94] sm:$0xf] }
 0x89f   :  { %v4144_v3 = vmul.f32 %v8363_v50, %v4143_v16  ;;  %v7411_v16 = vor.u32 %v8151_v14, %v7410_v12  ;;  %v7415_v40 = vor.u32 %v8150_v63, %v7412_v8  ;;  %v8142_v12 = vld [vmem:[%s10662_s6 + $0x50] sm:$0xf0]  ;;  %v8141_v14 = vld [vmem:[%s10662_s6 + $0x4c] sm:$0xf] }
 0x8a0   :  { %v4125_v22 = vadd.f32 %v8361_v53, %v4124_v29  ;;  %v8152_v29 = vld [vmem:[%s10662_s6 + $0xa0] sm:$0xf0] }
 0x8a1   :  { %v4145_v31 = vadd.f32 %v8363_v50, %v4144_v3  ;;  %v7419_v3 = vor.u32 %v8152_v29, %v7418_v62  ;;  %v7376_v62 = vld [vmem:[%s10662_s6 + $0x54] sm:$0xf0] }
 0x8a2   :  { %v4129_v51 = vsel %vm4128_vm10, %v8361_v53, %v4125_v22  ;;  %v9996_v53 = vld [vmem:[%s10664_s8] sm:$0x7]  ;;  %v7379_v29 = vor.u32 %v8141_v14, %v7376_v62  ;;  %v7346_v62 = vld [vmem:[%s10662_s6 + $0x8] sm:$0xf] }
 0x8a3   :  { %v4134_v33 = vsel %vm4131_vm11, %v4133_v15, %v4129_v51  ;;  %v4149_v27 = vsel %vm4148_vm14, %v8363_v50, %v4145_v31  ;;  %v8131_v50 = vld [vmem:[%s10665_s9 + $0x38] sm:$0xff]  ;;  %v4297_v22 = vperm.slane %v9996_v53, 0  ;;  %v4298_v15 = vperm.slane %v9996_v53, 1  ;;  %4812 = vmatpush.bf16.msra.mxu2 %v7419_v3 }
 0x8a4   :  { %v4156_v34 = vmul.f32 %v4134_v33, %v4113_v0  ;;  %v4154_v59 = vsel %vm4151_vm15, %v4153_v23, %v4149_v27  ;;  %4588 = vmatpush.bf16.msra.mxu3 %v8131_v50  ;;  %v8130_v0 = vld [vmem:[%s10665_s9 + $0x30] sm:$0xff]  ;;  %v7398_v51 = vld [vmem:[%s10662_s6 + $0x78] sm:$0xf]  ;;  %v8148_v33 = vld [vmem:[%s10662_s6 + $0x80] sm:$0xf0] }
 0x8a5   :  { %v4159_v45 = vsub.f32 1.0, %v4154_v59  ;;  %v4161_v32 = vmul.f32 %v4154_v59, %v9774_v20  ;;  %v8154_v20 = vld [vmem:[%s10662_s6 + $0xb0] sm:$0xf0]  ;;  %v8147_v31 = vld [vmem:[%s10662_s6 + $0x7c] sm:$0xf]  ;;  %v8129_v23 = vld [vmem:[%s10665_s9 + $0x28] sm:$0xff]  ;;  %v2750_v59 = vadd.f32 %v9168_v6, %v9245_v43 }
 0x8a6   :  { %v4157_v37 = vadd.f32 %v4156_v34, %v2811_v5  ;;  %v7423_v48 = vor.u32 %v8154_v20, %v7422_v10  ;;  %v7399_v5 = vor.u32 %v8148_v33, %v7398_v51  ;;  %v7406_v34 = vld [vmem:[%s10662_s6 + $0x80] sm:$0xf]  ;;  %v7388_v20 = vld [vmem:[%s10662_s6 + $0x6c] sm:$0xf0]  ;;  %v7374_v50 = vld [vmem:[%s10662_s6 + $0x48] sm:$0xf] }
 0x8a7   :  { %v7407_v27 = vor.u32 %v8149_v36, %v7406_v34  ;;  %v7375_v8 = vor.u32 %v8142_v12, %v7374_v50  ;;  %v8143_v3 = vld [vmem:[%s10662_s6 + $0x58] sm:$0xf0] }
 0x8a8   :  { %8364 = vtanh.f32 %v4157_v37  ;;  %4785 = vmatpush.bf16.msra.mxu0 %v7423_v48  ;;  %4589 = vmatpush.bf16.msra.mxu3 %v8130_v0  ;;  %v7403_v37 = vor.u32 %v8147_v31, %v7400_v1  ;;  %v8146_v48 = vld [vmem:[%s10662_s6 + $0x70] sm:$0xf0]  ;;  %v8127_v0 = vld [vmem:[%s10665_s9 + $0x18] sm:$0xff]  ;;  %v7362_v31 = vld [vmem:[%s10662_s6 + $0x30] sm:$0xf] }
 0x8a9   :  { %4813 = vmatpush.bf16.msra.mxu2 %v7407_v27  ;;  %v8138_v1 = vld [vmem:[%s10662_s6 + $0x34] sm:$0xf]  ;;  %v7364_v27 = vld [vmem:[%s10662_s6 + $0x3c] sm:$0xf0] }
 0x8ac   :  { %4786 = vmatpush.bf16.msra.mxu0 %v7411_v16  ;;  %4590 = vmatpush.bf16.msra.mxu3 %v8129_v23  ;;  %v7370_v23 = vld [vmem:[%s10662_s6 + $0x38] sm:$0xf] }
 0x8ae   :  { %v8365_v55 = vpop.eup %8364 }
 0x8af   :  { %v4160_v39 = vmul.f32 %v8365_v55, %v4159_v45 }
 0x8b0   :  { %4787 = vmatpush.bf16.msra.mxu0 %v7399_v5  ;;  %4591 = vmatpush.bf16.msra.mxu3 %v8128_v18  ;;  %v8139_v5 = vld [vmem:[%s10662_s6 + $0x38] sm:$0xf0]  ;;  %v8133_v18 = vld [vmem:[%s10662_s6 + $0x8] sm:$0xf0] }
 0x8b1   :  { %v9969_v25 = vadd.f32 %v4161_v32, %v4160_v39  ;;  %v7386_v39 = vld [vmem:[%s10662_s6 + $0x60] sm:$0xf]  ;;  %v8145_v32 = vld [vmem:[%s10662_s6 + $0x68] sm:$0xf0] }
 0x8b2   :  { %v7387_v10 = vor.u32 %v8145_v32, %v7386_v39  ;;  %v8126_v39 = vld [vmem:[%s10665_s9 + $0x10] sm:$0xff]  ;;  %v7350_v32 = vld [vmem:[%s10662_s6 + $0x18] sm:$0xf] }
 0x8b3   :  { %v4262_v38 = vpack.c.bf16 %v9969_v25, %v9969_v25  ;;  %v4164_v42 = vadd.f32 %v9969_v25, %v8890_v60  ;;  %v7424_v60 = vld [vmem:[%s10662_s6 + $0xb4] sm:$0xf0] }
 0x8b4   :  { %v7427_v41 = vor.u32 %v8153_v47, %v7424_v60  ;;  %v7394_v47 = vld [vmem:[%s10662_s6 + $0x68] sm:$0xf]  ;;  %4788 = vmatpush.bf16.msra.mxu0 %v7387_v10  ;;  %4592 = vmatpush.bf16.msra.mxu3 %v8127_v0 }
 0x8b5   :  { %4439 = vmatmul.bf16.vlgmr.msrb.gmra.mxu0 %v4262_v38  ;;  %4452 = vmatmul.bf16.vlgmr.msra.gmra.mxu1 %v4262_v38  ;;  %v4165_v17 = vpack.c.bf16 %v4164_v42, %v4164_v42  ;;  %v2779_v42 = vadd.f32 %v9170_v49, %v9263_v4  ;;  %v7395_v11 = vor.u32 %v8146_v48, %v7394_v47  ;;  %v7352_v10 = vld [vmem:[%s10662_s6 + $0x24] sm:$0xf0]  ;;  %v8137_v47 = vld [vmem:[%s10662_s6 + $0x28] sm:$0xf0] }
 0x8b6   :  { %4465 = vmatmul.bf16.vlgmr.msrb.gmra.mxu2 %v4262_v38  ;;  %4798 = vmatpush.bf16.msrb.mxu1 %v7427_v41  ;;  %v8144_v38 = vld [vmem:[%s10662_s6 + $0x64] sm:$0xf]  ;;  %v8241_v41 = vld [vmem:[#allocation14] ss:$0 sm:$0xff] }
 0x8b7   :  { %4242 = vmatmul.bf16.vlgmr.msrb.gmra.mxu3 %v4165_v17  ;;  %v7391_v60 = vor.u32 %v8144_v38, %v7388_v20  ;;  %4814 = vmatpush.bf16.msra.mxu2 %v7395_v11  ;;  %v8136_v38 = vld [vmem:[%s10662_s6 + $0x20] sm:$0xf0]  ;;  %v7358_v20 = vld [vmem:[%s10662_s6 + $0x20] sm:$0xf] }
 0x8b8   :  { %4789 = vmatpush.bf16.msra.mxu0 %v7375_v8  ;;  %4593 = vmatpush.bf16.msra.mxu3 %v8126_v39 }
 0x8ba   :  { %4799 = vmatpush.bf16.msrb.mxu1 %v7415_v40  ;;  %v7382_v40 = vld [vmem:[%s10662_s6 + $0x50] sm:$0xf] }
 0x8be   :  { %4800 = vmatpush.bf16.msrb.mxu1 %v7403_v37  ;;  %v7363_v37 = vor.u32 %v8139_v5, %v7362_v31 }
 0x8c0   :  { %4790 = vmatpush.bf16.msra.mxu0 %v7363_v37  ;;  %v4299_v37 = vperm.slane %v9996_v53, 2 }
 0x8c2   :  { %4801 = vmatpush.bf16.msrb.mxu1 %v7391_v60 }
 0x8c6   :  { %4802 = vmatpush.bf16.msrb.mxu1 %v7379_v29  ;;  %v8134_v29 = vld [vmem:[%s10662_s6 + $0x10] sm:$0xf0] }
 0x932   :  { %v4440_v45 = vpop.f32.mrf.mxu0  ;;  %v4453_v55 = vpop.f32.mrf.mxu1 }
 0x933   :  { %v4441_v6 = vadd.f32 %v4440_v45, %v4297_v22  ;;  %v4454_v17 = vadd.f32 %v4453_v55, %v4298_v15  ;;  %v7383_v15 = vor.u32 %v8143_v3, %v7382_v40  ;;  %v7367_v45 = vor.u32 %v8138_v1, %v7364_v27  ;;  %v8124_v40 = vld [vmem:[%s10665_s9] sm:$0xff] }
 0x935   :  { %v4470_v30 = vadd.f32 %v4441_v6, %v2750_v59  ;;  %v4490_v49 = vadd.f32 %v4454_v17, %v2779_v42  ;;  %4815 = vmatpush.bf16.msra.mxu2 %v7383_v15  ;;  %v8140_v59 = vld [vmem:[%s10662_s6 + $0x40] sm:$0xf0]  ;;  %4803 = vmatpush.bf16.msrb.mxu1 %v7367_v45  ;;  %v8135_v42 = vld [vmem:[%s10662_s6 + $0x1c] sm:$0xf]  ;;  %v7351_v17 = vor.u32 %v8136_v38, %v7350_v32 }
 0x936   :  { %v7371_v55 = vor.u32 %v8140_v59, %v7370_v23  ;;  %v7355_v11 = vor.u32 %v8135_v42, %v7352_v10  ;;  %v7347_v15 = vor.u32 %v8134_v29, %v7346_v62 }
 0x937   :  { %v7301_v63 = vmul.f32 -1.442695, %v4470_v30  ;;  %v7302_v16 = vmul.f32 -1.442695, %v4490_v49  ;;  %v7359_v30 = vor.u32 %v8137_v47, %v7358_v20  ;;  %v8125_v49 = vld [vmem:[%s10665_s9 + $0x8] sm:$0xff]  ;;  %4791 = vmatpush.bf16.msra.mxu0 %v7351_v17 }
 0x938   :  { %4594 = vmatpush.bf16.msra.mxu3 %v8125_v49 }
 0x939   :  { %8366 = vpow2.f32 %v7301_v63  ;;  %v10088_v22 = vpop.f32.mrf.mxu2  ;;  %4816 = vmatpush.bf16.msra.mxu2 %v7371_v55  ;;  %v8132_v63 = vld [vmem:[%s10662_s6 + $0x4] sm:$0xf]  ;;  %4804 = vmatpush.bf16.msrb.mxu1 %v7355_v11 }
 0x93a   :  { %8368 = vpow2.f32 %v7302_v16  ;;  %v4243_v51 = vpop.f32.mrf.mxu3  ;;  %v4442_v33 = vpop.f32.mrf.mxu0  ;;  %v7340_v16 = vld [vmem:[%s10662_s6 + $0xc] sm:$0xf0]  ;;  %v4467_v39 = vadd.f32 %v10088_v22, %v4299_v37 }
 0x93b   :  { %v10102_v34 = vadd.f32 %v8241_v41, %v4243_v51  ;;  %v4455_v36 = vpop.f32.mrf.mxu1  ;;  %v7338_v41 = vld [vmem:[%s10662_s6] sm:$0xf]  ;;  %v7343_v3 = vor.u32 %v8132_v63, %v7340_v16  ;;  %v7561_v16 = vld [vmem:[%s10662_s6 + $0xb0] sm:$0xf] }
 0x93c   :  { %v7339_v14 = vor.u32 %v8133_v18, %v7338_v41  ;;  %4595 = vmatpush.bf16.msra.mxu3 %v8124_v40  ;;  %v10191_v40 = vld [vmem:[%s10664_s8] sm:$0x7] }
 0x93d   :  { %4247 = vmax.xlane.f32.xlu1 %v10102_v34  ;;  %4817 = vmatpush.bf16.msra.mxu2 %v7359_v30 }
 0x93e   :  { %4792 = vmatpush.bf16.msra.mxu0 %v7339_v14  ;;  %4805 = vmatpush.bf16.msrb.mxu1 %v7343_v3  ;;  %v8185_v14 = vld [vmem:[%s10662_s6 + $0xac] sm:$0xf]  ;;  %v8163_v3 = vld [vmem:[%s10665_s9 + $0x38] sm:$0xff] }
 0x93f   :  { %v8367_v6 = vpop.eup %8366 }
 0x940   :  { %v8369_v48 = vpop.eup %8368  ;;  %v4474_v60 = vadd.f32 1.0, %v8367_v6  ;;  %v2808_v6 = vadd.f32 %v9202_v61, %v9381_v44  ;;  %4942 = vmatpush.bf16.msrb.mxu3 %v8163_v3 }
 0x941   :  { %v4494_v50 = vadd.f32 1.0, %v8369_v48  ;;  %v4468_v12 = vpop.f32.mrf.mxu2  ;;  %4818 = vmatpush.bf16.msra.mxu2 %v7347_v15  ;;  %v7541_v15 = vld [vmem:[%s10662_s6 + $0x90] sm:$0xf] }
 0x942   :  { %8370 = vrcp.f32 %v4474_v60  ;;  %v4245_v8 = vpop.f32.mrf.mxu3  ;;  %v4486_v36 = vand.u32 2147483648, %v4474_v60  ;;  %v4484_v23 = vand.u32 2147483647, %v4474_v60  ;;  %vm4480_vm1 = vweird.f32 %v4474_v60  ;;  %v7553_v12 = vld [vmem:[%s10662_s6 + $0xa8] sm:$0xf] }
 0x943   :  { %8372 = vrcp.f32 %v4494_v50  ;;  %v4506_v17 = vand.u32 2147483648, %v4494_v50  ;;  %vm4500_vm5 = vweird.f32 %v4494_v50  ;;  %v4504_v10 = vand.u32 2147483647, %v4494_v50  ;;  %v8187_v8 = vld [vmem:[%s10662_s6 + $0xb8] sm:$0xf0] }
 0x944   :  { %v4487_v55 = vor.u32 1.1754944e-38, %v4486_v36  ;;  %vm4485_vm3 = vcmp.eq.f32.partialorder %v4484_v23, 8.507059e+37  ;;  %v7562_v29 = vor.u32 %v8187_v8, %v7561_v16  ;;  %v4652_v23 = vperm.slane %v10191_v40, 1  ;;  %v8160_v16 = vld [vmem:[%s10665_s9 + $0x20] sm:$0xff]  ;;  %v7505_v8 = vld [vmem:[%s10662_s6 + $0x48] sm:$0xf] }
 0x945   :  { %v4507_v48 = vor.u32 1.1754944e-38, %v4506_v17  ;;  %vm4505_vm7 = vcmp.eq.f32.partialorder %v4504_v10, 8.507059e+37  ;;  %v8161_v10 = vld [vmem:[%s10665_s9 + $0x28] sm:$0xff] }
 0x946   :  { %5165 = vmatpush.bf16.msrb.mxu2 %v7562_v29  ;;  %v8173_v29 = vld [vmem:[%s10662_s6 + $0x4c] sm:$0xf] }
 0x948   :  { %v8371_v0 = vpop.eup %8370 }
 0x949   :  { %v8373_v51 = vpop.eup %8372  ;;  %v4476_v33 = vmul.f32 %v8371_v0, %v4474_v60  ;;  %vm4481_vm0 = vweird.f32 %v8371_v0 }
 0x94a   :  { %v4496_v31 = vmul.f32 %v8373_v51, %v4494_v50  ;;  %vm4482_vm2 = vmor %vm4480_vm1, %vm4481_vm0  ;;  %vm4501_vm4 = vweird.f32 %v8373_v51 }
 0x94b   :  { %v4477_v5 = vsub.f32 1.0, %v4476_v33  ;;  %vm4502_vm6 = vmor %vm4500_vm5, %vm4501_vm4 }
 0x94c   :  { %v4497_v1 = vsub.f32 1.0, %v4496_v31  ;;  %v7543_v31 = vld [vmem:[%s10662_s6 + $0x9c] sm:$0xf0] }
 0x94d   :  { %v4478_v27 = vmul.f32 %v8371_v0, %v4477_v5  ;;  %v7549_v5 = vld [vmem:[%s10662_s6 + $0x98] sm:$0xf] }
 0x94e   :  { %v4498_v59 = vmul.f32 %v8373_v51, %v4497_v1  ;;  %v8184_v1 = vld [vmem:[%s10662_s6 + $0xa0] sm:$0xf0] }
 0x94f   :  { %v4479_v45 = vadd.f32 %v8371_v0, %v4478_v27  ;;  %v7550_v37 = vor.u32 %v8184_v1, %v7549_v5  ;;  %v4651_v27 = vperm.slane %v10191_v40, 0  ;;  %v8175_v5 = vld [vmem:[%s10662_s6 + $0x58] sm:$0xf0] }
 0x950   :  { %v4499_v42 = vadd.f32 %v8373_v51, %v4498_v59  ;;  %v8162_v59 = vld [vmem:[%s10665_s9 + $0x30] sm:$0xff] }
 0x951   :  { %v4483_v32 = vsel %vm4482_vm2, %v8371_v0, %v4479_v45  ;;  %v8183_v0 = vld [vmem:[%s10662_s6 + $0x98] sm:$0xf0]  ;;  %5166 = vmatpush.bf16.msrb.mxu2 %v7550_v37  ;;  %v7529_v45 = vld [vmem:[%s10662_s6 + $0x78] sm:$0xf]  ;;  %4943 = vmatpush.bf16.msrb.mxu3 %v8162_v59  ;;  %v7493_v59 = vld [vmem:[%s10662_s6 + $0x30] sm:$0xf] }
 0x952   :  { %v4488_v38 = vsel %vm4485_vm3, %v4487_v55, %v4483_v32  ;;  %v4503_v47 = vsel %vm4502_vm6, %v8373_v51, %v4499_v42  ;;  %v8182_v51 = vld [vmem:[%s10662_s6 + $0x94] sm:$0xf]  ;;  %v7542_v33 = vor.u32 %v8183_v0, %v7541_v15  ;;  %v8180_v55 = vld [vmem:[%s10662_s6 + $0x80] sm:$0xf0]  ;;  %v7537_v42 = vld [vmem:[%s10662_s6 + $0x80] sm:$0xf] }
 0x953   :  { %v4510_v53 = vmul.f32 %v4488_v38, %v4467_v39  ;;  %v4508_v60 = vsel %vm4505_vm7, %v4507_v48, %v4503_v47  ;;  %v7546_v36 = vor.u32 %v8182_v51, %v7543_v31  ;;  %v8179_v39 = vld [vmem:[%s10662_s6 + $0x7c] sm:$0xf]  ;;  %v7530_v32 = vor.u32 %v8180_v55, %v7529_v45  ;;  %v7531_v38 = vld [vmem:[%s10662_s6 + $0x84] sm:$0xf0]  ;;  %v7507_v51 = vld [vmem:[%s10662_s6 + $0x54] sm:$0xf0] }
 0x954   :  { %v4513_v22 = vsub.f32 1.0, %v4508_v60  ;;  %v4515_v49 = vmul.f32 %v4508_v60, %v9969_v25  ;;  %v8186_v25 = vld [vmem:[%s10662_s6 + $0xb0] sm:$0xf0]  ;;  %v7534_v17 = vor.u32 %v8179_v39, %v7531_v38  ;;  %v7517_v60 = vld [vmem:[%s10662_s6 + $0x60] sm:$0xf]  ;;  %v8159_v37 = vld [vmem:[%s10665_s9 + $0x18] sm:$0xff] }
 0x955   :  { %v4511_v20 = vadd.f32 %v4510_v53, %v2808_v6  ;;  %v7554_v63 = vor.u32 %v8186_v25, %v7553_v12  ;;  %v8181_v6 = vld [vmem:[%s10662_s6 + $0x88] sm:$0xf0]  ;;  %4944 = vmatpush.bf16.msrb.mxu3 %v8161_v10  ;;  %v8178_v12 = vld [vmem:[%s10662_s6 + $0x70] sm:$0xf0]  ;;  %v7513_v31 = vld [vmem:[%s10662_s6 + $0x50] sm:$0xf] }
 0x956   :  { %v7538_v53 = vor.u32 %v8181_v6, %v7537_v42  ;;  %v8171_v45 = vld [vmem:[%s10662_s6 + $0x38] sm:$0xf0]  ;;  %v8170_v55 = vld [vmem:[%s10662_s6 + $0x34] sm:$0xf]  ;;  %v7495_v42 = vld [vmem:[%s10662_s6 + $0x3c] sm:$0xf0] }
 0x957   :  { %8374 = vtanh.f32 %v4511_v20  ;;  %5139 = vmatpush.bf16.msrb.mxu0 %v7554_v63  ;;  %v2748_v20 = vadd.f32 %v9156_v21, %v9245_v43  ;;  %v7494_v38 = vor.u32 %v8171_v45, %v7493_v59  ;;  %v7501_v6 = vld [vmem:[%s10662_s6 + $0x38] sm:$0xf]  ;;  %v4653_v45 = vperm.slane %v10191_v40, 2 }
 0x958   :  { %5167 = vmatpush.bf16.msrb.mxu2 %v7538_v53  ;;  %v7498_v53 = vor.u32 %v8170_v55, %v7495_v42 }
 0x959   :  { %4945 = vmatpush.bf16.msrb.mxu3 %v8160_v16 }
 0x95b   :  { %5140 = vmatpush.bf16.msrb.mxu0 %v7542_v33  ;;  %v7510_v33 = vor.u32 %v8173_v29, %v7507_v51 }
 0x95d   :  { %v8375_v11 = vpop.eup %8374  ;;  %4946 = vmatpush.bf16.msrb.mxu3 %v8159_v37 }
 0x95e   :  { %v4514_v30 = vmul.f32 %v8375_v11, %v4513_v22  ;;  %v8177_v22 = vld [vmem:[%s10662_s6 + $0x68] sm:$0xf0]  ;;  %v8176_v11 = vld [vmem:[%s10662_s6 + $0x64] sm:$0xf] }
 0x95f   :  { %5141 = vmatpush.bf16.msrb.mxu0 %v7530_v32 }
 0x960   :  { %v10164_v41 = vadd.f32 %v4515_v49, %v4514_v30  ;;  %v2777_v30 = vadd.f32 %v9158_v28, %v9263_v4 }
 0x962   :  { %v4616_v61 = vpack.c.bf16 %v10164_v41, %v10164_v41  ;;  %v4518_v18 = vadd.f32 %v10164_v41, %v8873_v26  ;;  %v7555_v26 = vld [vmem:[%s10662_s6 + $0xb4] sm:$0xf0] }
 0x963   :  { %v7558_v62 = vor.u32 %v8185_v14, %v7555_v26  ;;  %v8242_v26 = vld [vmem:[#allocation14] ss:$0 sm:$0xff] }
 0x964   :  { %4793 = vmatmul.bf16.vlgmr.msra.gmra.mxu0 %v4616_v61  ;;  %4806 = vmatmul.bf16.vlgmr.msrb.gmra.mxu1 %v4616_v61  ;;  %v4519_v50 = vpack.c.bf16 %v4518_v18, %v4518_v18  ;;  %v7519_v18 = vld [vmem:[%s10662_s6 + $0x6c] sm:$0xf0] }
 0x965   :  { %4819 = vmatmul.bf16.vlgmr.msra.gmra.mxu2 %v4616_v61  ;;  %5152 = vmatpush.bf16.msra.mxu1 %v7558_v62  ;;  %v7518_v61 = vor.u32 %v8177_v22, %v7517_v60  ;;  %v7522_v25 = vor.u32 %v8176_v11, %v7519_v18  ;;  %v8174_v62 = vld [vmem:[%s10662_s6 + $0x50] sm:$0xf0]  ;;  %v8167_v60 = vld [vmem:[%s10662_s6 + $0x1c] sm:$0xf] }
 0x966   :  { %4596 = vmatmul.bf16.vlgmr.msra.gmra.mxu3 %v4519_v50  ;;  %v7525_v50 = vld [vmem:[%s10662_s6 + $0x68] sm:$0xf]  ;;  %v7506_v0 = vor.u32 %v8174_v62, %v7505_v8  ;;  %v8164_v8 = vld [vmem:[%s10662_s6 + $0x4] sm:$0xf]  ;;  %v7471_v62 = vld [vmem:[%s10662_s6 + $0xc] sm:$0xf0] }
 0x967   :  { %v7526_v14 = vor.u32 %v8178_v12, %v7525_v50  ;;  %5142 = vmatpush.bf16.msrb.mxu0 %v7518_v61  ;;  %v7474_v51 = vor.u32 %v8164_v8, %v7471_v62 }
 0x969   :  { %5153 = vmatpush.bf16.msra.mxu1 %v7546_v36  ;;  %5168 = vmatpush.bf16.msrb.mxu2 %v7526_v14  ;;  %v7514_v36 = vor.u32 %v8175_v5, %v7513_v31  ;;  %v7469_v14 = vld [vmem:[%s10662_s6] sm:$0xf] }
 0x96b   :  { %5143 = vmatpush.bf16.msrb.mxu0 %v7506_v0  ;;  %v8156_v0 = vld [vmem:[%s10665_s9] sm:$0xff] }
 0x96d   :  { %5154 = vmatpush.bf16.msra.mxu1 %v7534_v17  ;;  %5169 = vmatpush.bf16.msrb.mxu2 %v7514_v36  ;;  %v8172_v17 = vld [vmem:[%s10662_s6 + $0x40] sm:$0xf0] }
 0x96e   :  { %v7502_v10 = vor.u32 %v8172_v17, %v7501_v6 }
 0x96f   :  { %5144 = vmatpush.bf16.msrb.mxu0 %v7494_v38 }
 0x971   :  { %5155 = vmatpush.bf16.msra.mxu1 %v7522_v25  ;;  %5170 = vmatpush.bf16.msrb.mxu2 %v7502_v10  ;;  %v8157_v25 = vld [vmem:[%s10665_s9 + $0x8] sm:$0xff] }
 0x975   :  { %5156 = vmatpush.bf16.msra.mxu1 %v7510_v33 }
 0x979   :  { %5157 = vmatpush.bf16.msra.mxu1 %v7498_v53 }
 0x9e1   :  { %v4794_v47 = vpop.f32.mrf.mxu0  ;;  %v4807_v48 = vpop.f32.mrf.mxu1 }
 0x9e2   :  { %v4795_v21 = vadd.f32 %v4794_v47, %v4651_v27  ;;  %v4808_v49 = vadd.f32 %v4807_v48, %v4652_v23  ;;  %v7481_v47 = vld [vmem:[%s10662_s6 + $0x18] sm:$0xf]  ;;  %v8168_v48 = vld [vmem:[%s10662_s6 + $0x20] sm:$0xf0] }
 0x9e3   :  { %v7482_v11 = vor.u32 %v8168_v48, %v7481_v47  ;;  %v2806_v47 = vadd.f32 %v9184_v24, %v9381_v44 }
 0x9e4   :  { %v4824_v63 = vadd.f32 %v4795_v21, %v2748_v20  ;;  %v4844_v28 = vadd.f32 %v4808_v49, %v2777_v30  ;;  %v8158_v20 = vld [vmem:[%s10665_s9 + $0x10] sm:$0xff]  ;;  %v7483_v30 = vld [vmem:[%s10662_s6 + $0x24] sm:$0xf0]  ;;  %v7489_v21 = vld [vmem:[%s10662_s6 + $0x20] sm:$0xf] }
 0x9e5   :  { %4947 = vmatpush.bf16.msrb.mxu3 %v8158_v20  ;;  %v8169_v49 = vld [vmem:[%s10662_s6 + $0x28] sm:$0xf0]  ;;  %v7486_v50 = vor.u32 %v8167_v60, %v7483_v30  ;;  %5145 = vmatpush.bf16.msrb.mxu0 %v7482_v11 }
 0x9e6   :  { %v7432_v3 = vmul.f32 -1.442695, %v4824_v63  ;;  %v7433_v15 = vmul.f32 -1.442695, %v4844_v28  ;;  %v7490_v12 = vor.u32 %v8169_v49, %v7489_v21  ;;  %v8165_v63 = vld [vmem:[%s10662_s6 + $0x8] sm:$0xf0] }
 0x9e7   :  { %v7470_v16 = vor.u32 %v8165_v63, %v7469_v14  ;;  %5158 = vmatpush.bf16.msra.mxu1 %v7486_v50  ;;  %v7684_v14 = vld [vmem:[%s10662_s6 + $0xa8] sm:$0xf]  ;;  %v8217_v63 = vld [vmem:[%s10662_s6 + $0xac] sm:$0xf] }
 0x9e8   :  { %8376 = vpow2.f32 %v7432_v3  ;;  %v10283_v1 = vpop.f32.mrf.mxu2  ;;  %v7477_v3 = vld [vmem:[%s10662_s6 + $0x8] sm:$0xf]  ;;  %5171 = vmatpush.bf16.msrb.mxu2 %v7490_v12 }
 0x9e9   :  { %8378 = vpow2.f32 %v7433_v15  ;;  %v4597_v27 = vpop.f32.mrf.mxu3  ;;  %v4796_v23 = vpop.f32.mrf.mxu0  ;;  %4948 = vmatpush.bf16.msrb.mxu3 %v8157_v25  ;;  %v8166_v15 = vld [vmem:[%s10662_s6 + $0x10] sm:$0xf0]  ;;  %5146 = vmatpush.bf16.msrb.mxu0 %v7470_v16  ;;  %v4821_v17 = vadd.f32 %v10283_v1, %v4653_v45  ;;  %v8219_v16 = vld [vmem:[%s10662_s6 + $0xb8] sm:$0xf0] }
 0x9ea   :  { %v10297_v39 = vadd.f32 %v8242_v26, %v4597_v27  ;;  %v4809_v32 = vpop.f32.mrf.mxu1  ;;  %v7478_v33 = vor.u32 %v8166_v15, %v7477_v3  ;;  %v8195_v3 = vld [vmem:[%s10665_s9 + $0x38] sm:$0xff]  ;;  %v7672_v15 = vld [vmem:[%s10662_s6 + $0x90] sm:$0xf] }
 0x9eb   :  { %5159 = vmatpush.bf16.msra.mxu1 %v7474_v51  ;;  %v8214_v51 = vld [vmem:[%s10662_s6 + $0x94] sm:$0xf] }
 0x9ec   :  { %4601 = vmax.xlane.f32.xlu2 %v10297_v39  ;;  %5172 = vmatpush.bf16.msrb.mxu2 %v7478_v33  ;;  %v8194_v45 = vld [vmem:[%s10665_s9 + $0x30] sm:$0xff] }
 0x9ed   :  { %4949 = vmatpush.bf16.msrb.mxu3 %v8156_v0  ;;  %v8215_v0 = vld [vmem:[%s10662_s6 + $0x98] sm:$0xf0] }
 0x9ee   :  { %v8377_v22 = vpop.eup %8376  ;;  %v7673_v33 = vor.u32 %v8215_v0, %v7672_v15  ;;  %v7638_v0 = vld [vmem:[%s10662_s6 + $0x54] sm:$0xf0] }
 0x9ef   :  { %v8379_v61 = vpop.eup %8378  ;;  %v4828_v18 = vadd.f32 1.0, %v8377_v22 }
 0x9f0   :  { %v4848_v28 = vadd.f32 1.0, %v8379_v61  ;;  %v4822_v26 = vpop.f32.mrf.mxu2 }
 0x9f1   :  { %8380 = vrcp.f32 %v4828_v18  ;;  %v4599_v29 = vpop.f32.mrf.mxu3  ;;  %v4840_v59 = vand.u32 2147483648, %v4828_v18  ;;  %v4838_v32 = vand.u32 2147483647, %v4828_v18  ;;  %vm4834_vm9 = vweird.f32 %v4828_v18  ;;  %v7692_v26 = vld [vmem:[%s10662_s6 + $0xb0] sm:$0xf]  ;;  %5296 = vmatpush.bf16.msra.mxu3 %v8195_v3 }
 0x9f2   :  { %8382 = vrcp.f32 %v4848_v28  ;;  %v4860_v48 = vand.u32 2147483648, %v4848_v28  ;;  %vm4854_vm13 = vweird.f32 %v4848_v28  ;;  %v4858_v60 = vand.u32 2147483647, %v4848_v28  ;;  %v10386_v29 = vld [vmem:[%s10664_s8] sm:$0x7] }
 0x9f3   :  { %v4841_v6 = vor.u32 1.1754944e-38, %v4840_v59  ;;  %vm4839_vm11 = vcmp.eq.f32.partialorder %v4838_v32, 8.507059e+37  ;;  %v7693_v62 = vor.u32 %v8219_v16, %v7692_v26  ;;  %v5006_v59 = vperm.slane %v10386_v29, 1  ;;  %v8212_v32 = vld [vmem:[%s10662_s6 + $0x80] sm:$0xf0] }
 0x9f4   :  { %v4861_v30 = vor.u32 1.1754944e-38, %v4860_v48  ;;  %vm4859_vm15 = vcmp.eq.f32.partialorder %v4858_v60, 8.507059e+37  ;;  %v8193_v48 = vld [vmem:[%s10665_s9 + $0x28] sm:$0xff]  ;;  %v8192_v26 = vld [vmem:[%s10665_s9 + $0x20] sm:$0xff] }
 0x9f5   :  { %5519 = vmatpush.bf16.msra.mxu2 %v7693_v62  ;;  %5297 = vmatpush.bf16.msra.mxu3 %v8194_v45  ;;  %v7636_v16 = vld [vmem:[%s10662_s6 + $0x48] sm:$0xf]  ;;  %v7624_v45 = vld [vmem:[%s10662_s6 + $0x30] sm:$0xf] }
 0x9f7   :  { %v8381_v31 = vpop.eup %8380 }
 0x9f8   :  { %v8383_v5 = vpop.eup %8382  ;;  %v4830_v36 = vmul.f32 %v8381_v31, %v4828_v18  ;;  %vm4835_vm8 = vweird.f32 %v8381_v31 }
 0x9f9   :  { %v4850_v37 = vmul.f32 %v8383_v5, %v4848_v28  ;;  %vm4836_vm10 = vmor %vm4834_vm9, %vm4835_vm8  ;;  %vm4855_vm12 = vweird.f32 %v8383_v5  ;;  %5298 = vmatpush.bf16.msra.mxu3 %v8193_v48 }
 0x9fa   :  { %v4831_v27 = vsub.f32 1.0, %v4830_v36  ;;  %vm4856_vm14 = vmor %vm4854_vm13, %vm4855_vm12  ;;  %v8216_v36 = vld [vmem:[%s10662_s6 + $0xa0] sm:$0xf0] }
 0x9fb   :  { %v4851_v23 = vsub.f32 1.0, %v4850_v37 }
 0x9fc   :  { %v4832_v55 = vmul.f32 %v8381_v31, %v4831_v27 }
 0x9fd   :  { %v4852_v38 = vmul.f32 %v8383_v5, %v4851_v23  ;;  %v5005_v23 = vperm.slane %v10386_v29, 0  ;;  %5299 = vmatpush.bf16.msra.mxu3 %v8192_v26 }
 0x9fe   :  { %v4833_v42 = vadd.f32 %v8381_v31, %v4832_v55  ;;  %v7660_v55 = vld [vmem:[%s10662_s6 + $0x78] sm:$0xf] }
 0x9ff   :  { %v4853_v20 = vadd.f32 %v8383_v5, %v4852_v38  ;;  %v8211_v38 = vld [vmem:[%s10662_s6 + $0x7c] sm:$0xf] }
 0xa00   :  { %v4837_v53 = vsel %vm4836_vm10, %v8381_v31, %v4833_v42  ;;  %v7674_v31 = vld [vmem:[%s10662_s6 + $0x9c] sm:$0xf0]  ;;  %v7661_v42 = vor.u32 %v8212_v32, %v7660_v55  ;;  %v8203_v55 = vld [vmem:[%s10662_s6 + $0x38] sm:$0xf0]  ;;  %v8202_v32 = vld [vmem:[%s10662_s6 + $0x34] sm:$0xf] }
 0xa01   :  { %v4842_v10 = vsel %vm4839_vm11, %v4841_v6, %v4837_v53  ;;  %v4857_v11 = vsel %vm4856_vm14, %v8383_v5, %v4853_v20  ;;  %v7680_v5 = vld [vmem:[%s10662_s6 + $0x98] sm:$0xf]  ;;  %v7677_v37 = vor.u32 %v8214_v51, %v7674_v31  ;;  %v7662_v6 = vld [vmem:[%s10662_s6 + $0x84] sm:$0xf0]  ;;  %v8213_v53 = vld [vmem:[%s10662_s6 + $0x88] sm:$0xf0] }
 0xa02   :  { %v4864_v40 = vmul.f32 %v4842_v10, %v4821_v17  ;;  %v4862_v21 = vsel %vm4859_vm15, %v4861_v30, %v4857_v11  ;;  %v7681_v27 = vor.u32 %v8216_v36, %v7680_v5  ;;  %v7668_v17 = vld [vmem:[%s10662_s6 + $0x80] sm:$0xf]  ;;  %v7665_v10 = vor.u32 %v8211_v38, %v7662_v6  ;;  %v8209_v30 = vld [vmem:[%s10662_s6 + $0x68] sm:$0xf0]  ;;  %v8207_v31 = vld [vmem:[%s10662_s6 + $0x58] sm:$0xf0] }
 0xa03   :  { %v4867_v1 = vsub.f32 1.0, %v4862_v21  ;;  %v4869_v18 = vmul.f32 %v4862_v21, %v10164_v41  ;;  %v8218_v41 = vld [vmem:[%s10662_s6 + $0xb0] sm:$0xf0]  ;;  %v7669_v20 = vor.u32 %v8213_v53, %v7668_v17  ;;  %v7648_v11 = vld [vmem:[%s10662_s6 + $0x60] sm:$0xf]  ;;  %v7625_v17 = vor.u32 %v8203_v55, %v7624_v45 }
 0xa04   :  { %v4865_v22 = vadd.f32 %v4864_v40, %v2806_v47  ;;  %v7685_v28 = vor.u32 %v8218_v41, %v7684_v14  ;;  %5520 = vmatpush.bf16.msra.mxu2 %v7681_v27  ;;  %v3186_v47 = vpop.xlane.xlu0 %3185  ;;  %v2745_v40 = vadd.f32 %v9150_v57, %v9245_v43  ;;  %v8208_v21 = vld [vmem:[%s10662_s6 + $0x64] sm:$0xf]  ;;  %v10448_v57 = vpop.xlane.xlu1 %3893  ;;  %v8191_v27 = vld [vmem:[%s10665_s9 + $0x18] sm:$0xff]  ;;  %v7626_v53 = vld [vmem:[%s10662_s6 + $0x3c] sm:$0xf0] }
 0xa05   :  { %v10460_v41 = vsub.f32 %v9517_v19, %v3186_v47  ;;  %v8205_v19 = vld [vmem:[%s10662_s6 + $0x4c] sm:$0xf]  ;;  %5300 = vmatpush.bf16.msra.mxu3 %v8191_v27  ;;  %v7629_v47 = vor.u32 %v8202_v32, %v7626_v53 }
 0xa06   :  { %8384 = vtanh.f32 %v4865_v22  ;;  %5493 = vmatpush.bf16.msra.mxu0 %v7685_v28  ;;  %v7641_v51 = vor.u32 %v8205_v19, %v7638_v0  ;;  %v8188_v0 = vld [vmem:[%s10665_s9] sm:$0xff] }
 0xa07   :  { %v3188_v5 = vmul.f32 1.442695, %v10460_v41 }
 0xa08   :  { %5521 = vmatpush.bf16.msra.mxu2 %v7669_v20  ;;  %v8204_v20 = vld [vmem:[%s10662_s6 + $0x40] sm:$0xf0] }
 0xa0a   :  { %5494 = vmatpush.bf16.msra.mxu0 %v7673_v33  ;;  %v7644_v33 = vld [vmem:[%s10662_s6 + $0x50] sm:$0xf] }
 0xa0c   :  { %v8385_v49 = vpop.eup %8384  ;;  %v4248_v38 = vpop.xlane.xlu1 %4247 }
 0xa0d   :  { %v4868_v61 = vmul.f32 %v8385_v49, %v4867_v1  ;;  %v2774_v1 = vadd.f32 %v9152_v58, %v9263_v4 }
 0xa0e   :  { %5495 = vmatpush.bf16.msra.mxu0 %v7661_v42 }
 0xa0f   :  { %v10359_v50 = vadd.f32 %v4869_v18, %v4868_v61  ;;  %v7649_v18 = vor.u32 %v8209_v30, %v7648_v11  ;;  %v8200_v11 = vld [vmem:[%s10662_s6 + $0x20] sm:$0xf0]  ;;  %v8199_v30 = vld [vmem:[%s10662_s6 + $0x1c] sm:$0xf] }
 0xa11   :  { %v4970_v24 = vpack.c.bf16 %v10359_v50, %v10359_v50  ;;  %v4872_v12 = vadd.f32 %v10359_v50, %v8847_v7  ;;  %v7686_v7 = vld [vmem:[%s10662_s6 + $0xb4] sm:$0xf0] }
 0xa12   :  { %v7689_v8 = vor.u32 %v8217_v63, %v7686_v7  ;;  %v8243_v7 = vld [vmem:[#allocation14] ss:$0 sm:$0xff]  ;;  %5496 = vmatpush.bf16.msra.mxu0 %v7649_v18 }
 0xa13   :  { %5147 = vmatmul.bf16.vlgmr.msrb.gmra.mxu0 %v4970_v24  ;;  %5160 = vmatmul.bf16.vlgmr.msra.gmra.mxu1 %v4970_v24  ;;  %v4873_v25 = vpack.c.bf16 %v4872_v12, %v4872_v12  ;;  %v7656_v12 = vld [vmem:[%s10662_s6 + $0x68] sm:$0xf] }
 0xa14   :  { %5173 = vmatmul.bf16.vlgmr.msrb.gmra.mxu2 %v4970_v24  ;;  %5506 = vmatpush.bf16.msrb.mxu1 %v7689_v8  ;;  %v7650_v24 = vld [vmem:[%s10662_s6 + $0x6c] sm:$0xf0]  ;;  %v8206_v8 = vld [vmem:[%s10662_s6 + $0x50] sm:$0xf0] }
 0xa15   :  { %4950 = vmatmul.bf16.vlgmr.msrb.gmra.mxu3 %v4873_v25  ;;  %v8210_v25 = vld [vmem:[%s10662_s6 + $0x70] sm:$0xf0]  ;;  %v7653_v14 = vor.u32 %v8208_v21, %v7650_v24  ;;  %v7637_v15 = vor.u32 %v8206_v8, %v7636_v16  ;;  %v8196_v16 = vld [vmem:[%s10662_s6 + $0x4] sm:$0xf]  ;;  %v7602_v8 = vld [vmem:[%s10662_s6 + $0xc] sm:$0xf0] }
 0xa16   :  { %v7657_v58 = vor.u32 %v8210_v25, %v7656_v12 }
 0xa17   :  { %5497 = vmatpush.bf16.msra.mxu0 %v7637_v15  ;;  %v8198_v15 = vld [vmem:[%s10662_s6 + $0x10] sm:$0xf0] }
 0xa18   :  { %5507 = vmatpush.bf16.msrb.mxu1 %v7677_v37  ;;  %5522 = vmatpush.bf16.msra.mxu2 %v7657_v58  ;;  %v7645_v37 = vor.u32 %v8207_v31, %v7644_v33  ;;  %v7600_v58 = vld [vmem:[%s10662_s6] sm:$0xf]  ;;  %v7605_v33 = vor.u32 %v8196_v16, %v7602_v8 }
 0xa1b   :  { %5498 = vmatpush.bf16.msra.mxu0 %v7625_v17 }
 0xa1c   :  { %5508 = vmatpush.bf16.msrb.mxu1 %v7665_v10  ;;  %5523 = vmatpush.bf16.msra.mxu2 %v7645_v37  ;;  %v7632_v10 = vld [vmem:[%s10662_s6 + $0x38] sm:$0xf] }
 0xa1d   :  { %v7633_v48 = vor.u32 %v8204_v20, %v7632_v10 }
 0xa20   :  { %5509 = vmatpush.bf16.msrb.mxu1 %v7653_v14  ;;  %5524 = vmatpush.bf16.msra.mxu2 %v7633_v48  ;;  %v8189_v14 = vld [vmem:[%s10665_s9 + $0x8] sm:$0xff] }
 0xa24   :  { %5510 = vmatpush.bf16.msrb.mxu1 %v7641_v51 }
 0xa28   :  { %5511 = vmatpush.bf16.msrb.mxu1 %v7629_v47 }
 0xa90   :  { %v5148_v60 = vpop.f32.mrf.mxu0  ;;  %v5161_v22 = vpop.f32.mrf.mxu1 }
 0xa91   :  { %v5149_v49 = vadd.f32 %v5148_v60, %v5005_v23  ;;  %v5162_v61 = vadd.f32 %v5161_v22, %v5006_v59  ;;  %v10514_v60 = vsub.f32 %v10102_v34, %v4248_v38  ;;  %v7612_v22 = vld [vmem:[%s10662_s6 + $0x18] sm:$0xf]  ;;  %v7614_v34 = vld [vmem:[%s10662_s6 + $0x24] sm:$0xf0]  ;;  %v5007_v38 = vperm.slane %v10386_v29, 2 }
 0xa92   :  { %v7617_v12 = vor.u32 %v8199_v30, %v7614_v34 }
 0xa93   :  { %v5178_v63 = vadd.f32 %v5149_v49, %v2745_v40  ;;  %v5198_v28 = vadd.f32 %v5162_v61, %v2774_v1  ;;  %v8190_v40 = vld [vmem:[%s10665_s9 + $0x10] sm:$0xff]  ;;  %v7613_v1 = vor.u32 %v8200_v11, %v7612_v22  ;;  %v7620_v49 = vld [vmem:[%s10662_s6 + $0x20] sm:$0xf]  ;;  %v8201_v61 = vld [vmem:[%s10662_s6 + $0x28] sm:$0xf0]  ;;  %v2803_v11 = vadd.f32 %v9178_v13, %v9381_v44 }
 0xa94   :  { %5301 = vmatpush.bf16.msra.mxu3 %v8190_v40  ;;  %v7621_v25 = vor.u32 %v8201_v61, %v7620_v49  ;;  %v4250_v19 = vmul.f32 1.442695, %v10514_v60  ;;  %5512 = vmatpush.bf16.msrb.mxu1 %v7617_v12 }
 0xa95   :  { %v7563_v62 = vmul.f32 -1.442695, %v5178_v63  ;;  %v7564_v3 = vmul.f32 -1.442695, %v5198_v28  ;;  %v8197_v63 = vld [vmem:[%s10662_s6 + $0x8] sm:$0xf0]  ;;  %5499 = vmatpush.bf16.msra.mxu0 %v7613_v1 }
 0xa96   :  { %v7601_v26 = vor.u32 %v8197_v63, %v7600_v58  ;;  %5525 = vmatpush.bf16.msra.mxu2 %v7621_v25  ;;  %v4602_v63 = vpop.xlane.xlu2 %4601 }
 0xa97   :  { %8386 = vpow2.f32 %v7563_v62  ;;  %v10484_v36 = vpop.f32.mrf.mxu2 }
 0xa98   :  { %8388 = vpow2.f32 %v7564_v3  ;;  %v4951_v23 = vpop.f32.mrf.mxu3  ;;  %v5150_v59 = vpop.f32.mrf.mxu0  ;;  %v7608_v3 = vld [vmem:[%s10662_s6 + $0x8] sm:$0xf]  ;;  %5302 = vmatpush.bf16.msra.mxu3 %v8189_v14  ;;  %5513 = vmatpush.bf16.msrb.mxu1 %v7605_v33  ;;  %v5175_v47 = vadd.f32 %v10484_v36, %v5007_v38 }
 0xa99   :  { %v10498_v42 = vadd.f32 %v8243_v7, %v4951_v23  ;;  %v5163_v6 = vpop.f32.mrf.mxu1  ;;  %8390 = vpow2.f32 %v3188_v5  ;;  %v7609_v31 = vor.u32 %v8198_v15, %v7608_v3  ;;  %5500 = vmatpush.bf16.msra.mxu0 %v7601_v26  ;;  %v8227_v3 = vld [vmem:[%s10665_s9 + $0x38] sm:$0xff]  ;;  %v8226_v15 = vld [vmem:[%s10665_s9 + $0x30] sm:$0xff] }
 0xa9b   :  { %4955 = vmax.xlane.f32.xlu2 %v10498_v42  ;;  %5526 = vmatpush.bf16.msra.mxu2 %v7609_v31 }
 0xa9c   :  { %5303 = vmatpush.bf16.msra.mxu3 %v8188_v0 }
 0xa9d   :  { %v8387_v21 = vpop.eup %8386 }
 0xa9e   :  { %v8389_v18 = vpop.eup %8388  ;;  %v5182_v24 = vadd.f32 1.0, %v8387_v21 }
 0xa9f   :  { %v5202_v28 = vadd.f32 1.0, %v8389_v18  ;;  %v5176_v7 = vpop.f32.mrf.mxu2  ;;  %v8391_v51 = vpop.eup %8390 }
 0xaa0   :  { %8392 = vrcp.f32 %v5182_v24  ;;  %v4953_v62 = vpop.f32.mrf.mxu3  ;;  %v5194_v32 = vand.u32 2147483648, %v5182_v24  ;;  %v5192_v17 = vand.u32 2147483647, %v5182_v24  ;;  %vm5188_vm1 = vweird.f32 %v5182_v24  ;;  %5650 = vmatpush.bf16.msrb.mxu3 %v8227_v3 }
 0xaa1   :  { %8394 = vrcp.f32 %v5202_v28  ;;  %v5214_v29 = vand.u32 2147483648, %v5202_v28  ;;  %vm5208_vm5 = vweird.f32 %v5202_v28  ;;  %v5212_v21 = vand.u32 2147483647, %v5202_v28 }
 0xaa2   :  { %8396 = vpow2.f32 %v4250_v19  ;;  %v5195_v20 = vor.u32 1.1754944e-38, %v5194_v32  ;;  %vm5193_vm3 = vcmp.eq.f32.partialorder %v5192_v17, 8.507059e+37  ;;  %v8224_v32 = vld [vmem:[%s10665_s9 + $0x20] sm:$0xff] }
 0xaa3   :  { %3190 = vadd.xlane.f32.xlu2 %v8391_v51  ;;  %v5215_v49 = vor.u32 1.1754944e-38, %v5214_v29  ;;  %vm5213_vm7 = vcmp.eq.f32.partialorder %v5212_v21, 8.507059e+37  ;;  %v8225_v51 = vld [vmem:[%s10665_s9 + $0x28] sm:$0xff] }
 0xaa4   :  { %5651 = vmatpush.bf16.msrb.mxu3 %v8226_v15  ;;  %v8221_v29 = vld [vmem:[%s10665_s9 + $0x8] sm:$0xff]  ;;  %v2801_v15 = vadd.f32 %v9166_v35, %v9381_v44 }
 0xaa6   :  { %v8393_v5 = vpop.eup %8392 }
 0xaa7   :  { %v8395_v37 = vpop.eup %8394  ;;  %v5184_v27 = vmul.f32 %v8393_v5, %v5182_v24  ;;  %vm5189_vm0 = vweird.f32 %v8393_v5 }
 0xaa8   :  { %v5204_v23 = vmul.f32 %v8395_v37, %v5202_v28  ;;  %v8397_v45 = vpop.eup %8396  ;;  %vm5190_vm2 = vmor %vm5188_vm1, %vm5189_vm0  ;;  %vm5209_vm4 = vweird.f32 %v8395_v37  ;;  %5652 = vmatpush.bf16.msrb.mxu3 %v8225_v51 }
 0xaa9   :  { %v5185_v59 = vsub.f32 1.0, %v5184_v27  ;;  %vm5210_vm6 = vmor %vm5208_vm5, %vm5209_vm4  ;;  %v3540_v27 = vpop.xlane.xlu0 %3539 }
 0xaaa   :  { %v5205_v55 = vsub.f32 1.0, %v5204_v23  ;;  %v10604_v38 = vsub.f32 %v9712_v2, %v3540_v27  ;;  %v8222_v2 = vld [vmem:[%s10665_s9 + $0x10] sm:$0xff] }
 0xaab   :  { %v5186_v6 = vmul.f32 %v8393_v5, %v5185_v59  ;;  %4252 = vadd.xlane.f32.xlu2 %v8397_v45 }
 0xaac   :  { %v5206_v53 = vmul.f32 %v8395_v37, %v5205_v55  ;;  %5653 = vmatpush.bf16.msrb.mxu3 %v8224_v32 }
 0xaad   :  { %v5187_v10 = vadd.f32 %v8393_v5, %v5186_v6 }
 0xaae   :  { %v5207_v22 = vadd.f32 %v8395_v37, %v5206_v53  ;;  %v8244_v53 = vld [vmem:[#allocation14] ss:$0 sm:$0xff] }
 0xaaf   :  { %v5191_v48 = vsel %vm5190_vm2, %v8393_v5, %v5187_v10  ;;  %v2743_v5 = vadd.f32 %v9146_v52, %v9245_v43  ;;  %v3542_v43 = vmul.f32 1.442695, %v10604_v38 }
 0xab0   :  { %v5196_v40 = vsel %vm5193_vm3, %v5195_v20, %v5191_v48  ;;  %v5211_v34 = vsel %vm5210_vm6, %v8395_v37, %v5207_v22  ;;  %v2772_v37 = vadd.f32 %v9148_v54, %v9263_v4  ;;  %v8223_v54 = vld [vmem:[%s10665_s9 + $0x18] sm:$0xff]  ;;  %v10617_v48 = vsub.f32 %v10297_v39, %v4602_v63  ;;  %v8220_v39 = vld [vmem:[%s10665_s9] sm:$0xff] }
 0xab1   :  { %v5218_v30 = vmul.f32 %v5196_v40, %v5175_v47  ;;  %v5216_v61 = vsel %vm5213_vm7, %v5215_v49, %v5211_v34  ;;  %5654 = vmatpush.bf16.msrb.mxu3 %v8223_v54 }
 0xab2   :  { %v5221_v36 = vsub.f32 1.0, %v5216_v61  ;;  %v5223_v12 = vmul.f32 %v5216_v61, %v10359_v50 }
 0xab3   :  { %v5219_v1 = vadd.f32 %v5218_v30, %v2803_v11 }
 0xab5   :  { %8398 = vtanh.f32 %v5219_v1  ;;  %5655 = vmatpush.bf16.msrb.mxu3 %v8222_v2  ;;  %v4604_v1 = vmul.f32 1.442695, %v10617_v48 }
 0xab9   :  { %5656 = vmatpush.bf16.msrb.mxu3 %v8221_v29 }
 0xabb   :  { %v8399_v18 = vpop.eup %8398 }
 0xabc   :  { %v5222_v24 = vmul.f32 %v8399_v18, %v5221_v36 }
 0xabd   :  { %5657 = vmatpush.bf16.msrb.mxu3 %v8220_v39 }
 0xabe   :  { %v10564_v25 = vadd.f32 %v5223_v12, %v5222_v24 }
 0xac0   :  { %v5324_v13 = vpack.c.bf16 %v10564_v25, %v10564_v25  ;;  %v5226_v14 = vadd.f32 %v10564_v25, %v8830_v9 }
 0xac2   :  { %5501 = vmatmul.bf16.vlgmr.msra.gmra.mxu0 %v5324_v13  ;;  %5514 = vmatmul.bf16.vlgmr.msrb.gmra.mxu1 %v5324_v13  ;;  %v5227_v58 = vpack.c.bf16 %v5226_v14, %v5226_v14 }
 0xac3   :  { %5527 = vmatmul.bf16.vlgmr.msra.gmra.mxu2 %v5324_v13 }
 0xac4   :  { %5304 = vmatmul.bf16.vlgmr.msra.gmra.mxu3 %v5227_v58 }
 0xb0e   :  { %v10570_v28 = vpop.xlane.xlu2 %4955 }
 0xb16   :  { %v3191_v7 = vpop.xlane.xlu2 %3190 }
 0xb17   :  { %8400 = vlog2.f32 %v3191_v7 }
 0xb1d   :  { %v8401_v26 = vpop.eup %8400 }
 0xb1e   :  { %v3193_v50 = vmul.f32 0.6931472, %v8401_v26  ;;  %v4253_v16 = vpop.xlane.xlu2 %4252 }
 0xb1f   :  { %8402 = vlog2.f32 %v4253_v16 }
 0xb20   :  { %v3194_v8 = vsub.f32 %v10460_v41, %v3193_v50  ;;  %v10586_v41 = vld [vmem:[%s10664_s8] sm:$0x7] }
 0xb21   :  { %v5360_v0 = vperm.slane %v10586_v41, 1  ;;  %v5361_v63 = vperm.slane %v10586_v41, 2 }
 0xb22   :  { %6811 = vst [vmem:[%s10667_s11 + $0x38] sm:$0xff] %v3194_v8 }
 0xb25   :  { %v8403_v9 = vpop.eup %8402 }
 0xb26   :  { %v4255_v19 = vmul.f32 0.6931472, %v8403_v9 }
 0xb28   :  { %v4256_v62 = vsub.f32 %v10514_v60, %v4255_v19  ;;  %v5359_v60 = vperm.slane %v10586_v41, 0 }
 0xb2a   :  { %7204 = vst [vmem:[%s10667_s11 + $0x20] sm:$0xff] %v4256_v62 }
 0xb3f   :  { %v5502_v33 = vpop.f32.mrf.mxu0  ;;  %v5515_v31 = vpop.f32.mrf.mxu1 }
 0xb40   :  { %v5503_v23 = vadd.f32 %v5502_v33, %v5359_v60  ;;  %v5516_v59 = vadd.f32 %v5515_v31, %v5360_v0 }
 0xb42   :  { %v5532_v45 = vadd.f32 %v5503_v23, %v2743_v5  ;;  %v5552_v55 = vadd.f32 %v5516_v59, %v2772_v37 }
 0xb44   :  { %v7694_v6 = vmul.f32 -1.442695, %v5532_v45  ;;  %v7695_v17 = vmul.f32 -1.442695, %v5552_v55 }
 0xb46   :  { %8404 = vpow2.f32 %v7694_v6  ;;  %v5528_v52 = vpop.f32.mrf.mxu2 }
 0xb47   :  { %8406 = vpow2.f32 %v7695_v17  ;;  %v5305_v4 = vpop.f32.mrf.mxu3  ;;  %v5504_v10 = vpop.f32.mrf.mxu0  ;;  %v5529_v9 = vadd.f32 %v5528_v52, %v5361_v63 }
 0xb48   :  { %v10610_v20 = vadd.f32 %v8244_v53, %v5305_v4  ;;  %v5517_v47 = vpop.f32.mrf.mxu1  ;;  %8408 = vpow2.f32 %v3542_v43 }
 0xb49   :  { %v8245_v47 = vld [vmem:[#allocation14] ss:$0 sm:$0xff] }
 0xb4a   :  { %5309 = vmax.xlane.f32.xlu0 %v10610_v20 }
 0xb4c   :  { %v8405_v40 = vpop.eup %8404 }
 0xb4d   :  { %v8407_v22 = vpop.eup %8406  ;;  %v5536_v11 = vadd.f32 1.0, %v8405_v40 }
 0xb4e   :  { %v5556_v30 = vadd.f32 1.0, %v8407_v22  ;;  %v5530_v21 = vpop.f32.mrf.mxu2  ;;  %v8409_v49 = vpop.eup %8408 }
 0xb4f   :  { %8410 = vrcp.f32 %v5536_v11  ;;  %v5307_v34 = vpop.f32.mrf.mxu3  ;;  %v5548_v58 = vand.u32 2147483648, %v5536_v11  ;;  %v5546_v26 = vand.u32 2147483647, %v5536_v11  ;;  %vm5542_vm9 = vweird.f32 %v5536_v11 }
 0xb50   :  { %8412 = vrcp.f32 %v5556_v30  ;;  %v5568_v60 = vand.u32 2147483648, %v5556_v30  ;;  %vm5562_vm13 = vweird.f32 %v5556_v30  ;;  %v5566_v0 = vand.u32 2147483647, %v5556_v30 }
 0xb51   :  { %8414 = vpow2.f32 %v4604_v1  ;;  %v5549_v8 = vor.u32 1.1754944e-38, %v5548_v58  ;;  %vm5547_vm11 = vcmp.eq.f32.partialorder %v5546_v26, 8.507059e+37 }
 0xb52   :  { %3544 = vadd.xlane.f32.xlu0 %v8409_v49  ;;  %v5569_v31 = vor.u32 1.1754944e-38, %v5568_v60  ;;  %vm5567_vm15 = vcmp.eq.f32.partialorder %v5566_v0, 8.507059e+37 }
 0xb55   :  { %v8411_v61 = vpop.eup %8410 }
 0xb56   :  { %v8413_v36 = vpop.eup %8412  ;;  %v5538_v18 = vmul.f32 %v8411_v61, %v5536_v11  ;;  %vm5543_vm8 = vweird.f32 %v8411_v61 }
 0xb57   :  { %v5558_v24 = vmul.f32 %v8413_v36, %v5556_v30  ;;  %v8415_v13 = vpop.eup %8414  ;;  %vm5544_vm10 = vmor %vm5542_vm9, %vm5543_vm8  ;;  %vm5563_vm12 = vweird.f32 %v8413_v36 }
 0xb58   :  { %v5539_v12 = vsub.f32 1.0, %v5538_v18  ;;  %vm5564_vm14 = vmor %vm5562_vm13, %vm5563_vm12 }
 0xb59   :  { %v5559_v14 = vsub.f32 1.0, %v5558_v24 }
 0xb5a   :  { %v5540_v7 = vmul.f32 %v8411_v61, %v5539_v12  ;;  %4606 = vadd.xlane.f32.xlu0 %v8415_v13 }
 0xb5b   :  { %v5560_v50 = vmul.f32 %v8413_v36, %v5559_v14 }
 0xb5c   :  { %v5541_v16 = vadd.f32 %v8411_v61, %v5540_v7 }
 0xb5d   :  { %v5561_v3 = vadd.f32 %v8413_v36, %v5560_v50 }
 0xb5e   :  { %v5545_v19 = vsel %vm5544_vm10, %v8411_v61, %v5541_v16 }
 0xb5f   :  { %v5550_v62 = vsel %vm5547_vm11, %v5549_v8, %v5545_v19  ;;  %v5565_v33 = vsel %vm5564_vm14, %v8413_v36, %v5561_v3 }
 0xb60   :  { %v5572_v41 = vmul.f32 %v5550_v62, %v5529_v9  ;;  %v5570_v5 = vsel %vm5567_vm15, %v5569_v31, %v5565_v33 }
 0xb61   :  { %v5575_v37 = vsub.f32 1.0, %v5570_v5  ;;  %v5577_v59 = vmul.f32 %v5570_v5, %v10564_v25 }
 0xb62   :  { %v5573_v51 = vadd.f32 %v5572_v41, %v2801_v15 }
 0xb64   :  { %8416 = vtanh.f32 %v5573_v51 }
 0xb6a   :  { %v8417_v27 = vpop.eup %8416 }
 0xb6b   :  { %v5576_v23 = vmul.f32 %v8417_v27, %v5575_v37 }
 0xb6d   :  { %v5578_v45 = vadd.f32 %v5577_v59, %v5576_v23 }
 0xb6f   :  { %v5580_v55 = vadd.f32 %v5578_v45, %v8792_v56 }
 0xb71   :  { %v5581_v35 = vpack.c.bf16 %v5580_v55, %v5580_v55 }
 0xb73   :  { %5658 = vmatmul.bf16.vlgmr.msrb.gmra.mxu3 %v5581_v35 }
 0xbbd   :  { %v5310_v44 = vpop.xlane.xlu0 %5309 }
 0xbbe   :  { %v5311_v32 = vsub.f32 %v10610_v20, %v5310_v44  ;;  %v3895_v20 = vsub.f32 %v9907_v46, %v10448_v57 }
 0xbc0   :  { %v5312_v6 = vmul.f32 1.442695, %v5311_v32  ;;  %v3896_v2 = vmul.f32 1.442695, %v3895_v20 }
 0xbc2   :  { %8418 = vpow2.f32 %v5312_v6 }
 0xbc5   :  { %v3545_v17 = vpop.xlane.xlu0 %3544 }
 0xbc6   :  { %8420 = vlog2.f32 %v3545_v17 }
 0xbc8   :  { %v8419_v53 = vpop.eup %8418 }
 0xbc9   :  { %5314 = vadd.xlane.f32.xlu2 %v8419_v53 }
 0xbcc   :  { %v8421_v52 = vpop.eup %8420 }
 0xbcd   :  { %v3547_v54 = vmul.f32 0.6931472, %v8421_v52  ;;  %v4607_v43 = vpop.xlane.xlu0 %4606 }
 0xbce   :  { %8422 = vlog2.f32 %v4607_v43 }
 0xbcf   :  { %v3548_v25 = vsub.f32 %v10604_v38, %v3547_v54  ;;  %8424 = vpow2.f32 %v3896_v2  ;;  %v4957_v38 = vsub.f32 %v10498_v42, %v10570_v28 }
 0xbd1   :  { %6942 = vst [vmem:[%s10667_s11 + $0x30] sm:$0xff] %v3548_v25  ;;  %v4958_v11 = vmul.f32 1.442695, %v4957_v38 }
 0xbd3   :  { %8426 = vpow2.f32 %v4958_v11 }
 0xbd4   :  { %v8423_v56 = vpop.eup %8422 }
 0xbd5   :  { %v4609_v4 = vmul.f32 0.6931472, %v8423_v56  ;;  %v8425_v30 = vpop.eup %8424 }
 0xbd7   :  { %v4610_v10 = vsub.f32 %v10617_v48, %v4609_v4 }
 0xbd9   :  { %7335 = vst [vmem:[%s10667_s11 + $0x18] sm:$0xff] %v4610_v10  ;;  %v8427_v48 = vpop.eup %8426 }
 0xbf6   :  { %v5659_v40 = vpop.f32.mrf.mxu3 }
 0xbf7   :  { %v5660_v22 = vadd.f32 %v8245_v47, %v5659_v40 }
 0xbf9   :  { %5663 = vmax.xlane.f32.xlu1 %v5660_v22 }
 0xbfe   :  { %v5661_v29 = vpop.f32.mrf.mxu3 }
 0xc01   :  { %3898 = vadd.xlane.f32.xlu1 %v8425_v30 }
 0xc09   :  { %4960 = vadd.xlane.f32.xlu1 %v8427_v48 }
 0xc3c   :  { %v5315_v21 = vpop.xlane.xlu2 %5314 }
 0xc3d   :  { %8428 = vlog2.f32 %v5315_v21 }
 0xc43   :  { %v8429_v1 = vpop.eup %8428 }
 0xc44   :  { %v5317_v46 = vmul.f32 0.6931472, %v8429_v1 }
 0xc46   :  { %v5318_v57 = vsub.f32 %v5311_v32, %v5317_v46 }
 0xc48   :  { %7597 = vst [vmem:[%s10667_s11 + $0x8] sm:$0xff] %v5318_v57 }
 0xc6c   :  { %v5664_v34 = vpop.xlane.xlu1 %5663 }
 0xc6d   :  { %v5665_v39 = vsub.f32 %v5660_v22, %v5664_v34 }
 0xc6f   :  { %v5666_v49 = vmul.f32 1.442695, %v5665_v39 }
 0xc71   :  { %8430 = vpow2.f32 %v5666_v49 }
 0xc74   :  { %v3899_v42 = vpop.xlane.xlu1 %3898 }
 0xc75   :  { %8432 = vlog2.f32 %v3899_v42 }
 0xc77   :  { %v8431_v28 = vpop.eup %8430 }
 0xc78   :  { %5668 = vadd.xlane.f32.xlu0 %v8431_v28 }
 0xc7b   :  { %v8433_v61 = vpop.eup %8432 }
 0xc7c   :  { %v3901_v36 = vmul.f32 0.6931472, %v8433_v61  ;;  %v4961_v18 = vpop.xlane.xlu1 %4960 }
 0xc7d   :  { %8434 = vlog2.f32 %v4961_v18 }
 0xc7e   :  { %v3902_v24 = vsub.f32 %v3895_v20, %v3901_v36 }
 0xc80   :  { %7073 = vst [vmem:[%s10667_s11 + $0x28] sm:$0xff] %v3902_v24 }
 0xc83   :  { %v8435_v12 = vpop.eup %8434 }
 0xc84   :  { %v4963_v13 = vmul.f32 0.6931472, %v8435_v12 }
 0xc86   :  { %v4964_v14 = vsub.f32 %v4957_v38, %v4963_v13 }
 0xc88   :  { %7466 = vst [vmem:[%s10667_s11 + $0x10] sm:$0xff] %v4964_v14 }
 0xceb   :  { %v5669_v58 = vpop.xlane.xlu0 %5668 }
 0xcec   :  { %8436 = vlog2.f32 %v5669_v58 }
 0xcf2   :  { %v8437_v63 = vpop.eup %8436 }
 0xcf3   :  { %v5671_v7 = vmul.f32 0.6931472, %v8437_v63 }
 0xcf5   :  { %v5672_v26 = vsub.f32 %v5665_v39, %v5671_v7 }
 0xcf7   :  { %5673 = vst [vmem:[%s10667_s11] sm:$0xff] %v5672_v26 }
 0xcf8   :  { %5678 = vsyncpa [#allocation5], 1 }
 0xcf9   :  { %5679 = vsyncpa [#allocation7], 1 }
 0xcfa   :  { %5680 = vsyncpa [#allocation10], 1 }
 0xcfb   :  { %5681 = vsyncpa [#allocation13], 1 }

</bundles_post_ra>
